<compile_context>
chip_gen: v7x
topology: tpu7x:2x2x1
jax: 0.10.0
libtpu: 0.0.40
codegen_flags: <defaults>
</compile_context>

<pallas_src>
import jax
import jax.numpy as jnp
import numpy as np
from jax.experimental import pallas as pl
from jax.experimental.pallas import tpu as pltpu

D = 768          # hidden size (from nn.Linear(2*768, 768))
FP_DIM = 2048    # Morgan fingerprint length
NODE_F = 128     # graph node feature dim
VOCAB = 64       # small SMILES char vocab

TM_MAX = 512                      # rows per grid step (v6e-friendly cap)
VMEM_LIMIT = 32 * 1024 * 1024     # explicit scoped-VMEM budget (v7x-safe)


def _round_up(x, m):
    return (x + m - 1) // m * m


def _plan_tm(m):
    """Row tile: align to 16 (bf16 sublane pack); ensure >=2 grid steps at
    large M so v7x's second TensorCore gets work; cap at TM_MAX."""
    mp = _round_up(m, 16)
    if mp <= 256:
        return mp                      # tiny M: single (partial) block
    return min(TM_MAX, _round_up(-(-mp // 2), 256))


def _row_spec(tm, k):
    return pl.BlockSpec((tm, k), lambda i: (i, 0))


def _resident_spec(shape):
    """Grid-invariant operand (constant index_map): single-buffer it."""
    return pl.BlockSpec(shape, lambda i: tuple(0 for _ in shape),
                        pipeline_mode=pl.Buffered(1))


# ----------------------------------------------------------------------------
# Kernel 1: bert-CLS MLP (gelu) + FpEncoder MLP (relu), fused in one call.
# Full-K / full-N blocks, M-only grid, f32 MXU accumulate, bf16 streaming.
# ----------------------------------------------------------------------------
def _text_fp_kernel(cls_ref, fp_ref,
                    bw1_ref, bb1_ref, bw2_ref, bb2_ref,
                    fw1_ref, fb1_ref, fw2_ref, fb2_ref,
                    cls_o_ref, fp_o_ref):
    # --- SmilesEncoder head: gelu(x @ w1 + b1) @ w2 + b2
    # NOTE: jax.nn.gelu is the tanh approximation (PyTorch nn.GELU defaults to
    # exact erf) -- small documented numeric mismatch; tanh lands on the EUP.
    h = jnp.dot(cls_ref[...], bw1_ref[...],
                preferred_element_type=jnp.float32) + bb1_ref[...]
    h = jax.nn.gelu(h)                               # f32 epilogue (v5e-safe)
    y = jnp.dot(h.astype(bw2_ref.dtype), bw2_ref[...],
                preferred_element_type=jnp.float32) + bb2_ref[...]
    cls_o_ref[...] = y.astype(cls_o_ref.dtype)

    # --- FpEncoder: fingerprints arrive f32; cast to bf16 per tile here
    # (strictly less HBM traffic than a standalone wrapper cast op).
    x = fp_ref[...].astype(fw1_ref.dtype)
    h = jnp.dot(x, fw1_ref[...],
                preferred_element_type=jnp.float32) + fb1_ref[...]
    h = jnp.maximum(h, 0.0)
    y = jnp.dot(h.astype(fw2_ref.dtype), fw2_ref[...],
                preferred_element_type=jnp.float32) + fb2_ref[...]
    fp_o_ref[...] = y.astype(fp_o_ref.dtype)


def text_fp_forward(params, cls_tok, fingerprints):
    m = cls_tok.shape[0]
    tm = _plan_tm(m)
    grid = (pl.cdiv(m, tm),)

    flops = 2 * m * (2 * D * D) + 2 * m * (FP_DIM * D + D * D)
    bytes_acc = (m * D * 2 + m * FP_DIM * 4
                 + (3 * D * D + FP_DIM * D) * 2 + 4 * D * 4
                 + 2 * m * D * 2)

    cls_out, fp_out = pl.pallas_call(
        _text_fp_kernel,
        out_shape=(jax.ShapeDtypeStruct((m, D), jnp.bfloat16),
                   jax.ShapeDtypeStruct((m, D), jnp.bfloat16)),
        grid_spec=pltpu.PrefetchScalarGridSpec(
            num_scalar_prefetch=0,
            grid=grid,
            in_specs=[
                _row_spec(tm, D),                      # CLS token embeddings
                _row_spec(tm, FP_DIM),                 # fingerprints (f32)
                _resident_spec((D, D)), _resident_spec((1, D)),
                _resident_spec((D, D)), _resident_spec((1, D)),
                _resident_spec((FP_DIM, D)), _resident_spec((1, D)),
                _resident_spec((D, D)), _resident_spec((1, D)),
            ],
            out_specs=[_row_spec(tm, D), _row_spec(tm, D)],
        ),
        compiler_params=pltpu.CompilerParams(
            dimension_semantics=("parallel",),
            vmem_limit_bytes=VMEM_LIMIT,
        ),
        cost_estimate=pl.CostEstimate(
            flops=flops, transcendentals=m * D, bytes_accessed=bytes_acc),
    )(cls_tok, fingerprints,
      params["bert_w1"], params["bert_b1"], params["bert_w2"], params["bert_b2"],
      params["fp_w1"], params["fp_b1"], params["fp_w2"], params["fp_b2"])
    return cls_out, fp_out


# ----------------------------------------------------------------------------
# Kernel 2: fused graph tail, gridded over batch.
#   msg = adj @ nodes ; h = relu(msg @ g_w + g_b) ; pool = [mean(h), max(h)]
#   out = pool @ mid_w + mid_b     (concat avoided by splitting mid_w)
# Node activations [Na, 768] live only in VMEM/vregs -- no HBM round-trip.
# ----------------------------------------------------------------------------
def _graph_tail_kernel(adj_ref, nodes_ref, gw_ref, gb_ref, mw_ref, mb_ref,
                       o_ref):
    nodes = nodes_ref[0]                               # (Na, F) bf16
    adj = adj_ref[0].astype(nodes.dtype)               # (Na, Na) 0/1, exact
    msg = jnp.dot(adj, nodes, preferred_element_type=jnp.float32)     # (Na, F)
    h = jnp.dot(msg.astype(gw_ref.dtype), gw_ref[...],
                preferred_element_type=jnp.float32) + gb_ref[...]     # (Na, D)
    h = jnp.maximum(h, 0.0)
    # TODO(synk): a real GraphEncoder with padded atoms must divide the mean by
    #             the true atom count and mask pads out of the max; the
    #             synthetic inputs here have no atom padding.
    mean_p = jnp.mean(h, axis=0, keepdims=True)        # (1, D) f32
    max_p = jnp.max(h, axis=0, keepdims=True)          # (1, D) f32
    d = gw_ref.shape[1]
    y = (jnp.dot(mean_p.astype(mw_ref.dtype), mw_ref[0:d, :],
                 preferred_element_type=jnp.float32)
         + jnp.dot(max_p.astype(mw_ref.dtype), mw_ref[d:2 * d, :],
                   preferred_element_type=jnp.float32)
         + mb_ref[...])
    o_ref[0] = y.astype(o_ref.dtype)


def graph_tail_forward(params, graph_adj, graph_nodes):
    B, Na, F = graph_nodes.shape

    flops = 2 * B * (Na * Na * F + Na * F * D + 2 * D * D)
    bytes_acc = (B * Na * Na * 4 + B * Na * F * 2
                 + (F * D + 2 * D * D) * 2 + 2 * D * 4 + B * D * 2)

    out = pl.pallas_call(
        _graph_tail_kernel,
        out_shape=jax.ShapeDtypeStruct((B, 1, D), jnp.bfloat16),
        grid_spec=pltpu.PrefetchScalarGridSpec(
            num_scalar_prefetch=0,
            grid=(B,),
            in_specs=[
                pl.BlockSpec((1, Na, Na), lambda b: (b, 0, 0)),  # adjacency
                pl.BlockSpec((1, Na, F), lambda b: (b, 0, 0)),   # node feats
                _resident_spec((F, D)),
                _resident_spec((1, D)),
                _resident_spec((2 * D, D)),
                _resident_spec((1, D)),
            ],
            out_specs=pl.BlockSpec((1, 1, D), lambda b: (b, 0, 0)),
        ),
        compiler_params=pltpu.CompilerParams(
            dimension_semantics=("parallel",),
            vmem_limit_bytes=VMEM_LIMIT,
        ),
        cost_estimate=pl.CostEstimate(
            flops=flops, transcendentals=0, bytes_accessed=bytes_acc),
    )(graph_adj, graph_nodes,
      params["g_w"], params["g_b"], params["mid_w"], params["mid_b"])
    return out.reshape(B, D)


# ----------------------------------------------------------------------------
# Deterministic parameter init (synthetic weights, no checkpoint load).
# Weights bf16 (half HBM streaming), biases f32 stored as (1, N).
# ----------------------------------------------------------------------------
def init_params(key, max_len=8):
    ks = jax.random.split(key, 8)
    s = 0.02

    def w(k, shape):
        return (jax.random.normal(k, shape, jnp.float32) * s).astype(jnp.bfloat16)

    def b(n):
        return jnp.zeros((1, n), jnp.float32)

    return {
        # simplified SmilesEncoder ("bert"): token+pos embedding, 2-layer MLP
        "tok_emb": w(ks[0], (VOCAB, D)),
        "pos_emb": w(ks[1], (max_len, D)),
        "bert_w1": w(ks[2], (D, D)), "bert_b1": b(D),
        "bert_w2": w(ks[3], (D, D)), "bert_b2": b(D),
        # FpEncoder: 2048 -> 768 -> 768
        "fp_w1": w(ks[4], (FP_DIM, D)), "fp_b1": b(D),
        "fp_w2": w(ks[5], (D, D)), "fp_b2": b(D),
        # GraphEncoder (MPNN-style): node feature -> 768 per node
        "g_w": w(ks[6], (NODE_F, D)), "g_b": b(D),
        # mid_liner_graph: nn.Linear(2*768, 768)
        "mid_w": w(ks[7], (2 * D, D)), "mid_b": b(D),
    }


# ----------------------------------------------------------------------------
# Forward pass mirroring MolecularEmbeddingModel.forward
# ----------------------------------------------------------------------------
def molecular_embedding_forward(params, input_ids, fingerprints,
                                graph_nodes, graph_adj):
    # --- self.bert(input_ids); downstream consumes only logits[:, 0, :].
    # The synthetic encoder is a per-token MLP (no cross-token mixing), so
    # pushing only the CLS rows through it equals computing all tokens and
    # slicing row 0 -- and ~L x cheaper.
    # TODO(synk): a real SmilesEncoder with self-attention needs all tokens.
    cls_tok = params["tok_emb"][input_ids[:, 0]] + params["pos_emb"][0][None, :]

    # --- bert-CLS MLP + self.fp_embedding fused into one pallas_call.
    cls_output, fp_embedding = text_fp_forward(params, cls_tok, fingerprints)

    # --- self.graph_embedding(...) + self.mid_liner_graph fused in one call.
    graph_embedding = graph_tail_forward(params, graph_adj, graph_nodes)

    return cls_output, fp_embedding, graph_embedding


# ----------------------------------------------------------------------------
# Pure-JAX reference (same mixed precision) for a correctness check.
# ----------------------------------------------------------------------------
def _reference_forward(params, input_ids, fingerprints, graph_nodes, graph_adj):
    f32, bf16 = jnp.float32, jnp.bfloat16
    cls_tok = params["tok_emb"][input_ids[:, 0]] + params["pos_emb"][0][None, :]
    h = jnp.dot(cls_tok.astype(f32), params["bert_w1"].astype(f32)) + params["bert_b1"]
    h = jax.nn.gelu(h).astype(bf16)
    cls_out = (jnp.dot(h.astype(f32), params["bert_w2"].astype(f32))
               + params["bert_b2"]).astype(bf16)

    x = fingerprints.astype(bf16)
    h = jnp.dot(x.astype(f32), params["fp_w1"].astype(f32)) + params["fp_b1"]
    h = jnp.maximum(h, 0.0).astype(bf16)
    fp_out = (jnp.dot(h.astype(f32), params["fp_w2"].astype(f32))
              + params["fp_b2"]).astype(bf16)

    adj = graph_adj.astype(bf16).astype(f32)
    msg = jnp.einsum("bij,bjf->bif", adj, graph_nodes.astype(f32)).astype(bf16)
    h = jnp.einsum("bif,fd->bid", msg.astype(f32),
                   params["g_w"].astype(f32)) + params["g_b"]
    h = jnp.maximum(h, 0.0)
    pooled = jnp.concatenate([h.mean(axis=1), h.max(axis=1)], axis=-1).astype(bf16)
    g_out = (jnp.dot(pooled.astype(f32), params["mid_w"].astype(f32))
             + params["mid_b"]).astype(bf16)
    return cls_out, fp_out, g_out


if __name__ == "__main__":
    B, L, N_ATOMS = 2, 8, 16

    key = jax.random.PRNGKey(0)
    k_par, k_ids, k_fp, k_nodes, k_adj = jax.random.split(key, 5)

    params = init_params(k_par, max_len=L)

    input_ids = jax.random.randint(k_ids, (B, L), 0, VOCAB, dtype=jnp.int32)
    fingerprints = (
        jax.random.bernoulli(k_fp, 0.1, (B, FP_DIM)).astype(jnp.float32)
    )
    graph_nodes = jax.random.normal(
        k_nodes, (B, N_ATOMS, NODE_F), jnp.float32).astype(jnp.bfloat16)
    adj_raw = jax.random.bernoulli(k_adj, 0.3, (B, N_ATOMS, N_ATOMS))
    graph_adj = (adj_raw | jnp.swapaxes(adj_raw, 1, 2)).astype(jnp.float32)

    fwd = jax.jit(molecular_embedding_forward)
    cls_out, fp_emb, graph_emb = fwd(
        params, input_ids, fingerprints, graph_nodes, graph_adj
    )
    jax.block_until_ready((cls_out, fp_emb, graph_emb))

    assert cls_out.shape == (B, D)
    assert fp_emb.shape == (B, D)
    assert graph_emb.shape == (B, D)

    # Correctness vs a pure-JAX reference in the same mixed precision
    # (bf16 weights/activations -> loose tolerance, documented deviation
    # vs an f32 PyTorch reference).
    ref = jax.jit(_reference_forward)(
        params, input_ids, fingerprints, graph_nodes, graph_adj)
    for got, want in zip((cls_out, fp_emb, graph_emb), ref):
        np.testing.assert_allclose(np.asarray(got, np.float32),
                                   np.asarray(want, np.float32),
                                   rtol=5e-2, atol=5e-2)

    print("KERNEL_OK")
</pallas_src>

<mosaic_0001>
module attributes {stable_mosaic.version = 11 : i64} {
  func.func @_text_fp_kernel(%arg0: i32, %arg1: memref<16x768xbf16, #tpu.memory_space<vmem>>, %arg2: memref<16x2048xf32, #tpu.memory_space<vmem>>, %arg3: memref<768x768xbf16, #tpu.memory_space<vmem>>, %arg4: memref<1x768xf32, #tpu.memory_space<vmem>>, %arg5: memref<768x768xbf16, #tpu.memory_space<vmem>>, %arg6: memref<1x768xf32, #tpu.memory_space<vmem>>, %arg7: memref<2048x768xbf16, #tpu.memory_space<vmem>>, %arg8: memref<1x768xf32, #tpu.memory_space<vmem>>, %arg9: memref<768x768xbf16, #tpu.memory_space<vmem>>, %arg10: memref<1x768xf32, #tpu.memory_space<vmem>>, %arg11: memref<16x768xbf16, #tpu.memory_space<vmem>>, %arg12: memref<16x768xbf16, #tpu.memory_space<vmem>>) attributes {dimension_semantics = [#tpu.dimension_semantics<parallel>], iteration_bounds = array<i64: 1>, scalar_prefetch = 0 : i64, scratch_operands = 0 : i64, tpu.core_type = #tpu.core_type<tc>, window_params = [{transform_indices = @transform_0, window_bounds = array<i64: 16, 768>}, {transform_indices = @transform_1, window_bounds = array<i64: 16, 2048>}, {pipeline_mode = #tpu.pipeline_mode<synchronous>, transform_indices = @transform_2, window_bounds = array<i64: 768, 768>}, {pipeline_mode = #tpu.pipeline_mode<synchronous>, transform_indices = @transform_3, window_bounds = array<i64: 1, 768>}, {pipeline_mode = #tpu.pipeline_mode<synchronous>, transform_indices = @transform_4, window_bounds = array<i64: 768, 768>}, {pipeline_mode = #tpu.pipeline_mode<synchronous>, transform_indices = @transform_5, window_bounds = array<i64: 1, 768>}, {pipeline_mode = #tpu.pipeline_mode<synchronous>, transform_indices = @transform_6, window_bounds = array<i64: 2048, 768>}, {pipeline_mode = #tpu.pipeline_mode<synchronous>, transform_indices = @transform_7, window_bounds = array<i64: 1, 768>}, {pipeline_mode = #tpu.pipeline_mode<synchronous>, transform_indices = @transform_8, window_bounds = array<i64: 768, 768>}, {pipeline_mode = #tpu.pipeline_mode<synchronous>, transform_indices = @transform_9, window_bounds = array<i64: 1, 768>}, {transform_indices = @transform_10, window_bounds = array<i64: 16, 768>}, {transform_indices = @transform_11, window_bounds = array<i64: 16, 768>}]} {
    %c0 = arith.constant 0 : index
    %c0_0 = arith.constant 0 : index
    %0 = vector.load %arg1[%c0, %c0_0] : memref<16x768xbf16, #tpu.memory_space<vmem>>, vector<16x768xbf16>
    %c0_1 = arith.constant 0 : index
    %c0_2 = arith.constant 0 : index
    %1 = vector.load %arg3[%c0_1, %c0_2] : memref<768x768xbf16, #tpu.memory_space<vmem>>, vector<768x768xbf16>
    %cst = arith.constant dense<0.000000e+00> : vector<16x768xf32>
    %2 = tpu.matmul %0, %1, %cst {dimension_numbers = #tpu.dot_dimension_numbers<[1], [0], [0], [1], [0, 0, 1, 1], [], []>} : vector<16x768xbf16>, vector<768x768xbf16>, vector<16x768xf32> -> vector<16x768xf32>
    %c0_3 = arith.constant 0 : index
    %c0_4 = arith.constant 0 : index
    %3 = vector.load %arg4[%c0_3, %c0_4] : memref<1x768xf32, #tpu.memory_space<vmem>>, vector<1x768xf32>
    %4 = vector.broadcast %3 : vector<1x768xf32> to vector<16x768xf32>
    %5 = arith.addf %2, %4 : vector<16x768xf32>
    %6 = arith.mulf %5, %5 : vector<16x768xf32>
    %7 = arith.mulf %5, %6 : vector<16x768xf32>
    %cst_5 = arith.constant 4.471500e-02 : f32
    %8 = vector.broadcast %cst_5 : f32 to vector<16x768xf32>
    %9 = arith.mulf %8, %7 : vector<16x768xf32>
    %10 = arith.addf %5, %9 : vector<16x768xf32>
    %cst_6 = arith.constant 0.797884583 : f32
    %11 = vector.broadcast %cst_6 : f32 to vector<16x768xf32>
    %12 = arith.mulf %11, %10 : vector<16x768xf32>
    %13 = math.tanh %12 : vector<16x768xf32>
    %cst_7 = arith.constant 1.000000e+00 : f32
    %14 = vector.broadcast %cst_7 : f32 to vector<16x768xf32>
    %15 = arith.addf %14, %13 : vector<16x768xf32>
    %cst_8 = arith.constant 5.000000e-01 : f32
    %16 = vector.broadcast %cst_8 : f32 to vector<16x768xf32>
    %17 = arith.mulf %16, %15 : vector<16x768xf32>
    %18 = arith.mulf %5, %17 : vector<16x768xf32>
    %19 = arith.truncf %18 : vector<16x768xf32> to vector<16x768xbf16>
    %c0_9 = arith.constant 0 : index
    %c0_10 = arith.constant 0 : index
    %20 = vector.load %arg5[%c0_9, %c0_10] : memref<768x768xbf16, #tpu.memory_space<vmem>>, vector<768x768xbf16>
    %cst_11 = arith.constant dense<0.000000e+00> : vector<16x768xf32>
    %21 = tpu.matmul %19, %20, %cst_11 {dimension_numbers = #tpu.dot_dimension_numbers<[1], [0], [0], [1], [0, 0, 1, 1], [], []>} : vector<16x768xbf16>, vector<768x768xbf16>, vector<16x768xf32> -> vector<16x768xf32>
    %c0_12 = arith.constant 0 : index
    %c0_13 = arith.constant 0 : index
    %22 = vector.load %arg6[%c0_12, %c0_13] : memref<1x768xf32, #tpu.memory_space<vmem>>, vector<1x768xf32>
    %23 = vector.broadcast %22 : vector<1x768xf32> to vector<16x768xf32>
    %24 = arith.addf %21, %23 : vector<16x768xf32>
    %25 = arith.truncf %24 : vector<16x768xf32> to vector<16x768xbf16>
    %c0_14 = arith.constant 0 : index
    %c0_15 = arith.constant 0 : index
    %26 = vector.load %arg11[%c0_14, %c0_15] : memref<16x768xbf16, #tpu.memory_space<vmem>>, vector<16x768xbf16>
    tpu.vector_store %arg11[%c0_14, %c0_15], %25 {strides = array<i32>} : memref<16x768xbf16, #tpu.memory_space<vmem>>, vector<16x768xbf16>,
    %c0_16 = arith.constant 0 : index
    %c0_17 = arith.constant 0 : index
    %27 = vector.load %arg2[%c0_16, %c0_17] : memref<16x2048xf32, #tpu.memory_space<vmem>>, vector<16x2048xf32>
    %28 = arith.truncf %27 : vector<16x2048xf32> to vector<16x2048xbf16>
    %c0_18 = arith.constant 0 : index
    %c0_19 = arith.constant 0 : index
    %29 = vector.load %arg7[%c0_18, %c0_19] : memref<2048x768xbf16, #tpu.memory_space<vmem>>, vector<2048x768xbf16>
    %cst_20 = arith.constant dense<0.000000e+00> : vector<16x768xf32>
    %30 = tpu.matmul %28, %29, %cst_20 {dimension_numbers = #tpu.dot_dimension_numbers<[1], [0], [0], [1], [0, 0, 1, 1], [], []>} : vector<16x2048xbf16>, vector<2048x768xbf16>, vector<16x768xf32> -> vector<16x768xf32>
    %c0_21 = arith.constant 0 : index
    %c0_22 = arith.constant 0 : index
    %31 = vector.load %arg8[%c0_21, %c0_22] : memref<1x768xf32, #tpu.memory_space<vmem>>, vector<1x768xf32>
    %32 = vector.broadcast %31 : vector<1x768xf32> to vector<16x768xf32>
    %33 = arith.addf %30, %32 : vector<16x768xf32>
    %cst_23 = arith.constant 0.000000e+00 : f32
    %34 = vector.broadcast %cst_23 : f32 to vector<16x768xf32>
    %35 = arith.maximumf %33, %34 : vector<16x768xf32>
    %36 = arith.truncf %35 : vector<16x768xf32> to vector<16x768xbf16>
    %c0_24 = arith.constant 0 : index
    %c0_25 = arith.constant 0 : index
    %37 = vector.load %arg9[%c0_24, %c0_25] : memref<768x768xbf16, #tpu.memory_space<vmem>>, vector<768x768xbf16>
    %cst_26 = arith.constant dense<0.000000e+00> : vector<16x768xf32>
    %38 = tpu.matmul %36, %37, %cst_26 {dimension_numbers = #tpu.dot_dimension_numbers<[1], [0], [0], [1], [0, 0, 1, 1], [], []>} : vector<16x768xbf16>, vector<768x768xbf16>, vector<16x768xf32> -> vector<16x768xf32>
    %c0_27 = arith.constant 0 : index
    %c0_28 = arith.constant 0 : index
    %39 = vector.load %arg10[%c0_27, %c0_28] : memref<1x768xf32, #tpu.memory_space<vmem>>, vector<1x768xf32>
    %40 = vector.broadcast %39 : vector<1x768xf32> to vector<16x768xf32>
    %41 = arith.addf %38, %40 : vector<16x768xf32>
    %42 = arith.truncf %41 : vector<16x768xf32> to vector<16x768xbf16>
    %c0_29 = arith.constant 0 : index
    %c0_30 = arith.constant 0 : index
    %43 = vector.load %arg12[%c0_29, %c0_30] : memref<16x768xbf16, #tpu.memory_space<vmem>>, vector<16x768xbf16>
    tpu.vector_store %arg12[%c0_29, %c0_30], %42 {strides = array<i32>} : memref<16x768xbf16, #tpu.memory_space<vmem>>, vector<16x768xbf16>,
    return
  }
  func.func @transform_0(%arg0: i32) -> (i32, i32) {
    %c0_i32 = arith.constant 0 : i32
    %c0_i32_0 = arith.constant 0 : i32
    return %arg0, %c0_i32 : i32, i32
  }
  func.func @transform_1(%arg0: i32) -> (i32, i32) {
    %c0_i32 = arith.constant 0 : i32
    %c0_i32_0 = arith.constant 0 : i32
    return %arg0, %c0_i32 : i32, i32
  }
  func.func @transform_2(%arg0: i32) -> (i32, i32) {
    %c0_i32 = arith.constant 0 : i32
    %c0_i32_0 = arith.constant 0 : i32
    %c0_i32_1 = arith.constant 0 : i32
    return %c0_i32, %c0_i32_0 : i32, i32
  }
  func.func @transform_3(%arg0: i32) -> (i32, i32) {
    %c0_i32 = arith.constant 0 : i32
    %c0_i32_0 = arith.constant 0 : i32
    %c0_i32_1 = arith.constant 0 : i32
    return %c0_i32, %c0_i32_0 : i32, i32
  }
  func.func @transform_4(%arg0: i32) -> (i32, i32) {
    %c0_i32 = arith.constant 0 : i32
    %c0_i32_0 = arith.constant 0 : i32
    %c0_i32_1 = arith.constant 0 : i32
    return %c0_i32, %c0_i32_0 : i32, i32
  }
  func.func @transform_5(%arg0: i32) -> (i32, i32) {
    %c0_i32 = arith.constant 0 : i32
    %c0_i32_0 = arith.constant 0 : i32
    %c0_i32_1 = arith.constant 0 : i32
    return %c0_i32, %c0_i32_0 : i32, i32
  }
  func.func @transform_6(%arg0: i32) -> (i32, i32) {
    %c0_i32 = arith.constant 0 : i32
    %c0_i32_0 = arith.constant 0 : i32
    %c0_i32_1 = arith.constant 0 : i32
    return %c0_i32, %c0_i32_0 : i32, i32
  }
  func.func @transform_7(%arg0: i32) -> (i32, i32) {
    %c0_i32 = arith.constant 0 : i32
    %c0_i32_0 = arith.constant 0 : i32
    %c0_i32_1 = arith.constant 0 : i32
    return %c0_i32, %c0_i32_0 : i32, i32
  }
  func.func @transform_8(%arg0: i32) -> (i32, i32) {
    %c0_i32 = arith.constant 0 : i32
    %c0_i32_0 = arith.constant 0 : i32
    %c0_i32_1 = arith.constant 0 : i32
    return %c0_i32, %c0_i32_0 : i32, i32
  }
  func.func @transform_9(%arg0: i32) -> (i32, i32) {
    %c0_i32 = arith.constant 0 : i32
    %c0_i32_0 = arith.constant 0 : i32
    %c0_i32_1 = arith.constant 0 : i32
    return %c0_i32, %c0_i32_0 : i32, i32
  }
  func.func @transform_10(%arg0: i32) -> (i32, i32) {
    %c0_i32 = arith.constant 0 : i32
    %c0_i32_0 = arith.constant 0 : i32
    return %arg0, %c0_i32 : i32, i32
  }
  func.func @transform_11(%arg0: i32) -> (i32, i32) {
    %c0_i32 = arith.constant 0 : i32
    %c0_i32_0 = arith.constant 0 : i32
    return %arg0, %c0_i32 : i32, i32
  }
}

module attributes {stable_mosaic.version = 11 : i64} {
  func.func @_graph_tail_kernel(%arg0: i32, %arg1: memref<1x16x16xf32, #tpu.memory_space<vmem>>, %arg2: memref<1x16x128xbf16, #tpu.memory_space<vmem>>, %arg3: memref<128x768xbf16, #tpu.memory_space<vmem>>, %arg4: memref<1x768xf32, #tpu.memory_space<vmem>>, %arg5: memref<1536x768xbf16, #tpu.memory_space<vmem>>, %arg6: memref<1x768xf32, #tpu.memory_space<vmem>>, %arg7: memref<1x1x768xbf16, #tpu.memory_space<vmem>>) attributes {dimension_semantics = [#tpu.dimension_semantics<parallel>], iteration_bounds = array<i64: 2>, scalar_prefetch = 0 : i64, scratch_operands = 0 : i64, tpu.core_type = #tpu.core_type<tc>, window_params = [{transform_indices = @transform_0, window_bounds = array<i64: 1, 16, 16>}, {transform_indices = @transform_1, window_bounds = array<i64: 1, 16, 128>}, {pipeline_mode = #tpu.pipeline_mode<synchronous>, transform_indices = @transform_2, window_bounds = array<i64: 128, 768>}, {pipeline_mode = #tpu.pipeline_mode<synchronous>, transform_indices = @transform_3, window_bounds = array<i64: 1, 768>}, {pipeline_mode = #tpu.pipeline_mode<synchronous>, transform_indices = @transform_4, window_bounds = array<i64: 1536, 768>}, {pipeline_mode = #tpu.pipeline_mode<synchronous>, transform_indices = @transform_5, window_bounds = array<i64: 1, 768>}, {transform_indices = @transform_6, window_bounds = array<i64: 1, 1, 768>}]} {
    %c0 = arith.constant 0 : index
    %c0_0 = arith.constant 0 : index
    %c0_1 = arith.constant 0 : index
    %0 = vector.load %arg2[%c0, %c0_0, %c0_1] : memref<1x16x128xbf16, #tpu.memory_space<vmem>>, vector<1x16x128xbf16>
    %1 = vector.shape_cast %0 : vector<1x16x128xbf16> to vector<16x128xbf16>
    %c0_2 = arith.constant 0 : index
    %c0_3 = arith.constant 0 : index
    %c0_4 = arith.constant 0 : index
    %2 = vector.load %arg1[%c0_2, %c0_3, %c0_4] : memref<1x16x16xf32, #tpu.memory_space<vmem>>, vector<1x16x16xf32>
    %3 = vector.shape_cast %2 : vector<1x16x16xf32> to vector<16x16xf32>
    %4 = arith.truncf %3 : vector<16x16xf32> to vector<16x16xbf16>
    %cst = arith.constant dense<0.000000e+00> : vector<16x128xf32>
    %5 = tpu.matmul %4, %1, %cst {dimension_numbers = #tpu.dot_dimension_numbers<[1], [0], [0], [1], [0, 0, 1, 1], [], []>} : vector<16x16xbf16>, vector<16x128xbf16>, vector<16x128xf32> -> vector<16x128xf32>
    %6 = arith.truncf %5 : vector<16x128xf32> to vector<16x128xbf16>
    %c0_5 = arith.constant 0 : index
    %c0_6 = arith.constant 0 : index
    %7 = vector.load %arg3[%c0_5, %c0_6] : memref<128x768xbf16, #tpu.memory_space<vmem>>, vector<128x768xbf16>
    %cst_7 = arith.constant dense<0.000000e+00> : vector<16x768xf32>
    %8 = tpu.matmul %6, %7, %cst_7 {dimension_numbers = #tpu.dot_dimension_numbers<[1], [0], [0], [1], [0, 0, 1, 1], [], []>} : vector<16x128xbf16>, vector<128x768xbf16>, vector<16x768xf32> -> vector<16x768xf32>
    %c0_8 = arith.constant 0 : index
    %c0_9 = arith.constant 0 : index
    %9 = vector.load %arg4[%c0_8, %c0_9] : memref<1x768xf32, #tpu.memory_space<vmem>>, vector<1x768xf32>
    %10 = vector.broadcast %9 : vector<1x768xf32> to vector<16x768xf32>
    %11 = arith.addf %8, %10 : vector<16x768xf32>
    %cst_10 = arith.constant 0.000000e+00 : f32
    %12 = vector.broadcast %cst_10 : f32 to vector<16x768xf32>
    %13 = arith.maximumf %11, %12 : vector<16x768xf32>
    %cst_11 = arith.constant dense<0.000000e+00> : vector<768xf32>
    %14 = vector.multi_reduction <add>, %13, %cst_11 [0] : vector<16x768xf32> to vector<768xf32>
    %15 = vector.shape_cast %14 : vector<768xf32> to vector<1x768xf32>
    %cst_12 = arith.constant 1.600000e+01 : f32
    %16 = vector.broadcast %cst_12 : f32 to vector<1x768xf32>
    %17 = arith.divf %15, %16 : vector<1x768xf32>
    %cst_13 = arith.constant dense<0xFF800000> : vector<768xf32>
    %18 = vector.multi_reduction <maximumf>, %13, %cst_13 [0] : vector<16x768xf32> to vector<768xf32>
    %19 = vector.shape_cast %18 : vector<768xf32> to vector<1x768xf32>
    %20 = arith.truncf %17 : vector<1x768xf32> to vector<1x768xbf16>
    %c0_14 = arith.constant 0 : index
    %c0_15 = arith.constant 0 : index
    %21 = vector.load %arg5[%c0_14, %c0_15] : memref<1536x768xbf16, #tpu.memory_space<vmem>>, vector<768x768xbf16>
    %cst_16 = arith.constant dense<0.000000e+00> : vector<1x768xf32>
    %22 = tpu.matmul %20, %21, %cst_16 {dimension_numbers = #tpu.dot_dimension_numbers<[1], [0], [0], [1], [0, 0, 1, 1], [], []>} : vector<1x768xbf16>, vector<768x768xbf16>, vector<1x768xf32> -> vector<1x768xf32>
    %23 = arith.truncf %19 : vector<1x768xf32> to vector<1x768xbf16>
    %c768 = arith.constant 768 : index
    %c0_17 = arith.constant 0 : index
    %24 = vector.load %arg5[%c768, %c0_17] : memref<1536x768xbf16, #tpu.memory_space<vmem>>, vector<768x768xbf16>
    %cst_18 = arith.constant dense<0.000000e+00> : vector<1x768xf32>
    %25 = tpu.matmul %23, %24, %cst_18 {dimension_numbers = #tpu.dot_dimension_numbers<[1], [0], [0], [1], [0, 0, 1, 1], [], []>} : vector<1x768xbf16>, vector<768x768xbf16>, vector<1x768xf32> -> vector<1x768xf32>
    %26 = arith.addf %22, %25 : vector<1x768xf32>
    %c0_19 = arith.constant 0 : index
    %c0_20 = arith.constant 0 : index
    %27 = vector.load %arg6[%c0_19, %c0_20] : memref<1x768xf32, #tpu.memory_space<vmem>>, vector<1x768xf32>
    %28 = arith.addf %26, %27 : vector<1x768xf32>
    %29 = arith.truncf %28 : vector<1x768xf32> to vector<1x768xbf16>
    %c0_21 = arith.constant 0 : index
    %c0_22 = arith.constant 0 : index
    %c0_23 = arith.constant 0 : index
    %30 = vector.load %arg7[%c0_21, %c0_22, %c0_23] : memref<1x1x768xbf16, #tpu.memory_space<vmem>>, vector<1x1x768xbf16>
    %31 = vector.shape_cast %30 : vector<1x1x768xbf16> to vector<1x768xbf16>
    %32 = vector.shape_cast %29 : vector<1x768xbf16> to vector<1x1x768xbf16>
    tpu.vector_store %arg7[%c0_21, %c0_22, %c0_23], %32 {strides = array<i32>} : memref<1x1x768xbf16, #tpu.memory_space<vmem>>, vector<1x1x768xbf16>,
    return
  }
  func.func @transform_0(%arg0: i32) -> (i32, i32, i32) {
    %c0_i32 = arith.constant 0 : i32
    %c0_i32_0 = arith.constant 0 : i32
    %c0_i32_1 = arith.constant 0 : i32
    return %arg0, %c0_i32, %c0_i32_0 : i32, i32, i32
  }
  func.func @transform_1(%arg0: i32) -> (i32, i32, i32) {
    %c0_i32 = arith.constant 0 : i32
    %c0_i32_0 = arith.constant 0 : i32
    %c0_i32_1 = arith.constant 0 : i32
    return %arg0, %c0_i32, %c0_i32_0 : i32, i32, i32
  }
  func.func @transform_2(%arg0: i32) -> (i32, i32) {
    %c0_i32 = arith.constant 0 : i32
    %c0_i32_0 = arith.constant 0 : i32
    %c0_i32_1 = arith.constant 0 : i32
    return %c0_i32, %c0_i32_0 : i32, i32
  }
  func.func @transform_3(%arg0: i32) -> (i32, i32) {
    %c0_i32 = arith.constant 0 : i32
    %c0_i32_0 = arith.constant 0 : i32
    %c0_i32_1 = arith.constant 0 : i32
    return %c0_i32, %c0_i32_0 : i32, i32
  }
  func.func @transform_4(%arg0: i32) -> (i32, i32) {
    %c0_i32 = arith.constant 0 : i32
    %c0_i32_0 = arith.constant 0 : i32
    %c0_i32_1 = arith.constant 0 : i32
    return %c0_i32, %c0_i32_0 : i32, i32
  }
  func.func @transform_5(%arg0: i32) -> (i32, i32) {
    %c0_i32 = arith.constant 0 : i32
    %c0_i32_0 = arith.constant 0 : i32
    %c0_i32_1 = arith.constant 0 : i32
    return %c0_i32, %c0_i32_0 : i32, i32
  }
  func.func @transform_6(%arg0: i32) -> (i32, i32, i32) {
    %c0_i32 = arith.constant 0 : i32
    %c0_i32_0 = arith.constant 0 : i32
    %c0_i32_1 = arith.constant 0 : i32
    return %arg0, %c0_i32, %c0_i32_0 : i32, i32, i32
  }
}

</mosaic_0001>

<bundles_post_ra>
// kernel: molecular_embedding_forward.3
= control target key start
LH: loop header
LB: loop body
LE: loop exit
PB: predicated region body
PF: predicated region fallthrough
CT: control target
= control target key end

     0   :  { %s6915_s21 = smov 0   ;;  %s9014_s0 = inlined_call_operand.vmem [shape: f32[2,16,16], index: 0, kind: input, shape index: {}]   ;;  %s9015_s1 = inlined_call_operand.vmem [shape: bf16[2,16,128], index: 1, kind: input, shape index: {}]   ;;  %s9016_s2 = inlined_call_operand.vmem [shape: bf16[128,768], index: 2, kind: input, shape index: {}]   ;;  %s9017_s3 = inlined_call_operand.vmem [shape: f32[1,768], index: 3, kind: input, shape index: {}]   ;;  %s9018_s4 = inlined_call_operand.vmem [shape: bf16[1536,768], index: 4, kind: input, shape index: {}]   ;;  %s9019_s5 = inlined_call_operand.vmem [shape: f32[1,768], index: 5, kind: input, shape index: {}]   ;;  %s9020_s6 = inlined_call_operand.vmem [shape: bf16[2,1,768], index: 6, kind: output, shape index: {}]  }
   0x1 LB: > { %s5268_s22 = sadd.s32 4294967295, %s6874_s21   ;;  %p5272_p0 = scmp.ge.s32.totalorder %s6874_s21, 1  ;;  %s6874_s21 = sphi %s6915_s21, %s16_s21  }
   0x2   : > { %p222_p1 = scmp.lt.s32.totalorder %s6874_s21, 3 }
   0x4   : > { %p223_p2 = pnand %p5272_p0, %p222_p1 }
   0x5   : > { %p256_p3 = scmp.lt.s32.totalorder (!%p223_p2), %s5268_s22, 1  ;;  %v6876_v0 = vmov (!%p223_p2), 0.0   ;;  %vm6877_vm0 = vmmov (!%p223_p2), 0   ;;  %v5932_v1 = vld [vmem:[%s9016_s2 + $0x4] ss:$24 sps:$4 sm:$0xff] (!%p223_p2)   ;;  %vm282_vm1 = vcmask (!%p223_p2), 130048  }
   0x6   : > { %226 = sbr.rel (%p223_p2) target bundleno = 1213 (0x4bd), region = 44  ;;  %5912 = vmatprep.subr.bf16.mxu0 (!%p223_p2), %v6876_v0  ;;  %5914 = vmatprep.mubr.msk.bf16.mxu0 (!%p223_p2), %vm6877_vm0, %v6876_v0  ;;  %v5934_v2 = vld [vmem:[%s9016_s2] ss:$24 sps:$4 sm:$0xff] (!%p223_p2)   ;;  %v5938_v3 = vld [vmem:[%s9016_s2 + $0x34] ss:$24 sps:$4 sm:$0xff] (!%p223_p2)   ;;  %v6878_v38 = vmov (!%p223_p2), 0  }
   0x7   : > { %648 = vmatprep.subr.bf16.mxu1 (!%p223_p2), %v5932_v1  ;;  %v5940_v4 = vld [vmem:[%s9016_s2 + $0x30] ss:$24 sps:$4 sm:$0xff] (!%p223_p2)   ;;  %v5937_v5 = vld [vmem:[%s9016_s2 + $0xc] ss:$24 sps:$4 sm:$0xff] (!%p223_p2)   ;;  %v5946_v12 = vld [vmem:[%s9016_s2 + $0x60] ss:$24 sps:$4 sm:$0xff] (!%p223_p2)   ;;  %680 = vmatprep.mubr.bf16.mxu1 (!%p223_p2), %v6878_v38 }
   0x8   : > { %649 = vmatpush1.bf16.msra.mxu1 (!%p223_p2), %v5934_v2  ;;  %v5935_v9 = vld [vmem:[%s9016_s2 + $0x8] ss:$24 sps:$4 sm:$0xff] (!%p223_p2)   ;;  %v5944_v11 = vld [vmem:[%s9016_s2 + $0x64] ss:$24 sps:$4 sm:$0xff] (!%p223_p2)   ;;  %v5941_v14 = vld [vmem:[%s9016_s2 + $0x38] ss:$24 sps:$4 sm:$0xff] (!%p223_p2)  }
   0x9   : > { %650 = vmatprep.subr.bf16.mxu1 (!%p223_p2), %v5938_v3  ;;  %v5943_v13 = vld [vmem:[%s9016_s2 + $0x3c] ss:$24 sps:$4 sm:$0xff] (!%p223_p2)   ;;  %v5949_v16 = vld [vmem:[%s9016_s2 + $0x6c] ss:$24 sps:$4 sm:$0xff] (!%p223_p2)   ;;  %v5952_v17 = vld [vmem:[%s9016_s2 + $0x90] ss:$24 sps:$4 sm:$0xff] (!%p223_p2)  }
   0xa   : > { %v5950_v15 = vld [vmem:[%s9016_s2 + $0x94] ss:$24 sps:$4 sm:$0xff] (!%p223_p2)   ;;  %v5956_v18 = vld [vmem:[%s9016_s2 + $0xc4] ss:$24 sps:$4 sm:$0xff] (!%p223_p2)   ;;  %v5947_v19 = vld [vmem:[%s9016_s2 + $0x68] ss:$24 sps:$4 sm:$0xff] (!%p223_p2)  }
   0xb   : > { %v5955_v20 = vld [vmem:[%s9016_s2 + $0x9c] ss:$24 sps:$4 sm:$0xff] (!%p223_p2)   ;;  %v5958_v21 = vld [vmem:[%s9016_s2 + $0xc0] ss:$24 sps:$4 sm:$0xff] (!%p223_p2)   ;;  %v5961_v24 = vld [vmem:[%s9016_s2 + $0xcc] ss:$24 sps:$4 sm:$0xff] (!%p223_p2)  }
   0xc   : > { %651 = vmatpush1.bf16.msra.mxu1 (!%p223_p2), %v5940_v4  ;;  %v5962_v22 = vld [vmem:[%s9016_s2 + $0xf4] ss:$24 sps:$4 sm:$0xff] (!%p223_p2)   ;;  %v5953_v23 = vld [vmem:[%s9016_s2 + $0x98] ss:$24 sps:$4 sm:$0xff] (!%p223_p2)   ;;  %v5968_v26 = vld [vmem:[%s9016_s2 + $0x124] ss:$24 sps:$4 sm:$0xff] (!%p223_p2)  }
   0xd   : > { %s9026_s22 = smov (!%p256_p3, %s5268_s22), 1  ;;  %652 = vmatprep.subr.bf16.mxu1 %v5944_v11  ;;  %v5964_v25 = vld [vmem:[%s9016_s2 + $0xf0] ss:$24 sps:$4 sm:$0xff]   ;;  %v5970_v28 = vld [vmem:[%s9016_s2 + $0x120] ss:$24 sps:$4 sm:$0xff]   ;;  %vm5177_vm2 = vcmask 1040384  }
   0xe   : > { %s5909_s29 = sshll.u32 %s9026_s22, 3  ;;  %s5908_s11 = sshll.u32 %s9026_s22, 4  ;;  %v5959_v27 = vld [vmem:[%s9016_s2 + $0xc8] ss:$24 sps:$4 sm:$0xff]   ;;  %v5967_v29 = vld [vmem:[%s9016_s2 + $0xfc] ss:$24 sps:$4 sm:$0xff]  }
   0xf   : > { %s265_s10 = scalar_lea.vmem %s9015_s1, %s5909_s29  ;;  %s260_s16 = scalar_lea.vmem %s9014_s0, %s5908_s11  ;;  %v5965_v30 = vld [vmem:[%s9016_s2 + $0xf8] ss:$24 sps:$4 sm:$0xff]   ;;  %v5973_v31 = vld [vmem:[%s9016_s2 + $0x12c] ss:$24 sps:$4 sm:$0xff]   ;;  %v5971_v32 = vld [vmem:[%s9016_s2 + $0x128] ss:$24 sps:$4 sm:$0xff]  }
  0x10   : > { %v5931_v6 = vld [vmem:[%s265_s10] sm:$0xff]   ;;  %v274_v8 = vld [vmem:[%s260_s16 + $0x8] sm:$0xff]  ;;  %653 = vmatpush1.bf16.msra.mxu1 %v5946_v12  ;;  %v5979_v35 = vld [vmem:[%s9016_s2 + $0x15c] ss:$24 sps:$4 sm:$0xff]   ;;  %vm5178_vm3 = vsmask.f32 256 }
  0x11   : > { %v273_v7 = vld [vmem:[%s260_s16] sm:$0xff]  ;;  %5913 = vmatpush3.bf16.msra.mxu0 %v5931_v6  ;;  %654 = vmatprep.subr.bf16.mxu1 %v5950_v15  ;;  %v5974_v33 = vld [vmem:[%s9016_s2 + $0x154] ss:$24 sps:$4 sm:$0xff]   ;;  %v5976_v34 = vld [vmem:[%s9016_s2 + $0x150] ss:$24 sps:$4 sm:$0xff]   ;;  %vm5180_vm4 = vcmask 1041409  }
  0x12   : > { %v275_v10 = vpack.c.bf16 %v274_v8, %v273_v7  ;;  %691 = vmatprep.subr.bf16.mxu0 %v5937_v5  ;;  %v5977_v36 = vld [vmem:[%s9016_s2 + $0x158] ss:$24 sps:$4 sm:$0xff]   ;;  %v5982_v37 = vld [vmem:[%s9016_s2 + $0x14] ss:$24 sps:$4 sm:$0xff]   ;;  %v6006_v39 = vld [vmem:[%s9018_s4 + $0x904] ss:$24 sps:$4 sm:$0xff]  }
  0x13   : > { %v5980_v41 = vld [vmem:[%s9016_s2 + $0x10] ss:$24 sps:$4 sm:$0xff]   ;;  %v5985_v43 = vld [vmem:[%s9016_s2 + $0x44] ss:$24 sps:$4 sm:$0xff]   ;;  %v6004_v44 = vld [vmem:[%s9018_s4 + $0x900] ss:$24 sps:$4 sm:$0xff]  }
  0x14   : > { %5915 = vmatmul.mubr.msk.bf16.vlgmr.msra.gmra.mrb[0].mxu0 %vm282_vm1, %v275_v10  ;;  %655 = vmatpush1.bf16.msra.mxu1 %v5952_v17  ;;  %v6012_v46 = vld [vmem:[%s9018_s4 + $0x934] ss:$24 sps:$4 sm:$0xff]   ;;  %v5983_v49 = vld [vmem:[%s9016_s2 + $0x40] ss:$24 sps:$4 sm:$0xff]   ;;  %v6010_v51 = vld [vmem:[%s9018_s4 + $0x930] ss:$24 sps:$4 sm:$0xff]  }
  0x15   : > { %692 = vmatpush1.bf16.msra.mxu0 %v5935_v9  ;;  %656 = vmatprep.subr.bf16.mxu1 %v5956_v18  ;;  %v5988_v50 = vld [vmem:[%s9016_s2 + $0x74] ss:$24 sps:$4 sm:$0xff]   ;;  %v6018_v52 = vld [vmem:[%s9018_s4 + $0x964] ss:$24 sps:$4 sm:$0xff]   ;;  %v5986_v53 = vld [vmem:[%s9016_s2 + $0x70] ss:$24 sps:$4 sm:$0xff]  }
  0x16   : > { %693 = vmatprep.subr.bf16.mxu0 %v5943_v13  ;;  %723 = vmatprep.mubr.bf16.mxu0 %v6878_v38  ;;  %v5991_v54 = vld [vmem:[%s9016_s2 + $0xa4] ss:$24 sps:$4 sm:$0xff]   ;;  %v6016_v55 = vld [vmem:[%s9018_s4 + $0x960] ss:$24 sps:$4 sm:$0xff]   ;;  %v6024_v56 = vld [vmem:[%s9018_s4 + $0x994] ss:$24 sps:$4 sm:$0xff]  }
  0x17   : > { %v5989_v57 = vld [vmem:[%s9016_s2 + $0xa0] ss:$24 sps:$4 sm:$0xff]   ;;  %v5994_v58 = vld [vmem:[%s9016_s2 + $0xd4] ss:$24 sps:$4 sm:$0xff]   ;;  %v6022_v59 = vld [vmem:[%s9018_s4 + $0x990] ss:$24 sps:$4 sm:$0xff]  }
  0x18   : > { %657 = vmatpush1.bf16.msra.mxu1 %v5958_v21  ;;  %v6030_v60 = vld [vmem:[%s9018_s4 + $0x9c4] ss:$24 sps:$4 sm:$0xff]   ;;  %v5992_v61 = vld [vmem:[%s9016_s2 + $0xd0] ss:$24 sps:$4 sm:$0xff]   ;;  %v6028_v63 = vld [vmem:[%s9018_s4 + $0x9c0] ss:$24 sps:$4 sm:$0xff]  }
  0x19   : > { %694 = vmatpush1.bf16.msra.mxu0 %v5941_v14  ;;  %658 = vmatprep.subr.bf16.mxu1 %v5962_v22  ;;  %v5997_v62 = vld [vmem:[%s9016_s2 + $0x104] ss:$24 sps:$4 sm:$0xff]   ;;  %v6036_v0 = vld [vmem:[%s9018_s4 + $0x9f4] ss:$24 sps:$4 sm:$0xff]   ;;  %v5995_v1 = vld [vmem:[%s9016_s2 + $0x100] ss:$24 sps:$4 sm:$0xff]  }
  0x1a   : > { %695 = vmatprep.subr.bf16.mxu0 %v5949_v16  ;;  %v6000_v2 = vld [vmem:[%s9016_s2 + $0x134] ss:$24 sps:$4 sm:$0xff]   ;;  %v6034_v3 = vld [vmem:[%s9018_s4 + $0x9f0] ss:$24 sps:$4 sm:$0xff]   ;;  %v6042_v4 = vld [vmem:[%s9018_s4 + $0xa24] ss:$24 sps:$4 sm:$0xff]  }
  0x1b   : > { %v5998_v5 = vld [vmem:[%s9016_s2 + $0x130] ss:$24 sps:$4 sm:$0xff]   ;;  %v6003_v6 = vld [vmem:[%s9016_s2 + $0x164] ss:$24 sps:$4 sm:$0xff]   ;;  %v6040_v7 = vld [vmem:[%s9018_s4 + $0xa20] ss:$24 sps:$4 sm:$0xff]  }
  0x1c   : > { %659 = vmatpush1.bf16.msra.mxu1 %v5964_v25  ;;  %v6048_v8 = vld [vmem:[%s9018_s4 + $0xa54] ss:$24 sps:$4 sm:$0xff]   ;;  %v6001_v9 = vld [vmem:[%s9016_s2 + $0x160] ss:$24 sps:$4 sm:$0xff]   ;;  %v6009_v10 = vld [vmem:[%s9018_s4 + $0xc04] ss:$24 sps:$4 sm:$0xff]  }
  0x1d   : > { %696 = vmatpush1.bf16.msra.mxu0 %v5947_v19  ;;  %660 = vmatprep.subr.bf16.mxu1 %v5968_v26  ;;  %v6046_v11 = vld [vmem:[%s9018_s4 + $0xa50] ss:$24 sps:$4 sm:$0xff]   ;;  %v6054_v12 = vld [vmem:[%s9018_s4 + $0xa84] ss:$24 sps:$4 sm:$0xff]   ;;  %v6007_v13 = vld [vmem:[%s9018_s4 + $0xc00] ss:$24 sps:$4 sm:$0xff]  }
  0x1e   : > { %697 = vmatprep.subr.bf16.mxu0 %v5955_v20  ;;  %v6015_v14 = vld [vmem:[%s9018_s4 + $0xc34] ss:$24 sps:$4 sm:$0xff]   ;;  %v6052_v15 = vld [vmem:[%s9018_s4 + $0xa80] ss:$24 sps:$4 sm:$0xff]   ;;  %v6013_v17 = vld [vmem:[%s9018_s4 + $0xc30] ss:$24 sps:$4 sm:$0xff]  }
  0x1f   : > { %v6060_v16 = vld [vmem:[%s9018_s4 + $0xab4] ss:$24 sps:$4 sm:$0xff]   ;;  %v6021_v18 = vld [vmem:[%s9018_s4 + $0xc64] ss:$24 sps:$4 sm:$0xff]   ;;  %v6058_v19 = vld [vmem:[%s9018_s4 + $0xab0] ss:$24 sps:$4 sm:$0xff]  }
  0x20   : > { %661 = vmatpush1.bf16.msra.mxu1 %v5970_v28  ;;  %v6019_v20 = vld [vmem:[%s9018_s4 + $0xc60] ss:$24 sps:$4 sm:$0xff]   ;;  %v6027_v21 = vld [vmem:[%s9018_s4 + $0xc94] ss:$24 sps:$4 sm:$0xff]   ;;  %v6025_v22 = vld [vmem:[%s9018_s4 + $0xc90] ss:$24 sps:$4 sm:$0xff]  }
  0x21   : > { %698 = vmatpush1.bf16.msra.mxu0 %v5953_v23  ;;  %662 = vmatprep.subr.bf16.mxu1 %v5974_v33  ;;  %v6033_v23 = vld [vmem:[%s9018_s4 + $0xcc4] ss:$24 sps:$4 sm:$0xff]   ;;  %v6039_v25 = vld [vmem:[%s9018_s4 + $0xcf4] ss:$24 sps:$4 sm:$0xff]   ;;  %v6037_v26 = vld [vmem:[%s9018_s4 + $0xcf0] ss:$24 sps:$4 sm:$0xff]  }
  0x22   : > { %699 = vmatprep.subr.bf16.mxu0 %v5961_v24  ;;  %v6031_v24 = vld [vmem:[%s9018_s4 + $0xcc0] ss:$24 sps:$4 sm:$0xff]   ;;  %v6063_v33 = vld [vmem:[%s9018_s4 + $0xdb4] ss:$24 sps:$4 sm:$0xff]   ;;  %vm5181_vm5 = vsmask.f32 1280  ;;  %vm5179_vm6 = vmand %vm5177_vm2, %vm5178_vm3 }
  0x23   : > { %v6043_v28 = vld [vmem:[%s9018_s4 + $0xd20] ss:$24 sps:$4 sm:$0xff]   ;;  %vm5182_vm7 = vmand %vm5180_vm4, %vm5181_vm5  ;;  %vm5184_vm8 = vcmask 1042434   ;;  %vm5185_vm9 = vsmask.f32 2304  ;;  %vm5188_vm12 = vcmask 1043459  }
  0x24   : > { %663 = vmatpush1.bf16.msra.mxu1 %v5976_v34  ;;  %v6061_v34 = vld [vmem:[%s9018_s4 + $0xdb0] ss:$24 sps:$4 sm:$0xff]   ;;  %vm5183_vm10 = vmor %vm5182_vm7, %vm5179_vm6  ;;  %vm5189_vm13 = vsmask.f32 3328  ;;  %vm5192_vm0 = vcmask 1044484   ;;  %s5918_s29 = smul.u32 6, %s9026_s22 }
  0x25   : > { %700 = vmatpush1.bf16.msra.mxu0 %v5959_v27  ;;  %734 = vmatprep.subr.bf16.mxu1 %v5982_v37  ;;  %v6045_v27 = vld [vmem:[%s9018_s4 + $0xd24] ss:$24 sps:$4 sm:$0xff]   ;;  %v6064_v37 = vld [vmem:[%s9018_s4 + $0xae0] ss:$24 sps:$4 sm:$0xff]   ;;  %vm5186_vm11 = vmand %vm5184_vm8, %vm5185_vm9  ;;  %vm5193_vm1 = vsmask.f32 4352 }
  0x26   : > { %701 = vmatprep.subr.bf16.mxu0 %v5967_v29  ;;  %v6051_v29 = vld [vmem:[%s9018_s4 + $0xd54] ss:$24 sps:$4 sm:$0xff]   ;;  %vm8992_vm14 = vmor %vm5186_vm11, %vm5183_vm10  ;;  %vm5196_vm4 = vcmask 1045509   ;;  %vm5197_vm5 = vsmask.f32 5376  ;;  %s269_s8 = scalar_lea.vmem %s9020_s6, %s5918_s29 }
  0x27   : > { %vm8999_vm15 = vmand %vm5188_vm12, %vm5189_vm13 }
  0x28   : > { %vm5191_vm2 = vmor %vm8999_vm15, %vm8992_vm14 }
  0x29   : > { %702 = vmatpush1.bf16.msra.mxu0 %v5965_v30  ;;  %v6049_v30 = vld [vmem:[%s9018_s4 + $0xd50] ss:$24 sps:$4 sm:$0xff]   ;;  %vm5194_vm3 = vmand %vm5192_vm0, %vm5193_vm1 }
  0x2a   : > { %703 = vmatprep.subr.bf16.mxu0 %v5973_v31  ;;  %v6057_v31 = vld [vmem:[%s9018_s4 + $0xd84] ss:$24 sps:$4 sm:$0xff]   ;;  %vm5195_vm6 = vmor %vm5194_vm3, %vm5191_vm2 }
  0x2b   : > { %vm5198_vm7 = vmand %vm5196_vm4, %vm5197_vm5 }
  0x2c   : > { %vm5199_vm8 = vmor %vm5198_vm7, %vm5195_vm6 }
  0x2d   : > { %704 = vmatpush1.bf16.msra.mxu0 %v5971_v32  ;;  %v6055_v32 = vld [vmem:[%s9018_s4 + $0xd80] ss:$24 sps:$4 sm:$0xff]  }
  0x2e   : > { %705 = vmatprep.subr.bf16.mxu0 %v5979_v35  ;;  %v6066_v35 = vld [vmem:[%s9018_s4 + $0xae4] ss:$24 sps:$4 sm:$0xff]  }
  0x31   : > { %706 = vmatpush1.bf16.msra.mxu0 %v5977_v36  ;;  %v6069_v36 = vld [vmem:[%s9018_s4 + $0xde4] ss:$24 sps:$4 sm:$0xff]  }
  0x32   : > { %2908 = vmatprep.subr.bf16.mxu0 %v6006_v39  ;;  %v6072_v39 = vld [vmem:[%s9018_s4 + $0xb14] ss:$24 sps:$4 sm:$0xff]  }
  0xe7   : > { %v320_v40 = vpop.f32.mrb[0].mxu0 }
  0xe8   : > { %v5916_v42 = vpop.f32.mrb[1].mxu0 }
  0xe9   : > { %v323_v45 = vpop.f32.mrb[2].mxu0  ;;  %v6073_v42 = vld [vmem:[%s9018_s4 + $0xe10] ss:$24 sps:$4 sm:$0xff]  }
  0xea   : > { %v7047_v47 = vpack.c.bf16 %v323_v45, %v320_v40  ;;  %v5917_v48 = vpop.f32.mrb[3].mxu0  ;;  %v6075_v40 = vld [vmem:[%s9018_s4 + $0xe14] ss:$24 sps:$4 sm:$0xff]   ;;  %v6076_v45 = vld [vmem:[%s9018_s4 + $0xb40] ss:$24 sps:$4 sm:$0xff]  }
  0xeb   : > { %v6087_v48 = vld [vmem:[%s9018_s4 + $0xe74] ss:$24 sps:$4 sm:$0xff]  }
  0xec   : > { %681 = vmatmul.mubr.bf16.vlgmr.msra.gmra.mrb[0].mxu1 %v7047_v47  ;;  %724 = vmatmul.mubr.bf16.vlgmr.msra.gmra.mrb[4].mxu0 %v7047_v47 }
  0xed   : > { %735 = vmatpush1.bf16.msra.mxu1 %v5980_v41  ;;  %766 = vmatprep.mubr.bf16.mxu1 %v6878_v38  ;;  %v6067_v38 = vld [vmem:[%s9018_s4 + $0xde0] ss:$24 sps:$4 sm:$0xff]   ;;  %v6070_v41 = vld [vmem:[%s9018_s4 + $0xb10] ss:$24 sps:$4 sm:$0xff]  }
  0xee   : > { %736 = vmatprep.subr.bf16.mxu1 %v5985_v43  ;;  %2909 = vmatpush1.bf16.msra.mxu0 %v6004_v44  ;;  %v6078_v43 = vld [vmem:[%s9018_s4 + $0xb44] ss:$24 sps:$4 sm:$0xff]  }
  0xef   : > { %2910 = vmatprep.subr.bf16.mxu0 %v6012_v46  ;;  %v6081_v44 = vld [vmem:[%s9018_s4 + $0xe44] ss:$24 sps:$4 sm:$0xff]   ;;  %v6079_v46 = vld [vmem:[%s9018_s4 + $0xe40] ss:$24 sps:$4 sm:$0xff]  }
  0xf1   : > { %737 = vmatpush1.bf16.msra.mxu1 %v5983_v49  ;;  %v6082_v49 = vld [vmem:[%s9018_s4 + $0xb70] ss:$24 sps:$4 sm:$0xff]  }
  0xf2   : > { %738 = vmatprep.subr.bf16.mxu1 %v5988_v50  ;;  %2911 = vmatpush1.bf16.msra.mxu0 %v6010_v51  ;;  %v6085_v50 = vld [vmem:[%s9018_s4 + $0xe70] ss:$24 sps:$4 sm:$0xff]   ;;  %v6090_v51 = vld [vmem:[%s9018_s4 + $0xba4] ss:$24 sps:$4 sm:$0xff]  }
  0xf3   : > { %2912 = vmatprep.subr.bf16.mxu0 %v6018_v52  ;;  %v6093_v52 = vld [vmem:[%s9018_s4 + $0xea4] ss:$24 sps:$4 sm:$0xff]  }
  0xf5   : > { %739 = vmatpush1.bf16.msra.mxu1 %v5986_v53  ;;  %v6088_v53 = vld [vmem:[%s9018_s4 + $0xba0] ss:$24 sps:$4 sm:$0xff]  }
  0xf6   : > { %740 = vmatprep.subr.bf16.mxu1 %v5991_v54  ;;  %2913 = vmatpush1.bf16.msra.mxu0 %v6016_v55  ;;  %v6091_v54 = vld [vmem:[%s9018_s4 + $0xea0] ss:$24 sps:$4 sm:$0xff]   ;;  %v6096_v55 = vld [vmem:[%s9018_s4 + $0xbd4] ss:$24 sps:$4 sm:$0xff]  }
  0xf7   : > { %2914 = vmatprep.subr.bf16.mxu0 %v6024_v56  ;;  %v6094_v56 = vld [vmem:[%s9018_s4 + $0xbd0] ss:$24 sps:$4 sm:$0xff]  }
  0xf9   : > { %741 = vmatpush1.bf16.msra.mxu1 %v5989_v57  ;;  %v6097_v57 = vld [vmem:[%s9018_s4 + $0xed0] ss:$24 sps:$4 sm:$0xff]  }
  0xfa   : > { %742 = vmatprep.subr.bf16.mxu1 %v5994_v58  ;;  %2915 = vmatpush1.bf16.msra.mxu0 %v6022_v59  ;;  %v6099_v58 = vld [vmem:[%s9018_s4 + $0xed4] ss:$24 sps:$4 sm:$0xff]   ;;  %v6102_v59 = vld [vmem:[%s9018_s4 + $0xf04] ss:$24 sps:$4 sm:$0xff]  }
  0xfb   : > { %2916 = vmatprep.subr.bf16.mxu0 %v6030_v60  ;;  %v6105_v60 = vld [vmem:[%s9018_s4 + $0x90c] ss:$24 sps:$4 sm:$0xff]  }
  0xfd   : > { %743 = vmatpush1.bf16.msra.mxu1 %v5992_v61  ;;  %v378_v61 = vlaneseq }
  0xfe   : > { %744 = vmatprep.subr.bf16.mxu1 %v5997_v62  ;;  %2917 = vmatpush1.bf16.msra.mxu0 %v6028_v63 }
  0xff   : > { %2918 = vmatprep.subr.bf16.mxu0 %v6036_v0  ;;  %v7280_v62 = vshrl.u32 %v378_v61, 7 }
 0x101   : > { %745 = vmatpush1.bf16.msra.mxu1 %v5995_v1  ;;  %v380_v63 = vsub.s32 0, %v7280_v62  ;;  %v388_v0 = vsub.s32 2, %v7280_v62  ;;  %v7287_v1 = vld [vmem:[%s9017_s3] sm:$0x3f] }
 0x102   : > { %746 = vmatprep.subr.bf16.mxu1 %v6000_v2  ;;  %2919 = vmatpush1.bf16.msra.mxu0 %v6034_v3  ;;  %v384_v2 = vsub.s32 1, %v7280_v62  ;;  %v392_v3 = vsub.s32 3, %v7280_v62 }
 0x103   : > { %2920 = vmatprep.subr.bf16.mxu0 %v6042_v4  ;;  %v381_v4 = vrot.slane %v7287_v1, %v380_v63 }
 0x105   : > { %747 = vmatpush1.bf16.msra.mxu1 %v5998_v5  ;;  %v389_v5 = vrot.slane %v7287_v1, %v388_v0 }
 0x106   : > { %748 = vmatprep.subr.bf16.mxu1 %v6003_v6  ;;  %2921 = vmatpush1.bf16.msra.mxu0 %v6040_v7  ;;  %v385_v6 = vrot.slane %v7287_v1, %v384_v2  ;;  %v393_v7 = vrot.slane %v7287_v1, %v392_v3 }
 0x107   : > { %2922 = vmatprep.subr.bf16.mxu0 %v6048_v8 }
 0x109   : > { %749 = vmatpush1.bf16.msra.mxu1 %v6001_v9 }
 0x10a   : > { %2949 = vmatprep.subr.bf16.mxu1 %v6009_v10  ;;  %2923 = vmatpush1.bf16.msra.mxu0 %v6046_v11 }
 0x10b   : > { %2924 = vmatprep.subr.bf16.mxu0 %v6054_v12 }
 0x10c   : > { %767 = vmatmul.mubr.bf16.vlgmr.msra.gmra.mrb[4].mxu1 %v7047_v47  ;;  %v6084_v47 = vld [vmem:[%s9018_s4 + $0xb74] ss:$24 sps:$4 sm:$0xff]  }
 0x10d   : > { %2950 = vmatpush1.bf16.msra.mxu1 %v6007_v13 }
 0x10e   : > { %2951 = vmatprep.subr.bf16.mxu1 %v6015_v14  ;;  %2925 = vmatpush1.bf16.msra.mxu0 %v6052_v15 }
 0x10f   : > { %2926 = vmatprep.subr.bf16.mxu0 %v6060_v16 }
 0x111   : > { %2952 = vmatpush1.bf16.msra.mxu1 %v6013_v17 }
 0x112   : > { %2953 = vmatprep.subr.bf16.mxu1 %v6021_v18  ;;  %2927 = vmatpush1.bf16.msra.mxu0 %v6058_v19 }
 0x113   : > { %2928 = vmatprep.subr.bf16.mxu0 %v6066_v35 }
 0x115   : > { %2954 = vmatpush1.bf16.msra.mxu1 %v6019_v20 }
 0x116   : > { %2955 = vmatprep.subr.bf16.mxu1 %v6027_v21  ;;  %2929 = vmatpush1.bf16.msra.mxu0 %v6064_v37 }
 0x117   : > { %2930 = vmatprep.subr.bf16.mxu0 %v6072_v39 }
 0x119   : > { %2956 = vmatpush1.bf16.msra.mxu1 %v6025_v22 }
 0x11a   : > { %2957 = vmatprep.subr.bf16.mxu1 %v6033_v23  ;;  %2931 = vmatpush1.bf16.msra.mxu0 %v6070_v41 }
 0x11b   : > { %2932 = vmatprep.subr.bf16.mxu0 %v6078_v43 }
 0x11d   : > { %2958 = vmatpush1.bf16.msra.mxu1 %v6031_v24 }
 0x11e   : > { %2959 = vmatprep.subr.bf16.mxu1 %v6039_v25  ;;  %2933 = vmatpush1.bf16.msra.mxu0 %v6076_v45 }
 0x11f   : > { %2934 = vmatprep.subr.bf16.mxu0 %v6084_v47 }
 0x121   : > { %2960 = vmatpush1.bf16.msra.mxu1 %v6037_v26 }
 0x122   : > { %2961 = vmatprep.subr.bf16.mxu1 %v6045_v27  ;;  %2935 = vmatpush1.bf16.msra.mxu0 %v6082_v49 }
 0x123   : > { %2936 = vmatprep.subr.bf16.mxu0 %v6090_v51 }
 0x125   : > { %2962 = vmatpush1.bf16.msra.mxu1 %v6043_v28 }
 0x126   : > { %2963 = vmatprep.subr.bf16.mxu1 %v6051_v29  ;;  %2937 = vmatpush1.bf16.msra.mxu0 %v6088_v53 }
 0x127   : > { %2938 = vmatprep.subr.bf16.mxu0 %v6096_v55 }
 0x129   : > { %2964 = vmatpush1.bf16.msra.mxu1 %v6049_v30 }
 0x12a   : > { %2965 = vmatprep.subr.bf16.mxu1 %v6057_v31  ;;  %2939 = vmatpush1.bf16.msra.mxu0 %v6094_v56 }
 0x12b   : > { %2990 = vmatprep.subr.bf16.mxu0 %v6102_v59 }
 0x12d   : > { %2966 = vmatpush1.bf16.msra.mxu1 %v6055_v32 }
 0x12e   : > { %2967 = vmatprep.subr.bf16.mxu1 %v6063_v33 }
 0x131   : > { %2968 = vmatpush1.bf16.msra.mxu1 %v6061_v34 }
 0x132   : > { %2969 = vmatprep.subr.bf16.mxu1 %v6069_v36 }
 0x135   : > { %2970 = vmatpush1.bf16.msra.mxu1 %v6067_v38 }
 0x136   : > { %2971 = vmatprep.subr.bf16.mxu1 %v6075_v40 }
 0x139   : > { %2972 = vmatpush1.bf16.msra.mxu1 %v6073_v42 }
 0x13a   : > { %2973 = vmatprep.subr.bf16.mxu1 %v6081_v44 }
 0x13d   : > { %2974 = vmatpush1.bf16.msra.mxu1 %v6079_v46 }
 0x13e   : > { %2975 = vmatprep.subr.bf16.mxu1 %v6087_v48 }
 0x141   : > { %2976 = vmatpush1.bf16.msra.mxu1 %v6085_v50 }
 0x142   : > { %2977 = vmatprep.subr.bf16.mxu1 %v6093_v52 }
 0x145   : > { %2978 = vmatpush1.bf16.msra.mxu1 %v6091_v54 }
 0x146   : > { %2979 = vmatprep.subr.bf16.mxu1 %v6099_v58 }
 0x149   : > { %2980 = vmatpush1.bf16.msra.mxu1 %v6097_v57 }
 0x14a   : > { %3031 = vmatprep.subr.bf16.mxu1 %v6105_v60 }
 0x1bf   : > { %v682_v8 = vpop.f32.mrb[0].mxu1  ;;  %v725_v9 = vpop.f32.mrb[4].mxu0 }
 0x1c0   : > { %v683_v10 = vadd.f32 %v682_v8, %v381_v4  ;;  %v726_v11 = vadd.f32 %v725_v9, %v389_v5  ;;  %v684_v12 = vpop.f32.mrb[1].mxu1  ;;  %v727_v13 = vpop.f32.mrb[5].mxu0  ;;  %v6100_v8 = vld [vmem:[%s9018_s4 + $0xf00] ss:$24 sps:$4 sm:$0xff]  }
 0x1c1   : > { %v685_v14 = vadd.f32 %v684_v12, %v385_v6  ;;  %v728_v15 = vadd.f32 %v727_v13, %v393_v7  ;;  %v686_v16 = vpop.f32.mrb[2].mxu1  ;;  %v729_v17 = vpop.f32.mrb[6].mxu0  ;;  %v6103_v9 = vld [vmem:[%s9018_s4 + $0x908] ss:$24 sps:$4 sm:$0xff]   ;;  %v6108_v12 = vld [vmem:[%s9018_s4 + $0xf34] ss:$24 sps:$4 sm:$0xff]  }
 0x1c2   : > { %v687_v18 = vadd.f32 %v686_v16, %v381_v4  ;;  %v730_v19 = vadd.f32 %v729_v17, %v389_v5  ;;  %v688_v20 = vpop.f32.mrb[3].mxu1  ;;  %v731_v21 = vpop.f32.mrb[7].mxu0  ;;  %v777_v24 = vmax.f32 %v683_v10, 0.0  ;;  %v779_v25 = vmax.f32 %v726_v11, 0.0  ;;  %v6111_v13 = vld [vmem:[%s9018_s4 + $0x93c] ss:$24 sps:$4 sm:$0xff]  }
 0x1c3   : > { %v689_v22 = vadd.f32 %v688_v20, %v385_v6  ;;  %v732_v23 = vadd.f32 %v731_v21, %v393_v7  ;;  %v778_v28 = vmax.f32 %v685_v14, 0.0  ;;  %v780_v29 = vmax.f32 %v728_v15, 0.0  ;;  %v6106_v15 = vld [vmem:[%s9018_s4 + $0xf30] ss:$24 sps:$4 sm:$0xff]  }
 0x1c4   : > { %v783_v26 = vmax.f32 %v687_v18, 0.0  ;;  %v785_v27 = vmax.f32 %v730_v19, 0.0  ;;  %v396_v14 = vsub.s32 4, %v7280_v62  ;;  %v6109_v16 = vld [vmem:[%s9018_s4 + $0x938] ss:$24 sps:$4 sm:$0xff]   ;;  %v400_v17 = vsub.s32 5, %v7280_v62 }
 0x1c5   : > { %v784_v30 = vmax.f32 %v689_v22, 0.0  ;;  %v786_v31 = vmax.f32 %v732_v23, 0.0  ;;  %v6114_v18 = vld [vmem:[%s9018_s4 + $0xf64] ss:$24 sps:$4 sm:$0xff]   ;;  %v6112_v22 = vld [vmem:[%s9018_s4 + $0xf60] ss:$24 sps:$4 sm:$0xff]  }
 0x1c6   : > { %v7303_v32 = vadd.f32 %v783_v26, %v777_v24  ;;  %v838_v33 = vmax.f32 %v777_v24, %v783_v26  ;;  %v7305_v34 = vadd.f32 %v785_v27, %v779_v25  ;;  %v852_v35 = vmax.f32 %v779_v25, %v785_v27  ;;  %v6117_v19 = vld [vmem:[%s9018_s4 + $0x96c] ss:$24 sps:$4 sm:$0xff]   ;;  %v6115_v23 = vld [vmem:[%s9018_s4 + $0x968] ss:$24 sps:$4 sm:$0xff]   ;;  %v6123_v25 = vld [vmem:[%s9018_s4 + $0x99c] ss:$24 sps:$4 sm:$0xff]  }
 0x1c7   : > { %v7307_v36 = vadd.f32 %v784_v30, %v778_v28  ;;  %v845_v37 = vmax.f32 %v778_v28, %v784_v30  ;;  %v7309_v38 = vadd.f32 %v786_v31, %v780_v29  ;;  %v859_v39 = vmax.f32 %v780_v29, %v786_v31  ;;  %v6120_v24 = vld [vmem:[%s9018_s4 + $0xf94] ss:$24 sps:$4 sm:$0xff]   ;;  %v6118_v30 = vld [vmem:[%s9018_s4 + $0xf90] ss:$24 sps:$4 sm:$0xff]  }
 0x1c8   : > { %v839_v40 = vrot.slane %v838_v33, 4  ;;  %v853_v41 = vrot.slane %v852_v35, 4  ;;  %v397_v20 = vrot.slane %v7287_v1, %v396_v14  ;;  %v401_v21 = vrot.slane %v7287_v1, %v400_v17  ;;  %v6121_v31 = vld [vmem:[%s9018_s4 + $0x998] ss:$24 sps:$4 sm:$0xff]  }
 0x1c9   : > { %v846_v42 = vrot.slane %v845_v37, 4  ;;  %v860_v43 = vrot.slane %v859_v39, 4 }
 0x1ca   : > { %v840_v44 = vmax.f32 %v838_v33, %v839_v40  ;;  %v854_v45 = vmax.f32 %v852_v35, %v853_v41 }
 0x1cb   : > { %v847_v46 = vmax.f32 %v845_v37, %v846_v42  ;;  %v861_v47 = vmax.f32 %v859_v39, %v860_v43  ;;  %v6126_v37 = vld [vmem:[%s9018_s4 + $0xfc4] ss:$24 sps:$4 sm:$0xff]  }
 0x1cc   : > { %v841_v48 = vrot.slane %v840_v44, 2  ;;  %v855_v49 = vrot.slane %v854_v45, 2  ;;  %v6129_v39 = vld [vmem:[%s9018_s4 + $0x9cc] ss:$24 sps:$4 sm:$0xff]  }
 0x1cd   : > { %v848_v50 = vrot.slane %v847_v46, 2  ;;  %v862_v51 = vrot.slane %v861_v47, 2 }
 0x1ce   : > { %v842_v52 = vmax.f32 %v840_v44, %v841_v48  ;;  %v856_v53 = vmax.f32 %v854_v45, %v855_v49  ;;  %v6124_v45 = vld [vmem:[%s9018_s4 + $0xfc0] ss:$24 sps:$4 sm:$0xff]   ;;  %v6132_v49 = vld [vmem:[%s9018_s4 + $0xff4] ss:$24 sps:$4 sm:$0xff]  }
 0x1cf   : > { %v849_v54 = vmax.f32 %v847_v46, %v848_v50  ;;  %v863_v55 = vmax.f32 %v861_v47, %v862_v51  ;;  %v6127_v46 = vld [vmem:[%s9018_s4 + $0x9c8] ss:$24 sps:$4 sm:$0xff]   ;;  %v6135_v50 = vld [vmem:[%s9018_s4 + $0x9fc] ss:$24 sps:$4 sm:$0xff]  }
 0x1d0   : > { %v843_v56 = vrot.slane %v842_v52, 1  ;;  %v857_v57 = vrot.slane %v856_v53, 1 }
 0x1d1   : > { %v850_v58 = vrot.slane %v849_v54, 1  ;;  %v864_v59 = vrot.slane %v863_v55, 1 }
 0x1d2   : > { %v844_v60 = vmax.f32 %v842_v52, %v843_v56  ;;  %v858_v61 = vmax.f32 %v856_v53, %v857_v57  ;;  %v6138_v56 = vld [vmem:[%s9018_s4 + $0x1024] ss:$24 sps:$4 sm:$0xff]  }
 0x1d3   : > { %v851_v4 = vmax.f32 %v849_v54, %v850_v58  ;;  %v865_v5 = vmax.f32 %v863_v55, %v864_v59  ;;  %v6130_v54 = vld [vmem:[%s9018_s4 + $0xff0] ss:$24 sps:$4 sm:$0xff]   ;;  %v6141_v57 = vld [vmem:[%s9018_s4 + $0xa2c] ss:$24 sps:$4 sm:$0xff]  }
 0x1d4   : > { %v7321_v10 = vpack.c.bf16 %v844_v60, %v844_v60  ;;  %v7323_v11 = vpack.c.bf16 %v858_v61, %v858_v61  ;;  %v6133_v55 = vld [vmem:[%s9018_s4 + $0x9f8] ss:$24 sps:$4 sm:$0xff]   ;;  %v6139_v61 = vld [vmem:[%s9018_s4 + $0xa28] ss:$24 sps:$4 sm:$0xff]  }
 0x1d5   : > { %v7311_v6 = vpack.c.bf16 %v851_v4, %v851_v4  ;;  %v7313_v7 = vpack.c.bf16 %v865_v5, %v865_v5  ;;  %v6136_v60 = vld [vmem:[%s9018_s4 + $0x1020] ss:$24 sps:$4 sm:$0xff]   ;;  %v6144_v4 = vld [vmem:[%s9018_s4 + $0x1054] ss:$24 sps:$4 sm:$0xff]  }
 0x1d6   : > { %v6147_v5 = vld [vmem:[%s9018_s4 + $0xa5c] ss:$24 sps:$4 sm:$0xff]  }
 0x1d7   : > { %2940 = vmatprep.mubr.bf16.mxu0 %v7311_v6  ;;  %2981 = vmatprep.mubr.bf16.mxu1 %v7313_v7 }
 0x1d8   : > { %2941 = vmatmul.mubr.bf16.vlgmr.msra.gmra.mrb[8].mxu0 %v7321_v10  ;;  %2982 = vmatmul.mubr.bf16.vlgmr.msra.gmra.mrb[8].mxu1 %v7323_v11 }
 0x1d9   : > { %2991 = vmatpush1.bf16.msra.mxu0 %v6100_v8  ;;  %3032 = vmatpush1.bf16.msra.mxu1 %v6103_v9  ;;  %v6142_v9 = vld [vmem:[%s9018_s4 + $0x1050] ss:$24 sps:$4 sm:$0xff]  }
 0x1da   : > { %3063 = vmatprep.mubr.bf16.mxu1 %v7311_v6  ;;  %2992 = vmatprep.subr.bf16.mxu0 %v6108_v12  ;;  %v6145_v12 = vld [vmem:[%s9018_s4 + $0xa58] ss:$24 sps:$4 sm:$0xff]  }
 0x1db   : > { %3033 = vmatprep.subr.bf16.mxu1 %v6111_v13 }
 0x1dd   : > { %2993 = vmatpush1.bf16.msra.mxu0 %v6106_v15  ;;  %3034 = vmatpush1.bf16.msra.mxu1 %v6109_v16  ;;  %v6150_v15 = vld [vmem:[%s9018_s4 + $0x1084] ss:$24 sps:$4 sm:$0xff]  }
 0x1de   : > { %2994 = vmatprep.subr.bf16.mxu0 %v6114_v18  ;;  %3035 = vmatprep.subr.bf16.mxu1 %v6117_v19  ;;  %v6153_v16 = vld [vmem:[%s9018_s4 + $0xa8c] ss:$24 sps:$4 sm:$0xff]  }
 0x1df   : > { %v768_v26 = vpop.f32.mrb[4].mxu1 }
 0x1e0   : > { %v769_v1 = vadd.f32 %v768_v26, %v397_v20  ;;  %v770_v27 = vpop.f32.mrb[5].mxu1  ;;  %v6162_v26 = vld [vmem:[%s9018_s4 + $0x10e4] ss:$24 sps:$4 sm:$0xff]  }
 0x1e1   : > { %v771_v28 = vadd.f32 %v770_v27, %v401_v21  ;;  %v772_v29 = vpop.f32.mrb[6].mxu1  ;;  %2995 = vmatpush1.bf16.msra.mxu0 %v6112_v22  ;;  %3036 = vmatpush1.bf16.msra.mxu1 %v6115_v23  ;;  %v6156_v22 = vld [vmem:[%s9018_s4 + $0x10b4] ss:$24 sps:$4 sm:$0xff]   ;;  %v6160_v27 = vld [vmem:[%s9018_s4 + $0x10e0] ss:$24 sps:$4 sm:$0xff]  }
 0x1e2   : > { %v773_v33 = vadd.f32 %v772_v29, %v397_v20  ;;  %v774_v35 = vpop.f32.mrb[7].mxu1  ;;  %2996 = vmatprep.subr.bf16.mxu0 %v6120_v24  ;;  %3037 = vmatprep.subr.bf16.mxu1 %v6123_v25  ;;  %v781_v41 = vmax.f32 %v769_v1, 0.0  ;;  %v6148_v20 = vld [vmem:[%s9018_s4 + $0x1080] ss:$24 sps:$4 sm:$0xff]   ;;  %v6159_v23 = vld [vmem:[%s9018_s4 + $0xabc] ss:$24 sps:$4 sm:$0xff]  }
 0x1e3   : > { %v775_v40 = vadd.f32 %v774_v35, %v401_v21  ;;  %v782_v43 = vmax.f32 %v771_v28, 0.0  ;;  %v6151_v21 = vld [vmem:[%s9018_s4 + $0xa88] ss:$24 sps:$4 sm:$0xff]   ;;  %v6157_v25 = vld [vmem:[%s9018_s4 + $0xab8] ss:$24 sps:$4 sm:$0xff]  }
 0x1e4   : > { %v787_v42 = vmax.f32 %v773_v33, 0.0  ;;  %v6154_v24 = vld [vmem:[%s9018_s4 + $0x10b0] ss:$24 sps:$4 sm:$0xff]   ;;  %v6165_v1 = vld [vmem:[%s9018_s4 + $0xaec] ss:$24 sps:$4 sm:$0xff]  }
 0x1e5   : > { %v788_v44 = vmax.f32 %v775_v40, 0.0  ;;  %2997 = vmatpush1.bf16.msra.mxu0 %v6118_v30  ;;  %3038 = vmatpush1.bf16.msra.mxu1 %v6121_v31  ;;  %v6163_v28 = vld [vmem:[%s9018_s4 + $0xae8] ss:$24 sps:$4 sm:$0xff]   ;;  %v6168_v30 = vld [vmem:[%s9018_s4 + $0x1114] ss:$24 sps:$4 sm:$0xff]  }
 0x1e6   : > { %v7386_v47 = vadd.f32 %v787_v42, %v781_v41  ;;  %v7388_v48 = vmax.f32 %v781_v41, %v787_v42  ;;  %2998 = vmatprep.subr.bf16.mxu0 %v6126_v37  ;;  %3039 = vmatprep.subr.bf16.mxu1 %v6129_v39  ;;  %v6171_v31 = vld [vmem:[%s9018_s4 + $0xb1c] ss:$24 sps:$4 sm:$0xff]   ;;  %v6166_v33 = vld [vmem:[%s9018_s4 + $0x1110] ss:$24 sps:$4 sm:$0xff]   ;;  %v6177_v40 = vld [vmem:[%s9018_s4 + $0xb4c] ss:$24 sps:$4 sm:$0xff]  }
 0x1e7   : > { %v7396_v51 = vadd.f32 %v788_v44, %v782_v43  ;;  %v873_v52 = vmax.f32 %v782_v43, %v788_v44  ;;  %v6169_v35 = vld [vmem:[%s9018_s4 + $0xb18] ss:$24 sps:$4 sm:$0xff]   ;;  %v6174_v39 = vld [vmem:[%s9018_s4 + $0x1144] ss:$24 sps:$4 sm:$0xff]   ;;  %v6175_v42 = vld [vmem:[%s9018_s4 + $0xb48] ss:$24 sps:$4 sm:$0xff]  }
 0x1e8   : > { %v867_v29 = vrot.slane %v7388_v48, 4  ;;  %v6172_v41 = vld [vmem:[%s9018_s4 + $0x1140] ss:$24 sps:$4 sm:$0xff]   ;;  %v6180_v44 = vld [vmem:[%s9018_s4 + $0x1174] ss:$24 sps:$4 sm:$0xff]  }
 0x1e9   : > { %v874_v53 = vrot.slane %v873_v52, 4  ;;  %2999 = vmatpush1.bf16.msra.mxu0 %v6124_v45  ;;  %3040 = vmatpush1.bf16.msra.mxu1 %v6127_v46  ;;  %v6183_v45 = vld [vmem:[%s9018_s4 + $0xb7c] ss:$24 sps:$4 sm:$0xff]   ;;  %v6178_v46 = vld [vmem:[%s9018_s4 + $0x1170] ss:$24 sps:$4 sm:$0xff]  }
 0x1ea   : > { %3000 = vmatprep.subr.bf16.mxu0 %v6132_v49  ;;  %3041 = vmatprep.subr.bf16.mxu1 %v6135_v50  ;;  %v868_v37 = vmax.f32 %v7388_v48, %v867_v29  ;;  %v6181_v48 = vld [vmem:[%s9018_s4 + $0xb78] ss:$24 sps:$4 sm:$0xff]   ;;  %v6186_v50 = vld [vmem:[%s9018_s4 + $0x11a4] ss:$24 sps:$4 sm:$0xff]   ;;  %v6223_v29 = vld [vmem:[%s9018_s4 + $0xfc8] ss:$24 sps:$4 sm:$0xff]  }
 0x1eb   : > { %v875_v58 = vmax.f32 %v873_v52, %v874_v53  ;;  %v6189_v52 = vld [vmem:[%s9018_s4 + $0xbac] ss:$24 sps:$4 sm:$0xff]   ;;  %v6184_v53 = vld [vmem:[%s9018_s4 + $0x11a0] ss:$24 sps:$4 sm:$0xff]  }
 0x1ec   : > { %v869_v43 = vrot.slane %v868_v37, 2 }
 0x1ed   : > { %v876_v59 = vrot.slane %v875_v58, 2  ;;  %3001 = vmatpush1.bf16.msra.mxu0 %v6130_v54  ;;  %3042 = vmatpush1.bf16.msra.mxu1 %v6133_v55  ;;  %v6187_v54 = vld [vmem:[%s9018_s4 + $0xba8] ss:$24 sps:$4 sm:$0xff]  }
 0x1ee   : > { %3002 = vmatprep.subr.bf16.mxu0 %v6138_v56  ;;  %3043 = vmatprep.subr.bf16.mxu1 %v6141_v57  ;;  %v870_v49 = vmax.f32 %v868_v37, %v869_v43  ;;  %v6192_v56 = vld [vmem:[%s9018_s4 + $0x11d4] ss:$24 sps:$4 sm:$0xff]  }
 0x1ef   : > { %v877_v8 = vmax.f32 %v875_v58, %v876_v59  ;;  %v6195_v57 = vld [vmem:[%s9018_s4 + $0xbdc] ss:$24 sps:$4 sm:$0xff]   ;;  %v6190_v58 = vld [vmem:[%s9018_s4 + $0x11d0] ss:$24 sps:$4 sm:$0xff]   ;;  %v6234_v37 = vld [vmem:[%s9018_s4 + $0xd2c] ss:$24 sps:$4 sm:$0xff]  }
 0x1f0   : > { %v871_v55 = vrot.slane %v870_v49, 1  ;;  %v6193_v59 = vld [vmem:[%s9018_s4 + $0xbd8] ss:$24 sps:$4 sm:$0xff]   ;;  %v6243_v43 = vld [vmem:[%s9018_s4 + $0x105c] ss:$24 sps:$4 sm:$0xff]  }
 0x1f1   : > { %3003 = vmatpush1.bf16.msra.mxu0 %v6136_v60  ;;  %3044 = vmatpush1.bf16.msra.mxu1 %v6139_v61  ;;  %v878_v13 = vrot.slane %v877_v8, 1  ;;  %v6198_v61 = vld [vmem:[%s9018_s4 + $0xc0c] ss:$24 sps:$4 sm:$0xff]  }
 0x1f2   : > { %3004 = vmatprep.subr.bf16.mxu0 %v6144_v4  ;;  %3045 = vmatprep.subr.bf16.mxu1 %v6147_v5  ;;  %v872_v60 = vmax.f32 %v870_v49, %v871_v55  ;;  %v6201_v4 = vld [vmem:[%s9018_s4 + $0xf0c] ss:$24 sps:$4 sm:$0xff]   ;;  %v6196_v5 = vld [vmem:[%s9018_s4 + $0xc08] ss:$24 sps:$4 sm:$0xff]   ;;  %v6253_v55 = vld [vmem:[%s9018_s4 + $0x10b8] ss:$24 sps:$4 sm:$0xff]  }
 0x1f3   : > { %v879_v18 = vmax.f32 %v877_v8, %v878_v13  ;;  %v6207_v13 = vld [vmem:[%s9018_s4 + $0xf3c] ss:$24 sps:$4 sm:$0xff]   ;;  %v6244_v49 = vld [vmem:[%s9018_s4 + $0xd88] ss:$24 sps:$4 sm:$0xff]  }
 0x1f4   : > { %v7538_v8 = vpack.c.bf16 %v872_v60, %v872_v60  ;;  %v6264_v60 = vld [vmem:[%s9018_s4 + $0xe1c] ss:$24 sps:$4 sm:$0xff]  }
 0x1f5   : > { %3005 = vmatpush1.bf16.msra.mxu0 %v6142_v9  ;;  %3046 = vmatpush1.bf16.msra.mxu1 %v6145_v12  ;;  %v7434_v19 = vpack.c.bf16 %v879_v18, %v879_v18  ;;  %v6199_v9 = vld [vmem:[%s9018_s4 + $0xf08] ss:$24 sps:$4 sm:$0xff]   ;;  %v6204_v12 = vld [vmem:[%s9018_s4 + $0xc3c] ss:$24 sps:$4 sm:$0xff]   ;;  %v6210_v18 = vld [vmem:[%s9018_s4 + $0xc6c] ss:$24 sps:$4 sm:$0xff]  }
 0x1f6   : > { %3006 = vmatprep.subr.bf16.mxu0 %v6150_v15  ;;  %3047 = vmatprep.subr.bf16.mxu1 %v6153_v16  ;;  %v6202_v15 = vld [vmem:[%s9018_s4 + $0xc38] ss:$24 sps:$4 sm:$0xff]  }
 0x1f7   : > { %3022 = vmatprep.mubr.bf16.mxu0 %v7434_v19  ;;  %v6205_v16 = vld [vmem:[%s9018_s4 + $0xf38] ss:$24 sps:$4 sm:$0xff]  }
 0x1f9   : > { %3007 = vmatpush1.bf16.msra.mxu0 %v6148_v20  ;;  %3048 = vmatpush1.bf16.msra.mxu1 %v6151_v21  ;;  %v6213_v20 = vld [vmem:[%s9018_s4 + $0xf6c] ss:$24 sps:$4 sm:$0xff]   ;;  %v6208_v21 = vld [vmem:[%s9018_s4 + $0xc68] ss:$24 sps:$4 sm:$0xff]  }
 0x1fa   : > { %3008 = vmatprep.subr.bf16.mxu0 %v6156_v22  ;;  %3049 = vmatprep.subr.bf16.mxu1 %v6159_v23  ;;  %v6211_v22 = vld [vmem:[%s9018_s4 + $0xf68] ss:$24 sps:$4 sm:$0xff]   ;;  %v6216_v23 = vld [vmem:[%s9018_s4 + $0xc9c] ss:$24 sps:$4 sm:$0xff]  }
 0x1fd   : > { %3009 = vmatpush1.bf16.msra.mxu0 %v6154_v24  ;;  %3050 = vmatpush1.bf16.msra.mxu1 %v6157_v25  ;;  %v6219_v24 = vld [vmem:[%s9018_s4 + $0xf9c] ss:$24 sps:$4 sm:$0xff]   ;;  %v6214_v25 = vld [vmem:[%s9018_s4 + $0xc98] ss:$24 sps:$4 sm:$0xff]  }
 0x1fe   : > { %3010 = vmatprep.subr.bf16.mxu0 %v6162_v26  ;;  %3051 = vmatprep.subr.bf16.mxu1 %v6165_v1  ;;  %v6217_v26 = vld [vmem:[%s9018_s4 + $0xf98] ss:$24 sps:$4 sm:$0xff]   ;;  %v6222_v1 = vld [vmem:[%s9018_s4 + $0xccc] ss:$24 sps:$4 sm:$0xff]  }
 0x201   : > { %3011 = vmatpush1.bf16.msra.mxu0 %v6160_v27  ;;  %3052 = vmatpush1.bf16.msra.mxu1 %v6163_v28  ;;  %v6225_v27 = vld [vmem:[%s9018_s4 + $0xfcc] ss:$24 sps:$4 sm:$0xff]   ;;  %v6220_v28 = vld [vmem:[%s9018_s4 + $0xcc8] ss:$24 sps:$4 sm:$0xff]  }
 0x202   : > { %3012 = vmatprep.subr.bf16.mxu0 %v6168_v30  ;;  %3053 = vmatprep.subr.bf16.mxu1 %v6171_v31  ;;  %v6228_v30 = vld [vmem:[%s9018_s4 + $0xcfc] ss:$24 sps:$4 sm:$0xff]  }
 0x203   : > { %v6231_v31 = vld [vmem:[%s9018_s4 + $0xffc] ss:$24 sps:$4 sm:$0xff]  }
 0x205   : > { %3013 = vmatpush1.bf16.msra.mxu0 %v6166_v33  ;;  %3054 = vmatpush1.bf16.msra.mxu1 %v6169_v35  ;;  %v6226_v33 = vld [vmem:[%s9018_s4 + $0xcf8] ss:$24 sps:$4 sm:$0xff]  }
 0x206   : > { %3014 = vmatprep.subr.bf16.mxu0 %v6174_v39  ;;  %3055 = vmatprep.subr.bf16.mxu1 %v6177_v40  ;;  %v6229_v35 = vld [vmem:[%s9018_s4 + $0xff8] ss:$24 sps:$4 sm:$0xff]   ;;  %v6237_v39 = vld [vmem:[%s9018_s4 + $0x102c] ss:$24 sps:$4 sm:$0xff]   ;;  %v6232_v40 = vld [vmem:[%s9018_s4 + $0xd28] ss:$24 sps:$4 sm:$0xff]  }
 0x209   : > { %3015 = vmatpush1.bf16.msra.mxu0 %v6172_v41  ;;  %3056 = vmatpush1.bf16.msra.mxu1 %v6175_v42  ;;  %v6235_v41 = vld [vmem:[%s9018_s4 + $0x1028] ss:$24 sps:$4 sm:$0xff]   ;;  %v6240_v42 = vld [vmem:[%s9018_s4 + $0xd5c] ss:$24 sps:$4 sm:$0xff]  }
 0x20a   : > { %3016 = vmatprep.subr.bf16.mxu0 %v6180_v44  ;;  %3057 = vmatprep.subr.bf16.mxu1 %v6183_v45  ;;  %v6238_v44 = vld [vmem:[%s9018_s4 + $0xd58] ss:$24 sps:$4 sm:$0xff]  }
 0x20b   : > { %v6241_v45 = vld [vmem:[%s9018_s4 + $0x1058] ss:$24 sps:$4 sm:$0xff]  }
 0x20d   : > { %3017 = vmatpush1.bf16.msra.mxu0 %v6178_v46  ;;  %3058 = vmatpush1.bf16.msra.mxu1 %v6181_v48  ;;  %v6246_v46 = vld [vmem:[%s9018_s4 + $0xd8c] ss:$24 sps:$4 sm:$0xff]  }
 0x20e   : > { %3018 = vmatprep.subr.bf16.mxu0 %v6186_v50  ;;  %3059 = vmatprep.subr.bf16.mxu1 %v6189_v52  ;;  %v6249_v48 = vld [vmem:[%s9018_s4 + $0x108c] ss:$24 sps:$4 sm:$0xff]   ;;  %v6247_v50 = vld [vmem:[%s9018_s4 + $0x1088] ss:$24 sps:$4 sm:$0xff]   ;;  %v6252_v52 = vld [vmem:[%s9018_s4 + $0xdbc] ss:$24 sps:$4 sm:$0xff]  }
 0x211   : > { %3019 = vmatpush1.bf16.msra.mxu0 %v6184_v53  ;;  %3060 = vmatpush1.bf16.msra.mxu1 %v6187_v54  ;;  %v6255_v53 = vld [vmem:[%s9018_s4 + $0x10bc] ss:$24 sps:$4 sm:$0xff]   ;;  %v6250_v54 = vld [vmem:[%s9018_s4 + $0xdb8] ss:$24 sps:$4 sm:$0xff]  }
 0x212   : > { %3020 = vmatprep.subr.bf16.mxu0 %v6192_v56  ;;  %3061 = vmatprep.subr.bf16.mxu1 %v6195_v57  ;;  %v6258_v56 = vld [vmem:[%s9018_s4 + $0xdec] ss:$24 sps:$4 sm:$0xff]  }
 0x213   : > { %v6261_v57 = vld [vmem:[%s9018_s4 + $0x10ec] ss:$24 sps:$4 sm:$0xff]  }
 0x215   : > { %3021 = vmatpush1.bf16.msra.mxu0 %v6190_v58  ;;  %3062 = vmatpush1.bf16.msra.mxu1 %v6193_v59  ;;  %v6256_v58 = vld [vmem:[%s9018_s4 + $0xde8] ss:$24 sps:$4 sm:$0xff]  }
 0x216   : > { %3072 = vmatprep.subr.bf16.mxu0 %v6198_v61  ;;  %3113 = vmatprep.subr.bf16.mxu1 %v6201_v4  ;;  %v6259_v59 = vld [vmem:[%s9018_s4 + $0x10e8] ss:$24 sps:$4 sm:$0xff]   ;;  %v6267_v61 = vld [vmem:[%s9018_s4 + $0x111c] ss:$24 sps:$4 sm:$0xff]   ;;  %v6262_v4 = vld [vmem:[%s9018_s4 + $0xe18] ss:$24 sps:$4 sm:$0xff]  }
 0x218   : > { %3023 = vmatmul.mubr.bf16.vlgmr.msra.gmra.mrb[12].mxu0 %v7538_v8  ;;  %3064 = vmatmul.mubr.bf16.vlgmr.msra.gmra.mrb[12].mxu1 %v7321_v10 }
 0x219   : > { %3073 = vmatpush1.bf16.msra.mxu0 %v6196_v5  ;;  %3104 = vmatprep.mubr.bf16.mxu0 %v7313_v7  ;;  %v6265_v5 = vld [vmem:[%s9018_s4 + $0x1118] ss:$24 sps:$4 sm:$0xff]  }
 0x21a   : > { %3114 = vmatpush1.bf16.msra.mxu1 %v6199_v9  ;;  %3145 = vmatprep.mubr.bf16.mxu1 %v7434_v19  ;;  %v6270_v9 = vld [vmem:[%s9018_s4 + $0xe4c] ss:$24 sps:$4 sm:$0xff]  }
 0x21b   : > { %3074 = vmatprep.subr.bf16.mxu0 %v6204_v12  ;;  %3115 = vmatprep.subr.bf16.mxu1 %v6207_v13  ;;  %v6273_v12 = vld [vmem:[%s9018_s4 + $0x114c] ss:$24 sps:$4 sm:$0xff]   ;;  %v6268_v13 = vld [vmem:[%s9018_s4 + $0xe48] ss:$24 sps:$4 sm:$0xff]  }
 0x21d   : > { %3075 = vmatpush1.bf16.msra.mxu0 %v6202_v15  ;;  %v6271_v15 = vld [vmem:[%s9018_s4 + $0x1148] ss:$24 sps:$4 sm:$0xff]  }
 0x21e   : > { %3116 = vmatpush1.bf16.msra.mxu1 %v6205_v16  ;;  %3076 = vmatprep.subr.bf16.mxu0 %v6210_v18  ;;  %v6276_v16 = vld [vmem:[%s9018_s4 + $0xe7c] ss:$24 sps:$4 sm:$0xff]  }
 0x21f   : > { %3117 = vmatprep.subr.bf16.mxu1 %v6213_v20  ;;  %v6279_v18 = vld [vmem:[%s9018_s4 + $0x117c] ss:$24 sps:$4 sm:$0xff]   ;;  %v6274_v20 = vld [vmem:[%s9018_s4 + $0xe78] ss:$24 sps:$4 sm:$0xff]  }
 0x221   : > { %3077 = vmatpush1.bf16.msra.mxu0 %v6208_v21  ;;  %v6277_v21 = vld [vmem:[%s9018_s4 + $0x1178] ss:$24 sps:$4 sm:$0xff]  }
 0x222   : > { %3118 = vmatpush1.bf16.msra.mxu1 %v6211_v22  ;;  %3078 = vmatprep.subr.bf16.mxu0 %v6216_v23  ;;  %v6282_v22 = vld [vmem:[%s9018_s4 + $0xeac] ss:$24 sps:$4 sm:$0xff]  }
 0x223   : > { %3119 = vmatprep.subr.bf16.mxu1 %v6219_v24  ;;  %v6285_v23 = vld [vmem:[%s9018_s4 + $0x11ac] ss:$24 sps:$4 sm:$0xff]   ;;  %v6280_v24 = vld [vmem:[%s9018_s4 + $0xea8] ss:$24 sps:$4 sm:$0xff]  }
 0x225   : > { %3079 = vmatpush1.bf16.msra.mxu0 %v6214_v25  ;;  %v6283_v25 = vld [vmem:[%s9018_s4 + $0x11a8] ss:$24 sps:$4 sm:$0xff]  }
 0x226   : > { %3120 = vmatpush1.bf16.msra.mxu1 %v6217_v26  ;;  %3080 = vmatprep.subr.bf16.mxu0 %v6222_v1  ;;  %v6288_v26 = vld [vmem:[%s9018_s4 + $0xedc] ss:$24 sps:$4 sm:$0xff]  }
 0x227   : > { %3121 = vmatprep.subr.bf16.mxu1 %v6225_v27  ;;  %v6291_v1 = vld [vmem:[%s9018_s4 + $0x11dc] ss:$24 sps:$4 sm:$0xff]   ;;  %v6286_v27 = vld [vmem:[%s9018_s4 + $0xed8] ss:$24 sps:$4 sm:$0xff]  }
 0x229   : > { %3081 = vmatpush1.bf16.msra.mxu0 %v6220_v28  ;;  %v6289_v28 = vld [vmem:[%s9018_s4 + $0x11d8] ss:$24 sps:$4 sm:$0xff]  }
 0x22a   : > { %3122 = vmatpush1.bf16.msra.mxu1 %v6223_v29  ;;  %3082 = vmatprep.subr.bf16.mxu0 %v6228_v30  ;;  %v6294_v29 = vld [vmem:[%s9018_s4 + $0x914] ss:$24 sps:$4 sm:$0xff]  }
 0x22b   : > { %3123 = vmatprep.subr.bf16.mxu1 %v6231_v31  ;;  %v6297_v30 = vld [vmem:[%s9018_s4 + $0xc14] ss:$24 sps:$4 sm:$0xff]   ;;  %v6292_v31 = vld [vmem:[%s9018_s4 + $0x910] ss:$24 sps:$4 sm:$0xff]  }
 0x22d   : > { %3083 = vmatpush1.bf16.msra.mxu0 %v6226_v33  ;;  %v6295_v33 = vld [vmem:[%s9018_s4 + $0xc10] ss:$24 sps:$4 sm:$0xff]  }
 0x22e   : > { %3124 = vmatpush1.bf16.msra.mxu1 %v6229_v35  ;;  %3084 = vmatprep.subr.bf16.mxu0 %v6234_v37  ;;  %v6300_v35 = vld [vmem:[%s9018_s4 + $0x944] ss:$24 sps:$4 sm:$0xff]  }
 0x22f   : > { %3125 = vmatprep.subr.bf16.mxu1 %v6237_v39  ;;  %v6303_v37 = vld [vmem:[%s9018_s4 + $0xc44] ss:$24 sps:$4 sm:$0xff]   ;;  %v6298_v39 = vld [vmem:[%s9018_s4 + $0x940] ss:$24 sps:$4 sm:$0xff]  }
 0x231   : > { %3085 = vmatpush1.bf16.msra.mxu0 %v6232_v40  ;;  %v6301_v40 = vld [vmem:[%s9018_s4 + $0xc40] ss:$24 sps:$4 sm:$0xff]  }
 0x232   : > { %3126 = vmatpush1.bf16.msra.mxu1 %v6235_v41  ;;  %3086 = vmatprep.subr.bf16.mxu0 %v6240_v42  ;;  %v6306_v41 = vld [vmem:[%s9018_s4 + $0x974] ss:$24 sps:$4 sm:$0xff]  }
 0x233   : > { %3127 = vmatprep.subr.bf16.mxu1 %v6243_v43  ;;  %v6309_v42 = vld [vmem:[%s9018_s4 + $0xc74] ss:$24 sps:$4 sm:$0xff]   ;;  %v6307_v43 = vld [vmem:[%s9018_s4 + $0xc70] ss:$24 sps:$4 sm:$0xff]  }
 0x235   : > { %3087 = vmatpush1.bf16.msra.mxu0 %v6238_v44  ;;  %v6315_v44 = vld [vmem:[%s9018_s4 + $0xca4] ss:$24 sps:$4 sm:$0xff]  }
 0x236   : > { %3128 = vmatpush1.bf16.msra.mxu1 %v6241_v45  ;;  %3088 = vmatprep.subr.bf16.mxu0 %v6246_v46  ;;  %v6310_v45 = vld [vmem:[%s9018_s4 + $0x9a0] ss:$24 sps:$4 sm:$0xff]  }
 0x237   : > { %3129 = vmatprep.subr.bf16.mxu1 %v6249_v48  ;;  %v6313_v46 = vld [vmem:[%s9018_s4 + $0xca0] ss:$24 sps:$4 sm:$0xff]   ;;  %v6318_v48 = vld [vmem:[%s9018_s4 + $0x9d4] ss:$24 sps:$4 sm:$0xff]  }
 0x239   : > { %3089 = vmatpush1.bf16.msra.mxu0 %v6244_v49  ;;  %v6321_v49 = vld [vmem:[%s9018_s4 + $0xcd4] ss:$24 sps:$4 sm:$0xff]  }
 0x23a   : > { %3130 = vmatpush1.bf16.msra.mxu1 %v6247_v50  ;;  %3090 = vmatprep.subr.bf16.mxu0 %v6252_v52  ;;  %v6316_v50 = vld [vmem:[%s9018_s4 + $0x9d0] ss:$24 sps:$4 sm:$0xff]  }
 0x23b   : > { %3131 = vmatprep.subr.bf16.mxu1 %v6255_v53  ;;  %v6319_v52 = vld [vmem:[%s9018_s4 + $0xcd0] ss:$24 sps:$4 sm:$0xff]   ;;  %v6324_v53 = vld [vmem:[%s9018_s4 + $0xa04] ss:$24 sps:$4 sm:$0xff]  }
 0x23d   : > { %3091 = vmatpush1.bf16.msra.mxu0 %v6250_v54  ;;  %v6327_v54 = vld [vmem:[%s9018_s4 + $0xd04] ss:$24 sps:$4 sm:$0xff]  }
 0x23e   : > { %3132 = vmatpush1.bf16.msra.mxu1 %v6253_v55  ;;  %3092 = vmatprep.subr.bf16.mxu0 %v6258_v56  ;;  %v6322_v55 = vld [vmem:[%s9018_s4 + $0xa00] ss:$24 sps:$4 sm:$0xff]  }
 0x23f   : > { %3133 = vmatprep.subr.bf16.mxu1 %v6261_v57  ;;  %v6325_v56 = vld [vmem:[%s9018_s4 + $0xd00] ss:$24 sps:$4 sm:$0xff]   ;;  %v6330_v57 = vld [vmem:[%s9018_s4 + $0xa34] ss:$24 sps:$4 sm:$0xff]  }
 0x241   : > { %3093 = vmatpush1.bf16.msra.mxu0 %v6256_v58  ;;  %v6333_v58 = vld [vmem:[%s9018_s4 + $0xd34] ss:$24 sps:$4 sm:$0xff]  }
 0x242   : > { %3134 = vmatpush1.bf16.msra.mxu1 %v6259_v59  ;;  %3094 = vmatprep.subr.bf16.mxu0 %v6264_v60  ;;  %v6328_v59 = vld [vmem:[%s9018_s4 + $0xa30] ss:$24 sps:$4 sm:$0xff]  }
 0x243   : > { %3135 = vmatprep.subr.bf16.mxu1 %v6267_v61  ;;  %v6331_v60 = vld [vmem:[%s9018_s4 + $0xd30] ss:$24 sps:$4 sm:$0xff]   ;;  %v6336_v61 = vld [vmem:[%s9018_s4 + $0xa64] ss:$24 sps:$4 sm:$0xff]  }
 0x245   : > { %3095 = vmatpush1.bf16.msra.mxu0 %v6262_v4  ;;  %v6339_v4 = vld [vmem:[%s9018_s4 + $0xd64] ss:$24 sps:$4 sm:$0xff]  }
 0x246   : > { %3136 = vmatpush1.bf16.msra.mxu1 %v6265_v5  ;;  %3096 = vmatprep.subr.bf16.mxu0 %v6270_v9  ;;  %v6334_v5 = vld [vmem:[%s9018_s4 + $0xa60] ss:$24 sps:$4 sm:$0xff]  }
 0x247   : > { %3137 = vmatprep.subr.bf16.mxu1 %v6273_v12  ;;  %v6337_v9 = vld [vmem:[%s9018_s4 + $0xd60] ss:$24 sps:$4 sm:$0xff]   ;;  %v6342_v12 = vld [vmem:[%s9018_s4 + $0xa94] ss:$24 sps:$4 sm:$0xff]  }
 0x249   : > { %3097 = vmatpush1.bf16.msra.mxu0 %v6268_v13  ;;  %v6345_v13 = vld [vmem:[%s9018_s4 + $0xd94] ss:$24 sps:$4 sm:$0xff]  }
 0x24a   : > { %3138 = vmatpush1.bf16.msra.mxu1 %v6271_v15  ;;  %3098 = vmatprep.subr.bf16.mxu0 %v6276_v16  ;;  %v6340_v15 = vld [vmem:[%s9018_s4 + $0xa90] ss:$24 sps:$4 sm:$0xff]  }
 0x24b   : > { %3139 = vmatprep.subr.bf16.mxu1 %v6279_v18  ;;  %v6343_v16 = vld [vmem:[%s9018_s4 + $0xd90] ss:$24 sps:$4 sm:$0xff]   ;;  %v6348_v18 = vld [vmem:[%s9018_s4 + $0xac4] ss:$24 sps:$4 sm:$0xff]  }
 0x24d   : > { %3099 = vmatpush1.bf16.msra.mxu0 %v6274_v20  ;;  %v6351_v20 = vld [vmem:[%s9018_s4 + $0xdc4] ss:$24 sps:$4 sm:$0xff]  }
 0x24e   : > { %3140 = vmatpush1.bf16.msra.mxu1 %v6277_v21  ;;  %3100 = vmatprep.subr.bf16.mxu0 %v6282_v22  ;;  %v6346_v21 = vld [vmem:[%s9018_s4 + $0xac0] ss:$24 sps:$4 sm:$0xff]  }
 0x24f   : > { %3141 = vmatprep.subr.bf16.mxu1 %v6285_v23  ;;  %v6349_v22 = vld [vmem:[%s9018_s4 + $0xdc0] ss:$24 sps:$4 sm:$0xff]   ;;  %v6354_v23 = vld [vmem:[%s9018_s4 + $0xaf4] ss:$24 sps:$4 sm:$0xff]  }
 0x251   : > { %3101 = vmatpush1.bf16.msra.mxu0 %v6280_v24  ;;  %v6357_v24 = vld [vmem:[%s9018_s4 + $0xdf4] ss:$24 sps:$4 sm:$0xff]  }
 0x252   : > { %3142 = vmatpush1.bf16.msra.mxu1 %v6283_v25  ;;  %3102 = vmatprep.subr.bf16.mxu0 %v6288_v26  ;;  %v797_v25 = vrot.slane %v7307_v36, 4  ;;  %v6352_v26 = vld [vmem:[%s9018_s4 + $0xaf0] ss:$24 sps:$4 sm:$0xff]  }
 0x253   : > { %3143 = vmatprep.subr.bf16.mxu1 %v6291_v1  ;;  %v6355_v1 = vld [vmem:[%s9018_s4 + $0xdf0] ss:$24 sps:$4 sm:$0xff]  }
 0x255   : > { %3103 = vmatpush1.bf16.msra.mxu0 %v6286_v27  ;;  %v6360_v27 = vld [vmem:[%s9018_s4 + $0xb24] ss:$24 sps:$4 sm:$0xff]  }
 0x256   : > { %3144 = vmatpush1.bf16.msra.mxu1 %v6289_v28  ;;  %3154 = vmatprep.subr.bf16.mxu0 %v6294_v29  ;;  %v6363_v28 = vld [vmem:[%s9018_s4 + $0xe24] ss:$24 sps:$4 sm:$0xff]   ;;  %v798_v29 = vadd.f32 %v797_v25, %v7307_v36  ;;  %v6369_v36 = vld [vmem:[%s9018_s4 + $0xe54] ss:$24 sps:$4 sm:$0xff]  }
 0x257   : > { %3195 = vmatprep.subr.bf16.mxu1 %v6297_v30  ;;  %v6358_v30 = vld [vmem:[%s9018_s4 + $0xb20] ss:$24 sps:$4 sm:$0xff]   ;;  %v6423_v25 = vld [vmem:[%s9018_s4 + $0xf4] ss:$24 sps:$4 sm:$0xff]  }
 0x258   : > { %3105 = vmatmul.mubr.bf16.vlgmr.msra.gmra.mrb[16].mxu0 %v7323_v11 }
 0x259   : > { %3146 = vmatmul.mubr.bf16.vlgmr.msra.gmra.mrb[16].mxu1 %v7538_v8  ;;  %3155 = vmatpush1.bf16.msra.mxu0 %v6292_v31  ;;  %v6361_v31 = vld [vmem:[%s9018_s4 + $0xe20] ss:$24 sps:$4 sm:$0xff]  }
 0x25a   : > { %3186 = vmatprep.mubr.bf16.mxu0 %v7311_v6  ;;  %3196 = vmatpush1.bf16.msra.mxu1 %v6295_v33  ;;  %v6304_v6 = vld [vmem:[%s9018_s4 + $0x970] ss:$24 sps:$4 sm:$0xff]   ;;  %v6366_v33 = vld [vmem:[%s9018_s4 + $0xb54] ss:$24 sps:$4 sm:$0xff]  }
 0x25b   : > { %3227 = vmatprep.mubr.bf16.mxu1 %v7313_v7  ;;  %3156 = vmatprep.subr.bf16.mxu0 %v6300_v35  ;;  %v6312_v7 = vld [vmem:[%s9018_s4 + $0x9a4] ss:$24 sps:$4 sm:$0xff]   ;;  %v799_v35 = vrot.slane %v798_v29, 2 }
 0x25c   : > { %3197 = vmatprep.subr.bf16.mxu1 %v6303_v37  ;;  %v6364_v37 = vld [vmem:[%s9018_s4 + $0xb50] ss:$24 sps:$4 sm:$0xff]  }
 0x25d   : > { %3157 = vmatpush1.bf16.msra.mxu0 %v6298_v39  ;;  %v6367_v39 = vld [vmem:[%s9018_s4 + $0xe50] ss:$24 sps:$4 sm:$0xff]  }
 0x25e   : > { %3198 = vmatpush1.bf16.msra.mxu1 %v6301_v40  ;;  %3158 = vmatprep.subr.bf16.mxu0 %v6306_v41  ;;  %v6372_v40 = vld [vmem:[%s9018_s4 + $0xb84] ss:$24 sps:$4 sm:$0xff]  }
 0x25f   : > { %3199 = vmatprep.subr.bf16.mxu1 %v6309_v42  ;;  %v6375_v41 = vld [vmem:[%s9018_s4 + $0xe84] ss:$24 sps:$4 sm:$0xff]   ;;  %v6370_v42 = vld [vmem:[%s9018_s4 + $0xb80] ss:$24 sps:$4 sm:$0xff]  }
 0x261   : > { %3159 = vmatpush1.bf16.msra.mxu0 %v6304_v6  ;;  %v800_v6 = vadd.f32 %v799_v35, %v798_v29 }
 0x262   : > { %3200 = vmatpush1.bf16.msra.mxu1 %v6307_v43  ;;  %3160 = vmatprep.subr.bf16.mxu0 %v6312_v7  ;;  %v6373_v43 = vld [vmem:[%s9018_s4 + $0xe80] ss:$24 sps:$4 sm:$0xff]   ;;  %v6378_v7 = vld [vmem:[%s9018_s4 + $0xbb4] ss:$24 sps:$4 sm:$0xff]  }
 0x263   : > { %3201 = vmatprep.subr.bf16.mxu1 %v6315_v44  ;;  %v6381_v44 = vld [vmem:[%s9018_s4 + $0xeb4] ss:$24 sps:$4 sm:$0xff]  }
 0x265   : > { %3161 = vmatpush1.bf16.msra.mxu0 %v6310_v45  ;;  %v6376_v45 = vld [vmem:[%s9018_s4 + $0xbb0] ss:$24 sps:$4 sm:$0xff]  }
 0x266   : > { %3202 = vmatpush1.bf16.msra.mxu1 %v6313_v46  ;;  %3162 = vmatprep.subr.bf16.mxu0 %v6318_v48  ;;  %v801_v46 = vrot.slane %v800_v6, 1  ;;  %v6379_v48 = vld [vmem:[%s9018_s4 + $0xeb0] ss:$24 sps:$4 sm:$0xff]  }
 0x267   : > { %3203 = vmatprep.subr.bf16.mxu1 %v6321_v49  ;;  %v6384_v49 = vld [vmem:[%s9018_s4 + $0xbe4] ss:$24 sps:$4 sm:$0xff]  }
 0x269   : > { %3163 = vmatpush1.bf16.msra.mxu0 %v6316_v50  ;;  %v6387_v50 = vld [vmem:[%s9018_s4 + $0xee4] ss:$24 sps:$4 sm:$0xff]  }
 0x26a   : > { %3204 = vmatpush1.bf16.msra.mxu1 %v6319_v52  ;;  %3164 = vmatprep.subr.bf16.mxu0 %v6324_v53  ;;  %v6382_v52 = vld [vmem:[%s9018_s4 + $0xbe0] ss:$24 sps:$4 sm:$0xff]   ;;  %v802_v53 = vadd.f32 %v801_v46, %v800_v6  ;;  %v6438_v46 = vld [vmem:[%s9018_s4 + $0x1094] ss:$24 sps:$4 sm:$0xff]  }
 0x26b   : > { %3205 = vmatprep.subr.bf16.mxu1 %v6327_v54  ;;  %v6385_v54 = vld [vmem:[%s9018_s4 + $0xee0] ss:$24 sps:$4 sm:$0xff]  }
 0x26c   : > { %v6427_v6 = vld [vmem:[%s9018_s4 + $0x120] ss:$24 sps:$4 sm:$0xff]  }
 0x26d   : > { %3165 = vmatpush1.bf16.msra.mxu0 %v6322_v55  ;;  %v6390_v55 = vld [vmem:[%s9018_s4 + $0xf14] ss:$24 sps:$4 sm:$0xff]  }
 0x26e   : > { %3206 = vmatpush1.bf16.msra.mxu1 %v6325_v56  ;;  %3166 = vmatprep.subr.bf16.mxu0 %v6330_v57  ;;  %v6393_v56 = vld [vmem:[%s9018_s4 + $0x4] ss:$24 sps:$4 sm:$0xff]   ;;  %v6388_v57 = vld [vmem:[%s9018_s4 + $0xf10] ss:$24 sps:$4 sm:$0xff]  }
 0x26f   : > { %3207 = vmatprep.subr.bf16.mxu1 %v6333_v58  ;;  %v833_v58 = vmul.f32 0.0625, %v802_v53  ;;  %v6447_v53 = vld [vmem:[%s9018_s4 + $0x1b4] ss:$24 sps:$4 sm:$0xff]  }
 0x271   : > { %3167 = vmatpush1.bf16.msra.mxu0 %v6328_v59  ;;  %v6391_v59 = vld [vmem:[%s9018_s4] ss:$24 sps:$4 sm:$0xff]  }
 0x272   : > { %3208 = vmatpush1.bf16.msra.mxu1 %v6331_v60  ;;  %3168 = vmatprep.subr.bf16.mxu0 %v6336_v61  ;;  %v6396_v60 = vld [vmem:[%s9018_s4 + $0xf44] ss:$24 sps:$4 sm:$0xff]   ;;  %v6399_v61 = vld [vmem:[%s9018_s4 + $0x34] ss:$24 sps:$4 sm:$0xff]  }
 0x273   : > { %3209 = vmatprep.subr.bf16.mxu1 %v6339_v4  ;;  %v7945_v4 = vpack.c.bf16 %v833_v58, %v833_v58  ;;  %v6453_v58 = vld [vmem:[%s9018_s4 + $0x1e4] ss:$24 sps:$4 sm:$0xff]  }
 0x275   : > { %3169 = vmatpush1.bf16.msra.mxu0 %v6334_v5  ;;  %v6394_v5 = vld [vmem:[%s9018_s4 + $0xf40] ss:$24 sps:$4 sm:$0xff]  }
 0x276   : > { %3210 = vmatpush1.bf16.msra.mxu1 %v6337_v9  ;;  %3170 = vmatprep.subr.bf16.mxu0 %v6342_v12  ;;  %v6402_v9 = vld [vmem:[%s9018_s4 + $0xf74] ss:$24 sps:$4 sm:$0xff]   ;;  %v6403_v12 = vld [vmem:[%s9018_s4 + $0x60] ss:$24 sps:$4 sm:$0xff]  }
 0x277   : > { %3211 = vmatprep.subr.bf16.mxu1 %v6345_v13  ;;  %v6408_v13 = vld [vmem:[%s9018_s4 + $0xfa4] ss:$24 sps:$4 sm:$0xff]  }
 0x279   : > { %3171 = vmatpush1.bf16.msra.mxu0 %v6340_v15  ;;  %v6411_v15 = vld [vmem:[%s9018_s4 + $0x94] ss:$24 sps:$4 sm:$0xff]  }
 0x27a   : > { %3212 = vmatpush1.bf16.msra.mxu1 %v6343_v16  ;;  %3172 = vmatprep.subr.bf16.mxu0 %v6348_v18  ;;  %v6406_v16 = vld [vmem:[%s9018_s4 + $0xfa0] ss:$24 sps:$4 sm:$0xff]   ;;  %v6409_v18 = vld [vmem:[%s9018_s4 + $0x90] ss:$24 sps:$4 sm:$0xff]  }
 0x27b   : > { %3213 = vmatprep.subr.bf16.mxu1 %v6351_v20  ;;  %v6414_v20 = vld [vmem:[%s9018_s4 + $0xfd4] ss:$24 sps:$4 sm:$0xff]  }
 0x27d   : > { %3173 = vmatpush1.bf16.msra.mxu0 %v6346_v21  ;;  %v6417_v21 = vld [vmem:[%s9018_s4 + $0xc4] ss:$24 sps:$4 sm:$0xff]  }
 0x27e   : > { %3214 = vmatpush1.bf16.msra.mxu1 %v6349_v22  ;;  %3174 = vmatprep.subr.bf16.mxu0 %v6354_v23  ;;  %v6412_v22 = vld [vmem:[%s9018_s4 + $0xfd0] ss:$24 sps:$4 sm:$0xff]   ;;  %v6415_v23 = vld [vmem:[%s9018_s4 + $0xc0] ss:$24 sps:$4 sm:$0xff]  }
 0x27f   : > { %3215 = vmatprep.subr.bf16.mxu1 %v6357_v24  ;;  %v6420_v24 = vld [vmem:[%s9018_s4 + $0x1004] ss:$24 sps:$4 sm:$0xff]  }
 0x281   : > { %3175 = vmatpush1.bf16.msra.mxu0 %v6352_v26  ;;  %v6418_v26 = vld [vmem:[%s9018_s4 + $0x1000] ss:$24 sps:$4 sm:$0xff]  }
 0x282   : > { %3216 = vmatpush1.bf16.msra.mxu1 %v6355_v1  ;;  %3176 = vmatprep.subr.bf16.mxu0 %v6360_v27  ;;  %v6421_v1 = vld [vmem:[%s9018_s4 + $0xf0] ss:$24 sps:$4 sm:$0xff]   ;;  %v6426_v27 = vld [vmem:[%s9018_s4 + $0x1034] ss:$24 sps:$4 sm:$0xff]  }
 0x283   : > { %3217 = vmatprep.subr.bf16.mxu1 %v6363_v28 }
 0x285   : > { %3177 = vmatpush1.bf16.msra.mxu0 %v6358_v30  ;;  %v6429_v30 = vld [vmem:[%s9018_s4 + $0x124] ss:$24 sps:$4 sm:$0xff]  }
 0x286   : > { %3218 = vmatpush1.bf16.msra.mxu1 %v6361_v31  ;;  %3178 = vmatprep.subr.bf16.mxu0 %v6366_v33 }
 0x287   : > { %3219 = vmatprep.subr.bf16.mxu1 %v6369_v36 }
 0x289   : > { %3179 = vmatpush1.bf16.msra.mxu0 %v6364_v37 }
 0x28a   : > { %3220 = vmatpush1.bf16.msra.mxu1 %v6367_v39  ;;  %3180 = vmatprep.subr.bf16.mxu0 %v6372_v40  ;;  %v6424_v40 = vld [vmem:[%s9018_s4 + $0x1030] ss:$24 sps:$4 sm:$0xff]  }
 0x28b   : > { %3221 = vmatprep.subr.bf16.mxu1 %v6375_v41 }
 0x28d   : > { %3181 = vmatpush1.bf16.msra.mxu0 %v6370_v42 }
 0x28e   : > { %3222 = vmatpush1.bf16.msra.mxu1 %v6373_v43  ;;  %3182 = vmatprep.subr.bf16.mxu0 %v6378_v7  ;;  %v6432_v43 = vld [vmem:[%s9018_s4 + $0x1064] ss:$24 sps:$4 sm:$0xff]   ;;  %v6435_v7 = vld [vmem:[%s9018_s4 + $0x154] ss:$24 sps:$4 sm:$0xff]  }
 0x28f   : > { %3223 = vmatprep.subr.bf16.mxu1 %v6381_v44  ;;  %v6430_v44 = vld [vmem:[%s9018_s4 + $0x1060] ss:$24 sps:$4 sm:$0xff]  }
 0x291   : > { %3183 = vmatpush1.bf16.msra.mxu0 %v6376_v45  ;;  %v6433_v45 = vld [vmem:[%s9018_s4 + $0x150] ss:$24 sps:$4 sm:$0xff]  }
 0x292   : > { %3224 = vmatpush1.bf16.msra.mxu1 %v6379_v48  ;;  %3184 = vmatprep.subr.bf16.mxu0 %v6384_v49  ;;  %v6441_v48 = vld [vmem:[%s9018_s4 + $0x184] ss:$24 sps:$4 sm:$0xff]   ;;  %v6436_v49 = vld [vmem:[%s9018_s4 + $0x1090] ss:$24 sps:$4 sm:$0xff]  }
 0x293   : > { %3225 = vmatprep.subr.bf16.mxu1 %v6387_v50  ;;  %v6439_v50 = vld [vmem:[%s9018_s4 + $0x180] ss:$24 sps:$4 sm:$0xff]  }
 0x295   : > { %3185 = vmatpush1.bf16.msra.mxu0 %v6382_v52  ;;  %v6444_v52 = vld [vmem:[%s9018_s4 + $0x10c4] ss:$24 sps:$4 sm:$0xff]  }
 0x296   : > { %3226 = vmatpush1.bf16.msra.mxu1 %v6385_v54  ;;  %3236 = vmatprep.subr.bf16.mxu0 %v6390_v55  ;;  %v6442_v54 = vld [vmem:[%s9018_s4 + $0x10c0] ss:$24 sps:$4 sm:$0xff]   ;;  %v6445_v55 = vld [vmem:[%s9018_s4 + $0x1b0] ss:$24 sps:$4 sm:$0xff]  }
 0x297   : > { %4717 = vmatprep.subr.bf16.mxu1 %v6393_v56  ;;  %v6450_v56 = vld [vmem:[%s9018_s4 + $0x10f4] ss:$24 sps:$4 sm:$0xff]  }
 0x298   : > { %3187 = vmatmul.mubr.bf16.vlgmr.msra.gmra.mrb[20].mxu0 %v7321_v10  ;;  %v6397_v10 = vld [vmem:[%s9018_s4 + $0x30] ss:$24 sps:$4 sm:$0xff]  }
 0x299   : > { %3228 = vmatmul.mubr.bf16.vlgmr.msra.gmra.mrb[20].mxu1 %v7323_v11  ;;  %3237 = vmatpush1.bf16.msra.mxu0 %v6388_v57  ;;  %v6405_v11 = vld [vmem:[%s9018_s4 + $0x64] ss:$24 sps:$4 sm:$0xff]   ;;  %v790_v57 = vrot.slane %v7303_v32, 4 }
 0x29a   : > { %3268 = vmatprep.mubr.bf16.mxu0 %v7434_v19  ;;  %4718 = vmatpush1.bf16.msra.mxu1 %v6391_v59  ;;  %v6400_v19 = vld [vmem:[%s9018_s4 + $0xf70] ss:$24 sps:$4 sm:$0xff]   ;;  %v811_v59 = vrot.slane %v7309_v38, 4 }
 0x29b   : > { %4749 = vmatprep.mubr.bf16.mxu1 %v7945_v4  ;;  %3238 = vmatprep.subr.bf16.mxu0 %v6396_v60  ;;  %v825_v60 = vrot.slane %v7396_v51, 4 }
 0x29c   : > { %4719 = vmatprep.subr.bf16.mxu1 %v6399_v61  ;;  %v6448_v61 = vld [vmem:[%s9018_s4 + $0x10f0] ss:$24 sps:$4 sm:$0xff]  }
 0x29d   : > { %3239 = vmatpush1.bf16.msra.mxu0 %v6394_v5  ;;  %v6451_v5 = vld [vmem:[%s9018_s4 + $0x1e0] ss:$24 sps:$4 sm:$0xff]  }
 0x29e   : > { %4720 = vmatpush1.bf16.msra.mxu1 %v6397_v10  ;;  %3240 = vmatprep.subr.bf16.mxu0 %v6402_v9  ;;  %v6456_v10 = vld [vmem:[%s9018_s4 + $0x1124] ss:$24 sps:$4 sm:$0xff]   ;;  %v791_v9 = vadd.f32 %v790_v57, %v7303_v32  ;;  %v6457_v32 = vld [vmem:[%s9018_s4 + $0x210] ss:$24 sps:$4 sm:$0xff]   ;;  %v6495_v57 = vld [vmem:[%s9018_s4 + $0x634] ss:$24 sps:$4 sm:$0xff]  }
 0x29f   : > { %4721 = vmatprep.subr.bf16.mxu1 %v6405_v11  ;;  %v6459_v11 = vld [vmem:[%s9018_s4 + $0x214] ss:$24 sps:$4 sm:$0xff]  }
 0x2a1   : > { %3241 = vmatpush1.bf16.msra.mxu0 %v6400_v19  ;;  %v812_v19 = vadd.f32 %v811_v59, %v7309_v38  ;;  %v6465_v38 = vld [vmem:[%s9018_s4 + $0x244] ss:$24 sps:$4 sm:$0xff]   ;;  %v6490_v59 = vld [vmem:[%s9018_s4 + $0x330] ss:$24 sps:$4 sm:$0xff]  }
 0x2a2   : > { %4722 = vmatpush1.bf16.msra.mxu1 %v6403_v12  ;;  %3242 = vmatprep.subr.bf16.mxu0 %v6408_v13  ;;  %v826_v12 = vadd.f32 %v825_v60, %v7396_v51  ;;  %v6454_v13 = vld [vmem:[%s9018_s4 + $0x1120] ss:$24 sps:$4 sm:$0xff]   ;;  %v6498_v60 = vld [vmem:[%s9018_s4 + $0x364] ss:$24 sps:$4 sm:$0xff]  }
 0x2a3   : > { %4723 = vmatprep.subr.bf16.mxu1 %v6411_v15  ;;  %v6462_v15 = vld [vmem:[%s9018_s4 + $0x1154] ss:$24 sps:$4 sm:$0xff]   ;;  %v813_v51 = vrot.slane %v812_v19, 2 }
 0x2a5   : > { %3243 = vmatpush1.bf16.msra.mxu0 %v6406_v16  ;;  %v792_v16 = vrot.slane %v791_v9, 2 }
 0x2a6   : > { %4724 = vmatpush1.bf16.msra.mxu1 %v6409_v18  ;;  %3244 = vmatprep.subr.bf16.mxu0 %v6414_v20  ;;  %v827_v18 = vrot.slane %v826_v12, 2  ;;  %v6460_v20 = vld [vmem:[%s9018_s4 + $0x1150] ss:$24 sps:$4 sm:$0xff]  }
 0x2a7   : > { %4725 = vmatprep.subr.bf16.mxu1 %v6417_v21  ;;  %v6463_v21 = vld [vmem:[%s9018_s4 + $0x240] ss:$24 sps:$4 sm:$0xff]  }
 0x2a9   : > { %3245 = vmatpush1.bf16.msra.mxu0 %v6412_v22  ;;  %v6468_v22 = vld [vmem:[%s9018_s4 + $0x1184] ss:$24 sps:$4 sm:$0xff]  }
 0x2aa   : > { %4726 = vmatpush1.bf16.msra.mxu1 %v6415_v23  ;;  %3246 = vmatprep.subr.bf16.mxu0 %v6420_v24  ;;  %v793_v23 = vadd.f32 %v792_v16, %v791_v9  ;;  %v6471_v24 = vld [vmem:[%s9018_s4 + $0x274] ss:$24 sps:$4 sm:$0xff]   ;;  %v6511_v16 = vld [vmem:[%s9018_s4 + $0x6c0] ss:$24 sps:$4 sm:$0xff]  }
 0x2ab   : > { %v2942_v28 = vpop.f32.mrb[8].mxu0  ;;  %v2983_v29 = vpop.f32.mrb[8].mxu1  ;;  %4727 = vmatprep.subr.bf16.mxu1 %v6423_v25  ;;  %v814_v25 = vadd.f32 %v813_v51, %v812_v19  ;;  %v6504_v9 = vld [vmem:[%s9018_s4 + $0x394] ss:$24 sps:$4 sm:$0xff]   ;;  %v6502_v19 = vld [vmem:[%s9018_s4 + $0x390] ss:$24 sps:$4 sm:$0xff]  }
 0x2ac   : > { %v8009_v31 = vadd.f32 %v2983_v29, %v2942_v28  ;;  %v2944_v33 = vpop.f32.mrb[9].mxu0  ;;  %v2985_v36 = vpop.f32.mrb[9].mxu1  ;;  %v6474_v28 = vld [vmem:[%s9018_s4 + $0x11b4] ss:$24 sps:$4 sm:$0xff]   ;;  %v794_v29 = vrot.slane %v793_v23, 1 }
 0x2ad   : > { %v8011_v35 = vadd.f32 %v2985_v36, %v2944_v33  ;;  %3247 = vmatpush1.bf16.msra.mxu0 %v6418_v26  ;;  %v2946_v37 = vpop.f32.mrb[10].mxu0  ;;  %v2987_v39 = vpop.f32.mrb[10].mxu1  ;;  %v6466_v26 = vld [vmem:[%s9018_s4 + $0x1180] ss:$24 sps:$4 sm:$0xff]   ;;  %v815_v33 = vrot.slane %v814_v25, 1 }
 0x2ae   : > { %4728 = vmatpush1.bf16.msra.mxu1 %v6421_v1  ;;  %v2947_v41 = vpop.f32.mrb[11].mxu0  ;;  %v2988_v42 = vpop.f32.mrb[11].mxu1  ;;  %3248 = vmatprep.subr.bf16.mxu0 %v6426_v27  ;;  %v828_v1 = vadd.f32 %v827_v18, %v826_v12  ;;  %v6469_v27 = vld [vmem:[%s9018_s4 + $0x270] ss:$24 sps:$4 sm:$0xff]   ;;  %v6475_v39 = vld [vmem:[%s9018_s4 + $0x2a0] ss:$24 sps:$4 sm:$0xff]  }
 0x2af   : > { %4729 = vmatprep.subr.bf16.mxu1 %v6429_v30  ;;  %v6477_v30 = vld [vmem:[%s9018_s4 + $0x2a4] ss:$24 sps:$4 sm:$0xff]   ;;  %v6472_v36 = vld [vmem:[%s9018_s4 + $0x11b0] ss:$24 sps:$4 sm:$0xff]   ;;  %v6483_v41 = vld [vmem:[%s9018_s4 + $0x2d4] ss:$24 sps:$4 sm:$0xff]   ;;  %v795_v42 = vadd.f32 %v794_v29, %v793_v23 }
 0x2b0   : > { %v829_v37 = vrot.slane %v828_v1, 1  ;;  %v6505_v12 = vld [vmem:[%s9018_s4 + $0x690] ss:$24 sps:$4 sm:$0xff]   ;;  %v6519_v51 = vld [vmem:[%s9018_s4 + $0x6f4] ss:$24 sps:$4 sm:$0xff]  }
 0x2b1   : > { %3249 = vmatpush1.bf16.msra.mxu0 %v6424_v40  ;;  %v6480_v40 = vld [vmem:[%s9018_s4 + $0x11e4] ss:$24 sps:$4 sm:$0xff]   ;;  %v6514_v18 = vld [vmem:[%s9018_s4 + $0x3f0] ss:$24 sps:$4 sm:$0xff]  }
 0x2b2   : > { %4730 = vmatpush1.bf16.msra.mxu1 %v6427_v6  ;;  %3250 = vmatprep.subr.bf16.mxu0 %v6432_v43  ;;  %v816_v6 = vadd.f32 %v815_v33, %v814_v25  ;;  %v6478_v43 = vld [vmem:[%s9018_s4 + $0x11e0] ss:$24 sps:$4 sm:$0xff]  }
 0x2b3   : > { %4731 = vmatprep.subr.bf16.mxu1 %v6435_v7  ;;  %v830_v7 = vadd.f32 %v829_v37, %v828_v1  ;;  %v6531_v37 = vld [vmem:[%s9018_s4 + $0x754] ss:$24 sps:$4 sm:$0xff]  }
 0x2b5   : > { %3251 = vmatpush1.bf16.msra.mxu0 %v6430_v44  ;;  %v6481_v44 = vld [vmem:[%s9018_s4 + $0x2d0] ss:$24 sps:$4 sm:$0xff]  }
 0x2b6   : > { %4732 = vmatpush1.bf16.msra.mxu1 %v6433_v45  ;;  %3252 = vmatprep.subr.bf16.mxu0 %v6438_v46  ;;  %v6486_v45 = vld [vmem:[%s9018_s4 + $0x304] ss:$24 sps:$4 sm:$0xff]   ;;  %v832_v46 = vmul.f32 0.0625, %v795_v42 }
 0x2b7   : > { %4733 = vmatprep.subr.bf16.mxu1 %v6441_v48  ;;  %v6489_v48 = vld [vmem:[%s9018_s4 + $0x604] ss:$24 sps:$4 sm:$0xff]  }
 0x2b8   : > { %v6537_v42 = vld [vmem:[%s9018_s4 + $0x784] ss:$24 sps:$4 sm:$0xff]  }
 0x2b9   : > { %3253 = vmatpush1.bf16.msra.mxu0 %v6436_v49  ;;  %v835_v49 = vmul.f32 0.0625, %v816_v6  ;;  %v6532_v6 = vld [vmem:[%s9018_s4 + $0x480] ss:$24 sps:$4 sm:$0xff]  }
 0x2ba   : > { %4734 = vmatpush1.bf16.msra.mxu1 %v6439_v50  ;;  %3254 = vmatprep.subr.bf16.mxu0 %v6444_v52  ;;  %v6484_v50 = vld [vmem:[%s9018_s4 + $0x300] ss:$24 sps:$4 sm:$0xff]   ;;  %v837_v52 = vmul.f32 0.0625, %v830_v7  ;;  %v6540_v7 = vld [vmem:[%s9018_s4 + $0x4b4] ss:$24 sps:$4 sm:$0xff]  }
 0x2bb   : > { %4735 = vmatprep.subr.bf16.mxu1 %v6447_v53  ;;  %v6487_v53 = vld [vmem:[%s9018_s4 + $0x600] ss:$24 sps:$4 sm:$0xff]  }
 0x2bd   : > { %3255 = vmatpush1.bf16.msra.mxu0 %v6442_v54  ;;  %v8145_v54 = vpack.c.bf16 %v832_v46, %v832_v46  ;;  %v804_v46 = vrot.slane %v7305_v34, 4 }
 0x2be   : > { %4736 = vmatpush1.bf16.msra.mxu1 %v6445_v55  ;;  %3256 = vmatprep.subr.bf16.mxu0 %v6450_v56  ;;  %v6492_v55 = vld [vmem:[%s9018_s4 + $0x334] ss:$24 sps:$4 sm:$0xff]   ;;  %v8151_v56 = vpack.c.bf16 %v835_v49, %v835_v49  ;;  %v6546_v49 = vld [vmem:[%s9018_s4 + $0x4e4] ss:$24 sps:$4 sm:$0xff]  }
 0x2bf   : > { %4737 = vmatprep.subr.bf16.mxu1 %v6453_v58  ;;  %v8157_v58 = vpack.c.bf16 %v837_v52, %v837_v52  ;;  %v6549_v52 = vld [vmem:[%s9018_s4 + $0x7e4] ss:$24 sps:$4 sm:$0xff]  }
 0x2c1   : > { %3257 = vmatpush1.bf16.msra.mxu0 %v6448_v61  ;;  %v6501_v61 = vld [vmem:[%s9018_s4 + $0x664] ss:$24 sps:$4 sm:$0xff]  }
 0x2c2   : > { %4738 = vmatpush1.bf16.msra.mxu1 %v6451_v5  ;;  %3258 = vmatprep.subr.bf16.mxu0 %v6456_v10  ;;  %v6496_v5 = vld [vmem:[%s9018_s4 + $0x360] ss:$24 sps:$4 sm:$0xff]  }
 0x2c3   : > { %4739 = vmatprep.subr.bf16.mxu1 %v6459_v11  ;;  %v6499_v10 = vld [vmem:[%s9018_s4 + $0x660] ss:$24 sps:$4 sm:$0xff]   ;;  %v6507_v11 = vld [vmem:[%s9018_s4 + $0x694] ss:$24 sps:$4 sm:$0xff]  }
 0x2c5   : > { %3259 = vmatpush1.bf16.msra.mxu0 %v6454_v13  ;;  %v6510_v13 = vld [vmem:[%s9018_s4 + $0x3c4] ss:$24 sps:$4 sm:$0xff]  }
 0x2c6   : > { %4740 = vmatpush1.bf16.msra.mxu1 %v6457_v32  ;;  %3260 = vmatprep.subr.bf16.mxu0 %v6462_v15  ;;  %v6513_v32 = vld [vmem:[%s9018_s4 + $0x6c4] ss:$24 sps:$4 sm:$0xff]   ;;  %v6508_v15 = vld [vmem:[%s9018_s4 + $0x3c0] ss:$24 sps:$4 sm:$0xff]  }
 0x2c7   : > { %4741 = vmatprep.subr.bf16.mxu1 %v6465_v38  ;;  %v6516_v38 = vld [vmem:[%s9018_s4 + $0x3f4] ss:$24 sps:$4 sm:$0xff]  }
 0x2c9   : > { %3261 = vmatpush1.bf16.msra.mxu0 %v6460_v20  ;;  %v6517_v20 = vld [vmem:[%s9018_s4 + $0x6f0] ss:$24 sps:$4 sm:$0xff]  }
 0x2ca   : > { %4742 = vmatpush1.bf16.msra.mxu1 %v6463_v21  ;;  %3262 = vmatprep.subr.bf16.mxu0 %v6468_v22  ;;  %v6522_v21 = vld [vmem:[%s9018_s4 + $0x424] ss:$24 sps:$4 sm:$0xff]  }
 0x2cb   : > { %4743 = vmatprep.subr.bf16.mxu1 %v6471_v24  ;;  %v6525_v24 = vld [vmem:[%s9018_s4 + $0x724] ss:$24 sps:$4 sm:$0xff]  }
 0x2cd   : > { %3263 = vmatpush1.bf16.msra.mxu0 %v6466_v26 }
 0x2ce   : > { %4744 = vmatpush1.bf16.msra.mxu1 %v6469_v27  ;;  %3264 = vmatprep.subr.bf16.mxu0 %v6474_v28 }
 0x2cf   : > { %4745 = vmatprep.subr.bf16.mxu1 %v6477_v30  ;;  %v6520_v30 = vld [vmem:[%s9018_s4 + $0x420] ss:$24 sps:$4 sm:$0xff]  }
 0x2d1   : > { %3265 = vmatpush1.bf16.msra.mxu0 %v6472_v36 }
 0x2d2   : > { %4746 = vmatpush1.bf16.msra.mxu1 %v6475_v39  ;;  %3266 = vmatprep.subr.bf16.mxu0 %v6480_v40  ;;  %v6526_v39 = vld [vmem:[%s9018_s4 + $0x450] ss:$24 sps:$4 sm:$0xff]  }
 0x2d3   : > { %4747 = vmatprep.subr.bf16.mxu1 %v6483_v41  ;;  %v6529_v40 = vld [vmem:[%s9018_s4 + $0x750] ss:$24 sps:$4 sm:$0xff]   ;;  %v6534_v41 = vld [vmem:[%s9018_s4 + $0x484] ss:$24 sps:$4 sm:$0xff]  }
 0x2d5   : > { %3267 = vmatpush1.bf16.msra.mxu0 %v6478_v43  ;;  %v6535_v43 = vld [vmem:[%s9018_s4 + $0x780] ss:$24 sps:$4 sm:$0xff]  }
 0x2d6   : > { %4748 = vmatpush1.bf16.msra.mxu1 %v6481_v44  ;;  %4758 = vmatprep.subr.bf16.mxu0 %v6486_v45  ;;  %v6543_v44 = vld [vmem:[%s9018_s4 + $0x7b4] ss:$24 sps:$4 sm:$0xff]   ;;  %v6538_v45 = vld [vmem:[%s9018_s4 + $0x4b0] ss:$24 sps:$4 sm:$0xff]  }
 0x2d7   : > { %4799 = vmatprep.subr.bf16.mxu1 %v6489_v48  ;;  %v6541_v48 = vld [vmem:[%s9018_s4 + $0x7b0] ss:$24 sps:$4 sm:$0xff]  }
 0x2d8   : > { %3269 = vmatmul.mubr.bf16.vlgmr.msra.gmra.mrb[24].mxu0 %v7538_v8  ;;  %v6493_v8 = vld [vmem:[%s9018_s4 + $0x630] ss:$24 sps:$4 sm:$0xff]  }
 0x2d9   : > { %4750 = vmatmul.mubr.bf16.vlgmr.msra.gmra.mrb[24].mxu1 %v8145_v54  ;;  %4759 = vmatpush1.bf16.msra.mxu0 %v6484_v50  ;;  %v818_v50 = vrot.slane %v7386_v47, 4 }
 0x2da   : > { %4790 = vmatprep.mubr.bf16.mxu0 %v8151_v56  ;;  %4800 = vmatpush1.bf16.msra.mxu1 %v6487_v53  ;;  %v6544_v53 = vld [vmem:[%s9018_s4 + $0x4e0] ss:$24 sps:$4 sm:$0xff]  }
 0x2db   : > { %4831 = vmatprep.mubr.bf16.mxu1 %v8157_v58  ;;  %4760 = vmatprep.subr.bf16.mxu0 %v6492_v55  ;;  %v805_v55 = vadd.f32 %v804_v46, %v7305_v34  ;;  %v6550_v34 = vld [vmem:[%s9018_s4 + $0x510] ss:$24 sps:$4 sm:$0xff]   ;;  %v6594_v46 = vld [vmem:[%s9018_s4 + $0x6c] ss:$24 sps:$4 sm:$0xff]  }
 0x2dc   : > { %4801 = vmatprep.subr.bf16.mxu1 %v6495_v57  ;;  %v6547_v57 = vld [vmem:[%s9018_s4 + $0x7e0] ss:$24 sps:$4 sm:$0xff]  }
 0x2dd   : > { %4761 = vmatpush1.bf16.msra.mxu0 %v6490_v59  ;;  %v6552_v59 = vld [vmem:[%s9018_s4 + $0x514] ss:$24 sps:$4 sm:$0xff]  }
 0x2de   : > { %4802 = vmatpush1.bf16.msra.mxu1 %v6493_v8  ;;  %4762 = vmatprep.subr.bf16.mxu0 %v6498_v60  ;;  %v819_v8 = vadd.f32 %v818_v50, %v7386_v47  ;;  %v6555_v60 = vld [vmem:[%s9018_s4 + $0x814] ss:$24 sps:$4 sm:$0xff]   ;;  %v6558_v47 = vld [vmem:[%s9018_s4 + $0x544] ss:$24 sps:$4 sm:$0xff]   ;;  %v6595_v50 = vld [vmem:[%s9018_s4 + $0x368] ss:$24 sps:$4 sm:$0xff]  }
 0x2df   : > { %4803 = vmatprep.subr.bf16.mxu1 %v6501_v61  ;;  %v806_v61 = vrot.slane %v805_v55, 2 }
 0x2e1   : > { %4763 = vmatpush1.bf16.msra.mxu0 %v6496_v5  ;;  %v6553_v5 = vld [vmem:[%s9018_s4 + $0x810] ss:$24 sps:$4 sm:$0xff]  }
 0x2e2   : > { %4804 = vmatpush1.bf16.msra.mxu1 %v6499_v10  ;;  %4764 = vmatprep.subr.bf16.mxu0 %v6504_v9  ;;  %v820_v10 = vrot.slane %v819_v8, 2  ;;  %v6561_v9 = vld [vmem:[%s9018_s4 + $0x844] ss:$24 sps:$4 sm:$0xff]  }
 0x2e3   : > { %4805 = vmatprep.subr.bf16.mxu1 %v6507_v11  ;;  %v6556_v11 = vld [vmem:[%s9018_s4 + $0x540] ss:$24 sps:$4 sm:$0xff]  }
 0x2e5   : > { %4765 = vmatpush1.bf16.msra.mxu0 %v6502_v19  ;;  %v807_v19 = vadd.f32 %v806_v61, %v805_v55  ;;  %v6598_v55 = vld [vmem:[%s9018_s4 + $0x98] ss:$24 sps:$4 sm:$0xff]   ;;  %v6612_v61 = vld [vmem:[%s9018_s4 + $0xfc] ss:$24 sps:$4 sm:$0xff]  }
 0x2e6   : > { %4806 = vmatpush1.bf16.msra.mxu1 %v6505_v12  ;;  %4766 = vmatprep.subr.bf16.mxu0 %v6510_v13  ;;  %v6559_v12 = vld [vmem:[%s9018_s4 + $0x840] ss:$24 sps:$4 sm:$0xff]   ;;  %v6564_v13 = vld [vmem:[%s9018_s4 + $0x574] ss:$24 sps:$4 sm:$0xff]  }
 0x2e7   : > { %4807 = vmatprep.subr.bf16.mxu1 %v6513_v32  ;;  %v821_v32 = vadd.f32 %v820_v10, %v819_v8  ;;  %v6609_v8 = vld [vmem:[%s9018_s4 + $0x3cc] ss:$24 sps:$4 sm:$0xff]   ;;  %v6613_v10 = vld [vmem:[%s9018_s4 + $0x3f8] ss:$24 sps:$4 sm:$0xff]  }
 0x2e9   : > { %4767 = vmatpush1.bf16.msra.mxu0 %v6508_v15  ;;  %v6567_v15 = vld [vmem:[%s9018_s4 + $0x874] ss:$24 sps:$4 sm:$0xff]  }
 0x2ea   : > { %4808 = vmatpush1.bf16.msra.mxu1 %v6511_v16  ;;  %4768 = vmatprep.subr.bf16.mxu0 %v6516_v38  ;;  %v6562_v16 = vld [vmem:[%s9018_s4 + $0x570] ss:$24 sps:$4 sm:$0xff]   ;;  %v808_v38 = vrot.slane %v807_v19, 1 }
 0x2eb   : > { %v3024_v22 = vpop.f32.mrb[12].mxu0  ;;  %v8218_v23 = vpop.f32.mrb[12].mxu1  ;;  %4809 = vmatprep.subr.bf16.mxu1 %v6519_v51  ;;  %v6565_v51 = vld [vmem:[%s9018_s4 + $0x870] ss:$24 sps:$4 sm:$0xff]  }
 0x2ec   : > { %v8224_v25 = vadd.f32 %v3024_v22, %v8009_v31  ;;  %v3026_v26 = vpop.f32.mrb[13].mxu0  ;;  %v8226_v1 = vpop.f32.mrb[13].mxu1  ;;  %v6523_v31 = vld [vmem:[%s9018_s4 + $0x720] ss:$24 sps:$4 sm:$0xff]  }
 0x2ed   : > { %v8229_v27 = vadd.f32 %v3026_v26, %v8011_v35  ;;  %v3028_v28 = vpop.f32.mrb[14].mxu0  ;;  %v3069_v29 = vpop.f32.mrb[14].mxu1  ;;  %4769 = vmatpush1.bf16.msra.mxu0 %v6514_v18  ;;  %v6528_v35 = vld [vmem:[%s9018_s4 + $0x454] ss:$24 sps:$4 sm:$0xff]   ;;  %v6570_v18 = vld [vmem:[%s9018_s4 + $0x5a4] ss:$24 sps:$4 sm:$0xff]  }
 0x2ee   : > { %4810 = vmatpush1.bf16.msra.mxu1 %v6517_v20  ;;  %v3029_v33 = vpop.f32.mrb[15].mxu0  ;;  %v3070_v36 = vpop.f32.mrb[15].mxu1  ;;  %4770 = vmatprep.subr.bf16.mxu0 %v6522_v21  ;;  %v822_v20 = vrot.slane %v821_v32, 1  ;;  %v6573_v21 = vld [vmem:[%s9018_s4 + $0x8a4] ss:$24 sps:$4 sm:$0xff]   ;;  %v809_v28 = vadd.f32 %v808_v38, %v807_v19 }
 0x2ef   : > { %4811 = vmatprep.subr.bf16.mxu1 %v6525_v24  ;;  %v6568_v22 = vld [vmem:[%s9018_s4 + $0x5a0] ss:$24 sps:$4 sm:$0xff]   ;;  %v6576_v26 = vld [vmem:[%s9018_s4 + $0x5d4] ss:$24 sps:$4 sm:$0xff]   ;;  %v6574_v33 = vld [vmem:[%s9018_s4 + $0x5d0] ss:$24 sps:$4 sm:$0xff]  }
 0x2f0   : > { %v6571_v24 = vld [vmem:[%s9018_s4 + $0x8a0] ss:$24 sps:$4 sm:$0xff]   ;;  %v6579_v29 = vld [vmem:[%s9018_s4 + $0x8d4] ss:$24 sps:$4 sm:$0xff]   ;;  %v6577_v36 = vld [vmem:[%s9018_s4 + $0x8d0] ss:$24 sps:$4 sm:$0xff]  }
 0x2f1   : > { %4771 = vmatpush1.bf16.msra.mxu0 %v6520_v30  ;;  %v823_v30 = vadd.f32 %v822_v20, %v821_v32  ;;  %v6621_v19 = vld [vmem:[%s9018_s4 + $0x42c] ss:$24 sps:$4 sm:$0xff]  }
 0x2f2   : > { %4812 = vmatpush1.bf16.msra.mxu1 %v6523_v31  ;;  %4772 = vmatprep.subr.bf16.mxu0 %v6528_v35  ;;  %v834_v31 = vmul.f32 0.0625, %v809_v28  ;;  %v6582_v35 = vld [vmem:[%s9018_s4 + $0xc] ss:$24 sps:$4 sm:$0xff]   ;;  %v6622_v28 = vld [vmem:[%s9018_s4 + $0x158] ss:$24 sps:$4 sm:$0xff]  }
 0x2f3   : > { %4813 = vmatprep.subr.bf16.mxu1 %v6531_v37  ;;  %v836_v37 = vmul.f32 0.0625, %v823_v30  ;;  %v6630_v30 = vld [vmem:[%s9018_s4 + $0x18c] ss:$24 sps:$4 sm:$0xff]  }
 0x2f5   : > { %4773 = vmatpush1.bf16.msra.mxu0 %v6526_v39  ;;  %v6585_v39 = vld [vmem:[%s9018_s4 + $0x30c] ss:$24 sps:$4 sm:$0xff]  }
 0x2f6   : > { %4814 = vmatpush1.bf16.msra.mxu1 %v6529_v40  ;;  %4774 = vmatprep.subr.bf16.mxu0 %v6534_v41  ;;  %v6580_v40 = vld [vmem:[%s9018_s4 + $0x8] ss:$24 sps:$4 sm:$0xff]   ;;  %v8358_v41 = vpack.c.bf16 %v834_v31, %v834_v31 }
 0x2f7   : > { %4815 = vmatprep.subr.bf16.mxu1 %v6537_v42  ;;  %v6583_v42 = vld [vmem:[%s9018_s4 + $0x308] ss:$24 sps:$4 sm:$0xff]  }
 0x2f8   : > { %v6631_v31 = vld [vmem:[%s9018_s4 + $0x488] ss:$24 sps:$4 sm:$0xff]  }
 0x2f9   : > { %4775 = vmatpush1.bf16.msra.mxu0 %v6532_v6  ;;  %v8363_v6 = vpack.c.bf16 %v836_v37, %v836_v37  ;;  %v6639_v37 = vld [vmem:[%s9018_s4 + $0x4bc] ss:$24 sps:$4 sm:$0xff]  }
 0x2fa   : > { %4816 = vmatpush1.bf16.msra.mxu1 %v6535_v43  ;;  %4776 = vmatprep.subr.bf16.mxu0 %v6540_v7  ;;  %v6588_v43 = vld [vmem:[%s9018_s4 + $0x3c] ss:$24 sps:$4 sm:$0xff]  }
 0x2fb   : > { %4817 = vmatprep.subr.bf16.mxu1 %v6543_v44  ;;  %v6591_v7 = vld [vmem:[%s9018_s4 + $0x33c] ss:$24 sps:$4 sm:$0xff]   ;;  %v6586_v44 = vld [vmem:[%s9018_s4 + $0x38] ss:$24 sps:$4 sm:$0xff]  }
 0x2fd   : > { %4777 = vmatpush1.bf16.msra.mxu0 %v6538_v45  ;;  %v6589_v45 = vld [vmem:[%s9018_s4 + $0x338] ss:$24 sps:$4 sm:$0xff]  }
 0x2fe   : > { %4818 = vmatpush1.bf16.msra.mxu1 %v6541_v48  ;;  %4778 = vmatprep.subr.bf16.mxu0 %v6546_v49  ;;  %v6597_v48 = vld [vmem:[%s9018_s4 + $0x36c] ss:$24 sps:$4 sm:$0xff]   ;;  %v6592_v49 = vld [vmem:[%s9018_s4 + $0x68] ss:$24 sps:$4 sm:$0xff]  }
 0x2ff   : > { %4819 = vmatprep.subr.bf16.mxu1 %v6549_v52  ;;  %v6600_v52 = vld [vmem:[%s9018_s4 + $0x9c] ss:$24 sps:$4 sm:$0xff]  }
 0x301   : > { %4779 = vmatpush1.bf16.msra.mxu0 %v6544_v53  ;;  %v6603_v53 = vld [vmem:[%s9018_s4 + $0x39c] ss:$24 sps:$4 sm:$0xff]  }
 0x302   : > { %4820 = vmatpush1.bf16.msra.mxu1 %v6547_v57  ;;  %4780 = vmatprep.subr.bf16.mxu0 %v6552_v59  ;;  %v6601_v57 = vld [vmem:[%s9018_s4 + $0x398] ss:$24 sps:$4 sm:$0xff]   ;;  %v6606_v59 = vld [vmem:[%s9018_s4 + $0xcc] ss:$24 sps:$4 sm:$0xff]  }
 0x303   : > { %4821 = vmatprep.subr.bf16.mxu1 %v6555_v60  ;;  %v6604_v60 = vld [vmem:[%s9018_s4 + $0xc8] ss:$24 sps:$4 sm:$0xff]  }
 0x305   : > { %4781 = vmatpush1.bf16.msra.mxu0 %v6550_v34  ;;  %v6607_v34 = vld [vmem:[%s9018_s4 + $0x3c8] ss:$24 sps:$4 sm:$0xff]  }
 0x306   : > { %4822 = vmatpush1.bf16.msra.mxu1 %v6553_v5  ;;  %4782 = vmatprep.subr.bf16.mxu0 %v6558_v47  ;;  %v6615_v5 = vld [vmem:[%s9018_s4 + $0x3fc] ss:$24 sps:$4 sm:$0xff]   ;;  %v6610_v47 = vld [vmem:[%s9018_s4 + $0xf8] ss:$24 sps:$4 sm:$0xff]  }
 0x307   : > { %4823 = vmatprep.subr.bf16.mxu1 %v6561_v9  ;;  %v6618_v9 = vld [vmem:[%s9018_s4 + $0x12c] ss:$24 sps:$4 sm:$0xff]  }
 0x309   : > { %4783 = vmatpush1.bf16.msra.mxu0 %v6556_v11 }
 0x30a   : > { %4824 = vmatpush1.bf16.msra.mxu1 %v6559_v12  ;;  %4784 = vmatprep.subr.bf16.mxu0 %v6564_v13 }
 0x30b   : > { %4825 = vmatprep.subr.bf16.mxu1 %v6567_v15 }
 0x30d   : > { %4785 = vmatpush1.bf16.msra.mxu0 %v6562_v16 }
 0x30e   : > { %4826 = vmatpush1.bf16.msra.mxu1 %v6565_v51  ;;  %4786 = vmatprep.subr.bf16.mxu0 %v6570_v18  ;;  %v6616_v51 = vld [vmem:[%s9018_s4 + $0x128] ss:$24 sps:$4 sm:$0xff]  }
 0x30f   : > { %4827 = vmatprep.subr.bf16.mxu1 %v6573_v21 }
 0x311   : > { %4787 = vmatpush1.bf16.msra.mxu0 %v6568_v22 }
 0x312   : > { %4828 = vmatpush1.bf16.msra.mxu1 %v6571_v24  ;;  %4788 = vmatprep.subr.bf16.mxu0 %v6576_v26  ;;  %v6627_v26 = vld [vmem:[%s9018_s4 + $0x45c] ss:$24 sps:$4 sm:$0xff]  }
 0x313   : > { %4829 = vmatprep.subr.bf16.mxu1 %v6579_v29  ;;  %v6625_v29 = vld [vmem:[%s9018_s4 + $0x458] ss:$24 sps:$4 sm:$0xff]  }
 0x315   : > { %4789 = vmatpush1.bf16.msra.mxu0 %v6574_v33  ;;  %v6633_v33 = vld [vmem:[%s9018_s4 + $0x48c] ss:$24 sps:$4 sm:$0xff]  }
 0x316   : > { %4830 = vmatpush1.bf16.msra.mxu1 %v6577_v36  ;;  %4840 = vmatprep.subr.bf16.mxu0 %v6582_v35  ;;  %v6628_v36 = vld [vmem:[%s9018_s4 + $0x188] ss:$24 sps:$4 sm:$0xff]   ;;  %v6636_v35 = vld [vmem:[%s9018_s4 + $0x1bc] ss:$24 sps:$4 sm:$0xff]  }
 0x317   : > { %4881 = vmatprep.subr.bf16.mxu1 %v6585_v39  ;;  %v6634_v39 = vld [vmem:[%s9018_s4 + $0x1b8] ss:$24 sps:$4 sm:$0xff]  }
 0x318   : > { %4791 = vmatmul.mubr.bf16.vlgmr.msra.gmra.mrb[28].mxu0 %v8358_v41 }
 0x319   : > { %4832 = vmatmul.mubr.bf16.vlgmr.msra.gmra.mrb[28].mxu1 %v8363_v6  ;;  %4841 = vmatpush1.bf16.msra.mxu0 %v6580_v40  ;;  %v6637_v40 = vld [vmem:[%s9018_s4 + $0x4b8] ss:$24 sps:$4 sm:$0xff]  }
 0x31a   : > { %4872 = vmatprep.mubr.bf16.mxu0 %v7945_v4  ;;  %4882 = vmatpush1.bf16.msra.mxu1 %v6583_v42  ;;  %v6642_v42 = vld [vmem:[%s9018_s4 + $0x1ec] ss:$24 sps:$4 sm:$0xff]  }
 0x31b   : > { %4913 = vmatprep.mubr.bf16.mxu1 %v8151_v56  ;;  %4842 = vmatprep.subr.bf16.mxu0 %v6588_v43  ;;  %v6645_v43 = vld [vmem:[%s9018_s4 + $0x4ec] ss:$24 sps:$4 sm:$0xff]  }
 0x31c   : > { %4883 = vmatprep.subr.bf16.mxu1 %v6591_v7  ;;  %v6640_v7 = vld [vmem:[%s9018_s4 + $0x1e8] ss:$24 sps:$4 sm:$0xff]  }
 0x31d   : > { %4843 = vmatpush1.bf16.msra.mxu0 %v6586_v44  ;;  %v6643_v44 = vld [vmem:[%s9018_s4 + $0x4e8] ss:$24 sps:$4 sm:$0xff]  }
 0x31e   : > { %4884 = vmatpush1.bf16.msra.mxu1 %v6589_v45  ;;  %4844 = vmatprep.subr.bf16.mxu0 %v6594_v46  ;;  %v6648_v45 = vld [vmem:[%s9018_s4 + $0x21c] ss:$24 sps:$4 sm:$0xff]  }
 0x31f   : > { %4885 = vmatprep.subr.bf16.mxu1 %v6597_v48  ;;  %v6651_v46 = vld [vmem:[%s9018_s4 + $0x51c] ss:$24 sps:$4 sm:$0xff]   ;;  %v6646_v48 = vld [vmem:[%s9018_s4 + $0x218] ss:$24 sps:$4 sm:$0xff]  }
 0x321   : > { %4845 = vmatpush1.bf16.msra.mxu0 %v6592_v49  ;;  %v6649_v49 = vld [vmem:[%s9018_s4 + $0x518] ss:$24 sps:$4 sm:$0xff]  }
 0x322   : > { %4886 = vmatpush1.bf16.msra.mxu1 %v6595_v50  ;;  %4846 = vmatprep.subr.bf16.mxu0 %v6600_v52  ;;  %v6654_v50 = vld [vmem:[%s9018_s4 + $0x24c] ss:$24 sps:$4 sm:$0xff]  }
 0x323   : > { %4887 = vmatprep.subr.bf16.mxu1 %v6603_v53  ;;  %v6657_v52 = vld [vmem:[%s9018_s4 + $0x54c] ss:$24 sps:$4 sm:$0xff]   ;;  %v6652_v53 = vld [vmem:[%s9018_s4 + $0x248] ss:$24 sps:$4 sm:$0xff]  }
 0x325   : > { %4847 = vmatpush1.bf16.msra.mxu0 %v6598_v55  ;;  %v6655_v55 = vld [vmem:[%s9018_s4 + $0x548] ss:$24 sps:$4 sm:$0xff]  }
 0x326   : > { %4888 = vmatpush1.bf16.msra.mxu1 %v6601_v57  ;;  %4848 = vmatprep.subr.bf16.mxu0 %v6606_v59  ;;  %v6660_v57 = vld [vmem:[%s9018_s4 + $0x27c] ss:$24 sps:$4 sm:$0xff]  }
 0x327   : > { %4889 = vmatprep.subr.bf16.mxu1 %v6609_v8  ;;  %v6663_v59 = vld [vmem:[%s9018_s4 + $0x57c] ss:$24 sps:$4 sm:$0xff]   ;;  %v6658_v8 = vld [vmem:[%s9018_s4 + $0x278] ss:$24 sps:$4 sm:$0xff]  }
 0x329   : > { %4849 = vmatpush1.bf16.msra.mxu0 %v6604_v60  ;;  %v6661_v60 = vld [vmem:[%s9018_s4 + $0x578] ss:$24 sps:$4 sm:$0xff]  }
 0x32a   : > { %4890 = vmatpush1.bf16.msra.mxu1 %v6607_v34  ;;  %4850 = vmatprep.subr.bf16.mxu0 %v6612_v61  ;;  %v6666_v34 = vld [vmem:[%s9018_s4 + $0x2ac] ss:$24 sps:$4 sm:$0xff]  }
 0x32b   : > { %v3106_v11 = vpop.f32.mrb[16].mxu0  ;;  %4891 = vmatprep.subr.bf16.mxu1 %v6615_v5  ;;  %v6669_v61 = vld [vmem:[%s9018_s4 + $0x5ac] ss:$24 sps:$4 sm:$0xff]   ;;  %v6664_v5 = vld [vmem:[%s9018_s4 + $0x2a8] ss:$24 sps:$4 sm:$0xff]  }
 0x32c   : > { %v3107_v12 = vadd.f32 %v3106_v11, %v8218_v23  ;;  %v3147_v13 = vpop.f32.mrb[16].mxu1  ;;  %v3108_v32 = vpop.f32.mrb[17].mxu0  ;;  %v6619_v23 = vld [vmem:[%s9018_s4 + $0x428] ss:$24 sps:$4 sm:$0xff]   ;;  %v6670_v11 = vld [vmem:[%s9018_s4 + $0x2d8] ss:$24 sps:$4 sm:$0xff]  }
 0x32d   : > { %v3109_v15 = vadd.f32 %v3108_v32, %v8226_v1  ;;  %v3149_v16 = vpop.f32.mrb[17].mxu1  ;;  %v3110_v38 = vpop.f32.mrb[18].mxu0  ;;  %4851 = vmatpush1.bf16.msra.mxu0 %v6610_v47  ;;  %v6624_v1 = vld [vmem:[%s9018_s4 + $0x15c] ss:$24 sps:$4 sm:$0xff]   ;;  %v6667_v47 = vld [vmem:[%s9018_s4 + $0x5a8] ss:$24 sps:$4 sm:$0xff]  }
 0x32e   : > { %v8440_v18 = vadd.f32 %v3147_v13, %v3107_v12  ;;  %v3151_v20 = vpop.f32.mrb[18].mxu1  ;;  %4892 = vmatpush1.bf16.msra.mxu1 %v6613_v10  ;;  %v3111_v21 = vpop.f32.mrb[19].mxu0  ;;  %4852 = vmatprep.subr.bf16.mxu0 %v6618_v9  ;;  %v6672_v10 = vld [vmem:[%s9018_s4 + $0x2dc] ss:$24 sps:$4 sm:$0xff]   ;;  %v6678_v12 = vld [vmem:[%s9018_s4 + $0x60c] ss:$24 sps:$4 sm:$0xff]  }
 0x32f   : > { %v8448_v22 = vadd.f32 %v3149_v16, %v3109_v15  ;;  %v3152_v24 = vpop.f32.mrb[19].mxu1  ;;  %4893 = vmatprep.subr.bf16.mxu1 %v6621_v19  ;;  %v6675_v9 = vld [vmem:[%s9018_s4 + $0x5dc] ss:$24 sps:$4 sm:$0xff]   ;;  %v6673_v19 = vld [vmem:[%s9018_s4 + $0x5d8] ss:$24 sps:$4 sm:$0xff]  }
 0x330   : > { %v6681_v13 = vld [vmem:[%s9018_s4 + $0x14] ss:$24 sps:$4 sm:$0xff]   ;;  %v6676_v32 = vld [vmem:[%s9018_s4 + $0x608] ss:$24 sps:$4 sm:$0xff]   ;;  %v6687_v38 = vld [vmem:[%s9018_s4 + $0x44] ss:$24 sps:$4 sm:$0xff]  }
 0x331   : > { %4853 = vmatpush1.bf16.msra.mxu0 %v6616_v51  ;;  %v6679_v15 = vld [vmem:[%s9018_s4 + $0x10] ss:$24 sps:$4 sm:$0xff]   ;;  %v6684_v16 = vld [vmem:[%s9018_s4 + $0x63c] ss:$24 sps:$4 sm:$0xff]   ;;  %v6685_v20 = vld [vmem:[%s9018_s4 + $0x40] ss:$24 sps:$4 sm:$0xff]  }
 0x332   : > { %4894 = vmatpush1.bf16.msra.mxu1 %v6619_v23  ;;  %4854 = vmatprep.subr.bf16.mxu0 %v6624_v1  ;;  %v6682_v51 = vld [vmem:[%s9018_s4 + $0x638] ss:$24 sps:$4 sm:$0xff]   ;;  %v6690_v21 = vld [vmem:[%s9018_s4 + $0x66c] ss:$24 sps:$4 sm:$0xff]   ;;  %v6688_v1 = vld [vmem:[%s9018_s4 + $0x668] ss:$24 sps:$4 sm:$0xff]  }
 0x333   : > { %4895 = vmatprep.subr.bf16.mxu1 %v6627_v26  ;;  %v6693_v23 = vld [vmem:[%s9018_s4 + $0x74] ss:$24 sps:$4 sm:$0xff]   ;;  %v6691_v24 = vld [vmem:[%s9018_s4 + $0x70] ss:$24 sps:$4 sm:$0xff]   ;;  %v6699_v26 = vld [vmem:[%s9018_s4 + $0xa4] ss:$24 sps:$4 sm:$0xff]  }
 0x335   : > { %4855 = vmatpush1.bf16.msra.mxu0 %v6622_v28  ;;  %v6694_v28 = vld [vmem:[%s9018_s4 + $0x698] ss:$24 sps:$4 sm:$0xff]  }
 0x336   : > { %4896 = vmatpush1.bf16.msra.mxu1 %v6625_v29  ;;  %4856 = vmatprep.subr.bf16.mxu0 %v6630_v30  ;;  %v6697_v29 = vld [vmem:[%s9018_s4 + $0xa0] ss:$24 sps:$4 sm:$0xff]   ;;  %v6702_v30 = vld [vmem:[%s9018_s4 + $0x6cc] ss:$24 sps:$4 sm:$0xff]  }
 0x337   : > { %4897 = vmatprep.subr.bf16.mxu1 %v6633_v33  ;;  %v6705_v33 = vld [vmem:[%s9018_s4 + $0xd4] ss:$24 sps:$4 sm:$0xff]  }
 0x339   : > { %4857 = vmatpush1.bf16.msra.mxu0 %v6628_v36  ;;  %v6700_v36 = vld [vmem:[%s9018_s4 + $0x6c8] ss:$24 sps:$4 sm:$0xff]  }
 0x33a   : > { %4898 = vmatpush1.bf16.msra.mxu1 %v6631_v31  ;;  %4858 = vmatprep.subr.bf16.mxu0 %v6636_v35  ;;  %v6703_v31 = vld [vmem:[%s9018_s4 + $0xd0] ss:$24 sps:$4 sm:$0xff]   ;;  %v6708_v35 = vld [vmem:[%s9018_s4 + $0x6fc] ss:$24 sps:$4 sm:$0xff]  }
 0x33b   : > { %4899 = vmatprep.subr.bf16.mxu1 %v6639_v37  ;;  %v6711_v37 = vld [vmem:[%s9018_s4 + $0x104] ss:$24 sps:$4 sm:$0xff]  }
 0x33d   : > { %4859 = vmatpush1.bf16.msra.mxu0 %v6634_v39  ;;  %v6706_v39 = vld [vmem:[%s9018_s4 + $0x6f8] ss:$24 sps:$4 sm:$0xff]  }
 0x33e   : > { %4900 = vmatpush1.bf16.msra.mxu1 %v6637_v40  ;;  %4860 = vmatprep.subr.bf16.mxu0 %v6642_v42  ;;  %v6709_v40 = vld [vmem:[%s9018_s4 + $0x100] ss:$24 sps:$4 sm:$0xff]   ;;  %v6714_v42 = vld [vmem:[%s9018_s4 + $0x72c] ss:$24 sps:$4 sm:$0xff]  }
 0x33f   : > { %4901 = vmatprep.subr.bf16.mxu1 %v6645_v43 }
 0x341   : > { %4861 = vmatpush1.bf16.msra.mxu0 %v6640_v7  ;;  %v6717_v7 = vld [vmem:[%s9018_s4 + $0x134] ss:$24 sps:$4 sm:$0xff]  }
 0x342   : > { %4902 = vmatpush1.bf16.msra.mxu1 %v6643_v44  ;;  %4862 = vmatprep.subr.bf16.mxu0 %v6648_v45 }
 0x343   : > { %4903 = vmatprep.subr.bf16.mxu1 %v6651_v46 }
 0x345   : > { %4863 = vmatpush1.bf16.msra.mxu0 %v6646_v48 }
 0x346   : > { %4904 = vmatpush1.bf16.msra.mxu1 %v6649_v49  ;;  %4864 = vmatprep.subr.bf16.mxu0 %v6654_v50  ;;  %v6712_v50 = vld [vmem:[%s9018_s4 + $0x728] ss:$24 sps:$4 sm:$0xff]  }
 0x347   : > { %4905 = vmatprep.subr.bf16.mxu1 %v6657_v52 }
 0x349   : > { %4865 = vmatpush1.bf16.msra.mxu0 %v6652_v53 }
 0x34a   : > { %4906 = vmatpush1.bf16.msra.mxu1 %v6655_v55  ;;  %4866 = vmatprep.subr.bf16.mxu0 %v6660_v57  ;;  %v6715_v57 = vld [vmem:[%s9018_s4 + $0x130] ss:$24 sps:$4 sm:$0xff]  }
 0x34b   : > { %4907 = vmatprep.subr.bf16.mxu1 %v6663_v59  ;;  %v6720_v59 = vld [vmem:[%s9018_s4 + $0x75c] ss:$24 sps:$4 sm:$0xff]  }
 0x34d   : > { %4867 = vmatpush1.bf16.msra.mxu0 %v6658_v8 }
 0x34e   : > { %4908 = vmatpush1.bf16.msra.mxu1 %v6661_v60  ;;  %4868 = vmatprep.subr.bf16.mxu0 %v6666_v34  ;;  %v6723_v60 = vld [vmem:[%s9018_s4 + $0x164] ss:$24 sps:$4 sm:$0xff]   ;;  %v6718_v34 = vld [vmem:[%s9018_s4 + $0x758] ss:$24 sps:$4 sm:$0xff]  }
 0x34f   : > { %4909 = vmatprep.subr.bf16.mxu1 %v6669_v61  ;;  %v6721_v61 = vld [vmem:[%s9018_s4 + $0x160] ss:$24 sps:$4 sm:$0xff]  }
 0x351   : > { %4869 = vmatpush1.bf16.msra.mxu0 %v6664_v5  ;;  %v6726_v5 = vld [vmem:[%s9018_s4 + $0x78c] ss:$24 sps:$4 sm:$0xff]  }
 0x352   : > { %4910 = vmatpush1.bf16.msra.mxu1 %v6667_v47  ;;  %4870 = vmatprep.subr.bf16.mxu0 %v6672_v10  ;;  %v6729_v47 = vld [vmem:[%s9018_s4 + $0x194] ss:$24 sps:$4 sm:$0xff]   ;;  %v6724_v10 = vld [vmem:[%s9018_s4 + $0x788] ss:$24 sps:$4 sm:$0xff]  }
 0x353   : > { %4911 = vmatprep.subr.bf16.mxu1 %v6675_v9  ;;  %v6727_v9 = vld [vmem:[%s9018_s4 + $0x190] ss:$24 sps:$4 sm:$0xff]  }
 0x355   : > { %4871 = vmatpush1.bf16.msra.mxu0 %v6670_v11  ;;  %v6732_v11 = vld [vmem:[%s9018_s4 + $0x7bc] ss:$24 sps:$4 sm:$0xff]  }
 0x356   : > { %4912 = vmatpush1.bf16.msra.mxu1 %v6673_v19  ;;  %4922 = vmatprep.subr.bf16.mxu0 %v6678_v12  ;;  %v6735_v19 = vld [vmem:[%s9018_s4 + $0x1c4] ss:$24 sps:$4 sm:$0xff]   ;;  %v6730_v12 = vld [vmem:[%s9018_s4 + $0x7b8] ss:$24 sps:$4 sm:$0xff]  }
 0x357   : > { %4963 = vmatprep.subr.bf16.mxu1 %v6681_v13  ;;  %v6733_v13 = vld [vmem:[%s9018_s4 + $0x1c0] ss:$24 sps:$4 sm:$0xff]  }
 0x358   : > { %4873 = vmatmul.mubr.bf16.vlgmr.msra.gmra.mrb[32].mxu0 %v8145_v54 }
 0x359   : > { %4914 = vmatmul.mubr.bf16.vlgmr.msra.gmra.mrb[32].mxu1 %v8358_v41  ;;  %4923 = vmatpush1.bf16.msra.mxu0 %v6676_v32  ;;  %v6738_v32 = vld [vmem:[%s9018_s4 + $0x7ec] ss:$24 sps:$4 sm:$0xff]  }
 0x35a   : > { %4954 = vmatprep.mubr.bf16.mxu0 %v8157_v58  ;;  %4964 = vmatpush1.bf16.msra.mxu1 %v6679_v15  ;;  %v6741_v15 = vld [vmem:[%s9018_s4 + $0x1f4] ss:$24 sps:$4 sm:$0xff]  }
 0x35b   : > { %4995 = vmatprep.mubr.bf16.mxu1 %v7945_v4  ;;  %4924 = vmatprep.subr.bf16.mxu0 %v6684_v16  ;;  %v6696_v4 = vld [vmem:[%s9018_s4 + $0x69c] ss:$24 sps:$4 sm:$0xff]   ;;  %v6736_v16 = vld [vmem:[%s9018_s4 + $0x7e8] ss:$24 sps:$4 sm:$0xff]  }
 0x35c   : > { %4965 = vmatprep.subr.bf16.mxu1 %v6687_v38  ;;  %v6739_v38 = vld [vmem:[%s9018_s4 + $0x1f0] ss:$24 sps:$4 sm:$0xff]  }
 0x35d   : > { %4925 = vmatpush1.bf16.msra.mxu0 %v6682_v51  ;;  %v6744_v51 = vld [vmem:[%s9018_s4 + $0x81c] ss:$24 sps:$4 sm:$0xff]  }
 0x35e   : > { %4966 = vmatpush1.bf16.msra.mxu1 %v6685_v20  ;;  %4926 = vmatprep.subr.bf16.mxu0 %v6690_v21  ;;  %v6747_v20 = vld [vmem:[%s9018_s4 + $0x224] ss:$24 sps:$4 sm:$0xff]   ;;  %v6742_v21 = vld [vmem:[%s9018_s4 + $0x818] ss:$24 sps:$4 sm:$0xff]  }
 0x35f   : > { %4967 = vmatprep.subr.bf16.mxu1 %v6693_v23  ;;  %v6745_v23 = vld [vmem:[%s9018_s4 + $0x220] ss:$24 sps:$4 sm:$0xff]  }
 0x361   : > { %4927 = vmatpush1.bf16.msra.mxu0 %v6688_v1  ;;  %v6750_v1 = vld [vmem:[%s9018_s4 + $0x84c] ss:$24 sps:$4 sm:$0xff]  }
 0x362   : > { %4968 = vmatpush1.bf16.msra.mxu1 %v6691_v24  ;;  %4928 = vmatprep.subr.bf16.mxu0 %v6696_v4  ;;  %v6753_v24 = vld [vmem:[%s9018_s4 + $0x254] ss:$24 sps:$4 sm:$0xff]   ;;  %v6748_v4 = vld [vmem:[%s9018_s4 + $0x848] ss:$24 sps:$4 sm:$0xff]  }
 0x363   : > { %4969 = vmatprep.subr.bf16.mxu1 %v6699_v26  ;;  %v6751_v26 = vld [vmem:[%s9018_s4 + $0x250] ss:$24 sps:$4 sm:$0xff]  }
 0x365   : > { %4929 = vmatpush1.bf16.msra.mxu0 %v6694_v28  ;;  %v6756_v28 = vld [vmem:[%s9018_s4 + $0x87c] ss:$24 sps:$4 sm:$0xff]  }
 0x366   : > { %4970 = vmatpush1.bf16.msra.mxu1 %v6697_v29  ;;  %4930 = vmatprep.subr.bf16.mxu0 %v6702_v30  ;;  %v6759_v29 = vld [vmem:[%s9018_s4 + $0x284] ss:$24 sps:$4 sm:$0xff]   ;;  %v6754_v30 = vld [vmem:[%s9018_s4 + $0x878] ss:$24 sps:$4 sm:$0xff]  }
 0x367   : > { %4971 = vmatprep.subr.bf16.mxu1 %v6705_v33  ;;  %v6757_v33 = vld [vmem:[%s9018_s4 + $0x280] ss:$24 sps:$4 sm:$0xff]  }
 0x369   : > { %4931 = vmatpush1.bf16.msra.mxu0 %v6700_v36  ;;  %v6762_v36 = vld [vmem:[%s9018_s4 + $0x8ac] ss:$24 sps:$4 sm:$0xff]  }
 0x36a   : > { %4972 = vmatpush1.bf16.msra.mxu1 %v6703_v31  ;;  %4932 = vmatprep.subr.bf16.mxu0 %v6708_v35  ;;  %v6765_v31 = vld [vmem:[%s9018_s4 + $0x2b4] ss:$24 sps:$4 sm:$0xff]   ;;  %v6760_v35 = vld [vmem:[%s9018_s4 + $0x8a8] ss:$24 sps:$4 sm:$0xff]  }
 0x36b   : > { %v3188_v43 = vpop.f32.mrb[20].mxu0  ;;  %4973 = vmatprep.subr.bf16.mxu1 %v6711_v37  ;;  %v6763_v37 = vld [vmem:[%s9018_s4 + $0x2b0] ss:$24 sps:$4 sm:$0xff]  }
 0x36c   : > { %v3229_v44 = vpop.f32.mrb[20].mxu1  ;;  %v3190_v45 = vpop.f32.mrb[21].mxu0 }
 0x36d   : > { %v8637_v46 = vadd.f32 %v3229_v44, %v3188_v43  ;;  %v3231_v48 = vpop.f32.mrb[21].mxu1  ;;  %v3192_v49 = vpop.f32.mrb[22].mxu0  ;;  %4933 = vmatpush1.bf16.msra.mxu0 %v6706_v39  ;;  %v6768_v39 = vld [vmem:[%s9018_s4 + $0x8dc] ss:$24 sps:$4 sm:$0xff]   ;;  %v6769_v43 = vld [vmem:[%s9018_s4 + $0x2e0] ss:$24 sps:$4 sm:$0xff]  }
 0x36e   : > { %v8642_v52 = vadd.f32 %v3231_v48, %v3190_v45  ;;  %v3233_v53 = vpop.f32.mrb[22].mxu1  ;;  %4974 = vmatpush1.bf16.msra.mxu1 %v6709_v40  ;;  %v3193_v55 = vpop.f32.mrb[23].mxu0  ;;  %4934 = vmatprep.subr.bf16.mxu0 %v6714_v42  ;;  %v6771_v40 = vld [vmem:[%s9018_s4 + $0x2e4] ss:$24 sps:$4 sm:$0xff]   ;;  %v6766_v42 = vld [vmem:[%s9018_s4 + $0x8d8] ss:$24 sps:$4 sm:$0xff]  }
 0x36f   : > { %v3234_v8 = vpop.f32.mrb[23].mxu1  ;;  %4975 = vmatprep.subr.bf16.mxu1 %v6717_v7  ;;  %v6774_v7 = vld [vmem:[%s9018_s4 + $0x314] ss:$24 sps:$4 sm:$0xff]   ;;  %v6772_v45 = vld [vmem:[%s9018_s4 + $0x310] ss:$24 sps:$4 sm:$0xff]  }
 0x370   : > { %v6777_v44 = vld [vmem:[%s9018_s4 + $0x614] ss:$24 sps:$4 sm:$0xff]   ;;  %v6775_v48 = vld [vmem:[%s9018_s4 + $0x610] ss:$24 sps:$4 sm:$0xff]   ;;  %v6780_v49 = vld [vmem:[%s9018_s4 + $0x344] ss:$24 sps:$4 sm:$0xff]  }
 0x371   : > { %4935 = vmatpush1.bf16.msra.mxu0 %v6712_v50  ;;  %v6783_v50 = vld [vmem:[%s9018_s4 + $0x644] ss:$24 sps:$4 sm:$0xff]   ;;  %v6778_v53 = vld [vmem:[%s9018_s4 + $0x340] ss:$24 sps:$4 sm:$0xff]  }
 0x372   : > { %4976 = vmatpush1.bf16.msra.mxu1 %v6715_v57  ;;  %4936 = vmatprep.subr.bf16.mxu0 %v6720_v59  ;;  %v6781_v55 = vld [vmem:[%s9018_s4 + $0x640] ss:$24 sps:$4 sm:$0xff]   ;;  %v6786_v57 = vld [vmem:[%s9018_s4 + $0x374] ss:$24 sps:$4 sm:$0xff]   ;;  %v6787_v59 = vld [vmem:[%s9018_s4 + $0x670] ss:$24 sps:$4 sm:$0xff]  }
 0x373   : > { %4977 = vmatprep.subr.bf16.mxu1 %v6723_v60  ;;  %v6795_v8 = vld [vmem:[%s9018_s4 + $0x6a4] ss:$24 sps:$4 sm:$0xff]   ;;  %v6790_v60 = vld [vmem:[%s9018_s4 + $0x3a0] ss:$24 sps:$4 sm:$0xff]  }
 0x375   : > { %4937 = vmatpush1.bf16.msra.mxu0 %v6718_v34  ;;  %v6793_v34 = vld [vmem:[%s9018_s4 + $0x6a0] ss:$24 sps:$4 sm:$0xff]  }
 0x376   : > { %4978 = vmatpush1.bf16.msra.mxu1 %v6721_v61  ;;  %4938 = vmatprep.subr.bf16.mxu0 %v6726_v5  ;;  %v6798_v61 = vld [vmem:[%s9018_s4 + $0x3d4] ss:$24 sps:$4 sm:$0xff]  }
 0x377   : > { %4979 = vmatprep.subr.bf16.mxu1 %v6729_v47  ;;  %v6801_v5 = vld [vmem:[%s9018_s4 + $0x6d4] ss:$24 sps:$4 sm:$0xff]   ;;  %v6796_v47 = vld [vmem:[%s9018_s4 + $0x3d0] ss:$24 sps:$4 sm:$0xff]  }
 0x379   : > { %4939 = vmatpush1.bf16.msra.mxu0 %v6724_v10  ;;  %v6799_v10 = vld [vmem:[%s9018_s4 + $0x6d0] ss:$24 sps:$4 sm:$0xff]  }
 0x37a   : > { %4980 = vmatpush1.bf16.msra.mxu1 %v6727_v9  ;;  %4940 = vmatprep.subr.bf16.mxu0 %v6732_v11  ;;  %v6804_v9 = vld [vmem:[%s9018_s4 + $0x404] ss:$24 sps:$4 sm:$0xff]  }
 0x37b   : > { %4981 = vmatprep.subr.bf16.mxu1 %v6735_v19  ;;  %v6807_v11 = vld [vmem:[%s9018_s4 + $0x704] ss:$24 sps:$4 sm:$0xff]   ;;  %v6802_v19 = vld [vmem:[%s9018_s4 + $0x400] ss:$24 sps:$4 sm:$0xff]  }
 0x37d   : > { %4941 = vmatpush1.bf16.msra.mxu0 %v6730_v12  ;;  %v6805_v12 = vld [vmem:[%s9018_s4 + $0x700] ss:$24 sps:$4 sm:$0xff]  }
 0x37e   : > { %4982 = vmatpush1.bf16.msra.mxu1 %v6733_v13  ;;  %4942 = vmatprep.subr.bf16.mxu0 %v6738_v32  ;;  %v6810_v13 = vld [vmem:[%s9018_s4 + $0x434] ss:$24 sps:$4 sm:$0xff]  }
 0x37f   : > { %4983 = vmatprep.subr.bf16.mxu1 %v6741_v15  ;;  %v6813_v15 = vld [vmem:[%s9018_s4 + $0x734] ss:$24 sps:$4 sm:$0xff]  }
 0x381   : > { %4943 = vmatpush1.bf16.msra.mxu0 %v6736_v16 }
 0x382   : > { %4984 = vmatpush1.bf16.msra.mxu1 %v6739_v38  ;;  %4944 = vmatprep.subr.bf16.mxu0 %v6744_v51 }
 0x383   : > { %4985 = vmatprep.subr.bf16.mxu1 %v6747_v20 }
 0x385   : > { %4945 = vmatpush1.bf16.msra.mxu0 %v6742_v21 }
 0x386   : > { %4986 = vmatpush1.bf16.msra.mxu1 %v6745_v23  ;;  %4946 = vmatprep.subr.bf16.mxu0 %v6750_v1 }
 0x387   : > { %4987 = vmatprep.subr.bf16.mxu1 %v6753_v24  ;;  %v6808_v24 = vld [vmem:[%s9018_s4 + $0x430] ss:$24 sps:$4 sm:$0xff]  }
 0x389   : > { %4947 = vmatpush1.bf16.msra.mxu0 %v6748_v4 }
 0x38a   : > { %4988 = vmatpush1.bf16.msra.mxu1 %v6751_v26  ;;  %4948 = vmatprep.subr.bf16.mxu0 %v6756_v28 }
 0x38b   : > { %4989 = vmatprep.subr.bf16.mxu1 %v6759_v29  ;;  %v6819_v29 = vld [vmem:[%s9018_s4 + $0x764] ss:$24 sps:$4 sm:$0xff]  }
 0x38d   : > { %4949 = vmatpush1.bf16.msra.mxu0 %v6754_v30  ;;  %v6817_v30 = vld [vmem:[%s9018_s4 + $0x760] ss:$24 sps:$4 sm:$0xff]  }
 0x38e   : > { %4990 = vmatpush1.bf16.msra.mxu1 %v6757_v33  ;;  %4950 = vmatprep.subr.bf16.mxu0 %v6762_v36  ;;  %v6822_v33 = vld [vmem:[%s9018_s4 + $0x494] ss:$24 sps:$4 sm:$0xff]  }
 0x38f   : > { %4991 = vmatprep.subr.bf16.mxu1 %v6765_v31  ;;  %v6825_v36 = vld [vmem:[%s9018_s4 + $0x794] ss:$24 sps:$4 sm:$0xff]   ;;  %v6820_v31 = vld [vmem:[%s9018_s4 + $0x490] ss:$24 sps:$4 sm:$0xff]  }
 0x391   : > { %4951 = vmatpush1.bf16.msra.mxu0 %v6760_v35  ;;  %v6823_v35 = vld [vmem:[%s9018_s4 + $0x790] ss:$24 sps:$4 sm:$0xff]  }
 0x392   : > { %4992 = vmatpush1.bf16.msra.mxu1 %v6763_v37  ;;  %4952 = vmatprep.subr.bf16.mxu0 %v6768_v39  ;;  %v6828_v37 = vld [vmem:[%s9018_s4 + $0x4c4] ss:$24 sps:$4 sm:$0xff]  }
 0x393   : > { %4993 = vmatprep.subr.bf16.mxu1 %v6771_v40  ;;  %v6831_v39 = vld [vmem:[%s9018_s4 + $0x7c4] ss:$24 sps:$4 sm:$0xff]   ;;  %v6826_v40 = vld [vmem:[%s9018_s4 + $0x4c0] ss:$24 sps:$4 sm:$0xff]  }
 0x395   : > { %4953 = vmatpush1.bf16.msra.mxu0 %v6766_v42  ;;  %v6829_v42 = vld [vmem:[%s9018_s4 + $0x7c0] ss:$24 sps:$4 sm:$0xff]  }
 0x396   : > { %4994 = vmatpush1.bf16.msra.mxu1 %v6769_v43  ;;  %5004 = vmatprep.subr.bf16.mxu0 %v6774_v7  ;;  %v6834_v43 = vld [vmem:[%s9018_s4 + $0x4f4] ss:$24 sps:$4 sm:$0xff]  }
 0x397   : > { %5045 = vmatprep.subr.bf16.mxu1 %v6777_v44  ;;  %v6837_v7 = vld [vmem:[%s9018_s4 + $0x7f4] ss:$24 sps:$4 sm:$0xff]   ;;  %v6832_v44 = vld [vmem:[%s9018_s4 + $0x4f0] ss:$24 sps:$4 sm:$0xff]  }
 0x398   : > { %4955 = vmatmul.mubr.bf16.vlgmr.msra.gmra.mrb[36].mxu0 %v8363_v6 }
 0x399   : > { %4996 = vmatmul.mubr.bf16.vlgmr.msra.gmra.mrb[36].mxu1 %v8145_v54  ;;  %5005 = vmatpush1.bf16.msra.mxu0 %v6772_v45  ;;  %v6789_v54 = vld [vmem:[%s9018_s4 + $0x674] ss:$24 sps:$4 sm:$0xff]   ;;  %v6835_v45 = vld [vmem:[%s9018_s4 + $0x7f0] ss:$24 sps:$4 sm:$0xff]  }
 0x39a   : > { %5036 = vmatprep.mubr.bf16.mxu0 %v8151_v56  ;;  %5046 = vmatpush1.bf16.msra.mxu1 %v6775_v48  ;;  %v6784_v56 = vld [vmem:[%s9018_s4 + $0x370] ss:$24 sps:$4 sm:$0xff]   ;;  %v6840_v48 = vld [vmem:[%s9018_s4 + $0x524] ss:$24 sps:$4 sm:$0xff]  }
 0x39b   : > { %5077 = vmatprep.mubr.bf16.mxu1 %v8157_v58  ;;  %5006 = vmatprep.subr.bf16.mxu0 %v6780_v49  ;;  %v6792_v58 = vld [vmem:[%s9018_s4 + $0x3a4] ss:$24 sps:$4 sm:$0xff]  }
 0x39c   : > { %5047 = vmatprep.subr.bf16.mxu1 %v6783_v50  ;;  %v6843_v49 = vld [vmem:[%s9018_s4 + $0x824] ss:$24 sps:$4 sm:$0xff]   ;;  %v6838_v50 = vld [vmem:[%s9018_s4 + $0x520] ss:$24 sps:$4 sm:$0xff]  }
 0x39d   : > { %5007 = vmatpush1.bf16.msra.mxu0 %v6778_v53  ;;  %v6841_v53 = vld [vmem:[%s9018_s4 + $0x820] ss:$24 sps:$4 sm:$0xff]  }
 0x39e   : > { %5048 = vmatpush1.bf16.msra.mxu1 %v6781_v55  ;;  %5008 = vmatprep.subr.bf16.mxu0 %v6786_v57  ;;  %v6846_v55 = vld [vmem:[%s9018_s4 + $0x554] ss:$24 sps:$4 sm:$0xff]  }
 0x39f   : > { %5049 = vmatprep.subr.bf16.mxu1 %v6789_v54  ;;  %v6849_v57 = vld [vmem:[%s9018_s4 + $0x854] ss:$24 sps:$4 sm:$0xff]   ;;  %v6844_v54 = vld [vmem:[%s9018_s4 + $0x550] ss:$24 sps:$4 sm:$0xff]  }
 0x3a1   : > { %5009 = vmatpush1.bf16.msra.mxu0 %v6784_v56  ;;  %v6847_v56 = vld [vmem:[%s9018_s4 + $0x850] ss:$24 sps:$4 sm:$0xff]  }
 0x3a2   : > { %5050 = vmatpush1.bf16.msra.mxu1 %v6787_v59  ;;  %5010 = vmatprep.subr.bf16.mxu0 %v6792_v58  ;;  %v6852_v59 = vld [vmem:[%s9018_s4 + $0x584] ss:$24 sps:$4 sm:$0xff]  }
 0x3a3   : > { %5051 = vmatprep.subr.bf16.mxu1 %v6795_v8  ;;  %v6855_v58 = vld [vmem:[%s9018_s4 + $0x884] ss:$24 sps:$4 sm:$0xff]   ;;  %v6850_v8 = vld [vmem:[%s9018_s4 + $0x580] ss:$24 sps:$4 sm:$0xff]  }
 0x3a5   : > { %5011 = vmatpush1.bf16.msra.mxu0 %v6790_v60  ;;  %v6853_v60 = vld [vmem:[%s9018_s4 + $0x880] ss:$24 sps:$4 sm:$0xff]  }
 0x3a6   : > { %5052 = vmatpush1.bf16.msra.mxu1 %v6793_v34  ;;  %5012 = vmatprep.subr.bf16.mxu0 %v6798_v61  ;;  %v6858_v34 = vld [vmem:[%s9018_s4 + $0x5b4] ss:$24 sps:$4 sm:$0xff]  }
 0x3a7   : > { %5053 = vmatprep.subr.bf16.mxu1 %v6801_v5  ;;  %v6861_v61 = vld [vmem:[%s9018_s4 + $0x8b4] ss:$24 sps:$4 sm:$0xff]   ;;  %v6856_v5 = vld [vmem:[%s9018_s4 + $0x5b0] ss:$24 sps:$4 sm:$0xff]  }
 0x3a9   : > { %5013 = vmatpush1.bf16.msra.mxu0 %v6796_v47  ;;  %v6859_v47 = vld [vmem:[%s9018_s4 + $0x8b0] ss:$24 sps:$4 sm:$0xff]  }
 0x3aa   : > { %5054 = vmatpush1.bf16.msra.mxu1 %v6799_v10  ;;  %5014 = vmatprep.subr.bf16.mxu0 %v6804_v9  ;;  %v6864_v10 = vld [vmem:[%s9018_s4 + $0x5e4] ss:$24 sps:$4 sm:$0xff]  }
 0x3ab   : > { %v3270_v32 = vpop.f32.mrb[24].mxu0  ;;  %5055 = vmatprep.subr.bf16.mxu1 %v6807_v11  ;;  %v6867_v9 = vld [vmem:[%s9018_s4 + $0x8e4] ss:$24 sps:$4 sm:$0xff]   ;;  %v6862_v11 = vld [vmem:[%s9018_s4 + $0x5e0] ss:$24 sps:$4 sm:$0xff]  }
 0x3ac   : > { %v8838_v16 = vadd.f32 %v3270_v32, %v8637_v46  ;;  %v4751_v38 = vpop.f32.mrb[24].mxu1  ;;  %v3272_v51 = vpop.f32.mrb[25].mxu0 }
 0x3ad   : > { %v8841_v20 = vadd.f32 %v4751_v38, %v8224_v25  ;;  %v8844_v21 = vadd.f32 %v3272_v51, %v8642_v52  ;;  %v4753_v23 = vpop.f32.mrb[25].mxu1  ;;  %v3274_v1 = vpop.f32.mrb[26].mxu0  ;;  %5015 = vmatpush1.bf16.msra.mxu0 %v6802_v19  ;;  %v6811_v25 = vld [vmem:[%s9018_s4 + $0x730] ss:$24 sps:$4 sm:$0xff]   ;;  %v6816_v52 = vld [vmem:[%s9018_s4 + $0x464] ss:$24 sps:$4 sm:$0xff]  }
 0x3ae   : > { %v8850_v4 = vadd.f32 %v4753_v23, %v8229_v27  ;;  %v4755_v46 = vpop.f32.mrb[26].mxu1  ;;  %5056 = vmatpush1.bf16.msra.mxu1 %v6805_v12  ;;  %v3275_v26 = vpop.f32.mrb[27].mxu0  ;;  %5016 = vmatprep.subr.bf16.mxu0 %v6810_v13  ;;  %v6814_v27 = vld [vmem:[%s9018_s4 + $0x460] ss:$24 sps:$4 sm:$0xff]  }
 0x3af   : > { %v4756_v28 = vpop.f32.mrb[27].mxu1  ;;  %5057 = vmatprep.subr.bf16.mxu1 %v6813_v15  ;;  %v6865_v19 = vld [vmem:[%s9018_s4 + $0x8e0] ss:$24 sps:$4 sm:$0xff]  }
 0x3b0   : > { %v8968_v12 = vld [vmem:[%s9019_s5] sm:$0x3f] }
 0x3b1   : > { %5017 = vmatpush1.bf16.msra.mxu0 %v6808_v24  ;;  %v5091_v38 = vrot.slane %v8968_v12, %v380_v63 }
 0x3b2   : > { %5058 = vmatpush1.bf16.msra.mxu1 %v6811_v25  ;;  %5018 = vmatprep.subr.bf16.mxu0 %v6816_v52 }
 0x3b3   : > { %5059 = vmatprep.subr.bf16.mxu1 %v6819_v29 }
 0x3b5   : > { %5019 = vmatpush1.bf16.msra.mxu0 %v6814_v27 }
 0x3b6   : > { %5060 = vmatpush1.bf16.msra.mxu1 %v6817_v30  ;;  %5020 = vmatprep.subr.bf16.mxu0 %v6822_v33 }
 0x3b7   : > { %5061 = vmatprep.subr.bf16.mxu1 %v6825_v36 }
 0x3b9   : > { %5021 = vmatpush1.bf16.msra.mxu0 %v6820_v31 }
 0x3ba   : > { %5062 = vmatpush1.bf16.msra.mxu1 %v6823_v35  ;;  %5022 = vmatprep.subr.bf16.mxu0 %v6828_v37 }
 0x3bb   : > { %5063 = vmatprep.subr.bf16.mxu1 %v6831_v39 }
 0x3bd   : > { %5023 = vmatpush1.bf16.msra.mxu0 %v6826_v40 }
 0x3be   : > { %5064 = vmatpush1.bf16.msra.mxu1 %v6829_v42  ;;  %5024 = vmatprep.subr.bf16.mxu0 %v6834_v43  ;;  %v6879_v42 = vmov 1966171168  }
 0x3bf   : > { %5065 = vmatprep.subr.bf16.mxu1 %v6837_v7  ;;  %v5140_v43 = vunpack.c.l.s4 %v6879_v42  ;;  %v5099_v7 = vrot.slane %v8968_v12, %v388_v0 }
 0x3c1   : > { %5025 = vmatpush1.bf16.msra.mxu0 %v6832_v44  ;;  %v5141_v44 = vunpack.c.0.s8 %v5140_v43 }
 0x3c2   : > { %5066 = vmatpush1.bf16.msra.mxu1 %v6835_v45  ;;  %5026 = vmatprep.subr.bf16.mxu0 %v6840_v48 }
 0x3c3   : > { %5067 = vmatprep.subr.bf16.mxu1 %v6843_v49  ;;  %v5144_v0 = vsub.s32 %v5141_v44, %v7280_v62 }
 0x3c5   : > { %5027 = vmatpush1.bf16.msra.mxu0 %v6838_v50 }
 0x3c6   : > { %5068 = vmatpush1.bf16.msra.mxu1 %v6841_v53  ;;  %5028 = vmatprep.subr.bf16.mxu0 %v6846_v55 }
 0x3c7   : > { %5069 = vmatprep.subr.bf16.mxu1 %v6849_v57 }
 0x3c9   : > { %5029 = vmatpush1.bf16.msra.mxu0 %v6844_v54 }
 0x3ca   : > { %5070 = vmatpush1.bf16.msra.mxu1 %v6847_v56  ;;  %5030 = vmatprep.subr.bf16.mxu0 %v6852_v59 }
 0x3cb   : > { %5071 = vmatprep.subr.bf16.mxu1 %v6855_v58 }
 0x3cd   : > { %5031 = vmatpush1.bf16.msra.mxu0 %v6850_v8 }
 0x3ce   : > { %5072 = vmatpush1.bf16.msra.mxu1 %v6853_v60  ;;  %5032 = vmatprep.subr.bf16.mxu0 %v6858_v34 }
 0x3cf   : > { %5073 = vmatprep.subr.bf16.mxu1 %v6861_v61 }
 0x3d1   : > { %5033 = vmatpush1.bf16.msra.mxu0 %v6856_v5 }
 0x3d2   : > { %5074 = vmatpush1.bf16.msra.mxu1 %v6859_v47  ;;  %5034 = vmatprep.subr.bf16.mxu0 %v6864_v10  ;;  %v5107_v10 = vrot.slane %v8968_v12, %v396_v14 }
 0x3d3   : > { %5075 = vmatprep.subr.bf16.mxu1 %v6867_v9 }
 0x3d5   : > { %5035 = vmatpush1.bf16.msra.mxu0 %v6862_v11 }
 0x3d6   : > { %5076 = vmatpush1.bf16.msra.mxu1 %v6865_v19 }
 0x3d8   : > { %5037 = vmatmul.mubr.bf16.vlgmr.msra.gmra.mrb[40].mxu0 %v8358_v41  ;;  %v5095_v41 = vrot.slane %v8968_v12, %v384_v2 }
 0x3d9   : > { %5078 = vmatmul.mubr.bf16.vlgmr.msra.gmra.mrb[40].mxu1 %v8363_v6 }
 0x3eb   : > { %v4792_v13 = vpop.f32.mrb[28].mxu0 }
 0x3ec   : > { %v4793_v32 = vadd.f32 %v4792_v13, %v8841_v20  ;;  %v4833_v15 = vpop.f32.mrb[28].mxu1  ;;  %v4794_v51 = vpop.f32.mrb[29].mxu0 }
 0x3ed   : > { %v4795_v23 = vadd.f32 %v4794_v51, %v8850_v4  ;;  %v4835_v1 = vpop.f32.mrb[29].mxu1  ;;  %v4796_v6 = vpop.f32.mrb[30].mxu0 }
 0x3ee   : > { %v4834_v24 = vadd.f32 %v4833_v15, %v4793_v32  ;;  %v4837_v46 = vpop.f32.mrb[30].mxu1  ;;  %v4797_v26 = vpop.f32.mrb[31].mxu0  ;;  %v5111_v32 = vrot.slane %v8968_v12, %v400_v17 }
 0x3ef   : > { %v4836_v25 = vadd.f32 %v4835_v1, %v4795_v23  ;;  %v4838_v52 = vpop.f32.mrb[31].mxu1  ;;  %v5200_v26 = vld [vmem:[%s269_s8] sm:$0x3f] }
 0x3f0   : > { %v5118_v20 = vadd.f32 %v5091_v38, %v4834_v24 }
 0x3f1   : > { %v5119_v28 = vadd.f32 %v5095_v41, %v4836_v25 }
 0x3f3   : > { %v5903_v29 = vpack.c.bf16 %v5119_v28, %v5118_v20 }
 0x3f5   : > { %v5145_v61 = vrot.slane %v5903_v29, %v5144_v0 }
 0x42b   : > { %v4874_v27 = vpop.f32.mrb[32].mxu0 }
 0x42c   : > { %v4875_v63 = vadd.f32 %v4874_v27, %v8440_v18  ;;  %v4915_v30 = vpop.f32.mrb[32].mxu1  ;;  %v4876_v33 = vpop.f32.mrb[33].mxu0  ;;  %v5103_v18 = vrot.slane %v8968_v12, %v392_v3 }
 0x42d   : > { %v4877_v4 = vadd.f32 %v4876_v33, %v8448_v22  ;;  %v4917_v36 = vpop.f32.mrb[33].mxu1  ;;  %v4878_v31 = vpop.f32.mrb[34].mxu0 }
 0x42e   : > { %v4916_v35 = vadd.f32 %v4915_v30, %v4875_v63  ;;  %v4919_v2 = vpop.f32.mrb[34].mxu1  ;;  %v4879_v37 = vpop.f32.mrb[35].mxu0 }
 0x42f   : > { %v4918_v39 = vadd.f32 %v4917_v36, %v4877_v4  ;;  %v4920_v40 = vpop.f32.mrb[35].mxu1 }
 0x46b   : > { %v4956_v45 = vpop.f32.mrb[36].mxu0 }
 0x46c   : > { %v4957_v22 = vadd.f32 %v4956_v45, %v4916_v35  ;;  %v4997_v48 = vpop.f32.mrb[36].mxu1  ;;  %v4958_v49 = vpop.f32.mrb[37].mxu0 }
 0x46d   : > { %v4998_v50 = vadd.f32 %v4997_v48, %v8838_v16  ;;  %v4959_v53 = vadd.f32 %v4958_v49, %v4918_v39  ;;  %v4999_v55 = vpop.f32.mrb[37].mxu1  ;;  %v4960_v57 = vpop.f32.mrb[38].mxu0 }
 0x46e   : > { %v5120_v54 = vadd.f32 %v5099_v7, %v4957_v22  ;;  %v5000_v56 = vadd.f32 %v4999_v55, %v8844_v21  ;;  %v5001_v59 = vpop.f32.mrb[38].mxu1  ;;  %v4961_v58 = vpop.f32.mrb[39].mxu0 }
 0x46f   : > { %v5121_v8 = vadd.f32 %v5103_v18, %v4959_v53  ;;  %v5002_v60 = vpop.f32.mrb[39].mxu1 }
 0x471   : > { %v5904_v34 = vpack.c.bf16 %v5121_v8, %v5120_v54 }
 0x473   : > { %v5152_v3 = vrot.slane %v5904_v34, %v5144_v0 }
 0x475   : > { %v5160_v5 = vcombine.low %v5145_v61, %v5152_v3 }
 0x477   : > { %v5167_v24 = vrot.slane %v5160_v5, %v5144_v0 }
 0x4ab   : > { %v5038_v16 = vpop.f32.mrb[40].mxu0 }
 0x4ac   : > { %v5039_v21 = vadd.f32 %v5038_v16, %v4998_v50  ;;  %v5079_v47 = vpop.f32.mrb[40].mxu1  ;;  %v5040_v9 = vpop.f32.mrb[41].mxu0 }
 0x4ad   : > { %v5041_v19 = vadd.f32 %v5040_v9, %v5000_v56  ;;  %v5081_v13 = vpop.f32.mrb[41].mxu1  ;;  %v5042_v38 = vpop.f32.mrb[42].mxu0 }
 0x4ae   : > { %v5080_v51 = vadd.f32 %v5079_v47, %v5039_v21  ;;  %v5083_v14 = vpop.f32.mrb[42].mxu1  ;;  %v5043_v23 = vpop.f32.mrb[43].mxu0 }
 0x4af   : > { %v5082_v1 = vadd.f32 %v5081_v13, %v5041_v19  ;;  %v5084_v41 = vpop.f32.mrb[43].mxu1 }
 0x4b0   : > { %v5122_v6 = vadd.f32 %v5107_v10, %v5080_v51 }
 0x4b1   : > { %v5123_v62 = vadd.f32 %v5111_v32, %v5082_v1 }
 0x4b3   : > { %v5905_v17 = vpack.c.bf16 %v5123_v62, %v5122_v6 }
 0x4b5   : > { %v5159_v12 = vrot.slane %v5905_v17, %v5144_v0 }
 0x4b7   : > { %v5174_v46 = vrot.slane %v5159_v12, %v5144_v0 }
 0x4b9   : > { %v5175_v25 = vcombine.low %v5167_v24, %v5174_v46 }
 0x4bb   : > { %v5201_v52 = vsel %vm5199_vm8, %v5175_v25, %v5200_v26 }
 0x4bc   : > { %5202 = vst [vmem:[%s269_s8] sm:$0x3f] %v5201_v52 }
 0x4bd PF: > { %s16_s21 = sadd.s32 1, %s6874_s21  }
 0x4be   : > { %p13_p4 = scmp.ge.s32.totalorder %s16_s21, 4  }
 0x4c0   :  { %15 = sbr.rel (!%p13_p4) target bundleno = 1 (0x1), region = 77 }

// kernel: molecular_embedding_forward.2
= control target key start
LH: loop header
LB: loop body
LE: loop exit
PB: predicated region body
PF: predicated region fallthrough
CT: control target
= control target key end

     0   :  { %17 = vsyncpa [#allocation3], 0  ;;  %s18749_s0 = inlined_call_operand.vmem [shape: bf16[2,768], index: 0, kind: input, shape index: {}]   ;;  %s18750_s1 = inlined_call_operand.hbm [shape: f32[2,2048], index: 1, kind: input, shape index: {}]   ;;  %s18751_s2 = inlined_call_operand.hbm [shape: bf16[768,768], index: 2, kind: input, shape index: {}]   ;;  %s18752_s3 = inlined_call_operand.hbm [shape: f32[1,768], index: 3, kind: input, shape index: {}]   ;;  %s18753_s4 = inlined_call_operand.hbm [shape: bf16[768,768], index: 4, kind: input, shape index: {}]   ;;  %s18754_s5 = inlined_call_operand.hbm [shape: f32[1,768], index: 5, kind: input, shape index: {}]   ;;  %s18755_s6 = inlined_call_operand.hbm [shape: bf16[2048,768], index: 6, kind: input, shape index: {}]   ;;  %s18756_s7 = inlined_call_operand.hbm [shape: f32[1,768], index: 7, kind: input, shape index: {}]   ;;  %s18757_s8 = inlined_call_operand.hbm [shape: bf16[768,768], index: 8, kind: input, shape index: {}]   ;;  %s18758_s9 = inlined_call_operand.hbm [shape: f32[1,768], index: 9, kind: input, shape index: {}]   ;;  %s18759_s10 = inlined_call_operand.hbm [shape: bf16[2,768], index: 10, kind: output, shape index: {0}]   ;;  %s18760_s11 = inlined_call_operand.hbm [shape: bf16[2,768], index: 11, kind: output, shape index: {1}]  }
   0x1   :  { %18 = vsyncpa [#allocation6], 0 }
   0x2   :  { %19 = vsyncpa [#allocation9], 0 }
   0x3   :  { %20 = vsyncpa [#allocation12], 0 }
   0x4   :  { %21 = vsyncpa [#allocation15], 0 }
   0x5   :  { %22 = vsyncpa [#allocation4], 0 }
   0x6   :  { %23 = vsyncpa [#allocation19], 0 }
   0x7   :  { %30 = vsyncadd [#allocation3], 3584  ;;  %s17892_s17 = smov [#allocation5]   ;;  %s17636_s21 = scalar_lea.hbm %s18751_s2, 36864 }
   0x8   :  { %s43_s18 = sshll.u32 %s17892_s17, 4  ;;  %p17637_p0 = scmp.ne.s32.totalorder %s18751_s2, %s17636_s21  ;;  %s44_s18 = int_to_ptr.vmem [resolvable:$true] %s43_s18 }
   0x9   :  { %p17640_p1 = scmp.lt.u32.totalorder %s17636_s21, %s18751_s2 }
   0xb   :  { %p17642_p2 = pnand %p17640_p1, %p17637_p0 }
   0xd   :  { %17645 = shalt.err (!%p17642_p2)
}
   0xe   :  { %s17646_s26 = scalar_lea.vmem %s44_s18, 36864  ;;  %p17651_p4 = scmp.lt.s32.totalorder %s44_s18, %s44_s18 }
   0xf   :  { %p17647_p3 = scmp.ne.s32.totalorder %s44_s18, %s17646_s26  ;;  %p17652_p5 = scmp.lt.s32.totalorder %s17646_s26, %s17646_s26 }
  0x11   :  { %p17653_p6 = por %p17652_p5, %p17651_p4 }
  0x13   :  { %p17654_p7 = pnand %p17653_p6, %p17647_p3 }
  0x15   :  { %17657 = shalt.err (!%p17654_p7)
}
  0x16   :  { %s17893_s27 = smov 384   ;;  %s17894_s28 = smov 24  }
  0x17   :  { %49 = dma.hbm_to_vmem [thread:$0]  %s18751_s2, 36864, %s44_s18, [#allocation6], %s17893_s27, %s17893_s27, %s17894_s28  }
  0x18   :  { %s17895_s12 = smov [#allocation8]   ;;  %s17896_s14 = smov [#allocation11]  }
  0x19   :  { %s65_s13 = sshll.u32 %s17895_s12, 4  ;;  %s87_s15 = sshll.u32 %s17896_s14, 4  ;;  %s66_s13 = int_to_ptr.vmem [resolvable:$true] %s65_s13  ;;  %s88_s15 = int_to_ptr.vmem [resolvable:$true] %s87_s15 }
  0x1a   :  { %s17658_s19 = scalar_lea.hbm %s18753_s4, 36864 }
  0x1b   :  { %p17659_p8 = scmp.ne.s32.totalorder %s18753_s4, %s17658_s19  ;;  %p17662_p9 = scmp.lt.u32.totalorder %s17658_s19, %s18753_s4 }
  0x1d   :  { %p17664_p10 = pnand %p17662_p9, %p17659_p8 }
  0x1f   :  { %17667 = shalt.err (!%p17664_p10)
}
  0x20   :  { %s17668_s2 = scalar_lea.vmem %s66_s13, 36864  ;;  %p17673_p12 = scmp.lt.s32.totalorder %s66_s13, %s66_s13 }
  0x21   :  { %p17669_p11 = scmp.ne.s32.totalorder %s66_s13, %s17668_s2  ;;  %p17674_p13 = scmp.lt.s32.totalorder %s17668_s2, %s17668_s2 }
  0x23   :  { %p17675_p0 = por %p17674_p13, %p17673_p12 }
  0x25   :  { %p17676_p1 = pnand %p17675_p0, %p17669_p11 }
  0x27   :  { %17679 = shalt.err (!%p17676_p1)
}
  0x28   :  { %71 = dma.hbm_to_vmem [thread:$0]  %s18753_s4, 36864, %s66_s13, [#allocation9], %s17893_s27, %s17893_s27, %s17894_s28  }
  0x29   :  { %s17680_s29 = scalar_lea.hbm %s18755_s6, 98304 }
  0x2a   :  { %p17681_p2 = scmp.ne.s32.totalorder %s18755_s6, %s17680_s29  ;;  %p17684_p3 = scmp.lt.u32.totalorder %s17680_s29, %s18755_s6 }
  0x2c   :  { %p17686_p4 = pnand %p17684_p3, %p17681_p2 }
  0x2e   :  { %17689 = shalt.err (!%p17686_p4)
}
  0x2f   :  { %s17690_s17 = scalar_lea.vmem %s88_s15, 98304  ;;  %p17695_p6 = scmp.lt.s32.totalorder %s88_s15, %s88_s15 }
  0x30   :  { %p17691_p5 = scmp.ne.s32.totalorder %s88_s15, %s17690_s17  ;;  %p17696_p7 = scmp.lt.s32.totalorder %s17690_s17, %s17690_s17 }
  0x32   :  { %p17697_p8 = por %p17696_p7, %p17695_p6 }
  0x34   :  { %p17698_p9 = pnand %p17697_p8, %p17691_p5 }
  0x36   :  { %17701 = shalt.err (!%p17698_p9)
}
  0x37   :  { %93 = dma.hbm_to_vmem [thread:$0]  %s18755_s6, 98304, %s88_s15, [#allocation12], %s17893_s27, %s17893_s27, %s17894_s28  }
  0x38   :  { %s17897_s19 = smov [#allocation14]   ;;  %s17898_s21 = smov [#allocation2]  }
  0x39   :  { %s109_s20 = sshll.u32 %s17897_s19, 4  ;;  %s31_s22 = sshll.u32 %s17898_s21, 4  ;;  %s110_s20 = int_to_ptr.vmem [resolvable:$true] %s109_s20  ;;  %s32_s22 = int_to_ptr.vmem [resolvable:$true] %s31_s22 }
  0x3a   :  { %s17702_s18 = scalar_lea.hbm %s18757_s8, 36864 }
  0x3b   :  { %p17703_p10 = scmp.ne.s32.totalorder %s18757_s8, %s17702_s18  ;;  %p17706_p11 = scmp.lt.u32.totalorder %s17702_s18, %s18757_s8 }
  0x3d   :  { %p17708_p12 = pnand %p17706_p11, %p17703_p10 }
  0x3f   :  { %17711 = shalt.err (!%p17708_p12)
}
  0x40   :  { %s17712_s6 = scalar_lea.vmem %s110_s20, 36864  ;;  %p17717_p0 = scmp.lt.s32.totalorder %s110_s20, %s110_s20 }
  0x41   :  { %p17713_p13 = scmp.ne.s32.totalorder %s110_s20, %s17712_s6  ;;  %p17718_p1 = scmp.lt.s32.totalorder %s17712_s6, %s17712_s6 }
  0x43   :  { %p17719_p2 = por %p17718_p1, %p17717_p0 }
  0x45   :  { %p17720_p3 = pnand %p17719_p2, %p17713_p13 }
  0x47   :  { %17723 = shalt.err (!%p17720_p3)
}
  0x48   :  { %115 = dma.hbm_to_vmem [thread:$0]  %s18757_s8, 36864, %s110_s20, [#allocation15], %s17893_s27, %s17893_s27, %s17894_s28  }
  0x49   :  { %s17724_s16 = scalar_lea.hbm %s18750_s1, 512 }
  0x4a   :  { %p17725_p4 = scmp.ne.s32.totalorder %s18750_s1, %s17724_s16  ;;  %p17728_p5 = scmp.lt.u32.totalorder %s17724_s16, %s18750_s1 }
  0x4c   :  { %p17730_p6 = pnand %p17728_p5, %p17725_p4 }
  0x4e   :  { %17733 = shalt.err (!%p17730_p6)
}
  0x4f   :  { %s17734_s21 = scalar_lea.vmem %s32_s22, 512  ;;  %s17738_s23 = scalar_lea.vmem %s32_s22, 4096 }
  0x50   :  { %p17735_p7 = scmp.ne.s32.totalorder %s32_s22, %s17734_s21  ;;  %p17739_p8 = scmp.lt.s32.totalorder %s32_s22, %s32_s22 }
  0x51   :  { %p17740_p9 = scmp.lt.s32.totalorder %s17738_s23, %s17734_s21 }
  0x53   :  { %p17741_p10 = por %p17740_p9, %p17739_p8 }
  0x55   :  { %p17742_p11 = pnand %p17741_p10, %p17735_p7 }
  0x57   :  { %17745 = shalt.err (!%p17742_p11)
}
  0x58   :  { %s17899_s8 = smov 512   ;;  %s17900_s27 = smov 32  }
  0x59   :  { %37 = dma.hbm_to_vmem [thread:$0]  %s18750_s1, 512, %s32_s22, [#allocation3], %s17899_s8, %s17899_s8, %s17900_s27  }
  0x5a   :  { %s17901_s2 = smov [#allocation7]   ;;  %s17902_s24 = smov [#allocation10]  }
  0x5b   :  { %s56_s18 = sshll.u32 %s17901_s2, 4  ;;  %s78_s25 = sshll.u32 %s17902_s24, 4  ;;  %s57_s18 = int_to_ptr.vmem [resolvable:$true] %s56_s18  ;;  %s79_s25 = int_to_ptr.vmem [resolvable:$true] %s78_s25 }
  0x5c   :  { %s17746_s6 = scalar_lea.hbm %s18752_s3, 96 }
  0x5d   :  { %p17747_p12 = scmp.ne.s32.totalorder %s18752_s3, %s17746_s6  ;;  %p17750_p13 = scmp.lt.u32.totalorder %s17746_s6, %s18752_s3 }
  0x5f   :  { %p17752_p0 = pnand %p17750_p13, %p17747_p12 }
  0x61   :  { %17755 = shalt.err (!%p17752_p0)
}
  0x62   :  { %s17756_s1 = scalar_lea.vmem %s57_s18, 96  ;;  %p17761_p2 = scmp.lt.s32.totalorder %s57_s18, %s57_s18 }
  0x63   :  { %p17757_p1 = scmp.ne.s32.totalorder %s57_s18, %s17756_s1  ;;  %p17762_p3 = scmp.lt.s32.totalorder %s17756_s1, %s17756_s1 }
  0x65   :  { %p17763_p4 = por %p17762_p3, %p17761_p2 }
  0x67   :  { %p17764_p5 = pnand %p17763_p4, %p17757_p1 }
  0x69   :  { %17767 = shalt.err (!%p17764_p5)
}
  0x6a   :  { %59 = dma.hbm_to_vmem [thread:$0]  %s18752_s3, 96, %s57_s18, [#allocation6]  }
  0x6b   :  { %s17768_s13 = scalar_lea.hbm %s18754_s5, 96 }
  0x6c   :  { %p17769_p6 = scmp.ne.s32.totalorder %s18754_s5, %s17768_s13  ;;  %p17772_p7 = scmp.lt.u32.totalorder %s17768_s13, %s18754_s5 }
  0x6e   :  { %p17774_p8 = pnand %p17772_p7, %p17769_p6 }
  0x70   :  { %17777 = shalt.err (!%p17774_p8)
}
  0x71   :  { %s17778_s27 = scalar_lea.vmem %s79_s25, 96  ;;  %p17783_p10 = scmp.lt.s32.totalorder %s79_s25, %s79_s25 }
  0x72   :  { %p17779_p9 = scmp.ne.s32.totalorder %s79_s25, %s17778_s27  ;;  %p17784_p11 = scmp.lt.s32.totalorder %s17778_s27, %s17778_s27 }
  0x74   :  { %p17785_p12 = por %p17784_p11, %p17783_p10 }
  0x76   :  { %p17786_p13 = pnand %p17785_p12, %p17779_p9 }
  0x78   :  { %17789 = shalt.err (!%p17786_p13)
}
  0x79   :  { %81 = dma.hbm_to_vmem [thread:$0]  %s18754_s5, 96, %s79_s25, [#allocation9]  }
  0x7a   :  { %s17903_s20 = smov [#allocation13]   ;;  %s17904_s18 = smov [#allocation16]  }
  0x7b   :  { %s100_s2 = sshll.u32 %s17903_s20, 4  ;;  %s122_s24 = sshll.u32 %s17904_s18, 4  ;;  %s101_s2 = int_to_ptr.vmem [resolvable:$true] %s100_s2  ;;  %s123_s24 = int_to_ptr.vmem [resolvable:$true] %s122_s24 }
  0x7c   :  { %s17790_s6 = scalar_lea.hbm %s18756_s7, 96 }
  0x7d   :  { %p17791_p0 = scmp.ne.s32.totalorder %s18756_s7, %s17790_s6  ;;  %p17794_p1 = scmp.lt.u32.totalorder %s17790_s6, %s18756_s7 }
  0x7f   :  { %p17796_p2 = pnand %p17794_p1, %p17791_p0 }
  0x81   :  { %17799 = shalt.err (!%p17796_p2)
}
  0x82   :  { %s17800_s5 = scalar_lea.vmem %s101_s2, 96  ;;  %p17805_p4 = scmp.lt.s32.totalorder %s101_s2, %s101_s2 }
  0x83   :  { %p17801_p3 = scmp.ne.s32.totalorder %s101_s2, %s17800_s5  ;;  %p17806_p5 = scmp.lt.s32.totalorder %s17800_s5, %s17800_s5 }
  0x85   :  { %p17807_p6 = por %p17806_p5, %p17805_p4 }
  0x87   :  { %p17808_p7 = pnand %p17807_p6, %p17801_p3 }
  0x89   :  { %17811 = shalt.err (!%p17808_p7)
}
  0x8a   :  { %103 = dma.hbm_to_vmem [thread:$0]  %s18756_s7, 96, %s101_s2, [#allocation12]  }
  0x8b   :  { %s17812_s17 = scalar_lea.hbm %s18758_s9, 96 }
  0x8c   :  { %p17813_p8 = scmp.ne.s32.totalorder %s18758_s9, %s17812_s17  ;;  %p17816_p9 = scmp.lt.u32.totalorder %s17812_s17, %s18758_s9 }
  0x8e   :  { %p17818_p10 = pnand %p17816_p9, %p17813_p8 }
  0x90   :  { %17821 = shalt.err (!%p17818_p10)
}
  0x91   :  { %s17822_s23 = scalar_lea.vmem %s123_s24, 96  ;;  %p17827_p12 = scmp.lt.s32.totalorder %s123_s24, %s123_s24 }
  0x92   :  { %p17823_p11 = scmp.ne.s32.totalorder %s123_s24, %s17822_s23  ;;  %p17828_p13 = scmp.lt.s32.totalorder %s17822_s23, %s17822_s23 }
  0x94   :  { %p17829_p0 = por %p17828_p13, %p17827_p12 }
  0x96   :  { %p17830_p1 = pnand %p17829_p0, %p17823_p11 }
  0x98   :  { %17833 = shalt.err (!%p17830_p1)
}
  0x99   :  { %125 = dma.hbm_to_vmem [thread:$0]  %s18758_s9, 96, %s123_s24, [#allocation15]  }
  0x9a   :  { %17878 = dma.done.wait [#allocation3], 4096  }
  0x9b   :  { %17879 = vsyncadd [#allocation3], 4294963200 }
  0x9c   :  { %17880 = dma.done.wait [#allocation6], 36960  }
  0x9d   :  { %17881 = vsyncadd [#allocation6], 4294930336 }
  0x9e   :  { %17882 = dma.done.wait [#allocation9], 36960  }
  0x9f   :  { %17883 = vsyncadd [#allocation9], 4294930336 }
  0xa0   :  { %17884 = dma.done.wait [#allocation12], 98400  }
  0xa1   :  { %17885 = vsyncadd [#allocation12], 4294868896 }
  0xa2   :  { %17886 = dma.done.wait [#allocation15], 36960  }
  0xa3   :  { %17887 = vsyncadd [#allocation15], 4294930336  ;;  %v15150_v0 = vld [vmem:[#allocation5 + $0x4] ss:$24 sps:$4 sm:$0xff]   ;;  %v15154_v2 = vld [vmem:[#allocation5] ss:$24 sps:$4 sm:$0xff]   ;;  %v451_v39 = vlaneseq }
  0xa4   :  { %v15152_v1 = vld [vmem:[#allocation5 + $0xc] ss:$24 sps:$4 sm:$0xff]   ;;  %2069 = vmatprep.subr.bf16.mxu0 %v15150_v0  ;;  %v15155_v3 = vld [vmem:[#allocation5 + $0x8] ss:$24 sps:$4 sm:$0xff]   ;;  %v15158_v5 = vld [vmem:[#allocation5 + $0x3c] ss:$24 sps:$4 sm:$0xff]  }
  0xa5   :  { %2198 = vmatprep.subr.bf16.mxu1 %v15152_v1  ;;  %v15156_v4 = vld [vmem:[#allocation5 + $0x34] ss:$24 sps:$4 sm:$0xff]   ;;  %2070 = vmatpush1.bf16.msra.mxu0 %v15154_v2  ;;  %v15160_v6 = vld [vmem:[#allocation5 + $0x30] ss:$24 sps:$4 sm:$0xff]   ;;  %v15162_v8 = vld [vmem:[#allocation5 + $0x64] ss:$24 sps:$4 sm:$0xff]  }
  0xa6   :  { %2199 = vmatpush1.bf16.msra.mxu1 %v15155_v3  ;;  %2071 = vmatprep.subr.bf16.mxu0 %v15156_v4  ;;  %v15161_v7 = vld [vmem:[#allocation5 + $0x38] ss:$24 sps:$4 sm:$0xff]   ;;  %v15164_v9 = vld [vmem:[#allocation5 + $0x6c] ss:$24 sps:$4 sm:$0xff]   ;;  %v15167_v11 = vld [vmem:[#allocation5 + $0x68] ss:$24 sps:$4 sm:$0xff]  }
  0xa7   :  { %2200 = vmatprep.subr.bf16.mxu1 %v15158_v5  ;;  %v15166_v10 = vld [vmem:[#allocation5 + $0x60] ss:$24 sps:$4 sm:$0xff]   ;;  %v15168_v12 = vld [vmem:[#allocation5 + $0x94] ss:$24 sps:$4 sm:$0xff]   ;;  %v15172_v14 = vld [vmem:[#allocation5 + $0x90] ss:$24 sps:$4 sm:$0xff]  }
  0xa8   :  { %v15170_v13 = vld [vmem:[#allocation5 + $0x9c] ss:$24 sps:$4 sm:$0xff]   ;;  %v15173_v15 = vld [vmem:[#allocation5 + $0x98] ss:$24 sps:$4 sm:$0xff]   ;;  %v15176_v17 = vld [vmem:[#allocation5 + $0xcc] ss:$24 sps:$4 sm:$0xff]  }
  0xa9   :  { %2072 = vmatpush1.bf16.msra.mxu0 %v15160_v6  ;;  %v15174_v16 = vld [vmem:[#allocation5 + $0xc4] ss:$24 sps:$4 sm:$0xff]   ;;  %v15178_v18 = vld [vmem:[#allocation5 + $0xc0] ss:$24 sps:$4 sm:$0xff]   ;;  %v15180_v20 = vld [vmem:[#allocation5 + $0xf4] ss:$24 sps:$4 sm:$0xff]  }
  0xaa   :  { %2201 = vmatpush1.bf16.msra.mxu1 %v15161_v7  ;;  %2073 = vmatprep.subr.bf16.mxu0 %v15162_v8  ;;  %v15179_v19 = vld [vmem:[#allocation5 + $0xc8] ss:$24 sps:$4 sm:$0xff]   ;;  %v15182_v21 = vld [vmem:[#allocation5 + $0xfc] ss:$24 sps:$4 sm:$0xff]   ;;  %v15185_v23 = vld [vmem:[#allocation5 + $0xf8] ss:$24 sps:$4 sm:$0xff]  }
  0xab   :  { %2202 = vmatprep.subr.bf16.mxu1 %v15164_v9  ;;  %v15184_v22 = vld [vmem:[#allocation5 + $0xf0] ss:$24 sps:$4 sm:$0xff]   ;;  %v15186_v24 = vld [vmem:[#allocation5 + $0x124] ss:$24 sps:$4 sm:$0xff]   ;;  %v15190_v26 = vld [vmem:[#allocation5 + $0x120] ss:$24 sps:$4 sm:$0xff]  }
  0xac   :  { %v15188_v25 = vld [vmem:[#allocation5 + $0x12c] ss:$24 sps:$4 sm:$0xff]   ;;  %v15191_v27 = vld [vmem:[#allocation5 + $0x128] ss:$24 sps:$4 sm:$0xff]   ;;  %v15194_v29 = vld [vmem:[#allocation5 + $0x15c] ss:$24 sps:$4 sm:$0xff]  }
  0xad   :  { %2074 = vmatpush1.bf16.msra.mxu0 %v15166_v10  ;;  %v15192_v28 = vld [vmem:[#allocation5 + $0x154] ss:$24 sps:$4 sm:$0xff]   ;;  %v15196_v30 = vld [vmem:[#allocation5 + $0x150] ss:$24 sps:$4 sm:$0xff]   ;;  %v15198_v32 = vld [vmem:[#allocation5 + $0x184] ss:$24 sps:$4 sm:$0xff]  }
  0xae   :  { %2203 = vmatpush1.bf16.msra.mxu1 %v15167_v11  ;;  %2075 = vmatprep.subr.bf16.mxu0 %v15168_v12  ;;  %v15197_v31 = vld [vmem:[#allocation5 + $0x158] ss:$24 sps:$4 sm:$0xff]   ;;  %v15200_v33 = vld [vmem:[#allocation5 + $0x18c] ss:$24 sps:$4 sm:$0xff]   ;;  %v15203_v35 = vld [vmem:[#allocation5 + $0x188] ss:$24 sps:$4 sm:$0xff]  }
  0xaf   :  { %2204 = vmatprep.subr.bf16.mxu1 %v15170_v13  ;;  %v15202_v34 = vld [vmem:[#allocation5 + $0x180] ss:$24 sps:$4 sm:$0xff]   ;;  %v15204_v36 = vld [vmem:[#allocation5 + $0x1b4] ss:$24 sps:$4 sm:$0xff]   ;;  %v15208_v38 = vld [vmem:[#allocation5 + $0x1b0] ss:$24 sps:$4 sm:$0xff]  }
  0xb0   :  { %v15206_v37 = vld [vmem:[#allocation5 + $0x1bc] ss:$24 sps:$4 sm:$0xff]   ;;  %v17905_v40 = vmov 1966171168   ;;  %v15209_v42 = vld [vmem:[#allocation5 + $0x1b8] ss:$24 sps:$4 sm:$0xff]  }
  0xb1   :  { %2076 = vmatpush1.bf16.msra.mxu0 %v15172_v14  ;;  %v498_v41 = vunpack.c.l.s4 %v17905_v40  ;;  %v15210_v43 = vld [vmem:[#allocation5 + $0x1e4] ss:$24 sps:$4 sm:$0xff]   ;;  %v15214_v45 = vld [vmem:[#allocation5 + $0x1e0] ss:$24 sps:$4 sm:$0xff]   ;;  %v18091_v47 = vshrl.u32 %v451_v39, 7 }
  0xb2   :  { %2205 = vmatpush1.bf16.msra.mxu1 %v15173_v15  ;;  %2077 = vmatprep.subr.bf16.mxu0 %v15174_v16  ;;  %v15212_v44 = vld [vmem:[#allocation5 + $0x1ec] ss:$24 sps:$4 sm:$0xff]   ;;  %v15215_v46 = vld [vmem:[#allocation5 + $0x1e8] ss:$24 sps:$4 sm:$0xff]   ;;  %v15218_v50 = vld [vmem:[#allocation5 + $0x21c] ss:$24 sps:$4 sm:$0xff]  }
  0xb3   :  { %2206 = vmatprep.subr.bf16.mxu1 %v15176_v17  ;;  %v499_v48 = vunpack.c.0.s8 %v498_v41  ;;  %v15216_v49 = vld [vmem:[#allocation5 + $0x214] ss:$24 sps:$4 sm:$0xff]   ;;  %v15220_v51 = vld [vmem:[#allocation5 + $0x210] ss:$24 sps:$4 sm:$0xff]   ;;  %v15222_v53 = vld [vmem:[#allocation5 + $0x244] ss:$24 sps:$4 sm:$0xff]  }
  0xb4   :  { %v15221_v52 = vld [vmem:[#allocation5 + $0x218] ss:$24 sps:$4 sm:$0xff]   ;;  %v15224_v54 = vld [vmem:[#allocation5 + $0x24c] ss:$24 sps:$4 sm:$0xff]   ;;  %v15227_v61 = vld [vmem:[#allocation5 + $0x248] ss:$24 sps:$4 sm:$0xff]  }
  0xb5   :  { %2078 = vmatpush1.bf16.msra.mxu0 %v15178_v18  ;;  %v18094_v55 = vsub.s32 %v499_v48, %v18091_v47  ;;  %v15246_v56 = vld [vmem:[%s18749_s0] ss:$6 sps:$4 sm:$0xff]   ;;  %v15248_v57 = vld [vmem:[%s18749_s0 + $0xc] ss:$6 sps:$4 sm:$0xff]  }
  0xb6   :  { %2207 = vmatpush1.bf16.msra.mxu1 %v15179_v19  ;;  %2079 = vmatprep.subr.bf16.mxu0 %v15180_v20  ;;  %v15250_v58 = vld [vmem:[%s18749_s0 + $0x18] ss:$6 sps:$4 sm:$0xff]   ;;  %v15252_v59 = vld [vmem:[%s18749_s0 + $0x24] ss:$6 sps:$4 sm:$0xff]  }
  0xb7   :  { %2208 = vmatprep.subr.bf16.mxu1 %v15182_v21  ;;  %v15226_v60 = vld [vmem:[#allocation5 + $0x240] ss:$24 sps:$4 sm:$0xff]   ;;  %v503_v62 = vrot.slane %v15246_v56, %v18094_v55  ;;  %v517_v63 = vrot.slane %v15248_v57, %v18094_v55  ;;  %v15228_v0 = vld [vmem:[#allocation5 + $0x274] ss:$24 sps:$4 sm:$0xff]   ;;  %v531_v1 = vrot.slane %v15250_v58, %v18094_v55  ;;  %v545_v2 = vrot.slane %v15252_v59, %v18094_v55  ;;  %v15232_v8 = vld [vmem:[#allocation5 + $0x270] ss:$24 sps:$4 sm:$0xff]  }
  0xb8   :  { %v15230_v3 = vld [vmem:[#allocation5 + $0x27c] ss:$24 sps:$4 sm:$0xff]   ;;  %v15233_v9 = vld [vmem:[#allocation5 + $0x278] ss:$24 sps:$4 sm:$0xff]   ;;  %v15236_v15 = vld [vmem:[#allocation5 + $0x2ac] ss:$24 sps:$4 sm:$0xff]  }
  0xb9   :  { %2080 = vmatpush1.bf16.msra.mxu0 %v15184_v22  ;;  %v554_v4 = vcombine.high %v503_v62, %v517_v63  ;;  %v553_v5 = vcombine.low %v503_v62, %v517_v63  ;;  %v558_v6 = vcombine.high %v531_v1, %v545_v2  ;;  %v557_v7 = vcombine.low %v531_v1, %v545_v2  ;;  %v15234_v11 = vld [vmem:[#allocation5 + $0x2a4] ss:$24 sps:$4 sm:$0xff]   ;;  %v15238_v18 = vld [vmem:[#allocation5 + $0x2a0] ss:$24 sps:$4 sm:$0xff]   ;;  %v15240_v20 = vld [vmem:[#allocation5 + $0x2d4] ss:$24 sps:$4 sm:$0xff]  }
  0xba   :  { %2209 = vmatpush1.bf16.msra.mxu1 %v15185_v23  ;;  %2081 = vmatprep.subr.bf16.mxu0 %v15186_v24  ;;  %v15239_v19 = vld [vmem:[#allocation5 + $0x2a8] ss:$24 sps:$4 sm:$0xff]   ;;  %v15242_v21 = vld [vmem:[#allocation5 + $0x2dc] ss:$24 sps:$4 sm:$0xff]   ;;  %v15245_v23 = vld [vmem:[#allocation5 + $0x2d8] ss:$24 sps:$4 sm:$0xff]  }
  0xbb   :  { %2210 = vmatprep.subr.bf16.mxu1 %v15188_v25  ;;  %v581_v10 = vrot.slane %v554_v4, %v18094_v55  ;;  %v609_v12 = vrot.slane %v558_v6, %v18094_v55  ;;  %v567_v13 = vrot.slane %v553_v5, %v18094_v55  ;;  %v595_v14 = vrot.slane %v557_v7, %v18094_v55  ;;  %v15244_v22 = vld [vmem:[#allocation5 + $0x2d0] ss:$24 sps:$4 sm:$0xff]   ;;  %v15256_v24 = vld [vmem:[#allocation5 + $0x304] ss:$24 sps:$4 sm:$0xff]   ;;  %v15298_v56 = vld [vmem:[#allocation5 + $0x454] ss:$24 sps:$4 sm:$0xff]  }
  0xbc   :  { %v15259_v25 = vld [vmem:[#allocation5 + $0x30c] ss:$24 sps:$4 sm:$0xff]   ;;  %v15277_v39 = vld [vmem:[#allocation5 + $0x39c] ss:$24 sps:$4 sm:$0xff]   ;;  %v15272_v40 = vld [vmem:[#allocation5 + $0x390] ss:$24 sps:$4 sm:$0xff]  }
  0xbd   :  { %2082 = vmatpush1.bf16.msra.mxu0 %v15190_v26  ;;  %v18116_v16 = vcombine.low %v581_v10, %v609_v12  ;;  %v18118_v17 = vcombine.high %v567_v13, %v595_v14  ;;  %v15254_v26 = vld [vmem:[#allocation5 + $0x300] ss:$24 sps:$4 sm:$0xff]   ;;  %v15289_v48 = vld [vmem:[#allocation5 + $0x3fc] ss:$24 sps:$4 sm:$0xff]   ;;  %v15296_v58 = vld [vmem:[#allocation5 + $0x450] ss:$24 sps:$4 sm:$0xff]  }
  0xbe   :  { %2211 = vmatpush1.bf16.msra.mxu1 %v15191_v27  ;;  %2083 = vmatprep.subr.bf16.mxu0 %v15192_v28  ;;  %v15257_v27 = vld [vmem:[#allocation5 + $0x308] ss:$24 sps:$4 sm:$0xff]   ;;  %v18122_v28 = vcombine.low %v567_v13, %v595_v14  ;;  %v15275_v41 = vld [vmem:[#allocation5 + $0x398] ss:$24 sps:$4 sm:$0xff]   ;;  %v15301_v57 = vld [vmem:[#allocation5 + $0x45c] ss:$24 sps:$4 sm:$0xff]  }
  0xbf   :  { %2212 = vmatprep.subr.bf16.mxu1 %v15194_v29  ;;  %2101 = vmatprep.mubr.bf16.mxu0 %v18116_v16  ;;  %v15262_v29 = vld [vmem:[#allocation5 + $0x334] ss:$24 sps:$4 sm:$0xff]   ;;  %v15299_v59 = vld [vmem:[#allocation5 + $0x458] ss:$24 sps:$4 sm:$0xff]   ;;  %v15305_v63 = vld [vmem:[#allocation5 + $0x488] ss:$24 sps:$4 sm:$0xff]  }
  0xc0   :  { %2230 = vmatprep.mubr.bf16.mxu1 %v18116_v16  ;;  %v15302_v62 = vld [vmem:[#allocation5 + $0x480] ss:$24 sps:$4 sm:$0xff]   ;;  %v15313_v1 = vld [vmem:[#allocation5 + $0x4bc] ss:$24 sps:$4 sm:$0xff]   ;;  %v15308_v2 = vld [vmem:[#allocation5 + $0x4b0] ss:$24 sps:$4 sm:$0xff]  }
  0xc1   :  { %2084 = vmatpush1.bf16.msra.mxu0 %v15196_v30  ;;  %v15265_v30 = vld [vmem:[#allocation5 + $0x33c] ss:$24 sps:$4 sm:$0xff]   ;;  %v15319_v5 = vld [vmem:[#allocation5 + $0x4ec] ss:$24 sps:$4 sm:$0xff]   ;;  %v15314_v6 = vld [vmem:[#allocation5 + $0x4e0] ss:$24 sps:$4 sm:$0xff]  }
  0xc2   :  { %2213 = vmatpush1.bf16.msra.mxu1 %v15197_v31  ;;  %2085 = vmatprep.subr.bf16.mxu0 %v15198_v32  ;;  %v18124_v31 = vcombine.high %v581_v10, %v609_v12  ;;  %v15260_v32 = vld [vmem:[#allocation5 + $0x330] ss:$24 sps:$4 sm:$0xff]   ;;  %v15316_v4 = vld [vmem:[#allocation5 + $0x4e4] ss:$24 sps:$4 sm:$0xff]   ;;  %v15326_v14 = vld [vmem:[#allocation5 + $0x540] ss:$24 sps:$4 sm:$0xff]  }
  0xc3   :  { %2214 = vmatprep.subr.bf16.mxu1 %v15200_v33  ;;  %v15263_v33 = vld [vmem:[#allocation5 + $0x338] ss:$24 sps:$4 sm:$0xff]   ;;  %v15317_v7 = vld [vmem:[#allocation5 + $0x4e8] ss:$24 sps:$4 sm:$0xff]   ;;  %v15328_v12 = vld [vmem:[#allocation5 + $0x544] ss:$24 sps:$4 sm:$0xff]  }
  0xc4   :  { %v15320_v10 = vld [vmem:[#allocation5 + $0x510] ss:$24 sps:$4 sm:$0xff]   ;;  %v15331_v13 = vld [vmem:[#allocation5 + $0x54c] ss:$24 sps:$4 sm:$0xff]  }
  0xc5   :  { %2086 = vmatpush1.bf16.msra.mxu0 %v15202_v34  ;;  %v15268_v34 = vld [vmem:[#allocation5 + $0x364] ss:$24 sps:$4 sm:$0xff]  }
  0xc6   :  { %2215 = vmatpush1.bf16.msra.mxu1 %v15203_v35  ;;  %2087 = vmatprep.subr.bf16.mxu0 %v15204_v36  ;;  %v15271_v35 = vld [vmem:[#allocation5 + $0x36c] ss:$24 sps:$4 sm:$0xff]   ;;  %v15266_v36 = vld [vmem:[#allocation5 + $0x360] ss:$24 sps:$4 sm:$0xff]  }
  0xc7   :  { %2216 = vmatprep.subr.bf16.mxu1 %v15206_v37  ;;  %v15269_v37 = vld [vmem:[#allocation5 + $0x368] ss:$24 sps:$4 sm:$0xff]  }
  0xc9   :  { %2088 = vmatpush1.bf16.msra.mxu0 %v15208_v38  ;;  %v15274_v38 = vld [vmem:[#allocation5 + $0x394] ss:$24 sps:$4 sm:$0xff]  }
  0xca   :  { %2217 = vmatpush1.bf16.msra.mxu1 %v15209_v42  ;;  %2089 = vmatprep.subr.bf16.mxu0 %v15210_v43  ;;  %v15280_v42 = vld [vmem:[#allocation5 + $0x3c4] ss:$24 sps:$4 sm:$0xff]  }
  0xcb   :  { %2218 = vmatprep.subr.bf16.mxu1 %v15212_v44  ;;  %v15283_v43 = vld [vmem:[#allocation5 + $0x3cc] ss:$24 sps:$4 sm:$0xff]   ;;  %v15278_v44 = vld [vmem:[#allocation5 + $0x3c0] ss:$24 sps:$4 sm:$0xff]  }
  0xcd   :  { %2090 = vmatpush1.bf16.msra.mxu0 %v15214_v45  ;;  %v15281_v45 = vld [vmem:[#allocation5 + $0x3c8] ss:$24 sps:$4 sm:$0xff]  }
  0xce   :  { %2219 = vmatpush1.bf16.msra.mxu1 %v15215_v46  ;;  %2091 = vmatprep.subr.bf16.mxu0 %v15216_v49  ;;  %v15286_v46 = vld [vmem:[#allocation5 + $0x3f4] ss:$24 sps:$4 sm:$0xff]   ;;  %v15284_v49 = vld [vmem:[#allocation5 + $0x3f0] ss:$24 sps:$4 sm:$0xff]  }
  0xcf   :  { %2220 = vmatprep.subr.bf16.mxu1 %v15218_v50  ;;  %v15287_v50 = vld [vmem:[#allocation5 + $0x3f8] ss:$24 sps:$4 sm:$0xff]  }
  0xd1   :  { %2092 = vmatpush1.bf16.msra.mxu0 %v15220_v51  ;;  %v15292_v51 = vld [vmem:[#allocation5 + $0x424] ss:$24 sps:$4 sm:$0xff]  }
  0xd2   :  { %2221 = vmatpush1.bf16.msra.mxu1 %v15221_v52  ;;  %2093 = vmatprep.subr.bf16.mxu0 %v15222_v53  ;;  %v15295_v52 = vld [vmem:[#allocation5 + $0x42c] ss:$24 sps:$4 sm:$0xff]   ;;  %v15290_v53 = vld [vmem:[#allocation5 + $0x420] ss:$24 sps:$4 sm:$0xff]  }
  0xd3   :  { %2222 = vmatprep.subr.bf16.mxu1 %v15224_v54  ;;  %v15293_v54 = vld [vmem:[#allocation5 + $0x428] ss:$24 sps:$4 sm:$0xff]  }
  0xd5   :  { %2094 = vmatpush1.bf16.msra.mxu0 %v15226_v60  ;;  %v15304_v60 = vld [vmem:[#allocation5 + $0x484] ss:$24 sps:$4 sm:$0xff]  }
  0xd6   :  { %2223 = vmatpush1.bf16.msra.mxu1 %v15227_v61  ;;  %2095 = vmatprep.subr.bf16.mxu0 %v15228_v0  ;;  %v15307_v61 = vld [vmem:[#allocation5 + $0x48c] ss:$24 sps:$4 sm:$0xff]  }
  0xd7   :  { %2224 = vmatprep.subr.bf16.mxu1 %v15230_v3  ;;  %v15310_v0 = vld [vmem:[#allocation5 + $0x4b4] ss:$24 sps:$4 sm:$0xff]   ;;  %v15311_v3 = vld [vmem:[#allocation5 + $0x4b8] ss:$24 sps:$4 sm:$0xff]  }
  0xd9   :  { %2096 = vmatpush1.bf16.msra.mxu0 %v15232_v8  ;;  %v15322_v8 = vld [vmem:[#allocation5 + $0x514] ss:$24 sps:$4 sm:$0xff]  }
  0xda   :  { %2225 = vmatpush1.bf16.msra.mxu1 %v15233_v9  ;;  %2097 = vmatprep.subr.bf16.mxu0 %v15234_v11  ;;  %v15325_v9 = vld [vmem:[#allocation5 + $0x51c] ss:$24 sps:$4 sm:$0xff]   ;;  %v15323_v11 = vld [vmem:[#allocation5 + $0x518] ss:$24 sps:$4 sm:$0xff]  }
  0xdb   :  { %2226 = vmatprep.subr.bf16.mxu1 %v15236_v15  ;;  %v15329_v15 = vld [vmem:[#allocation5 + $0x548] ss:$24 sps:$4 sm:$0xff]  }
  0xdd   :  { %2098 = vmatpush1.bf16.msra.mxu0 %v15238_v18  ;;  %v15334_v18 = vld [vmem:[#allocation5 + $0x574] ss:$24 sps:$4 sm:$0xff]  }
  0xde   :  { %2227 = vmatpush1.bf16.msra.mxu1 %v15239_v19  ;;  %2099 = vmatprep.subr.bf16.mxu0 %v15240_v20  ;;  %v15337_v19 = vld [vmem:[#allocation5 + $0x57c] ss:$24 sps:$4 sm:$0xff]   ;;  %v15332_v20 = vld [vmem:[#allocation5 + $0x570] ss:$24 sps:$4 sm:$0xff]  }
  0xdf   :  { %2228 = vmatprep.subr.bf16.mxu1 %v15242_v21  ;;  %v15335_v21 = vld [vmem:[#allocation5 + $0x578] ss:$24 sps:$4 sm:$0xff]  }
  0xe1   :  { %2100 = vmatpush1.bf16.msra.mxu0 %v15244_v22  ;;  %v15340_v22 = vld [vmem:[#allocation5 + $0x5a4] ss:$24 sps:$4 sm:$0xff]  }
  0xe2   :  { %2229 = vmatpush1.bf16.msra.mxu1 %v15245_v23  ;;  %2112 = vmatprep.subr.bf16.mxu0 %v15256_v24  ;;  %v15343_v23 = vld [vmem:[#allocation5 + $0x5ac] ss:$24 sps:$4 sm:$0xff]   ;;  %v15338_v24 = vld [vmem:[#allocation5 + $0x5a0] ss:$24 sps:$4 sm:$0xff]  }
  0xe3   :  { %2241 = vmatprep.subr.bf16.mxu1 %v15259_v25  ;;  %v15341_v25 = vld [vmem:[#allocation5 + $0x5a8] ss:$24 sps:$4 sm:$0xff]  }
  0xe4   :  { %2102 = vmatmul.mubr.bf16.vlgmr.msra.gmra.mrb[0].mxu0 %v18122_v28 }
  0xe5   :  { %2231 = vmatmul.mubr.bf16.vlgmr.msra.gmra.mrb[0].mxu1 %v18122_v28  ;;  %2113 = vmatpush1.bf16.msra.mxu0 %v15254_v26  ;;  %v15346_v26 = vld [vmem:[#allocation5 + $0x5d4] ss:$24 sps:$4 sm:$0xff]  }
  0xe6   :  { %2242 = vmatpush1.bf16.msra.mxu1 %v15257_v27  ;;  %2114 = vmatprep.subr.bf16.mxu0 %v15262_v29  ;;  %v15349_v27 = vld [vmem:[#allocation5 + $0x5dc] ss:$24 sps:$4 sm:$0xff]   ;;  %v15344_v29 = vld [vmem:[#allocation5 + $0x5d0] ss:$24 sps:$4 sm:$0xff]  }
  0xe7   :  { %2243 = vmatprep.subr.bf16.mxu1 %v15265_v30  ;;  %2144 = vmatprep.mubr.bf16.mxu0 %v18124_v31  ;;  %v15347_v30 = vld [vmem:[#allocation5 + $0x5d8] ss:$24 sps:$4 sm:$0xff]  }
  0xe8   :  { %2273 = vmatprep.mubr.bf16.mxu1 %v18124_v31 }
  0xe9   :  { %2115 = vmatpush1.bf16.msra.mxu0 %v15260_v32  ;;  %v15352_v32 = vld [vmem:[#allocation5 + $0x604] ss:$24 sps:$4 sm:$0xff]  }
  0xea   :  { %2244 = vmatpush1.bf16.msra.mxu1 %v15263_v33  ;;  %2116 = vmatprep.subr.bf16.mxu0 %v15268_v34  ;;  %v15355_v33 = vld [vmem:[#allocation5 + $0x60c] ss:$24 sps:$4 sm:$0xff]   ;;  %v15350_v34 = vld [vmem:[#allocation5 + $0x600] ss:$24 sps:$4 sm:$0xff]  }
  0xeb   :  { %2245 = vmatprep.subr.bf16.mxu1 %v15271_v35  ;;  %v15353_v35 = vld [vmem:[#allocation5 + $0x608] ss:$24 sps:$4 sm:$0xff]  }
  0xed   :  { %2117 = vmatpush1.bf16.msra.mxu0 %v15266_v36  ;;  %v15358_v36 = vld [vmem:[#allocation5 + $0x634] ss:$24 sps:$4 sm:$0xff]  }
  0xee   :  { %2246 = vmatpush1.bf16.msra.mxu1 %v15269_v37  ;;  %2118 = vmatprep.subr.bf16.mxu0 %v15274_v38  ;;  %v15361_v37 = vld [vmem:[#allocation5 + $0x63c] ss:$24 sps:$4 sm:$0xff]   ;;  %v15356_v38 = vld [vmem:[#allocation5 + $0x630] ss:$24 sps:$4 sm:$0xff]  }
  0xef   :  { %2247 = vmatprep.subr.bf16.mxu1 %v15277_v39  ;;  %v15359_v39 = vld [vmem:[#allocation5 + $0x638] ss:$24 sps:$4 sm:$0xff]  }
  0xf1   :  { %2119 = vmatpush1.bf16.msra.mxu0 %v15272_v40  ;;  %v15364_v40 = vld [vmem:[#allocation5 + $0x664] ss:$24 sps:$4 sm:$0xff]  }
  0xf2   :  { %2248 = vmatpush1.bf16.msra.mxu1 %v15275_v41  ;;  %2120 = vmatprep.subr.bf16.mxu0 %v15280_v42  ;;  %v15367_v41 = vld [vmem:[#allocation5 + $0x66c] ss:$24 sps:$4 sm:$0xff]  }
  0xf3   :  { %2249 = vmatprep.subr.bf16.mxu1 %v15283_v43  ;;  %v15446_v42 = vld [vmem:[%s18749_s0 + $0x4] ss:$6 sps:$4 sm:$0x33]   ;;  %v15447_v43 = vld [vmem:[%s18749_s0 + $0x10] ss:$6 sps:$4 sm:$0x33]  }
  0xf5   :  { %2121 = vmatpush1.bf16.msra.mxu0 %v15278_v44  ;;  %v15448_v44 = vld [vmem:[%s18749_s0 + $0x1c] ss:$6 sps:$4 sm:$0x33]  }
  0xf6   :  { %2250 = vmatpush1.bf16.msra.mxu1 %v15281_v45  ;;  %2122 = vmatprep.subr.bf16.mxu0 %v15286_v46  ;;  %v15449_v45 = vld [vmem:[%s18749_s0 + $0x28] ss:$6 sps:$4 sm:$0x33]   ;;  %v18145_v46 = vrot.slane %v15446_v42, %v18094_v55  ;;  %v15431_v42 = vld [vmem:[#allocation5 + $0x878] ss:$24 sps:$4 sm:$0xff]  }
  0xf7   :  { %2251 = vmatprep.subr.bf16.mxu1 %v15289_v48  ;;  %v18148_v48 = vrot.slane %v15447_v43, %v18094_v55  ;;  %v15436_v43 = vld [vmem:[#allocation5 + $0x8a4] ss:$24 sps:$4 sm:$0xff]  }
  0xf9   :  { %2123 = vmatpush1.bf16.msra.mxu0 %v15284_v49  ;;  %v18151_v49 = vrot.slane %v15448_v44, %v18094_v55  ;;  %v15439_v44 = vld [vmem:[#allocation5 + $0x8ac] ss:$24 sps:$4 sm:$0xff]  }
  0xfa   :  { %2252 = vmatpush1.bf16.msra.mxu1 %v15287_v50  ;;  %2124 = vmatprep.subr.bf16.mxu0 %v15292_v51  ;;  %v18154_v50 = vrot.slane %v15449_v45, %v18094_v55  ;;  %v15362_v51 = vld [vmem:[#allocation5 + $0x660] ss:$24 sps:$4 sm:$0xff]  }
  0xfb   :  { %2253 = vmatprep.subr.bf16.mxu1 %v15295_v52  ;;  %v15365_v52 = vld [vmem:[#allocation5 + $0x668] ss:$24 sps:$4 sm:$0xff]  }
  0xfc   :  { %v15434_v45 = vld [vmem:[#allocation5 + $0x8a0] ss:$24 sps:$4 sm:$0xff]  }
  0xfd   :  { %2125 = vmatpush1.bf16.msra.mxu0 %v15290_v53  ;;  %v556_v53 = vcombine.high %v18145_v46, %v18148_v48 }
  0xfe   :  { %2254 = vmatpush1.bf16.msra.mxu1 %v15293_v54  ;;  %2126 = vmatprep.subr.bf16.mxu0 %v15298_v56  ;;  %v15370_v54 = vld [vmem:[#allocation5 + $0x694] ss:$24 sps:$4 sm:$0xff]  }
  0xff   :  { %2255 = vmatprep.subr.bf16.mxu1 %v15301_v57  ;;  %v15373_v56 = vld [vmem:[#allocation5 + $0x69c] ss:$24 sps:$4 sm:$0xff]   ;;  %v560_v57 = vcombine.high %v18151_v49, %v18154_v50 }
 0x101   :  { %2127 = vmatpush1.bf16.msra.mxu0 %v15296_v58  ;;  %v588_v58 = vrot.slane %v556_v53, %v18094_v55  ;;  %v559_v53 = vcombine.low %v18151_v49, %v18154_v50  ;;  %v15455_v49 = vld [vmem:[#allocation5 + $0x44] ss:$24 sps:$4 sm:$0xff]   ;;  %v15453_v50 = vld [vmem:[#allocation5 + $0x40] ss:$24 sps:$4 sm:$0xff]  }
 0x102   :  { %2256 = vmatpush1.bf16.msra.mxu1 %v15299_v59  ;;  %2128 = vmatprep.subr.bf16.mxu0 %v15304_v60  ;;  %v616_v59 = vrot.slane %v560_v57, %v18094_v55  ;;  %v15368_v60 = vld [vmem:[#allocation5 + $0x690] ss:$24 sps:$4 sm:$0xff]  }
 0x103   :  { %2257 = vmatprep.subr.bf16.mxu1 %v15307_v61  ;;  %v15371_v61 = vld [vmem:[#allocation5 + $0x698] ss:$24 sps:$4 sm:$0xff]  }
 0x104   :  { %v15440_v57 = vld [vmem:[#allocation5 + $0x8d0] ss:$24 sps:$4 sm:$0xff]  }
 0x105   :  { %2129 = vmatpush1.bf16.msra.mxu0 %v15302_v62  ;;  %v15376_v62 = vld [vmem:[#allocation5 + $0x6c4] ss:$24 sps:$4 sm:$0xff]  }
 0x106   :  { %2258 = vmatpush1.bf16.msra.mxu1 %v15305_v63  ;;  %2130 = vmatprep.subr.bf16.mxu0 %v15310_v0  ;;  %v15379_v63 = vld [vmem:[#allocation5 + $0x6cc] ss:$24 sps:$4 sm:$0xff]   ;;  %v18162_v0 = vcombine.low %v588_v58, %v616_v59  ;;  %v602_v59 = vrot.slane %v559_v53, %v18094_v55 }
 0x107   :  { %2259 = vmatprep.subr.bf16.mxu1 %v15313_v1  ;;  %v15374_v1 = vld [vmem:[#allocation5 + $0x6c0] ss:$24 sps:$4 sm:$0xff]   ;;  %v15512_v53 = vld [vmem:[#allocation5 + $0x3d4] ss:$24 sps:$4 sm:$0xff]  }
 0x109   :  { %2131 = vmatpush1.bf16.msra.mxu0 %v15308_v2  ;;  %v15377_v2 = vld [vmem:[#allocation5 + $0x6c8] ss:$24 sps:$4 sm:$0xff]  }
 0x10a   :  { %2260 = vmatpush1.bf16.msra.mxu1 %v15311_v3  ;;  %2132 = vmatprep.subr.bf16.mxu0 %v15316_v4  ;;  %v15382_v3 = vld [vmem:[#allocation5 + $0x6f4] ss:$24 sps:$4 sm:$0xff]  }
 0x10b   :  { %2261 = vmatprep.subr.bf16.mxu1 %v15319_v5  ;;  %v15385_v4 = vld [vmem:[#allocation5 + $0x6fc] ss:$24 sps:$4 sm:$0xff]   ;;  %v15380_v5 = vld [vmem:[#allocation5 + $0x6f0] ss:$24 sps:$4 sm:$0xff]  }
 0x10d   :  { %2133 = vmatpush1.bf16.msra.mxu0 %v15314_v6  ;;  %v15383_v6 = vld [vmem:[#allocation5 + $0x6f8] ss:$24 sps:$4 sm:$0xff]  }
 0x10e   :  { %2262 = vmatpush1.bf16.msra.mxu1 %v15317_v7  ;;  %2134 = vmatprep.subr.bf16.mxu0 %v15322_v8  ;;  %v15388_v7 = vld [vmem:[#allocation5 + $0x724] ss:$24 sps:$4 sm:$0xff]  }
 0x10f   :  { %2263 = vmatprep.subr.bf16.mxu1 %v15325_v9  ;;  %v15391_v8 = vld [vmem:[#allocation5 + $0x72c] ss:$24 sps:$4 sm:$0xff]   ;;  %v15386_v9 = vld [vmem:[#allocation5 + $0x720] ss:$24 sps:$4 sm:$0xff]  }
 0x111   :  { %2135 = vmatpush1.bf16.msra.mxu0 %v15320_v10  ;;  %v15389_v10 = vld [vmem:[#allocation5 + $0x728] ss:$24 sps:$4 sm:$0xff]  }
 0x112   :  { %2264 = vmatpush1.bf16.msra.mxu1 %v15323_v11  ;;  %2136 = vmatprep.subr.bf16.mxu0 %v15328_v12  ;;  %v15394_v11 = vld [vmem:[#allocation5 + $0x754] ss:$24 sps:$4 sm:$0xff]  }
 0x113   :  { %2265 = vmatprep.subr.bf16.mxu1 %v15331_v13  ;;  %v15397_v12 = vld [vmem:[#allocation5 + $0x75c] ss:$24 sps:$4 sm:$0xff]   ;;  %v15392_v13 = vld [vmem:[#allocation5 + $0x750] ss:$24 sps:$4 sm:$0xff]  }
 0x115   :  { %2137 = vmatpush1.bf16.msra.mxu0 %v15326_v14  ;;  %v15395_v14 = vld [vmem:[#allocation5 + $0x758] ss:$24 sps:$4 sm:$0xff]  }
 0x116   :  { %2266 = vmatpush1.bf16.msra.mxu1 %v15329_v15  ;;  %2138 = vmatprep.subr.bf16.mxu0 %v15334_v18  ;;  %v15400_v15 = vld [vmem:[#allocation5 + $0x784] ss:$24 sps:$4 sm:$0xff]  }
 0x117   :  { %2267 = vmatprep.subr.bf16.mxu1 %v15337_v19  ;;  %v15403_v18 = vld [vmem:[#allocation5 + $0x78c] ss:$24 sps:$4 sm:$0xff]   ;;  %v15398_v19 = vld [vmem:[#allocation5 + $0x780] ss:$24 sps:$4 sm:$0xff]  }
 0x119   :  { %2139 = vmatpush1.bf16.msra.mxu0 %v15332_v20  ;;  %v15401_v20 = vld [vmem:[#allocation5 + $0x788] ss:$24 sps:$4 sm:$0xff]  }
 0x11a   :  { %2268 = vmatpush1.bf16.msra.mxu1 %v15335_v21  ;;  %2140 = vmatprep.subr.bf16.mxu0 %v15340_v22  ;;  %v15406_v21 = vld [vmem:[#allocation5 + $0x7b4] ss:$24 sps:$4 sm:$0xff]  }
 0x11b   :  { %2269 = vmatprep.subr.bf16.mxu1 %v15343_v23  ;;  %v15409_v22 = vld [vmem:[#allocation5 + $0x7bc] ss:$24 sps:$4 sm:$0xff]   ;;  %v15404_v23 = vld [vmem:[#allocation5 + $0x7b0] ss:$24 sps:$4 sm:$0xff]  }
 0x11d   :  { %2141 = vmatpush1.bf16.msra.mxu0 %v15338_v24  ;;  %v15407_v24 = vld [vmem:[#allocation5 + $0x7b8] ss:$24 sps:$4 sm:$0xff]  }
 0x11e   :  { %2270 = vmatpush1.bf16.msra.mxu1 %v15341_v25  ;;  %2142 = vmatprep.subr.bf16.mxu0 %v15346_v26  ;;  %v15412_v25 = vld [vmem:[#allocation5 + $0x7e4] ss:$24 sps:$4 sm:$0xff]  }
 0x11f   :  { %2271 = vmatprep.subr.bf16.mxu1 %v15349_v27  ;;  %v15415_v26 = vld [vmem:[#allocation5 + $0x7ec] ss:$24 sps:$4 sm:$0xff]   ;;  %v15410_v27 = vld [vmem:[#allocation5 + $0x7e0] ss:$24 sps:$4 sm:$0xff]  }
 0x121   :  { %2143 = vmatpush1.bf16.msra.mxu0 %v15344_v29  ;;  %v15413_v29 = vld [vmem:[#allocation5 + $0x7e8] ss:$24 sps:$4 sm:$0xff]  }
 0x122   :  { %2272 = vmatpush1.bf16.msra.mxu1 %v15347_v30  ;;  %2155 = vmatprep.subr.bf16.mxu0 %v15352_v32  ;;  %v15418_v30 = vld [vmem:[#allocation5 + $0x814] ss:$24 sps:$4 sm:$0xff]  }
 0x123   :  { %2284 = vmatprep.subr.bf16.mxu1 %v15355_v33  ;;  %v15421_v32 = vld [vmem:[#allocation5 + $0x81c] ss:$24 sps:$4 sm:$0xff]   ;;  %v15416_v33 = vld [vmem:[#allocation5 + $0x810] ss:$24 sps:$4 sm:$0xff]  }
 0x124   :  { %2145 = vmatmul.mubr.bf16.vlgmr.msra.gmra.mrb[0].mxu0 %v18118_v17 }
 0x125   :  { %2274 = vmatmul.mubr.bf16.vlgmr.msra.gmra.mrb[0].mxu1 %v18118_v17  ;;  %2156 = vmatpush1.bf16.msra.mxu0 %v15350_v34  ;;  %v15419_v34 = vld [vmem:[#allocation5 + $0x818] ss:$24 sps:$4 sm:$0xff]  }
 0x126   :  { %2285 = vmatpush1.bf16.msra.mxu1 %v15353_v35  ;;  %2157 = vmatprep.subr.bf16.mxu0 %v15358_v36  ;;  %v15424_v35 = vld [vmem:[#allocation5 + $0x844] ss:$24 sps:$4 sm:$0xff]  }
 0x127   :  { %2286 = vmatprep.subr.bf16.mxu1 %v15361_v37  ;;  %2187 = vmatprep.mubr.bf16.mxu0 %v18162_v0  ;;  %v15427_v36 = vld [vmem:[#allocation5 + $0x84c] ss:$24 sps:$4 sm:$0xff]   ;;  %v15422_v37 = vld [vmem:[#allocation5 + $0x840] ss:$24 sps:$4 sm:$0xff]  }
 0x128   :  { %2316 = vmatprep.mubr.bf16.mxu1 %v18162_v0 }
 0x129   :  { %2158 = vmatpush1.bf16.msra.mxu0 %v15356_v38  ;;  %v15425_v38 = vld [vmem:[#allocation5 + $0x848] ss:$24 sps:$4 sm:$0xff]  }
 0x12a   :  { %2287 = vmatpush1.bf16.msra.mxu1 %v15359_v39  ;;  %2159 = vmatprep.subr.bf16.mxu0 %v15364_v40  ;;  %v15430_v39 = vld [vmem:[#allocation5 + $0x874] ss:$24 sps:$4 sm:$0xff]  }
 0x12b   :  { %2288 = vmatprep.subr.bf16.mxu1 %v15367_v41  ;;  %v15433_v40 = vld [vmem:[#allocation5 + $0x87c] ss:$24 sps:$4 sm:$0xff]   ;;  %v15428_v41 = vld [vmem:[#allocation5 + $0x870] ss:$24 sps:$4 sm:$0xff]  }
 0x12d   :  { %2160 = vmatpush1.bf16.msra.mxu0 %v15362_v51  ;;  %v15437_v51 = vld [vmem:[#allocation5 + $0x8a8] ss:$24 sps:$4 sm:$0xff]  }
 0x12e   :  { %2289 = vmatpush1.bf16.msra.mxu1 %v15365_v52  ;;  %2161 = vmatprep.subr.bf16.mxu0 %v15370_v54  ;;  %v555_v52 = vcombine.low %v18145_v46, %v18148_v48  ;;  %v15442_v54 = vld [vmem:[#allocation5 + $0x8d4] ss:$24 sps:$4 sm:$0xff]   ;;  %v15450_v48 = vld [vmem:[#allocation5 + $0x10] ss:$24 sps:$4 sm:$0xff]  }
 0x12f   :  { %2290 = vmatprep.subr.bf16.mxu1 %v15373_v56  ;;  %v15445_v56 = vld [vmem:[#allocation5 + $0x8dc] ss:$24 sps:$4 sm:$0xff]  }
 0x130   :  { %v574_v58 = vrot.slane %v555_v52, %v18094_v55  ;;  %v15620_v52 = vld [vmem:[#allocation8 + $0xf4] ss:$24 sps:$4 sm:$0xff]  }
 0x131   :  { %2162 = vmatpush1.bf16.msra.mxu0 %v15368_v60  ;;  %v15443_v60 = vld [vmem:[#allocation5 + $0x8d8] ss:$24 sps:$4 sm:$0xff]  }
 0x132   :  { %2291 = vmatpush1.bf16.msra.mxu1 %v15371_v61  ;;  %2163 = vmatprep.subr.bf16.mxu0 %v15376_v62  ;;  %v15452_v61 = vld [vmem:[#allocation5 + $0x14] ss:$24 sps:$4 sm:$0xff]   ;;  %v18172_v46 = vcombine.low %v574_v58, %v602_v59  ;;  %v15624_v58 = vld [vmem:[#allocation8 + $0x120] ss:$24 sps:$4 sm:$0xff]  }
 0x133   :  { %2292 = vmatprep.subr.bf16.mxu1 %v15379_v63  ;;  %v15458_v62 = vld [vmem:[#allocation5 + $0x74] ss:$24 sps:$4 sm:$0xff]   ;;  %v15456_v63 = vld [vmem:[#allocation5 + $0x70] ss:$24 sps:$4 sm:$0xff]   ;;  %v15513_v59 = vld [vmem:[#allocation5 + $0x400] ss:$24 sps:$4 sm:$0xff]  }
 0x135   :  { %2164 = vmatpush1.bf16.msra.mxu0 %v15374_v1  ;;  %v15461_v1 = vld [vmem:[#allocation5 + $0xa4] ss:$24 sps:$4 sm:$0xff]  }
 0x136   :  { %2293 = vmatpush1.bf16.msra.mxu1 %v15377_v2  ;;  %2165 = vmatprep.subr.bf16.mxu0 %v15382_v3  ;;  %v15459_v2 = vld [vmem:[#allocation5 + $0xa0] ss:$24 sps:$4 sm:$0xff]   ;;  %v15464_v3 = vld [vmem:[#allocation5 + $0xd4] ss:$24 sps:$4 sm:$0xff]  }
 0x137   :  { %2294 = vmatprep.subr.bf16.mxu1 %v15385_v4  ;;  %v15462_v4 = vld [vmem:[#allocation5 + $0xd0] ss:$24 sps:$4 sm:$0xff]  }
 0x139   :  { %2166 = vmatpush1.bf16.msra.mxu0 %v15380_v5  ;;  %v15467_v5 = vld [vmem:[#allocation5 + $0x104] ss:$24 sps:$4 sm:$0xff]  }
 0x13a   :  { %2295 = vmatpush1.bf16.msra.mxu1 %v15383_v6  ;;  %2167 = vmatprep.subr.bf16.mxu0 %v15388_v7  ;;  %v15465_v6 = vld [vmem:[#allocation5 + $0x100] ss:$24 sps:$4 sm:$0xff]   ;;  %v15470_v7 = vld [vmem:[#allocation5 + $0x134] ss:$24 sps:$4 sm:$0xff]  }
 0x13b   :  { %2296 = vmatprep.subr.bf16.mxu1 %v15391_v8  ;;  %v15468_v8 = vld [vmem:[#allocation5 + $0x130] ss:$24 sps:$4 sm:$0xff]  }
 0x13d   :  { %2168 = vmatpush1.bf16.msra.mxu0 %v15386_v9  ;;  %v15471_v9 = vld [vmem:[#allocation5 + $0x160] ss:$24 sps:$4 sm:$0xff]  }
 0x13e   :  { %2297 = vmatpush1.bf16.msra.mxu1 %v15389_v10  ;;  %2169 = vmatprep.subr.bf16.mxu0 %v15394_v11  ;;  %v15476_v10 = vld [vmem:[#allocation5 + $0x194] ss:$24 sps:$4 sm:$0xff]   ;;  %v15474_v11 = vld [vmem:[#allocation5 + $0x190] ss:$24 sps:$4 sm:$0xff]  }
 0x13f   :  { %2298 = vmatprep.subr.bf16.mxu1 %v15397_v12  ;;  %v15479_v12 = vld [vmem:[#allocation5 + $0x1c4] ss:$24 sps:$4 sm:$0xff]  }
 0x141   :  { %2170 = vmatpush1.bf16.msra.mxu0 %v15392_v13  ;;  %v15477_v13 = vld [vmem:[#allocation5 + $0x1c0] ss:$24 sps:$4 sm:$0xff]  }
 0x142   :  { %2299 = vmatpush1.bf16.msra.mxu1 %v15395_v14  ;;  %2171 = vmatprep.subr.bf16.mxu0 %v15400_v15  ;;  %v15482_v14 = vld [vmem:[#allocation5 + $0x1f4] ss:$24 sps:$4 sm:$0xff]   ;;  %v15480_v15 = vld [vmem:[#allocation5 + $0x1f0] ss:$24 sps:$4 sm:$0xff]  }
 0x143   :  { %2300 = vmatprep.subr.bf16.mxu1 %v15403_v18  ;;  %v15485_v18 = vld [vmem:[#allocation5 + $0x224] ss:$24 sps:$4 sm:$0xff]  }
 0x145   :  { %2172 = vmatpush1.bf16.msra.mxu0 %v15398_v19  ;;  %v15483_v19 = vld [vmem:[#allocation5 + $0x220] ss:$24 sps:$4 sm:$0xff]  }
 0x146   :  { %2301 = vmatpush1.bf16.msra.mxu1 %v15401_v20  ;;  %2173 = vmatprep.subr.bf16.mxu0 %v15406_v21  ;;  %v15488_v20 = vld [vmem:[#allocation5 + $0x254] ss:$24 sps:$4 sm:$0xff]   ;;  %v15486_v21 = vld [vmem:[#allocation5 + $0x250] ss:$24 sps:$4 sm:$0xff]  }
 0x147   :  { %2302 = vmatprep.subr.bf16.mxu1 %v15409_v22  ;;  %v15491_v22 = vld [vmem:[#allocation5 + $0x284] ss:$24 sps:$4 sm:$0xff]  }
 0x149   :  { %2174 = vmatpush1.bf16.msra.mxu0 %v15404_v23  ;;  %v15489_v23 = vld [vmem:[#allocation5 + $0x280] ss:$24 sps:$4 sm:$0xff]  }
 0x14a   :  { %2303 = vmatpush1.bf16.msra.mxu1 %v15407_v24  ;;  %2175 = vmatprep.subr.bf16.mxu0 %v15412_v25  ;;  %v15494_v24 = vld [vmem:[#allocation5 + $0x2b4] ss:$24 sps:$4 sm:$0xff]  }
 0x14b   :  { %2304 = vmatprep.subr.bf16.mxu1 %v15415_v26  ;;  %v15590_v25 = vld [vmem:[#allocation8 + $0x4] ss:$24 sps:$4 sm:$0xff]  }
 0x14c   :  { %v15492_v26 = vld [vmem:[#allocation5 + $0x2b0] ss:$24 sps:$4 sm:$0xff]  }
 0x14d   :  { %2176 = vmatpush1.bf16.msra.mxu0 %v15410_v27  ;;  %v15497_v27 = vld [vmem:[#allocation5 + $0x2e4] ss:$24 sps:$4 sm:$0xff]  }
 0x14e   :  { %2305 = vmatpush1.bf16.msra.mxu1 %v15413_v29  ;;  %2177 = vmatprep.subr.bf16.mxu0 %v15418_v30  ;;  %v15588_v29 = vld [vmem:[#allocation8] ss:$24 sps:$4 sm:$0xff]   ;;  %v15596_v30 = vld [vmem:[#allocation8 + $0x34] ss:$24 sps:$4 sm:$0xff]  }
 0x14f   :  { %2306 = vmatprep.subr.bf16.mxu1 %v15421_v32  ;;  %v15495_v32 = vld [vmem:[#allocation5 + $0x2e0] ss:$24 sps:$4 sm:$0xff]  }
 0x151   :  { %2178 = vmatpush1.bf16.msra.mxu0 %v15416_v33  ;;  %v15500_v33 = vld [vmem:[#allocation5 + $0x314] ss:$24 sps:$4 sm:$0xff]  }
 0x152   :  { %2307 = vmatpush1.bf16.msra.mxu1 %v15419_v34  ;;  %2179 = vmatprep.subr.bf16.mxu0 %v15424_v35  ;;  %v15594_v34 = vld [vmem:[#allocation8 + $0x30] ss:$24 sps:$4 sm:$0xff]  }
 0x153   :  { %2308 = vmatprep.subr.bf16.mxu1 %v15427_v36  ;;  %v15498_v35 = vld [vmem:[#allocation5 + $0x310] ss:$24 sps:$4 sm:$0xff]  }
 0x154   :  { %v15602_v36 = vld [vmem:[#allocation8 + $0x64] ss:$24 sps:$4 sm:$0xff]  }
 0x155   :  { %2180 = vmatpush1.bf16.msra.mxu0 %v15422_v37  ;;  %v15600_v37 = vld [vmem:[#allocation8 + $0x60] ss:$24 sps:$4 sm:$0xff]  }
 0x156   :  { %2309 = vmatpush1.bf16.msra.mxu1 %v15425_v38  ;;  %2181 = vmatprep.subr.bf16.mxu0 %v15430_v39  ;;  %v15503_v38 = vld [vmem:[#allocation5 + $0x344] ss:$24 sps:$4 sm:$0xff]  }
 0x157   :  { %2310 = vmatprep.subr.bf16.mxu1 %v15433_v40  ;;  %v15608_v39 = vld [vmem:[#allocation8 + $0x94] ss:$24 sps:$4 sm:$0xff]  }
 0x158   :  { %v15501_v40 = vld [vmem:[#allocation5 + $0x340] ss:$24 sps:$4 sm:$0xff]  }
 0x159   :  { %2182 = vmatpush1.bf16.msra.mxu0 %v15428_v41  ;;  %v15506_v41 = vld [vmem:[#allocation5 + $0x374] ss:$24 sps:$4 sm:$0xff]  }
 0x15a   :  { %2311 = vmatpush1.bf16.msra.mxu1 %v15431_v42  ;;  %2183 = vmatprep.subr.bf16.mxu0 %v15436_v43  ;;  %v15606_v42 = vld [vmem:[#allocation8 + $0x90] ss:$24 sps:$4 sm:$0xff]   ;;  %v15614_v43 = vld [vmem:[#allocation8 + $0xc4] ss:$24 sps:$4 sm:$0xff]  }
 0x15b   :  { %2312 = vmatprep.subr.bf16.mxu1 %v15439_v44  ;;  %v15504_v44 = vld [vmem:[#allocation5 + $0x370] ss:$24 sps:$4 sm:$0xff]  }
 0x15d   :  { %2184 = vmatpush1.bf16.msra.mxu0 %v15434_v45  ;;  %v15509_v45 = vld [vmem:[#allocation5 + $0x3a4] ss:$24 sps:$4 sm:$0xff]  }
 0x15e   :  { %2313 = vmatpush1.bf16.msra.mxu1 %v15437_v51  ;;  %2185 = vmatprep.subr.bf16.mxu0 %v15442_v54  ;;  %v15612_v51 = vld [vmem:[#allocation8 + $0xc0] ss:$24 sps:$4 sm:$0xff]   ;;  %v15618_v54 = vld [vmem:[#allocation8 + $0xf0] ss:$24 sps:$4 sm:$0xff]  }
 0x15f   :  { %2314 = vmatprep.subr.bf16.mxu1 %v15445_v56  ;;  %v15510_v56 = vld [vmem:[#allocation5 + $0x3d0] ss:$24 sps:$4 sm:$0xff]  }
 0x161   :  { %2186 = vmatpush1.bf16.msra.mxu0 %v15440_v57  ;;  %v15515_v57 = vld [vmem:[#allocation5 + $0x404] ss:$24 sps:$4 sm:$0xff]  }
 0x162   :  { %2315 = vmatpush1.bf16.msra.mxu1 %v15443_v60  ;;  %2327 = vmatprep.subr.bf16.mxu0 %v15452_v61  ;;  %v15632_v60 = vld [vmem:[#allocation8 + $0x154] ss:$24 sps:$4 sm:$0xff]  }
 0x163   :  { %4330 = vmatprep.subr.bf16.mxu1 %v15590_v25  ;;  %v15518_v61 = vld [vmem:[#allocation5 + $0x434] ss:$24 sps:$4 sm:$0xff]  }
 0x164   :  { %2188 = vmatmul.mubr.bf16.vlgmr.msra.gmra.mrb[0].mxu0 %v18172_v46  ;;  %v15674_v25 = vld [vmem:[#allocation8 + $0x2a4] ss:$24 sps:$4 sm:$0xff]  }
 0x165   :  { %2317 = vmatmul.mubr.bf16.vlgmr.msra.gmra.mrb[0].mxu1 %v18172_v46  ;;  %2328 = vmatpush1.bf16.msra.mxu0 %v15450_v48  ;;  %v15630_v48 = vld [vmem:[#allocation8 + $0x150] ss:$24 sps:$4 sm:$0xff]  }
 0x166   :  { %2359 = vmatprep.mubr.bf16.mxu0 %v18116_v16  ;;  %2329 = vmatprep.subr.bf16.mxu0 %v15455_v49  ;;  %v15473_v16 = vld [vmem:[#allocation5 + $0x164] ss:$24 sps:$4 sm:$0xff]   ;;  %v15516_v49 = vld [vmem:[#allocation5 + $0x430] ss:$24 sps:$4 sm:$0xff]  }
 0x167   :  { %4331 = vmatpush1.bf16.msra.mxu1 %v15588_v29  ;;  %v15540_v29 = vld [vmem:[#allocation5 + $0x5b0] ss:$24 sps:$4 sm:$0xff]  }
 0x168   :  { %4332 = vmatprep.subr.bf16.mxu1 %v15596_v30  ;;  %v15678_v30 = vld [vmem:[#allocation8 + $0x2d0] ss:$24 sps:$4 sm:$0xff]  }
 0x169   :  { %2330 = vmatpush1.bf16.msra.mxu0 %v15453_v50  ;;  %v15521_v50 = vld [vmem:[#allocation5 + $0x464] ss:$24 sps:$4 sm:$0xff]  }
 0x16a   :  { %2331 = vmatprep.subr.bf16.mxu0 %v15458_v62  ;;  %v15519_v62 = vld [vmem:[#allocation5 + $0x460] ss:$24 sps:$4 sm:$0xff]  }
 0x16b   :  { %4333 = vmatpush1.bf16.msra.mxu1 %v15594_v34  ;;  %v15686_v34 = vld [vmem:[#allocation8 + $0x304] ss:$24 sps:$4 sm:$0xff]  }
 0x16c   :  { %4334 = vmatprep.subr.bf16.mxu1 %v15602_v36  ;;  %v15548_v36 = vld [vmem:[#allocation5 + $0x614] ss:$24 sps:$4 sm:$0xff]  }
 0x16d   :  { %2332 = vmatpush1.bf16.msra.mxu0 %v15456_v63  ;;  %v15638_v63 = vld [vmem:[#allocation8 + $0x184] ss:$24 sps:$4 sm:$0xff]  }
 0x16e   :  { %2333 = vmatprep.subr.bf16.mxu0 %v15461_v1  ;;  %v15636_v1 = vld [vmem:[#allocation8 + $0x180] ss:$24 sps:$4 sm:$0xff]  }
 0x16f   :  { %4335 = vmatpush1.bf16.msra.mxu1 %v15600_v37  ;;  %v15546_v37 = vld [vmem:[#allocation5 + $0x610] ss:$24 sps:$4 sm:$0xff]  }
 0x170   :  { %4336 = vmatprep.subr.bf16.mxu1 %v15608_v39  ;;  %v15549_v39 = vld [vmem:[#allocation5 + $0x640] ss:$24 sps:$4 sm:$0xff]  }
 0x171   :  { %2334 = vmatpush1.bf16.msra.mxu0 %v15459_v2  ;;  %v15524_v2 = vld [vmem:[#allocation5 + $0x494] ss:$24 sps:$4 sm:$0xff]  }
 0x172   :  { %2335 = vmatprep.subr.bf16.mxu0 %v15464_v3  ;;  %v15522_v3 = vld [vmem:[#allocation5 + $0x490] ss:$24 sps:$4 sm:$0xff]  }
 0x173   :  { %4337 = vmatpush1.bf16.msra.mxu1 %v15606_v42  ;;  %v15557_v42 = vld [vmem:[#allocation5 + $0x6a4] ss:$24 sps:$4 sm:$0xff]  }
 0x174   :  { %4338 = vmatprep.subr.bf16.mxu1 %v15614_v43  ;;  %v15555_v43 = vld [vmem:[#allocation5 + $0x6a0] ss:$24 sps:$4 sm:$0xff]  }
 0x175   :  { %2336 = vmatpush1.bf16.msra.mxu0 %v15462_v4  ;;  %v15644_v4 = vld [vmem:[#allocation8 + $0x1b4] ss:$24 sps:$4 sm:$0xff]  }
 0x176   :  { %2337 = vmatprep.subr.bf16.mxu0 %v15467_v5  ;;  %v15642_v5 = vld [vmem:[#allocation8 + $0x1b0] ss:$24 sps:$4 sm:$0xff]  }
 0x177   :  { %4339 = vmatpush1.bf16.msra.mxu1 %v15612_v51  ;;  %v15563_v51 = vld [vmem:[#allocation5 + $0x704] ss:$24 sps:$4 sm:$0xff]  }
 0x178   :  { %4340 = vmatprep.subr.bf16.mxu1 %v15620_v52  ;;  %v15561_v52 = vld [vmem:[#allocation5 + $0x700] ss:$24 sps:$4 sm:$0xff]  }
 0x179   :  { %2338 = vmatpush1.bf16.msra.mxu0 %v15465_v6  ;;  %v15527_v6 = vld [vmem:[#allocation5 + $0x4c4] ss:$24 sps:$4 sm:$0xff]  }
 0x17a   :  { %2339 = vmatprep.subr.bf16.mxu0 %v15470_v7  ;;  %v15525_v7 = vld [vmem:[#allocation5 + $0x4c0] ss:$24 sps:$4 sm:$0xff]  }
 0x17b   :  { %4341 = vmatpush1.bf16.msra.mxu1 %v15618_v54  ;;  %v15572_v54 = vld [vmem:[#allocation5 + $0x794] ss:$24 sps:$4 sm:$0xff]  }
 0x17d   :  { %2340 = vmatpush1.bf16.msra.mxu0 %v15468_v8  ;;  %v15650_v8 = vld [vmem:[#allocation8 + $0x1e4] ss:$24 sps:$4 sm:$0xff]  }
 0x17e   :  { %2341 = vmatprep.subr.bf16.mxu0 %v15473_v16  ;;  %v15648_v16 = vld [vmem:[#allocation8 + $0x1e0] ss:$24 sps:$4 sm:$0xff]  }
 0x181   :  { %2342 = vmatpush1.bf16.msra.mxu0 %v15471_v9  ;;  %v15530_v9 = vld [vmem:[#allocation5 + $0x4f4] ss:$24 sps:$4 sm:$0xff]  }
 0x182   :  { %2343 = vmatprep.subr.bf16.mxu0 %v15476_v10  ;;  %v15528_v10 = vld [vmem:[#allocation5 + $0x4f0] ss:$24 sps:$4 sm:$0xff]  }
 0x185   :  { %2344 = vmatpush1.bf16.msra.mxu0 %v15474_v11  ;;  %v15656_v11 = vld [vmem:[#allocation8 + $0x214] ss:$24 sps:$4 sm:$0xff]  }
 0x186   :  { %2345 = vmatprep.subr.bf16.mxu0 %v15479_v12  ;;  %v15654_v12 = vld [vmem:[#allocation8 + $0x210] ss:$24 sps:$4 sm:$0xff]  }
 0x189   :  { %2346 = vmatpush1.bf16.msra.mxu0 %v15477_v13  ;;  %v15533_v13 = vld [vmem:[#allocation5 + $0x524] ss:$24 sps:$4 sm:$0xff]  }
 0x18a   :  { %2347 = vmatprep.subr.bf16.mxu0 %v15482_v14  ;;  %v15531_v14 = vld [vmem:[#allocation5 + $0x520] ss:$24 sps:$4 sm:$0xff]  }
 0x18d   :  { %2348 = vmatpush1.bf16.msra.mxu0 %v15480_v15  ;;  %v15662_v15 = vld [vmem:[#allocation8 + $0x244] ss:$24 sps:$4 sm:$0xff]  }
 0x18e   :  { %2349 = vmatprep.subr.bf16.mxu0 %v15485_v18  ;;  %v15660_v18 = vld [vmem:[#allocation8 + $0x240] ss:$24 sps:$4 sm:$0xff]  }
 0x191   :  { %2350 = vmatpush1.bf16.msra.mxu0 %v15483_v19  ;;  %v15536_v19 = vld [vmem:[#allocation5 + $0x554] ss:$24 sps:$4 sm:$0xff]  }
 0x192   :  { %2351 = vmatprep.subr.bf16.mxu0 %v15488_v20  ;;  %v15534_v20 = vld [vmem:[#allocation5 + $0x550] ss:$24 sps:$4 sm:$0xff]  }
 0x195   :  { %2352 = vmatpush1.bf16.msra.mxu0 %v15486_v21  ;;  %v15668_v21 = vld [vmem:[#allocation8 + $0x274] ss:$24 sps:$4 sm:$0xff]  }
 0x196   :  { %2353 = vmatprep.subr.bf16.mxu0 %v15491_v22  ;;  %v15666_v22 = vld [vmem:[#allocation8 + $0x270] ss:$24 sps:$4 sm:$0xff]  }
 0x199   :  { %2354 = vmatpush1.bf16.msra.mxu0 %v15489_v23  ;;  %v15539_v23 = vld [vmem:[#allocation5 + $0x584] ss:$24 sps:$4 sm:$0xff]  }
 0x19a   :  { %2355 = vmatprep.subr.bf16.mxu0 %v15494_v24  ;;  %v15537_v24 = vld [vmem:[#allocation5 + $0x580] ss:$24 sps:$4 sm:$0xff]  }
 0x19d   :  { %2356 = vmatpush1.bf16.msra.mxu0 %v15492_v26  ;;  %v15672_v26 = vld [vmem:[#allocation8 + $0x2a0] ss:$24 sps:$4 sm:$0xff]  }
 0x19e   :  { %2357 = vmatprep.subr.bf16.mxu0 %v15497_v27  ;;  %v15542_v27 = vld [vmem:[#allocation5 + $0x5b4] ss:$24 sps:$4 sm:$0xff]  }
 0x1a1   :  { %2358 = vmatpush1.bf16.msra.mxu0 %v15495_v32  ;;  %v15680_v32 = vld [vmem:[#allocation8 + $0x2d4] ss:$24 sps:$4 sm:$0xff]  }
 0x1a2   :  { %2370 = vmatprep.subr.bf16.mxu0 %v15500_v33  ;;  %v15545_v33 = vld [vmem:[#allocation5 + $0x5e4] ss:$24 sps:$4 sm:$0xff]  }
 0x1a4   :  { %2360 = vmatmul.mubr.bf16.vlgmr.msra.gmra.mrb[4].mxu0 %v18122_v28  ;;  %v15507_v28 = vld [vmem:[#allocation5 + $0x3a0] ss:$24 sps:$4 sm:$0xff]  }
 0x1a5   :  { %2371 = vmatpush1.bf16.msra.mxu0 %v15498_v35  ;;  %2402 = vmatprep.mubr.bf16.mxu0 %v18124_v31  ;;  %v15626_v31 = vld [vmem:[#allocation8 + $0x124] ss:$24 sps:$4 sm:$0xff]  }
 0x1a6   :  { %2372 = vmatprep.subr.bf16.mxu0 %v15503_v38  ;;  %4342 = vmatprep.subr.bf16.mxu1 %v15626_v31  ;;  %v15543_v35 = vld [vmem:[#allocation5 + $0x5e0] ss:$24 sps:$4 sm:$0xff]   ;;  %v15551_v38 = vld [vmem:[#allocation5 + $0x644] ss:$24 sps:$4 sm:$0xff]   ;;  %v15570_v31 = vld [vmem:[#allocation5 + $0x790] ss:$24 sps:$4 sm:$0xff]  }
 0x1a7   :  { %4343 = vmatpush1.bf16.msra.mxu1 %v15624_v58  ;;  %v15578_v58 = vld [vmem:[#allocation5 + $0x7f4] ss:$24 sps:$4 sm:$0xff]  }
 0x1a8   :  { %4344 = vmatprep.subr.bf16.mxu1 %v15632_v60  ;;  %v15581_v60 = vld [vmem:[#allocation5 + $0x824] ss:$24 sps:$4 sm:$0xff]  }
 0x1a9   :  { %2373 = vmatpush1.bf16.msra.mxu0 %v15501_v40  ;;  %v15554_v40 = vld [vmem:[#allocation5 + $0x674] ss:$24 sps:$4 sm:$0xff]  }
 0x1aa   :  { %2374 = vmatprep.subr.bf16.mxu0 %v15506_v41  ;;  %v15552_v41 = vld [vmem:[#allocation5 + $0x670] ss:$24 sps:$4 sm:$0xff]  }
 0x1ab   :  { %4345 = vmatpush1.bf16.msra.mxu1 %v15630_v48  ;;  %v15584_v48 = vld [vmem:[#allocation5 + $0x854] ss:$24 sps:$4 sm:$0xff]  }
 0x1ac   :  { %4346 = vmatprep.subr.bf16.mxu1 %v15638_v63  ;;  %v15593_v63 = vld [vmem:[#allocation5 + $0x8b4] ss:$24 sps:$4 sm:$0xff]  }
 0x1ad   :  { %2375 = vmatpush1.bf16.msra.mxu0 %v15504_v44  ;;  %v15560_v44 = vld [vmem:[#allocation5 + $0x6d4] ss:$24 sps:$4 sm:$0xff]  }
 0x1ae   :  { %2376 = vmatprep.subr.bf16.mxu0 %v15509_v45  ;;  %v15558_v45 = vld [vmem:[#allocation5 + $0x6d0] ss:$24 sps:$4 sm:$0xff]  }
 0x1af   :  { %4347 = vmatpush1.bf16.msra.mxu1 %v15636_v1  ;;  %v15591_v1 = vld [vmem:[#allocation5 + $0x8b0] ss:$24 sps:$4 sm:$0xff]  }
 0x1b0   :  { %4348 = vmatprep.subr.bf16.mxu1 %v15644_v4  ;;  %v15605_v4 = vld [vmem:[#allocation8 + $0xc] ss:$24 sps:$4 sm:$0xff]  }
 0x1b1   :  { %2377 = vmatpush1.bf16.msra.mxu0 %v15507_v28  ;;  %v15564_v28 = vld [vmem:[#allocation5 + $0x730] ss:$24 sps:$4 sm:$0xff]  }
 0x1b2   :  { %2378 = vmatprep.subr.bf16.mxu0 %v15512_v53  ;;  %v15567_v53 = vld [vmem:[#allocation5 + $0x760] ss:$24 sps:$4 sm:$0xff]  }
 0x1b3   :  { %4349 = vmatpush1.bf16.msra.mxu1 %v15642_v5  ;;  %v15603_v5 = vld [vmem:[#allocation8 + $0x8] ss:$24 sps:$4 sm:$0xff]  }
 0x1b4   :  { %4350 = vmatprep.subr.bf16.mxu1 %v15650_v8  ;;  %v15617_v8 = vld [vmem:[#allocation8 + $0x6c] ss:$24 sps:$4 sm:$0xff]  }
 0x1b5   :  { %2379 = vmatpush1.bf16.msra.mxu0 %v15510_v56  ;;  %v15575_v56 = vld [vmem:[#allocation5 + $0x7c4] ss:$24 sps:$4 sm:$0xff]  }
 0x1b6   :  { %2380 = vmatprep.subr.bf16.mxu0 %v15515_v57  ;;  %v15573_v57 = vld [vmem:[#allocation5 + $0x7c0] ss:$24 sps:$4 sm:$0xff]  }
 0x1b7   :  { %4351 = vmatpush1.bf16.msra.mxu1 %v15648_v16  ;;  %v15615_v16 = vld [vmem:[#allocation8 + $0x68] ss:$24 sps:$4 sm:$0xff]  }
 0x1b8   :  { %4352 = vmatprep.subr.bf16.mxu1 %v15656_v11  ;;  %v15629_v11 = vld [vmem:[#allocation8 + $0xcc] ss:$24 sps:$4 sm:$0xff]  }
 0x1b9   :  { %2381 = vmatpush1.bf16.msra.mxu0 %v15513_v59  ;;  %v15576_v59 = vld [vmem:[#allocation5 + $0x7f0] ss:$24 sps:$4 sm:$0xff]  }
 0x1ba   :  { %2382 = vmatprep.subr.bf16.mxu0 %v15518_v61  ;;  %v15579_v61 = vld [vmem:[#allocation5 + $0x820] ss:$24 sps:$4 sm:$0xff]  }
 0x1bb   :  { %4353 = vmatpush1.bf16.msra.mxu1 %v15654_v12  ;;  %v15627_v12 = vld [vmem:[#allocation8 + $0xc8] ss:$24 sps:$4 sm:$0xff]  }
 0x1bc   :  { %4354 = vmatprep.subr.bf16.mxu1 %v15662_v15  ;;  %v18186_v15 = vsub.s32 2, %v18091_v47 }
 0x1bd   :  { %2383 = vmatpush1.bf16.msra.mxu0 %v15516_v49  ;;  %v15582_v49 = vld [vmem:[#allocation5 + $0x850] ss:$24 sps:$4 sm:$0xff]  }
 0x1be   :  { %2384 = vmatprep.subr.bf16.mxu0 %v15521_v50  ;;  %v15587_v50 = vld [vmem:[#allocation5 + $0x884] ss:$24 sps:$4 sm:$0xff]  }
 0x1bf   :  { %4355 = vmatpush1.bf16.msra.mxu1 %v15660_v18  ;;  %v18192_v18 = vsub.s32 3, %v18091_v47 }
 0x1c0   :  { %4356 = vmatprep.subr.bf16.mxu1 %v15668_v21 }
 0x1c1   :  { %2385 = vmatpush1.bf16.msra.mxu0 %v15519_v62  ;;  %v15585_v62 = vld [vmem:[#allocation5 + $0x880] ss:$24 sps:$4 sm:$0xff]  }
 0x1c2   :  { %2386 = vmatprep.subr.bf16.mxu0 %v15524_v2  ;;  %v15599_v2 = vld [vmem:[#allocation5 + $0x8e4] ss:$24 sps:$4 sm:$0xff]  }
 0x1c3   :  { %4357 = vmatpush1.bf16.msra.mxu1 %v15666_v22 }
 0x1c4   :  { %4358 = vmatprep.subr.bf16.mxu1 %v15674_v25  ;;  %v15641_v25 = vld [vmem:[#allocation8 + $0x12c] ss:$24 sps:$4 sm:$0xff]  }
 0x1c5   :  { %2387 = vmatpush1.bf16.msra.mxu0 %v15522_v3  ;;  %v15597_v3 = vld [vmem:[#allocation5 + $0x8e0] ss:$24 sps:$4 sm:$0xff]  }
 0x1c6   :  { %2388 = vmatprep.subr.bf16.mxu0 %v15527_v6  ;;  %v15611_v6 = vld [vmem:[#allocation8 + $0x3c] ss:$24 sps:$4 sm:$0xff]  }
 0x1c7   :  { %4359 = vmatpush1.bf16.msra.mxu1 %v15672_v26 }
 0x1c8   :  { %4360 = vmatprep.subr.bf16.mxu1 %v15680_v32 }
 0x1c9   :  { %2389 = vmatpush1.bf16.msra.mxu0 %v15525_v7  ;;  %v15609_v7 = vld [vmem:[#allocation8 + $0x38] ss:$24 sps:$4 sm:$0xff]  }
 0x1ca   :  { %2390 = vmatprep.subr.bf16.mxu0 %v15530_v9  ;;  %v15623_v9 = vld [vmem:[#allocation8 + $0x9c] ss:$24 sps:$4 sm:$0xff]  }
 0x1cb   :  { %4361 = vmatpush1.bf16.msra.mxu1 %v15678_v30 }
 0x1cc   :  { %4373 = vmatprep.subr.bf16.mxu1 %v15686_v34 }
 0x1cd   :  { %2391 = vmatpush1.bf16.msra.mxu0 %v15528_v10  ;;  %v15621_v10 = vld [vmem:[#allocation8 + $0x98] ss:$24 sps:$4 sm:$0xff]  }
 0x1ce   :  { %2392 = vmatprep.subr.bf16.mxu0 %v15533_v13  ;;  %v449_v13 = vld [vmem:[#allocation7] sm:$0x3f] }
 0x1cf   :  { %v462_v22 = vrot.slane %v449_v13, %v18186_v15 }
 0x1d1   :  { %2393 = vmatpush1.bf16.msra.mxu0 %v15531_v14  ;;  %v18183_v14 = vsub.s32 0, %v18091_v47 }
 0x1d2   :  { %2394 = vmatprep.subr.bf16.mxu0 %v15536_v19  ;;  %v15635_v19 = vld [vmem:[#allocation8 + $0xfc] ss:$24 sps:$4 sm:$0xff]  }
 0x1d3   :  { %v454_v21 = vrot.slane %v449_v13, %v18183_v14 }
 0x1d5   :  { %2395 = vmatpush1.bf16.msra.mxu0 %v15534_v20  ;;  %v15633_v20 = vld [vmem:[#allocation8 + $0xf8] ss:$24 sps:$4 sm:$0xff]  }
 0x1d6   :  { %2396 = vmatprep.subr.bf16.mxu0 %v15539_v23 }
 0x1d9   :  { %2397 = vmatpush1.bf16.msra.mxu0 %v15537_v24  ;;  %v466_v24 = vrot.slane %v449_v13, %v18192_v18 }
 0x1da   :  { %2398 = vmatprep.subr.bf16.mxu0 %v15542_v27 }
 0x1dd   :  { %2399 = vmatpush1.bf16.msra.mxu0 %v15540_v29  ;;  %v15639_v29 = vld [vmem:[#allocation8 + $0x128] ss:$24 sps:$4 sm:$0xff]  }
 0x1de   :  { %2400 = vmatprep.subr.bf16.mxu0 %v15545_v33 }
 0x1e1   :  { %2401 = vmatpush1.bf16.msra.mxu0 %v15543_v35 }
 0x1e2   :  { %2413 = vmatprep.subr.bf16.mxu0 %v15548_v36 }
 0x1e4   :  { %2403 = vmatmul.mubr.bf16.vlgmr.msra.gmra.mrb[4].mxu0 %v18118_v17  ;;  %v15566_v17 = vld [vmem:[#allocation5 + $0x734] ss:$24 sps:$4 sm:$0xff]  }
 0x1e5   :  { %2414 = vmatpush1.bf16.msra.mxu0 %v15546_v37  ;;  %2445 = vmatprep.mubr.bf16.mxu0 %v18162_v0  ;;  %v15569_v0 = vld [vmem:[#allocation5 + $0x764] ss:$24 sps:$4 sm:$0xff]  }
 0x1e6   :  { %2415 = vmatprep.subr.bf16.mxu0 %v15551_v38 }
 0x1e9   :  { %2416 = vmatpush1.bf16.msra.mxu0 %v15549_v39 }
 0x1ea   :  { %2417 = vmatprep.subr.bf16.mxu0 %v15554_v40 }
 0x1ed   :  { %2418 = vmatpush1.bf16.msra.mxu0 %v15552_v41 }
 0x1ee   :  { %2419 = vmatprep.subr.bf16.mxu0 %v15557_v42 }
 0x1f1   :  { %2420 = vmatpush1.bf16.msra.mxu0 %v15555_v43 }
 0x1f2   :  { %2421 = vmatprep.subr.bf16.mxu0 %v15560_v44 }
 0x1f5   :  { %2422 = vmatpush1.bf16.msra.mxu0 %v15558_v45  ;;  %v15647_v45 = vld [vmem:[#allocation8 + $0x15c] ss:$24 sps:$4 sm:$0xff]  }
 0x1f6   :  { %2423 = vmatprep.subr.bf16.mxu0 %v15563_v51 }
 0x1f9   :  { %2424 = vmatpush1.bf16.msra.mxu0 %v15561_v52 }
 0x1fa   :  { %2425 = vmatprep.subr.bf16.mxu0 %v15566_v17 }
 0x1fd   :  { %2426 = vmatpush1.bf16.msra.mxu0 %v15564_v28 }
 0x1fe   :  { %2427 = vmatprep.subr.bf16.mxu0 %v15569_v0  ;;  %v15645_v0 = vld [vmem:[#allocation8 + $0x158] ss:$24 sps:$4 sm:$0xff]  }
 0x201   :  { %2428 = vmatpush1.bf16.msra.mxu0 %v15567_v53 }
 0x202   :  { %2429 = vmatprep.subr.bf16.mxu0 %v15572_v54 }
 0x205   :  { %2430 = vmatpush1.bf16.msra.mxu0 %v15570_v31 }
 0x206   :  { %2431 = vmatprep.subr.bf16.mxu0 %v15575_v56 }
 0x209   :  { %2432 = vmatpush1.bf16.msra.mxu0 %v15573_v57 }
 0x20a   :  { %2433 = vmatprep.subr.bf16.mxu0 %v15578_v58 }
 0x20d   :  { %2434 = vmatpush1.bf16.msra.mxu0 %v15576_v59 }
 0x20e   :  { %2435 = vmatprep.subr.bf16.mxu0 %v15581_v60 }
 0x211   :  { %2436 = vmatpush1.bf16.msra.mxu0 %v15579_v61 }
 0x212   :  { %2437 = vmatprep.subr.bf16.mxu0 %v15584_v48 }
 0x215   :  { %2438 = vmatpush1.bf16.msra.mxu0 %v15582_v49 }
 0x216   :  { %2439 = vmatprep.subr.bf16.mxu0 %v15587_v50 }
 0x219   :  { %2440 = vmatpush1.bf16.msra.mxu0 %v15585_v62  ;;  %v15653_v62 = vld [vmem:[#allocation8 + $0x18c] ss:$24 sps:$4 sm:$0xff]  }
 0x21a   :  { %2441 = vmatprep.subr.bf16.mxu0 %v15593_v63 }
 0x21d   :  { %2442 = vmatpush1.bf16.msra.mxu0 %v15591_v1 }
 0x21e   :  { %2443 = vmatprep.subr.bf16.mxu0 %v15599_v2 }
 0x221   :  { %2444 = vmatpush1.bf16.msra.mxu0 %v15597_v3 }
 0x222   :  { %4459 = vmatprep.subr.bf16.mxu0 %v15605_v4 }
 0x224   :  { %2446 = vmatmul.mubr.bf16.vlgmr.msra.gmra.mrb[4].mxu0 %v18172_v46  ;;  %v18189_v46 = vsub.s32 1, %v18091_v47 }
 0x225   :  { %4460 = vmatpush1.bf16.msra.mxu0 %v15603_v5 }
 0x226   :  { %4461 = vmatprep.subr.bf16.mxu0 %v15611_v6  ;;  %v458_v23 = vrot.slane %v449_v13, %v18189_v46 }
 0x229   :  { %4462 = vmatpush1.bf16.msra.mxu0 %v15609_v7 }
 0x22a   :  { %4463 = vmatprep.subr.bf16.mxu0 %v15617_v8  ;;  %v15651_v8 = vld [vmem:[#allocation8 + $0x188] ss:$24 sps:$4 sm:$0xff]  }
 0x22d   :  { %4464 = vmatpush1.bf16.msra.mxu0 %v15615_v16 }
 0x22e   :  { %4465 = vmatprep.subr.bf16.mxu0 %v15623_v9 }
 0x231   :  { %4466 = vmatpush1.bf16.msra.mxu0 %v15621_v10 }
 0x232   :  { %4467 = vmatprep.subr.bf16.mxu0 %v15629_v11 }
 0x235   :  { %4468 = vmatpush1.bf16.msra.mxu0 %v15627_v12  ;;  %v15659_v12 = vld [vmem:[#allocation8 + $0x1bc] ss:$24 sps:$4 sm:$0xff]  }
 0x236   :  { %4469 = vmatprep.subr.bf16.mxu0 %v15635_v19 }
 0x237   :  { %v2189_v26 = vpop.f32.mrb[0].mxu0 }
 0x238   :  { %v2318_v27 = vpop.f32.mrb[0].mxu1  ;;  %v18198_v30 = vadd.f32 %v2189_v26, %v454_v21  ;;  %v2191_v33 = vpop.f32.mrb[1].mxu0 }
 0x239   :  { %v18200_v32 = vadd.f32 %v2318_v27, %v462_v22  ;;  %v2320_v34 = vpop.f32.mrb[1].mxu1  ;;  %v18202_v35 = vadd.f32 %v2191_v33, %v458_v23  ;;  %v2193_v37 = vpop.f32.mrb[2].mxu0  ;;  %4470 = vmatpush1.bf16.msra.mxu0 %v15633_v20  ;;  %v15657_v27 = vld [vmem:[#allocation8 + $0x1b8] ss:$24 sps:$4 sm:$0xff]   ;;  %v15665_v33 = vld [vmem:[#allocation8 + $0x1ec] ss:$24 sps:$4 sm:$0xff]  }
 0x23a   :  { %v18204_v36 = vadd.f32 %v2320_v34, %v466_v24  ;;  %v2322_v38 = vpop.f32.mrb[2].mxu1  ;;  %v2456_v39 = vmul.f32 %v18198_v30, %v18198_v30  ;;  %v18210_v41 = vadd.f32 %v2193_v37, %v454_v21  ;;  %v2195_v43 = vpop.f32.mrb[3].mxu0  ;;  %4471 = vmatprep.subr.bf16.mxu0 %v15641_v25 }
 0x23b   :  { %v2458_v40 = vmul.f32 %v18200_v32, %v18200_v32  ;;  %v18212_v42 = vadd.f32 %v2322_v38, %v462_v22  ;;  %v2324_v44 = vpop.f32.mrb[3].mxu1  ;;  %v2457_v51 = vmul.f32 %v18202_v35, %v18202_v35  ;;  %v18218_v17 = vadd.f32 %v2195_v43, %v458_v23  ;;  %v15663_v38 = vld [vmem:[#allocation8 + $0x1e8] ss:$24 sps:$4 sm:$0xff]   ;;  %v15677_v43 = vld [vmem:[#allocation8 + $0x24c] ss:$24 sps:$4 sm:$0xff]  }
 0x23c   :  { %v2459_v52 = vmul.f32 %v18204_v36, %v18204_v36  ;;  %v18220_v28 = vadd.f32 %v2324_v44, %v466_v24  ;;  %v2468_v53 = vmul.f32 %v18198_v30, %v2456_v39  ;;  %v2462_v31 = vmul.f32 %v18210_v41, %v18210_v41  ;;  %v15671_v39 = vld [vmem:[#allocation8 + $0x21c] ss:$24 sps:$4 sm:$0xff]  }
 0x23d   :  { %v2470_v54 = vmul.f32 %v18200_v32, %v2458_v40  ;;  %v2464_v56 = vmul.f32 %v18212_v42, %v18212_v42  ;;  %v2469_v57 = vmul.f32 %v18202_v35, %v2457_v51  ;;  %v2463_v59 = vmul.f32 %v18218_v17, %v18218_v17  ;;  %4472 = vmatpush1.bf16.msra.mxu0 %v15639_v29  ;;  %v15669_v40 = vld [vmem:[#allocation8 + $0x218] ss:$24 sps:$4 sm:$0xff]  }
 0x23e   :  { %v2471_v58 = vmul.f32 %v18204_v36, %v2459_v52  ;;  %v2465_v60 = vmul.f32 %v18220_v28, %v18220_v28  ;;  %v2480_v61 = vmul.f32 0.044715, %v2468_v53  ;;  %v2474_v49 = vmul.f32 %v18210_v41, %v2462_v31  ;;  %4473 = vmatprep.subr.bf16.mxu0 %v15647_v45  ;;  %v15675_v52 = vld [vmem:[#allocation8 + $0x248] ss:$24 sps:$4 sm:$0xff]  }
 0x23f   :  { %v2482_v48 = vmul.f32 0.044715, %v2470_v54  ;;  %v2476_v50 = vmul.f32 %v18212_v42, %v2464_v56  ;;  %v2481_v63 = vmul.f32 0.044715, %v2469_v57  ;;  %v2475_v2 = vmul.f32 %v18218_v17, %v2463_v59  ;;  %v15683_v54 = vld [vmem:[#allocation8 + $0x27c] ss:$24 sps:$4 sm:$0xff]  }
 0x240   :  { %v2483_v1 = vmul.f32 0.044715, %v2471_v58  ;;  %v2477_v3 = vmul.f32 %v18220_v28, %v2465_v60  ;;  %v2492_v4 = vadd.f32 %v18198_v30, %v2480_v61  ;;  %v2486_v6 = vmul.f32 0.044715, %v2474_v49 }
 0x241   :  { %v2494_v5 = vadd.f32 %v18200_v32, %v2482_v48  ;;  %v2488_v7 = vmul.f32 0.044715, %v2476_v50  ;;  %v2493_v16 = vadd.f32 %v18202_v35, %v2481_v63  ;;  %v2487_v10 = vmul.f32 0.044715, %v2475_v2  ;;  %4474 = vmatpush1.bf16.msra.mxu0 %v15645_v0  ;;  %v15681_v48 = vld [vmem:[#allocation8 + $0x278] ss:$24 sps:$4 sm:$0xff]  }
 0x242   :  { %v2495_v9 = vadd.f32 %v18204_v36, %v2483_v1  ;;  %v2489_v11 = vmul.f32 0.044715, %v2477_v3  ;;  %v2504_v13 = vmul.f32 0.7978846, %v2492_v4  ;;  %v2498_v20 = vadd.f32 %v18210_v41, %v2486_v6  ;;  %4475 = vmatprep.subr.bf16.mxu0 %v15653_v62  ;;  %v15689_v63 = vld [vmem:[#allocation8 + $0x2ac] ss:$24 sps:$4 sm:$0xff]  }
 0x243   :  { %v2506_v19 = vmul.f32 0.7978846, %v2494_v5  ;;  %v2500_v21 = vadd.f32 %v18212_v42, %v2488_v7  ;;  %v2505_v22 = vmul.f32 0.7978846, %v2493_v16  ;;  %v2499_v24 = vadd.f32 %v18218_v17, %v2487_v10 }
 0x244   :  { %v2507_v23 = vmul.f32 0.7978846, %v2495_v9  ;;  %v2501_v25 = vadd.f32 %v18220_v28, %v2489_v11  ;;  %17610 = vtanh.f32 %v2504_v13  ;;  %v2510_v26 = vmul.f32 0.7978846, %v2498_v20  ;;  %v15687_v13 = vld [vmem:[#allocation8 + $0x2a8] ss:$24 sps:$4 sm:$0xff]  }
 0x245   :  { %17612 = vtanh.f32 %v2506_v19  ;;  %v2512_v29 = vmul.f32 0.7978846, %v2500_v21  ;;  %4476 = vmatpush1.bf16.msra.mxu0 %v15651_v8  ;;  %v2511_v34 = vmul.f32 0.7978846, %v2499_v24  ;;  %v15684_v21 = vld [vmem:[#allocation8 + $0x300] ss:$24 sps:$4 sm:$0xff]  }
 0x246   :  { %17614 = vtanh.f32 %v2505_v22  ;;  %4477 = vmatprep.subr.bf16.mxu0 %v15659_v12  ;;  %v2513_v37 = vmul.f32 0.7978846, %v2501_v25  ;;  %v15695_v24 = vld [vmem:[#allocation8 + $0x2dc] ss:$24 sps:$4 sm:$0xff]  }
 0x247   :  { %17616 = vtanh.f32 %v2507_v23 }
 0x248   :  { %17618 = vtanh.f32 %v2510_v26  ;;  %v15693_v26 = vld [vmem:[#allocation8 + $0x2d8] ss:$24 sps:$4 sm:$0xff]  }
 0x249   :  { %17620 = vtanh.f32 %v2512_v29  ;;  %4478 = vmatpush1.bf16.msra.mxu0 %v15657_v27  ;;  %v15696_v27 = vld [vmem:[#allocation8 + $0x360] ss:$24 sps:$4 sm:$0xff]   ;;  %v15707_v29 = vld [vmem:[#allocation8 + $0x33c] ss:$24 sps:$4 sm:$0xff]  }
 0x24a   :  { %17622 = vtanh.f32 %v2511_v34  ;;  %4479 = vmatprep.subr.bf16.mxu0 %v15665_v33  ;;  %v15704_v33 = vld [vmem:[#allocation8 + $0x394] ss:$24 sps:$4 sm:$0xff]   ;;  %v15705_v34 = vld [vmem:[#allocation8 + $0x338] ss:$24 sps:$4 sm:$0xff]  }
 0x24b   :  { %17624 = vtanh.f32 %v2513_v37  ;;  %v15702_v37 = vld [vmem:[#allocation8 + $0x390] ss:$24 sps:$4 sm:$0xff]  }
 0x24d   :  { %4480 = vmatpush1.bf16.msra.mxu0 %v15663_v38  ;;  %v15713_v38 = vld [vmem:[#allocation8 + $0x36c] ss:$24 sps:$4 sm:$0xff]  }
 0x24e   :  { %v17611_v44 = vpop.eup %17610  ;;  %4481 = vmatprep.subr.bf16.mxu0 %v15671_v39  ;;  %v15710_v39 = vld [vmem:[#allocation8 + $0x3c4] ss:$24 sps:$4 sm:$0xff]  }
 0x24f   :  { %v17613_v45 = vpop.eup %17612  ;;  %v2528_v51 = vadd.f32 1.0, %v17611_v44  ;;  %v15719_v44 = vld [vmem:[#allocation8 + $0x39c] ss:$24 sps:$4 sm:$0xff]  }
 0x250   :  { %v17615_v0 = vpop.eup %17614  ;;  %v2530_v53 = vadd.f32 1.0, %v17613_v45  ;;  %v15716_v45 = vld [vmem:[#allocation8 + $0x3f4] ss:$24 sps:$4 sm:$0xff]  }
 0x251   :  { %v17617_v31 = vpop.eup %17616  ;;  %4482 = vmatpush1.bf16.msra.mxu0 %v15669_v40  ;;  %v2529_v56 = vadd.f32 1.0, %v17615_v0  ;;  %v2540_v60 = vmul.f32 0.5, %v2528_v51  ;;  %v15711_v40 = vld [vmem:[#allocation8 + $0x368] ss:$24 sps:$4 sm:$0xff]   ;;  %v15717_v51 = vld [vmem:[#allocation8 + $0x398] ss:$24 sps:$4 sm:$0xff]  }
 0x252   :  { %v17619_v57 = vpop.eup %17618  ;;  %4483 = vmatprep.subr.bf16.mxu0 %v15677_v43  ;;  %v2531_v58 = vadd.f32 1.0, %v17617_v31  ;;  %v2542_v50 = vmul.f32 0.5, %v2530_v53  ;;  %v15708_v43 = vld [vmem:[#allocation8 + $0x3c0] ss:$24 sps:$4 sm:$0xff]   ;;  %v15725_v0 = vld [vmem:[#allocation8 + $0x3cc] ss:$24 sps:$4 sm:$0xff]  }
 0x253   :  { %v17621_v59 = vpop.eup %17620  ;;  %v2534_v61 = vadd.f32 1.0, %v17619_v57  ;;  %v2541_v4 = vmul.f32 0.5, %v2529_v56  ;;  %v2552_v8 = vmul.f32 %v18198_v30, %v2540_v60  ;;  %v15722_v53 = vld [vmem:[#allocation8 + $0x424] ss:$24 sps:$4 sm:$0xff]   ;;  %v15720_v31 = vld [vmem:[#allocation8 + $0x420] ss:$24 sps:$4 sm:$0xff]  }
 0x254   :  { %v17623_v49 = vpop.eup %17622  ;;  %v2536_v62 = vadd.f32 1.0, %v17621_v59  ;;  %v2543_v7 = vmul.f32 0.5, %v2531_v58  ;;  %v2554_v10 = vmul.f32 %v18200_v32, %v2542_v50  ;;  %v15731_v56 = vld [vmem:[#allocation8 + $0x3fc] ss:$24 sps:$4 sm:$0xff]   ;;  %v15729_v58 = vld [vmem:[#allocation8 + $0x3f8] ss:$24 sps:$4 sm:$0xff]  }
 0x255   :  { %v17625_v1 = vpop.eup %17624  ;;  %v2546_v2 = vmul.f32 0.5, %v2534_v61  ;;  %4484 = vmatpush1.bf16.msra.mxu0 %v15675_v52  ;;  %v2535_v3 = vadd.f32 1.0, %v17623_v49  ;;  %v2553_v19 = vmul.f32 %v18202_v35, %v2541_v4  ;;  %v15690_v35 = vld [vmem:[#allocation8 + $0x330] ss:$24 sps:$4 sm:$0xff]   ;;  %v15728_v57 = vld [vmem:[#allocation8 + $0x454] ss:$24 sps:$4 sm:$0xff]  }
 0x256   :  { %v2548_v5 = vmul.f32 0.5, %v2536_v62  ;;  %4485 = vmatprep.subr.bf16.mxu0 %v15683_v54  ;;  %v2537_v6 = vadd.f32 1.0, %v17625_v1  ;;  %v2555_v23 = vmul.f32 %v18204_v36, %v2543_v7  ;;  %v15698_v36 = vld [vmem:[#allocation8 + $0x364] ss:$24 sps:$4 sm:$0xff]   ;;  %v15714_v52 = vld [vmem:[#allocation8 + $0x3f0] ss:$24 sps:$4 sm:$0xff]  }
 0x257   :  { %v2558_v16 = vmul.f32 %v18210_v41, %v2546_v2  ;;  %v2547_v9 = vmul.f32 0.5, %v2535_v3  ;;  %v15692_v41 = vld [vmem:[#allocation8 + $0x334] ss:$24 sps:$4 sm:$0xff]   ;;  %v15723_v54 = vld [vmem:[#allocation8 + $0x3c8] ss:$24 sps:$4 sm:$0xff]  }
 0x258   :  { %v2560_v11 = vmul.f32 %v18212_v42, %v2548_v5  ;;  %v2549_v12 = vmul.f32 0.5, %v2537_v6  ;;  %v15726_v59 = vld [vmem:[#allocation8 + $0x450] ss:$24 sps:$4 sm:$0xff]   ;;  %v15737_v60 = vld [vmem:[#allocation8 + $0x42c] ss:$24 sps:$4 sm:$0xff]  }
 0x259   :  { %4486 = vmatpush1.bf16.msra.mxu0 %v15681_v48  ;;  %v2559_v20 = vmul.f32 %v18218_v17, %v2547_v9  ;;  %v18252_v22 = vpack.c.bf16 %v2558_v16, %v2552_v8  ;;  %v15701_v17 = vld [vmem:[#allocation8 + $0x30c] ss:$24 sps:$4 sm:$0xff]   ;;  %v15735_v48 = vld [vmem:[#allocation8 + $0x428] ss:$24 sps:$4 sm:$0xff]   ;;  %v15743_v50 = vld [vmem:[#allocation8 + $0x45c] ss:$24 sps:$4 sm:$0xff]  }
 0x25a   :  { %v2561_v30 = vmul.f32 %v18220_v28, %v2549_v12  ;;  %4487 = vmatprep.subr.bf16.mxu0 %v15689_v63  ;;  %v18256_v32 = vpack.c.bf16 %v2560_v11, %v2554_v10  ;;  %v15699_v28 = vld [vmem:[#allocation8 + $0x308] ss:$24 sps:$4 sm:$0xff]   ;;  %v15734_v61 = vld [vmem:[#allocation8 + $0x484] ss:$24 sps:$4 sm:$0xff]   ;;  %v15740_v62 = vld [vmem:[#allocation8 + $0x4b4] ss:$24 sps:$4 sm:$0xff]  }
 0x25b   :  { %v18258_v42 = vpack.c.bf16 %v2559_v20, %v2553_v19  ;;  %v15732_v49 = vld [vmem:[#allocation8 + $0x480] ss:$24 sps:$4 sm:$0xff]   ;;  %v15738_v63 = vld [vmem:[#allocation8 + $0x4b0] ss:$24 sps:$4 sm:$0xff]   ;;  %v15749_v2 = vld [vmem:[#allocation8 + $0x48c] ss:$24 sps:$4 sm:$0xff]  }
 0x25c   :  { %v18260_v25 = vpack.c.bf16 %v2561_v30, %v2555_v23  ;;  %v15741_v1 = vld [vmem:[#allocation8 + $0x458] ss:$24 sps:$4 sm:$0xff]   ;;  %v15746_v3 = vld [vmem:[#allocation8 + $0x4e4] ss:$24 sps:$4 sm:$0xff]   ;;  %v15747_v5 = vld [vmem:[#allocation8 + $0x488] ss:$24 sps:$4 sm:$0xff]  }
 0x25d   :  { %4362 = vmatprep.mubr.bf16.mxu1 %v18258_v42  ;;  %4491 = vmatprep.mubr.bf16.mxu0 %v18258_v42  ;;  %v15744_v4 = vld [vmem:[#allocation8 + $0x4e0] ss:$24 sps:$4 sm:$0xff]   ;;  %v15755_v6 = vld [vmem:[#allocation8 + $0x4bc] ss:$24 sps:$4 sm:$0xff]   ;;  %v15750_v8 = vld [vmem:[#allocation8 + $0x510] ss:$24 sps:$4 sm:$0xff]  }
 0x25e   :  { %4363 = vmatmul.mubr.bf16.vlgmr.msra.gmra.mrb[4].mxu1 %v18252_v22  ;;  %4488 = vmatpush1.bf16.msra.mxu0 %v15687_v13  ;;  %v15752_v7 = vld [vmem:[#allocation8 + $0x514] ss:$24 sps:$4 sm:$0xff]   ;;  %v15753_v16 = vld [vmem:[#allocation8 + $0x4b8] ss:$24 sps:$4 sm:$0xff]   ;;  %v15758_v10 = vld [vmem:[#allocation8 + $0x544] ss:$24 sps:$4 sm:$0xff]  }
 0x25f   :  { %4374 = vmatpush1.bf16.msra.mxu1 %v15684_v21  ;;  %4405 = vmatprep.mubr.bf16.mxu1 %v18260_v25  ;;  %v15761_v9 = vld [vmem:[#allocation8 + $0x4ec] ss:$24 sps:$4 sm:$0xff]   ;;  %v15756_v11 = vld [vmem:[#allocation8 + $0x540] ss:$24 sps:$4 sm:$0xff]   ;;  %v15767_v13 = vld [vmem:[#allocation8 + $0x51c] ss:$24 sps:$4 sm:$0xff]  }
 0x260   :  { %4375 = vmatprep.subr.bf16.mxu1 %v15692_v41  ;;  %4489 = vmatprep.subr.bf16.mxu0 %v15695_v24  ;;  %v15759_v12 = vld [vmem:[#allocation8 + $0x4e8] ss:$24 sps:$4 sm:$0xff]   ;;  %v15764_v19 = vld [vmem:[#allocation8 + $0x574] ss:$24 sps:$4 sm:$0xff]   ;;  %v15765_v21 = vld [vmem:[#allocation8 + $0x518] ss:$24 sps:$4 sm:$0xff]  }
 0x261   :  { %v15762_v20 = vld [vmem:[#allocation8 + $0x570] ss:$24 sps:$4 sm:$0xff]   ;;  %v15773_v23 = vld [vmem:[#allocation8 + $0x54c] ss:$24 sps:$4 sm:$0xff]   ;;  %v15768_v41 = vld [vmem:[#allocation8 + $0x5a0] ss:$24 sps:$4 sm:$0xff]  }
 0x262   :  { %4490 = vmatpush1.bf16.msra.mxu0 %v15693_v26  ;;  %v15770_v30 = vld [vmem:[#allocation8 + $0x5a4] ss:$24 sps:$4 sm:$0xff]   ;;  %v15771_v24 = vld [vmem:[#allocation8 + $0x548] ss:$24 sps:$4 sm:$0xff]  }
 0x263   :  { %4376 = vmatpush1.bf16.msra.mxu1 %v15690_v35  ;;  %4502 = vmatprep.subr.bf16.mxu0 %v15701_v17  ;;  %v15779_v26 = vld [vmem:[#allocation8 + $0x57c] ss:$24 sps:$4 sm:$0xff]   ;;  %v15774_v17 = vld [vmem:[#allocation8 + $0x5d0] ss:$24 sps:$4 sm:$0xff]  }
 0x264   :  { %4377 = vmatprep.subr.bf16.mxu1 %v15698_v36  ;;  %v15776_v35 = vld [vmem:[#allocation8 + $0x5d4] ss:$24 sps:$4 sm:$0xff]   ;;  %v15777_v36 = vld [vmem:[#allocation8 + $0x578] ss:$24 sps:$4 sm:$0xff]  }
 0x265   :  { %4492 = vmatmul.mubr.bf16.vlgmr.msra.gmra.mrb[8].mxu0 %v18252_v22 }
 0x266   :  { %4503 = vmatpush1.bf16.msra.mxu0 %v15699_v28  ;;  %4534 = vmatprep.mubr.bf16.mxu0 %v18260_v25  ;;  %v15782_v28 = vld [vmem:[#allocation8 + $0x5ac] ss:$24 sps:$4 sm:$0xff]  }
 0x267   :  { %4378 = vmatpush1.bf16.msra.mxu1 %v15696_v27  ;;  %4504 = vmatprep.subr.bf16.mxu0 %v15707_v29  ;;  %v15788_v27 = vld [vmem:[#allocation8 + $0x604] ss:$24 sps:$4 sm:$0xff]   ;;  %v15780_v29 = vld [vmem:[#allocation8 + $0x5a8] ss:$24 sps:$4 sm:$0xff]  }
 0x268   :  { %4379 = vmatprep.subr.bf16.mxu1 %v15704_v33  ;;  %v15785_v33 = vld [vmem:[#allocation8 + $0x5dc] ss:$24 sps:$4 sm:$0xff]  }
 0x26a   :  { %4505 = vmatpush1.bf16.msra.mxu0 %v15705_v34  ;;  %v15786_v34 = vld [vmem:[#allocation8 + $0x600] ss:$24 sps:$4 sm:$0xff]  }
 0x26b   :  { %4380 = vmatpush1.bf16.msra.mxu1 %v15702_v37  ;;  %4506 = vmatprep.subr.bf16.mxu0 %v15713_v38  ;;  %v15794_v37 = vld [vmem:[#allocation8 + $0x634] ss:$24 sps:$4 sm:$0xff]   ;;  %v15783_v38 = vld [vmem:[#allocation8 + $0x5d8] ss:$24 sps:$4 sm:$0xff]  }
 0x26c   :  { %4381 = vmatprep.subr.bf16.mxu1 %v15710_v39  ;;  %v15791_v39 = vld [vmem:[#allocation8 + $0x60c] ss:$24 sps:$4 sm:$0xff]  }
 0x26e   :  { %4507 = vmatpush1.bf16.msra.mxu0 %v15711_v40  ;;  %v15792_v40 = vld [vmem:[#allocation8 + $0x630] ss:$24 sps:$4 sm:$0xff]  }
 0x26f   :  { %4382 = vmatpush1.bf16.msra.mxu1 %v15708_v43  ;;  %4508 = vmatprep.subr.bf16.mxu0 %v15719_v44  ;;  %v15789_v43 = vld [vmem:[#allocation8 + $0x608] ss:$24 sps:$4 sm:$0xff]   ;;  %v15800_v44 = vld [vmem:[#allocation8 + $0x664] ss:$24 sps:$4 sm:$0xff]  }
 0x270   :  { %4383 = vmatprep.subr.bf16.mxu1 %v15716_v45  ;;  %v15797_v45 = vld [vmem:[#allocation8 + $0x63c] ss:$24 sps:$4 sm:$0xff]  }
 0x272   :  { %4509 = vmatpush1.bf16.msra.mxu0 %v15717_v51  ;;  %v15798_v51 = vld [vmem:[#allocation8 + $0x660] ss:$24 sps:$4 sm:$0xff]  }
 0x273   :  { %4384 = vmatpush1.bf16.msra.mxu1 %v15714_v52  ;;  %4510 = vmatprep.subr.bf16.mxu0 %v15725_v0  ;;  %v15795_v52 = vld [vmem:[#allocation8 + $0x638] ss:$24 sps:$4 sm:$0xff]   ;;  %v15806_v0 = vld [vmem:[#allocation8 + $0x694] ss:$24 sps:$4 sm:$0xff]  }
 0x274   :  { %4385 = vmatprep.subr.bf16.mxu1 %v15722_v53  ;;  %v15803_v53 = vld [vmem:[#allocation8 + $0x66c] ss:$24 sps:$4 sm:$0xff]  }
 0x276   :  { %4511 = vmatpush1.bf16.msra.mxu0 %v15723_v54  ;;  %v15804_v54 = vld [vmem:[#allocation8 + $0x690] ss:$24 sps:$4 sm:$0xff]  }
 0x277   :  { %4386 = vmatpush1.bf16.msra.mxu1 %v15720_v31  ;;  %4512 = vmatprep.subr.bf16.mxu0 %v15731_v56  ;;  %v15801_v31 = vld [vmem:[#allocation8 + $0x668] ss:$24 sps:$4 sm:$0xff]   ;;  %v15812_v56 = vld [vmem:[#allocation8 + $0x6c4] ss:$24 sps:$4 sm:$0xff]  }
 0x278   :  { %4387 = vmatprep.subr.bf16.mxu1 %v15728_v57  ;;  %v15809_v57 = vld [vmem:[#allocation8 + $0x69c] ss:$24 sps:$4 sm:$0xff]  }
 0x27a   :  { %4513 = vmatpush1.bf16.msra.mxu0 %v15729_v58  ;;  %v15810_v58 = vld [vmem:[#allocation8 + $0x6c0] ss:$24 sps:$4 sm:$0xff]  }
 0x27b   :  { %4388 = vmatpush1.bf16.msra.mxu1 %v15726_v59  ;;  %4514 = vmatprep.subr.bf16.mxu0 %v15737_v60  ;;  %v15807_v59 = vld [vmem:[#allocation8 + $0x698] ss:$24 sps:$4 sm:$0xff]   ;;  %v15818_v60 = vld [vmem:[#allocation8 + $0x6f4] ss:$24 sps:$4 sm:$0xff]  }
 0x27c   :  { %4389 = vmatprep.subr.bf16.mxu1 %v15734_v61  ;;  %v15815_v61 = vld [vmem:[#allocation8 + $0x6cc] ss:$24 sps:$4 sm:$0xff]  }
 0x27e   :  { %4515 = vmatpush1.bf16.msra.mxu0 %v15735_v48  ;;  %v15816_v48 = vld [vmem:[#allocation8 + $0x6f0] ss:$24 sps:$4 sm:$0xff]  }
 0x27f   :  { %4390 = vmatpush1.bf16.msra.mxu1 %v15732_v49  ;;  %4516 = vmatprep.subr.bf16.mxu0 %v15743_v50  ;;  %v15813_v49 = vld [vmem:[#allocation8 + $0x6c8] ss:$24 sps:$4 sm:$0xff]   ;;  %v15824_v50 = vld [vmem:[#allocation8 + $0x724] ss:$24 sps:$4 sm:$0xff]  }
 0x280   :  { %4391 = vmatprep.subr.bf16.mxu1 %v15740_v62  ;;  %v15821_v62 = vld [vmem:[#allocation8 + $0x6fc] ss:$24 sps:$4 sm:$0xff]  }
 0x282   :  { %4517 = vmatpush1.bf16.msra.mxu0 %v15741_v1  ;;  %v15819_v1 = vld [vmem:[#allocation8 + $0x6f8] ss:$24 sps:$4 sm:$0xff]  }
 0x283   :  { %4392 = vmatpush1.bf16.msra.mxu1 %v15738_v63  ;;  %4518 = vmatprep.subr.bf16.mxu0 %v15749_v2  ;;  %v15822_v63 = vld [vmem:[#allocation8 + $0x720] ss:$24 sps:$4 sm:$0xff]   ;;  %v15830_v2 = vld [vmem:[#allocation8 + $0x754] ss:$24 sps:$4 sm:$0xff]  }
 0x284   :  { %4393 = vmatprep.subr.bf16.mxu1 %v15746_v3  ;;  %v15827_v3 = vld [vmem:[#allocation8 + $0x72c] ss:$24 sps:$4 sm:$0xff]  }
 0x286   :  { %4519 = vmatpush1.bf16.msra.mxu0 %v15747_v5  ;;  %v15825_v5 = vld [vmem:[#allocation8 + $0x728] ss:$24 sps:$4 sm:$0xff]  }
 0x287   :  { %4394 = vmatpush1.bf16.msra.mxu1 %v15744_v4  ;;  %4520 = vmatprep.subr.bf16.mxu0 %v15755_v6  ;;  %v15828_v4 = vld [vmem:[#allocation8 + $0x750] ss:$24 sps:$4 sm:$0xff]   ;;  %v15836_v6 = vld [vmem:[#allocation8 + $0x784] ss:$24 sps:$4 sm:$0xff]  }
 0x288   :  { %4395 = vmatprep.subr.bf16.mxu1 %v15752_v7  ;;  %v15833_v7 = vld [vmem:[#allocation8 + $0x75c] ss:$24 sps:$4 sm:$0xff]  }
 0x28a   :  { %4521 = vmatpush1.bf16.msra.mxu0 %v15753_v16  ;;  %v15831_v16 = vld [vmem:[#allocation8 + $0x758] ss:$24 sps:$4 sm:$0xff]  }
 0x28b   :  { %4396 = vmatpush1.bf16.msra.mxu1 %v15750_v8  ;;  %4522 = vmatprep.subr.bf16.mxu0 %v15761_v9  ;;  %v15834_v8 = vld [vmem:[#allocation8 + $0x780] ss:$24 sps:$4 sm:$0xff]   ;;  %v15842_v9 = vld [vmem:[#allocation8 + $0x7b4] ss:$24 sps:$4 sm:$0xff]  }
 0x28c   :  { %4397 = vmatprep.subr.bf16.mxu1 %v15758_v10  ;;  %v15839_v10 = vld [vmem:[#allocation8 + $0x78c] ss:$24 sps:$4 sm:$0xff]  }
 0x28e   :  { %4523 = vmatpush1.bf16.msra.mxu0 %v15759_v12  ;;  %v15837_v12 = vld [vmem:[#allocation8 + $0x788] ss:$24 sps:$4 sm:$0xff]  }
 0x28f   :  { %4398 = vmatpush1.bf16.msra.mxu1 %v15756_v11  ;;  %4524 = vmatprep.subr.bf16.mxu0 %v15767_v13  ;;  %v15840_v11 = vld [vmem:[#allocation8 + $0x7b0] ss:$24 sps:$4 sm:$0xff]   ;;  %v15848_v13 = vld [vmem:[#allocation8 + $0x7e4] ss:$24 sps:$4 sm:$0xff]  }
 0x290   :  { %4399 = vmatprep.subr.bf16.mxu1 %v15764_v19  ;;  %v15845_v19 = vld [vmem:[#allocation8 + $0x7bc] ss:$24 sps:$4 sm:$0xff]  }
 0x292   :  { %4525 = vmatpush1.bf16.msra.mxu0 %v15765_v21  ;;  %v15843_v21 = vld [vmem:[#allocation8 + $0x7b8] ss:$24 sps:$4 sm:$0xff]  }
 0x293   :  { %4400 = vmatpush1.bf16.msra.mxu1 %v15762_v20  ;;  %4526 = vmatprep.subr.bf16.mxu0 %v15773_v23  ;;  %v15846_v20 = vld [vmem:[#allocation8 + $0x7e0] ss:$24 sps:$4 sm:$0xff]   ;;  %v15854_v23 = vld [vmem:[#allocation8 + $0x814] ss:$24 sps:$4 sm:$0xff]  }
 0x294   :  { %4401 = vmatprep.subr.bf16.mxu1 %v15770_v30  ;;  %v15851_v30 = vld [vmem:[#allocation8 + $0x7ec] ss:$24 sps:$4 sm:$0xff]  }
 0x296   :  { %4527 = vmatpush1.bf16.msra.mxu0 %v15771_v24  ;;  %v15849_v24 = vld [vmem:[#allocation8 + $0x7e8] ss:$24 sps:$4 sm:$0xff]  }
 0x297   :  { %4402 = vmatpush1.bf16.msra.mxu1 %v15768_v41  ;;  %4528 = vmatprep.subr.bf16.mxu0 %v15779_v26  ;;  %v15852_v41 = vld [vmem:[#allocation8 + $0x810] ss:$24 sps:$4 sm:$0xff]   ;;  %v15860_v26 = vld [vmem:[#allocation8 + $0x844] ss:$24 sps:$4 sm:$0xff]  }
 0x298   :  { %4403 = vmatprep.subr.bf16.mxu1 %v15776_v35  ;;  %v15857_v35 = vld [vmem:[#allocation8 + $0x81c] ss:$24 sps:$4 sm:$0xff]  }
 0x29a   :  { %4529 = vmatpush1.bf16.msra.mxu0 %v15777_v36  ;;  %v15855_v36 = vld [vmem:[#allocation8 + $0x818] ss:$24 sps:$4 sm:$0xff]  }
 0x29b   :  { %4404 = vmatpush1.bf16.msra.mxu1 %v15774_v17  ;;  %4530 = vmatprep.subr.bf16.mxu0 %v15782_v28  ;;  %v15858_v17 = vld [vmem:[#allocation8 + $0x840] ss:$24 sps:$4 sm:$0xff]   ;;  %v15866_v28 = vld [vmem:[#allocation8 + $0x874] ss:$24 sps:$4 sm:$0xff]  }
 0x29c   :  { %4416 = vmatprep.subr.bf16.mxu1 %v15788_v27  ;;  %v15863_v27 = vld [vmem:[#allocation8 + $0x84c] ss:$24 sps:$4 sm:$0xff]  }
 0x29e   :  { %4406 = vmatmul.mubr.bf16.vlgmr.msra.gmra.mrb[4].mxu1 %v18256_v32  ;;  %4531 = vmatpush1.bf16.msra.mxu0 %v15780_v29  ;;  %v15864_v29 = vld [vmem:[#allocation8 + $0x870] ss:$24 sps:$4 sm:$0xff]  }
 0x29f   :  { %4532 = vmatprep.subr.bf16.mxu0 %v15785_v33  ;;  %4417 = vmatpush1.bf16.msra.mxu1 %v15786_v34  ;;  %v15872_v33 = vld [vmem:[#allocation8 + $0x8a4] ss:$24 sps:$4 sm:$0xff]   ;;  %v15861_v34 = vld [vmem:[#allocation8 + $0x848] ss:$24 sps:$4 sm:$0xff]  }
 0x2a0   :  { %4418 = vmatprep.subr.bf16.mxu1 %v15794_v37  ;;  %v15869_v37 = vld [vmem:[#allocation8 + $0x87c] ss:$24 sps:$4 sm:$0xff]  }
 0x2a2   :  { %4533 = vmatpush1.bf16.msra.mxu0 %v15783_v38  ;;  %v15870_v38 = vld [vmem:[#allocation8 + $0x8a0] ss:$24 sps:$4 sm:$0xff]  }
 0x2a3   :  { %4545 = vmatprep.subr.bf16.mxu0 %v15791_v39  ;;  %4419 = vmatpush1.bf16.msra.mxu1 %v15792_v40  ;;  %v15878_v39 = vld [vmem:[#allocation8 + $0x8d4] ss:$24 sps:$4 sm:$0xff]   ;;  %v15867_v40 = vld [vmem:[#allocation8 + $0x878] ss:$24 sps:$4 sm:$0xff]  }
 0x2a4   :  { %4420 = vmatprep.subr.bf16.mxu1 %v15800_v44  ;;  %v15876_v44 = vld [vmem:[#allocation8 + $0x8d0] ss:$24 sps:$4 sm:$0xff]  }
 0x2a5   :  { %4535 = vmatmul.mubr.bf16.vlgmr.msra.gmra.mrb[8].mxu0 %v18256_v32 }
 0x2a6   :  { %4546 = vmatpush1.bf16.msra.mxu0 %v15789_v43  ;;  %v15875_v43 = vld [vmem:[#allocation8 + $0x8ac] ss:$24 sps:$4 sm:$0xff]  }
 0x2a7   :  { %4547 = vmatprep.subr.bf16.mxu0 %v15797_v45  ;;  %4421 = vmatpush1.bf16.msra.mxu1 %v15798_v51  ;;  %v15873_v45 = vld [vmem:[#allocation8 + $0x8a8] ss:$24 sps:$4 sm:$0xff]   ;;  %v15884_v51 = vld [vmem:[#allocation8 + $0x14] ss:$24 sps:$4 sm:$0xff]  }
 0x2a8   :  { %4422 = vmatprep.subr.bf16.mxu1 %v15806_v0  ;;  %v15879_v0 = vld [vmem:[#allocation8 + $0x8d8] ss:$24 sps:$4 sm:$0xff]  }
 0x2aa   :  { %4548 = vmatpush1.bf16.msra.mxu0 %v15795_v52  ;;  %v15881_v52 = vld [vmem:[#allocation8 + $0x8dc] ss:$24 sps:$4 sm:$0xff]  }
 0x2ab   :  { %4549 = vmatprep.subr.bf16.mxu0 %v15803_v53  ;;  %4423 = vmatpush1.bf16.msra.mxu1 %v15804_v54  ;;  %v15887_v53 = vld [vmem:[#allocation11 + $0x4] ss:$24 sps:$4 sm:$0xff]   ;;  %v18271_v54 = vsub.s32 4, %v18091_v47 }
 0x2ac   :  { %4424 = vmatprep.subr.bf16.mxu1 %v15812_v56  ;;  %v17634_v56 = vld [vmem:[#allocation7] sm:$0x3f] }
 0x2ae   :  { %4550 = vmatpush1.bf16.msra.mxu0 %v15801_v31  ;;  %v18274_v31 = vsub.s32 5, %v18091_v47 }
 0x2af   :  { %4551 = vmatprep.subr.bf16.mxu0 %v15809_v57  ;;  %4425 = vmatpush1.bf16.msra.mxu1 %v15810_v58  ;;  %v470_v57 = vrot.slane %v17634_v56, %v18271_v54 }
 0x2b0   :  { %4426 = vmatprep.subr.bf16.mxu1 %v15818_v60  ;;  %v474_v58 = vrot.slane %v17634_v56, %v18274_v31 }
 0x2b2   :  { %4552 = vmatpush1.bf16.msra.mxu0 %v15807_v59 }
 0x2b3   :  { %4553 = vmatprep.subr.bf16.mxu0 %v15815_v61  ;;  %4427 = vmatpush1.bf16.msra.mxu1 %v15816_v48 }
 0x2b4   :  { %4428 = vmatprep.subr.bf16.mxu1 %v15824_v50 }
 0x2b6   :  { %4554 = vmatpush1.bf16.msra.mxu0 %v15813_v49 }
 0x2b7   :  { %4555 = vmatprep.subr.bf16.mxu0 %v15821_v62  ;;  %4429 = vmatpush1.bf16.msra.mxu1 %v15822_v63 }
 0x2b8   :  { %4430 = vmatprep.subr.bf16.mxu1 %v15830_v2 }
 0x2ba   :  { %4556 = vmatpush1.bf16.msra.mxu0 %v15819_v1 }
 0x2bb   :  { %4557 = vmatprep.subr.bf16.mxu0 %v15827_v3  ;;  %4431 = vmatpush1.bf16.msra.mxu1 %v15828_v4 }
 0x2bc   :  { %4432 = vmatprep.subr.bf16.mxu1 %v15836_v6 }
 0x2be   :  { %4558 = vmatpush1.bf16.msra.mxu0 %v15825_v5 }
 0x2bf   :  { %4559 = vmatprep.subr.bf16.mxu0 %v15833_v7  ;;  %4433 = vmatpush1.bf16.msra.mxu1 %v15834_v8 }
 0x2c0   :  { %4434 = vmatprep.subr.bf16.mxu1 %v15842_v9 }
 0x2c2   :  { %4560 = vmatpush1.bf16.msra.mxu0 %v15831_v16 }
 0x2c3   :  { %4561 = vmatprep.subr.bf16.mxu0 %v15839_v10  ;;  %4435 = vmatpush1.bf16.msra.mxu1 %v15840_v11 }
 0x2c4   :  { %4436 = vmatprep.subr.bf16.mxu1 %v15848_v13 }
 0x2c6   :  { %4562 = vmatpush1.bf16.msra.mxu0 %v15837_v12 }
 0x2c7   :  { %4563 = vmatprep.subr.bf16.mxu0 %v15845_v19  ;;  %4437 = vmatpush1.bf16.msra.mxu1 %v15846_v20 }
 0x2c8   :  { %4438 = vmatprep.subr.bf16.mxu1 %v15854_v23 }
 0x2ca   :  { %4564 = vmatpush1.bf16.msra.mxu0 %v15843_v21 }
 0x2cb   :  { %4565 = vmatprep.subr.bf16.mxu0 %v15851_v30  ;;  %4439 = vmatpush1.bf16.msra.mxu1 %v15852_v41  ;;  %v17906_v41 = vmov 1983009808  }
 0x2cc   :  { %4440 = vmatprep.subr.bf16.mxu1 %v15860_v26 }
 0x2ce   :  { %4566 = vmatpush1.bf16.msra.mxu0 %v15849_v24  ;;  %v4932_v24 = vunpack.c.l.s4 %v17906_v41 }
 0x2cf   :  { %4567 = vmatprep.subr.bf16.mxu0 %v15857_v35  ;;  %4441 = vmatpush1.bf16.msra.mxu1 %v15858_v17  ;;  %v4863_v35 = vld [vmem:[#allocation2] sm:$0xff] }
 0x2d0   :  { %4442 = vmatprep.subr.bf16.mxu1 %v15866_v28  ;;  %v4867_v17 = vld [vmem:[#allocation2 + $0x20] sm:$0xff] }
 0x2d1   :  { %v4875_v28 = vld [vmem:[#allocation2 + $0x60] sm:$0xff] }
 0x2d2   :  { %4568 = vmatpush1.bf16.msra.mxu0 %v15855_v36  ;;  %v4871_v36 = vld [vmem:[#allocation2 + $0x40] sm:$0xff] }
 0x2d3   :  { %4569 = vmatprep.subr.bf16.mxu0 %v15863_v27  ;;  %4443 = vmatpush1.bf16.msra.mxu1 %v15864_v29  ;;  %v4933_v27 = vunpack.c.0.s8 %v4932_v24  ;;  %v4879_v29 = vld [vmem:[#allocation2 + $0x80] sm:$0xff] }
 0x2d4   :  { %4444 = vmatprep.subr.bf16.mxu1 %v15872_v33  ;;  %v4883_v33 = vld [vmem:[#allocation2 + $0xa0] sm:$0xff] }
 0x2d6   :  { %4570 = vmatpush1.bf16.msra.mxu0 %v15861_v34  ;;  %v4887_v34 = vld [vmem:[#allocation2 + $0xc0] sm:$0xff] }
 0x2d7   :  { %4571 = vmatprep.subr.bf16.mxu0 %v15869_v37  ;;  %4445 = vmatpush1.bf16.msra.mxu1 %v15870_v38  ;;  %v4891_v37 = vld [vmem:[#allocation2 + $0xe0] sm:$0xff]  ;;  %v4927_v38 = vcombine.low %v4863_v35, %v4867_v17 }
 0x2d8   :  { %4446 = vmatprep.subr.bf16.mxu1 %v15878_v39  ;;  %v4929_v39 = vcombine.low %v4871_v36, %v4875_v28 }
 0x2da   :  { %4572 = vmatpush1.bf16.msra.mxu0 %v15867_v40  ;;  %v18291_v40 = vsub.s32 %v4933_v27, %v18091_v47 }
 0x2db   :  { %4573 = vmatprep.subr.bf16.mxu0 %v15875_v43  ;;  %4447 = vmatpush1.bf16.msra.mxu1 %v15876_v44  ;;  %v5071_v43 = vcombine.low %v4879_v29, %v4883_v33  ;;  %v5073_v44 = vcombine.low %v4887_v34, %v4891_v37 }
 0x2dc   :  { %4588 = vmatprep.subr.bf16.mxu1 %v15884_v51  ;;  %v18294_v56 = vrot.slane %v4927_v38, %v18291_v40  ;;  %v15897_v38 = vld [vmem:[#allocation11 + $0x60] ss:$24 sps:$4 sm:$0xff]  }
 0x2dd   :  { %v18303_v47 = vrot.slane %v5073_v44, %v18291_v40  ;;  %v15900_v44 = vld [vmem:[#allocation8 + $0xa0] ss:$24 sps:$4 sm:$0xff]  }
 0x2de   :  { %4574 = vmatpush1.bf16.msra.mxu0 %v15873_v45 }
 0x2df   :  { %4575 = vmatprep.subr.bf16.mxu0 %v15881_v52 }
 0x2e2   :  { %4576 = vmatpush1.bf16.msra.mxu0 %v15879_v0 }
 0x2e3   :  { %9903 = vmatprep.subr.bf16.mxu0 %v15887_v53 }
 0x2f7   :  { %v2447_v59 = vpop.f32.mrb[4].mxu0 }
 0x2f8   :  { %v18278_v60 = vadd.f32 %v2447_v59, %v470_v57  ;;  %v2449_v61 = vpop.f32.mrb[5].mxu0 }
 0x2f9   :  { %v18280_v48 = vadd.f32 %v2449_v61, %v474_v58  ;;  %v2451_v49 = vpop.f32.mrb[6].mxu0 }
 0x2fa   :  { %v2460_v50 = vmul.f32 %v18278_v60, %v18278_v60  ;;  %v14937_v62 = vadd.f32 %v2451_v49, %v470_v57  ;;  %v2453_v63 = vpop.f32.mrb[7].mxu0  ;;  %v18297_v57 = vrot.slane %v4929_v39, %v18291_v40  ;;  %v18300_v49 = vrot.slane %v5071_v43, %v18291_v40  ;;  %v15902_v39 = vld [vmem:[#allocation8 + $0xa4] ss:$24 sps:$4 sm:$0xff]  }
 0x2fb   :  { %v2461_v1 = vmul.f32 %v18280_v48, %v18280_v48  ;;  %v14938_v2 = vadd.f32 %v2453_v63, %v474_v58  ;;  %v15905_v43 = vld [vmem:[#allocation11 + $0x94] ss:$24 sps:$4 sm:$0xff]  }
 0x2fc   :  { %v2472_v3 = vmul.f32 %v18278_v60, %v2460_v50  ;;  %v2466_v4 = vmul.f32 %v14937_v62, %v14937_v62 }
 0x2fd   :  { %v2473_v5 = vmul.f32 %v18280_v48, %v2461_v1  ;;  %v2467_v6 = vmul.f32 %v14938_v2, %v14938_v2 }
 0x2fe   :  { %v2484_v7 = vmul.f32 0.044715, %v2472_v3  ;;  %v2478_v8 = vmul.f32 %v14937_v62, %v2466_v4  ;;  %v4960_v4 = vcombine.high %v18294_v56, %v18297_v57 }
 0x2ff   :  { %v2485_v16 = vmul.f32 0.044715, %v2473_v5  ;;  %v2479_v9 = vmul.f32 %v14938_v2, %v2467_v6 }
 0x300   :  { %v2496_v10 = vadd.f32 %v18278_v60, %v2484_v7  ;;  %v2490_v11 = vmul.f32 0.044715, %v2478_v8  ;;  %v5104_v8 = vcombine.high %v18300_v49, %v18303_v47 }
 0x301   :  { %v2497_v12 = vadd.f32 %v18280_v48, %v2485_v16  ;;  %v2491_v13 = vmul.f32 0.044715, %v2479_v9  ;;  %v15882_v9 = vld [vmem:[#allocation8 + $0x10] ss:$24 sps:$4 sm:$0xff]  }
 0x302   :  { %v2508_v19 = vmul.f32 0.7978846, %v2496_v10  ;;  %v2502_v20 = vadd.f32 %v14937_v62, %v2490_v11  ;;  %v15885_v10 = vld [vmem:[#allocation11] ss:$24 sps:$4 sm:$0xff]   ;;  %v4928_v11 = vcombine.high %v4863_v35, %v4867_v17  ;;  %v18321_v41 = vpack.c.bf16 %v5104_v8, %v4960_v4  ;;  %v15891_v35 = vld [vmem:[#allocation11 + $0x30] ss:$24 sps:$4 sm:$0xff]  }
 0x303   :  { %v2509_v21 = vmul.f32 0.7978846, %v2497_v12  ;;  %v2503_v23 = vadd.f32 %v14938_v2, %v2491_v13  ;;  %v4930_v12 = vcombine.high %v4871_v36, %v4875_v28  ;;  %v5072_v13 = vcombine.high %v4879_v29, %v4883_v33  ;;  %v15896_v17 = vld [vmem:[#allocation8 + $0x74] ss:$24 sps:$4 sm:$0xff]   ;;  %v15926_v4 = vld [vmem:[#allocation8 + $0x164] ss:$24 sps:$4 sm:$0xff]  }
 0x304   :  { %17626 = vtanh.f32 %v2508_v19  ;;  %v2514_v30 = vmul.f32 0.7978846, %v2502_v20  ;;  %v15890_v20 = vld [vmem:[#allocation8 + $0x44] ss:$24 sps:$4 sm:$0xff]   ;;  %v15932_v8 = vld [vmem:[#allocation8 + $0x194] ss:$24 sps:$4 sm:$0xff]  }
 0x305   :  { %17628 = vtanh.f32 %v2509_v21  ;;  %v2515_v26 = vmul.f32 0.7978846, %v2503_v23  ;;  %v5074_v21 = vcombine.high %v4887_v34, %v4891_v37  ;;  %v15899_v29 = vld [vmem:[#allocation11 + $0x64] ss:$24 sps:$4 sm:$0xff]  }
 0x306   :  { %17630 = vtanh.f32 %v2514_v30  ;;  %v15893_v30 = vld [vmem:[#allocation11 + $0x34] ss:$24 sps:$4 sm:$0xff]  }
 0x307   :  { %17632 = vtanh.f32 %v2515_v26  ;;  %v15888_v26 = vld [vmem:[#allocation8 + $0x40] ss:$24 sps:$4 sm:$0xff]   ;;  %v15894_v37 = vld [vmem:[#allocation8 + $0x70] ss:$24 sps:$4 sm:$0xff]  }
 0x30e   :  { %v17627_v45 = vpop.eup %17626 }
 0x30f   :  { %v17629_v51 = vpop.eup %17628  ;;  %v2532_v52 = vadd.f32 1.0, %v17627_v45  ;;  %v15903_v45 = vld [vmem:[#allocation11 + $0x90] ss:$24 sps:$4 sm:$0xff]  }
 0x310   :  { %v17631_v0 = vpop.eup %17630  ;;  %v2533_v53 = vadd.f32 1.0, %v17629_v51  ;;  %v15908_v51 = vld [vmem:[#allocation8 + $0xd4] ss:$24 sps:$4 sm:$0xff]  }
 0x311   :  { %v17633_v58 = vpop.eup %17632  ;;  %v2544_v59 = vmul.f32 0.5, %v2532_v52  ;;  %v2538_v61 = vadd.f32 1.0, %v17631_v0  ;;  %v15906_v52 = vld [vmem:[#allocation8 + $0xd0] ss:$24 sps:$4 sm:$0xff]  }
 0x312   :  { %v2539_v50 = vadd.f32 1.0, %v17633_v58  ;;  %v2545_v63 = vmul.f32 0.5, %v2533_v53  ;;  %v15909_v0 = vld [vmem:[#allocation11 + $0xc0] ss:$24 sps:$4 sm:$0xff]   ;;  %v15917_v58 = vld [vmem:[#allocation11 + $0xf4] ss:$24 sps:$4 sm:$0xff]  }
 0x313   :  { %v2550_v1 = vmul.f32 0.5, %v2538_v61  ;;  %v2556_v5 = vmul.f32 %v18278_v60, %v2544_v59  ;;  %v4944_v60 = vrot.slane %v4928_v11, %v18291_v40  ;;  %v15914_v53 = vld [vmem:[#allocation8 + $0x104] ss:$24 sps:$4 sm:$0xff]   ;;  %v15912_v59 = vld [vmem:[#allocation8 + $0x100] ss:$24 sps:$4 sm:$0xff]  }
 0x314   :  { %v2551_v3 = vmul.f32 0.5, %v2539_v50  ;;  %v2557_v7 = vmul.f32 %v18280_v48, %v2545_v63  ;;  %v4958_v48 = vrot.slane %v4930_v12, %v18291_v40  ;;  %v15915_v61 = vld [vmem:[#allocation11 + $0xf0] ss:$24 sps:$4 sm:$0xff]   ;;  %v15923_v63 = vld [vmem:[#allocation11 + $0x124] ss:$24 sps:$4 sm:$0xff]  }
 0x315   :  { %v2562_v6 = vmul.f32 %v14937_v62, %v2550_v1  ;;  %v5088_v62 = vrot.slane %v5072_v13, %v18291_v40  ;;  %v15920_v50 = vld [vmem:[#allocation8 + $0x134] ss:$24 sps:$4 sm:$0xff]   ;;  %v15918_v1 = vld [vmem:[#allocation8 + $0x130] ss:$24 sps:$4 sm:$0xff]   ;;  %v15938_v11 = vld [vmem:[#allocation8 + $0x1c4] ss:$24 sps:$4 sm:$0xff]  }
 0x316   :  { %v2563_v16 = vmul.f32 %v14938_v2, %v2551_v3  ;;  %v5102_v2 = vrot.slane %v5074_v21, %v18291_v40  ;;  %v4962_v24 = vcombine.high %v4944_v60, %v4958_v48  ;;  %v4961_v28 = vcombine.low %v4944_v60, %v4958_v48  ;;  %v15921_v3 = vld [vmem:[#allocation11 + $0x120] ss:$24 sps:$4 sm:$0xff]   ;;  %v15941_v12 = vld [vmem:[#allocation11 + $0x1b4] ss:$24 sps:$4 sm:$0xff]  }
 0x317   :  { %v18311_v19 = vpack.c.bf16 %v2562_v6, %v2556_v5  ;;  %v15929_v5 = vld [vmem:[#allocation11 + $0x154] ss:$24 sps:$4 sm:$0xff]   ;;  %v15945_v48 = vld [vmem:[#allocation11 + $0x1e0] ss:$24 sps:$4 sm:$0xff]  }
 0x318   :  { %v18313_v23 = vpack.c.bf16 %v2563_v16, %v2557_v7  ;;  %v5106_v36 = vcombine.high %v5088_v62, %v5102_v2  ;;  %v5105_v27 = vcombine.low %v5088_v62, %v5102_v2  ;;  %v15924_v6 = vld [vmem:[#allocation8 + $0x160] ss:$24 sps:$4 sm:$0xff]   ;;  %v15944_v21 = vld [vmem:[#allocation8 + $0x1f4] ss:$24 sps:$4 sm:$0xff]   ;;  %v15942_v60 = vld [vmem:[#allocation8 + $0x1f0] ss:$24 sps:$4 sm:$0xff]  }
 0x319   :  { %v15927_v7 = vld [vmem:[#allocation11 + $0x150] ss:$24 sps:$4 sm:$0xff]   ;;  %v15935_v16 = vld [vmem:[#allocation11 + $0x184] ss:$24 sps:$4 sm:$0xff]   ;;  %v15953_v2 = vld [vmem:[#allocation11 + $0x214] ss:$24 sps:$4 sm:$0xff]  }
 0x31a   :  { %4448 = vmatprep.mubr.bf16.mxu1 %v18313_v23  ;;  %4577 = vmatprep.mubr.bf16.mxu0 %v18313_v23  ;;  %v18326_v33 = vpack.c.bf16 %v5106_v36, %v4962_v24  ;;  %v18328_v34 = vpack.c.bf16 %v5105_v27, %v4961_v28  ;;  %v15936_v13 = vld [vmem:[#allocation8 + $0x1c0] ss:$24 sps:$4 sm:$0xff]   ;;  %v15950_v62 = vld [vmem:[#allocation8 + $0x224] ss:$24 sps:$4 sm:$0xff]   ;;  %v15954_v36 = vld [vmem:[#allocation8 + $0x250] ss:$24 sps:$4 sm:$0xff]  }
 0x31b   :  { %4449 = vmatmul.mubr.bf16.vlgmr.msra.gmra.mrb[4].mxu1 %v18311_v19  ;;  %4578 = vmatmul.mubr.bf16.vlgmr.msra.gmra.mrb[8].mxu0 %v18311_v19  ;;  %v15948_v24 = vld [vmem:[#allocation8 + $0x220] ss:$24 sps:$4 sm:$0xff]   ;;  %v15962_v27 = vld [vmem:[#allocation8 + $0x284] ss:$24 sps:$4 sm:$0xff]  }
 0x31c   :  { %4589 = vmatpush1.bf16.msra.mxu1 %v15882_v9  ;;  %9904 = vmatpush1.bf16.msra.mxu0 %v15885_v10  ;;  %v15930_v9 = vld [vmem:[#allocation8 + $0x190] ss:$24 sps:$4 sm:$0xff]  }
 0x31d   :  { %4620 = vmatprep.mubr.bf16.mxu1 %v18258_v42  ;;  %4590 = vmatprep.subr.bf16.mxu1 %v15890_v20  ;;  %v15911_v42 = vld [vmem:[#allocation11 + $0xc4] ss:$24 sps:$4 sm:$0xff]   ;;  %v15933_v10 = vld [vmem:[#allocation11 + $0x180] ss:$24 sps:$4 sm:$0xff]   ;;  %v15939_v20 = vld [vmem:[#allocation11 + $0x1b0] ss:$24 sps:$4 sm:$0xff]  }
 0x31e   :  { %9905 = vmatprep.subr.bf16.mxu0 %v15893_v30  ;;  %9935 = vmatprep.mubr.bf16.mxu0 %v18321_v41  ;;  %v15947_v30 = vld [vmem:[#allocation11 + $0x1e4] ss:$24 sps:$4 sm:$0xff]   ;;  %v15957_v28 = vld [vmem:[#allocation11 + $0x240] ss:$24 sps:$4 sm:$0xff]  }
 0x320   :  { %4591 = vmatpush1.bf16.msra.mxu1 %v15888_v26  ;;  %9906 = vmatpush1.bf16.msra.mxu0 %v15891_v35  ;;  %v15951_v26 = vld [vmem:[#allocation11 + $0x210] ss:$24 sps:$4 sm:$0xff]  }
 0x321   :  { %4592 = vmatprep.subr.bf16.mxu1 %v15896_v17  ;;  %9907 = vmatprep.subr.bf16.mxu0 %v15899_v29  ;;  %v15956_v35 = vld [vmem:[#allocation8 + $0x254] ss:$24 sps:$4 sm:$0xff]  }
 0x322   :  { %v15959_v17 = vld [vmem:[#allocation11 + $0x244] ss:$24 sps:$4 sm:$0xff]   ;;  %v15965_v29 = vld [vmem:[#allocation11 + $0x274] ss:$24 sps:$4 sm:$0xff]  }
 0x324   :  { %4593 = vmatpush1.bf16.msra.mxu1 %v15894_v37  ;;  %9908 = vmatpush1.bf16.msra.mxu0 %v15897_v38  ;;  %v15960_v37 = vld [vmem:[#allocation8 + $0x280] ss:$24 sps:$4 sm:$0xff]  }
 0x325   :  { %4594 = vmatprep.subr.bf16.mxu1 %v15902_v39  ;;  %9909 = vmatprep.subr.bf16.mxu0 %v15905_v43  ;;  %v15963_v38 = vld [vmem:[#allocation11 + $0x270] ss:$24 sps:$4 sm:$0xff]   ;;  %v15971_v43 = vld [vmem:[#allocation11 + $0x2a4] ss:$24 sps:$4 sm:$0xff]  }
 0x326   :  { %v15968_v39 = vld [vmem:[#allocation8 + $0x2b4] ss:$24 sps:$4 sm:$0xff]  }
 0x328   :  { %4595 = vmatpush1.bf16.msra.mxu1 %v15900_v44  ;;  %9910 = vmatpush1.bf16.msra.mxu0 %v15903_v45  ;;  %v15966_v44 = vld [vmem:[#allocation8 + $0x2b0] ss:$24 sps:$4 sm:$0xff]  }
 0x329   :  { %4596 = vmatprep.subr.bf16.mxu1 %v15908_v51  ;;  %9911 = vmatprep.subr.bf16.mxu0 %v15911_v42  ;;  %v15969_v45 = vld [vmem:[#allocation11 + $0x2a0] ss:$24 sps:$4 sm:$0xff]   ;;  %v15977_v42 = vld [vmem:[#allocation11 + $0x2d4] ss:$24 sps:$4 sm:$0xff]  }
 0x32a   :  { %v15974_v51 = vld [vmem:[#allocation8 + $0x2e4] ss:$24 sps:$4 sm:$0xff]  }
 0x32c   :  { %4597 = vmatpush1.bf16.msra.mxu1 %v15906_v52  ;;  %9912 = vmatpush1.bf16.msra.mxu0 %v15909_v0  ;;  %v15972_v52 = vld [vmem:[#allocation8 + $0x2e0] ss:$24 sps:$4 sm:$0xff]  }
 0x32d   :  { %4598 = vmatprep.subr.bf16.mxu1 %v15914_v53  ;;  %9913 = vmatprep.subr.bf16.mxu0 %v15917_v58  ;;  %v15975_v0 = vld [vmem:[#allocation11 + $0x2d0] ss:$24 sps:$4 sm:$0xff]   ;;  %v15983_v58 = vld [vmem:[#allocation11 + $0x304] ss:$24 sps:$4 sm:$0xff]  }
 0x32e   :  { %v15980_v53 = vld [vmem:[#allocation8 + $0x314] ss:$24 sps:$4 sm:$0xff]  }
 0x330   :  { %4599 = vmatpush1.bf16.msra.mxu1 %v15912_v59  ;;  %9914 = vmatpush1.bf16.msra.mxu0 %v15915_v61  ;;  %v4959_v59 = vcombine.low %v18294_v56, %v18297_v57  ;;  %v5103_v61 = vcombine.low %v18300_v49, %v18303_v47  ;;  %v15986_v56 = vld [vmem:[#allocation8 + $0x344] ss:$24 sps:$4 sm:$0xff]  }
 0x331   :  { %4600 = vmatprep.subr.bf16.mxu1 %v15920_v50  ;;  %9915 = vmatprep.subr.bf16.mxu0 %v15923_v63  ;;  %v18335_v50 = vld [vmem:[#allocation2 + $0x8] sm:$0xff]  ;;  %v15989_v47 = vld [vmem:[#allocation11 + $0x334] ss:$24 sps:$4 sm:$0xff]  }
 0x332   :  { %v18337_v63 = vld [vmem:[#allocation2 + $0x28] sm:$0xff] }
 0x333   :  { %v18345_v57 = vld [vmem:[#allocation2 + $0x68] sm:$0xff] }
 0x334   :  { %4601 = vmatpush1.bf16.msra.mxu1 %v15918_v1  ;;  %9916 = vmatpush1.bf16.msra.mxu0 %v15921_v3  ;;  %v18339_v1 = vld [vmem:[#allocation2 + $0x48] sm:$0xff] }
 0x335   :  { %4602 = vmatprep.subr.bf16.mxu1 %v15926_v4  ;;  %9917 = vmatprep.subr.bf16.mxu0 %v15929_v5  ;;  %v15978_v3 = vld [vmem:[#allocation8 + $0x310] ss:$24 sps:$4 sm:$0xff]   ;;  %v4963_v4 = vcombine.low %v18335_v50, %v18337_v63 }
 0x336   :  { %v15981_v5 = vld [vmem:[#allocation11 + $0x300] ss:$24 sps:$4 sm:$0xff]  }
 0x337   :  { %v18347_v49 = vld [vmem:[#allocation2 + $0x88] sm:$0xff] }
 0x338   :  { %4603 = vmatpush1.bf16.msra.mxu1 %v15924_v6  ;;  %9918 = vmatpush1.bf16.msra.mxu0 %v15927_v7  ;;  %v18343_v6 = vpack.c.bf16 %v5103_v61, %v4959_v59  ;;  %v18349_v7 = vld [vmem:[#allocation2 + $0xa8] sm:$0xff]  ;;  %v16023_v61 = vld [vmem:[#allocation11 + $0x450] ss:$24 sps:$4 sm:$0xff]  }
 0x339   :  { %4604 = vmatprep.subr.bf16.mxu1 %v15932_v8  ;;  %9919 = vmatprep.subr.bf16.mxu0 %v15935_v16  ;;  %v18351_v8 = vld [vmem:[#allocation2 + $0xc8] sm:$0xff] }
 0x33a   :  { %v18353_v16 = vld [vmem:[#allocation2 + $0xe8] sm:$0xff] }
 0x33b   :  { %v16020_v59 = vld [vmem:[#allocation8 + $0x460] ss:$24 sps:$4 sm:$0xff]  }
 0x33c   :  { %4605 = vmatpush1.bf16.msra.mxu1 %v15930_v9  ;;  %9920 = vmatpush1.bf16.msra.mxu0 %v15933_v10  ;;  %v4965_v9 = vcombine.low %v18339_v1, %v18345_v57  ;;  %v18358_v10 = vrot.slane %v4963_v4, %v18291_v40  ;;  %v16031_v4 = vld [vmem:[#allocation11 + $0x484] ss:$24 sps:$4 sm:$0xff]  }
 0x33d   :  { %4606 = vmatprep.subr.bf16.mxu1 %v15938_v11  ;;  %9921 = vmatprep.subr.bf16.mxu0 %v15941_v12  ;;  %v5107_v11 = vcombine.low %v18347_v49, %v18349_v7  ;;  %v5109_v12 = vcombine.low %v18351_v8, %v18353_v16 }
 0x340   :  { %4607 = vmatpush1.bf16.msra.mxu1 %v15936_v13  ;;  %9922 = vmatpush1.bf16.msra.mxu0 %v15939_v20  ;;  %v18365_v13 = vrot.slane %v4965_v9, %v18291_v40  ;;  %v15984_v20 = vld [vmem:[#allocation8 + $0x340] ss:$24 sps:$4 sm:$0xff]  }
 0x341   :  { %4608 = vmatprep.subr.bf16.mxu1 %v15944_v21  ;;  %9923 = vmatprep.subr.bf16.mxu0 %v15947_v30  ;;  %v15987_v21 = vld [vmem:[#allocation11 + $0x330] ss:$24 sps:$4 sm:$0xff]   ;;  %v18370_v30 = vrot.slane %v5107_v11, %v18291_v40  ;;  %v16037_v11 = vld [vmem:[#allocation11 + $0x4b4] ss:$24 sps:$4 sm:$0xff]  }
 0x342   :  { %v16032_v9 = vld [vmem:[#allocation8 + $0x4c0] ss:$24 sps:$4 sm:$0xff]  }
 0x344   :  { %4609 = vmatpush1.bf16.msra.mxu1 %v15942_v60  ;;  %9924 = vmatpush1.bf16.msra.mxu0 %v15945_v48  ;;  %v18373_v60 = vrot.slane %v5109_v12, %v18291_v40  ;;  %v15992_v48 = vld [vmem:[#allocation8 + $0x374] ss:$24 sps:$4 sm:$0xff]  }
 0x345   :  { %4610 = vmatprep.subr.bf16.mxu1 %v15950_v62  ;;  %9925 = vmatprep.subr.bf16.mxu0 %v15953_v2  ;;  %v4995_v62 = vcombine.low %v18358_v10, %v18365_v13  ;;  %v15990_v2 = vld [vmem:[#allocation8 + $0x370] ss:$24 sps:$4 sm:$0xff]  }
 0x346   :  { %v16035_v12 = vld [vmem:[#allocation11 + $0x4b0] ss:$24 sps:$4 sm:$0xff]  }
 0x348   :  { %4611 = vmatpush1.bf16.msra.mxu1 %v15948_v24  ;;  %9926 = vmatpush1.bf16.msra.mxu0 %v15951_v26  ;;  %v15995_v24 = vld [vmem:[#allocation11 + $0x364] ss:$24 sps:$4 sm:$0xff]   ;;  %v15993_v26 = vld [vmem:[#allocation11 + $0x360] ss:$24 sps:$4 sm:$0xff]  }
 0x349   :  { %4612 = vmatprep.subr.bf16.mxu1 %v15956_v35  ;;  %9927 = vmatprep.subr.bf16.mxu0 %v15959_v17  ;;  %v15998_v35 = vld [vmem:[#allocation8 + $0x3a4] ss:$24 sps:$4 sm:$0xff]  }
 0x34c   :  { %4613 = vmatpush1.bf16.msra.mxu1 %v15954_v36  ;;  %9928 = vmatpush1.bf16.msra.mxu0 %v15957_v28  ;;  %v16001_v36 = vld [vmem:[#allocation11 + $0x394] ss:$24 sps:$4 sm:$0xff]   ;;  %v15999_v28 = vld [vmem:[#allocation11 + $0x390] ss:$24 sps:$4 sm:$0xff]  }
 0x34d   :  { %4614 = vmatprep.subr.bf16.mxu1 %v15962_v27  ;;  %9929 = vmatprep.subr.bf16.mxu0 %v15965_v29  ;;  %v16004_v27 = vld [vmem:[#allocation8 + $0x3d4] ss:$24 sps:$4 sm:$0xff]   ;;  %v16002_v29 = vld [vmem:[#allocation8 + $0x3d0] ss:$24 sps:$4 sm:$0xff]  }
 0x350   :  { %4615 = vmatpush1.bf16.msra.mxu1 %v15960_v37  ;;  %9930 = vmatpush1.bf16.msra.mxu0 %v15963_v38  ;;  %v16007_v37 = vld [vmem:[#allocation11 + $0x3c4] ss:$24 sps:$4 sm:$0xff]   ;;  %v16005_v38 = vld [vmem:[#allocation11 + $0x3c0] ss:$24 sps:$4 sm:$0xff]  }
 0x351   :  { %4616 = vmatprep.subr.bf16.mxu1 %v15968_v39  ;;  %9931 = vmatprep.subr.bf16.mxu0 %v15971_v43  ;;  %v16010_v39 = vld [vmem:[#allocation8 + $0x404] ss:$24 sps:$4 sm:$0xff]   ;;  %v16008_v43 = vld [vmem:[#allocation8 + $0x400] ss:$24 sps:$4 sm:$0xff]  }
 0x354   :  { %4617 = vmatpush1.bf16.msra.mxu1 %v15966_v44  ;;  %9932 = vmatpush1.bf16.msra.mxu0 %v15969_v45  ;;  %v16013_v44 = vld [vmem:[#allocation11 + $0x3f4] ss:$24 sps:$4 sm:$0xff]   ;;  %v16011_v45 = vld [vmem:[#allocation11 + $0x3f0] ss:$24 sps:$4 sm:$0xff]  }
 0x355   :  { %4618 = vmatprep.subr.bf16.mxu1 %v15974_v51  ;;  %9933 = vmatprep.subr.bf16.mxu0 %v15977_v42  ;;  %v16016_v51 = vld [vmem:[#allocation8 + $0x434] ss:$24 sps:$4 sm:$0xff]  }
 0x356   :  { %v16019_v42 = vld [vmem:[#allocation11 + $0x424] ss:$24 sps:$4 sm:$0xff]  }
 0x358   :  { %4619 = vmatpush1.bf16.msra.mxu1 %v15972_v52  ;;  %9934 = vmatpush1.bf16.msra.mxu0 %v15975_v0  ;;  %v16014_v52 = vld [vmem:[#allocation8 + $0x430] ss:$24 sps:$4 sm:$0xff]  }
 0x359   :  { %4631 = vmatprep.subr.bf16.mxu1 %v15980_v53  ;;  %9946 = vmatprep.subr.bf16.mxu0 %v15983_v58  ;;  %v16017_v0 = vld [vmem:[#allocation11 + $0x420] ss:$24 sps:$4 sm:$0xff]   ;;  %v16025_v58 = vld [vmem:[#allocation11 + $0x454] ss:$24 sps:$4 sm:$0xff]  }
 0x35a   :  { %v16022_v53 = vld [vmem:[#allocation8 + $0x464] ss:$24 sps:$4 sm:$0xff]  }
 0x35b   :  { %4621 = vmatmul.mubr.bf16.vlgmr.msra.gmra.mrb[8].mxu1 %v18252_v22  ;;  %9936 = vmatmul.mubr.bf16.vlgmr.msra.gmra.mrb[12].mxu0 %v18343_v6  ;;  %v5139_v22 = vcombine.low %v18370_v30, %v18373_v60 }
 0x35c   :  { %4632 = vmatpush1.bf16.msra.mxu1 %v15978_v3  ;;  %4663 = vmatprep.mubr.bf16.mxu1 %v18260_v25  ;;  %v15996_v25 = vld [vmem:[#allocation8 + $0x3a0] ss:$24 sps:$4 sm:$0xff]   ;;  %v16028_v3 = vld [vmem:[#allocation8 + $0x494] ss:$24 sps:$4 sm:$0xff]  }
 0x35d   :  { %9947 = vmatpush1.bf16.msra.mxu0 %v15981_v5  ;;  %4633 = vmatprep.subr.bf16.mxu1 %v15986_v56  ;;  %v18381_v17 = vpack.c.bf16 %v5139_v22, %v4995_v62  ;;  %v16026_v5 = vld [vmem:[#allocation8 + $0x490] ss:$24 sps:$4 sm:$0xff]   ;;  %v16046_v22 = vld [vmem:[#allocation8 + $0x524] ss:$24 sps:$4 sm:$0xff]  }
 0x35e   :  { %9948 = vmatprep.subr.bf16.mxu0 %v15989_v47  ;;  %9978 = vmatprep.mubr.bf16.mxu0 %v18326_v33  ;;  %v16029_v56 = vld [vmem:[#allocation11 + $0x480] ss:$24 sps:$4 sm:$0xff]  }
 0x35f   :  { %v16034_v47 = vld [vmem:[#allocation8 + $0x4c4] ss:$24 sps:$4 sm:$0xff]  }
 0x360   :  { %4634 = vmatpush1.bf16.msra.mxu1 %v15984_v20  ;;  %v16040_v20 = vld [vmem:[#allocation8 + $0x4f4] ss:$24 sps:$4 sm:$0xff]   ;;  %v16041_v62 = vld [vmem:[#allocation11 + $0x4e0] ss:$24 sps:$4 sm:$0xff]  }
 0x361   :  { %9949 = vmatpush1.bf16.msra.mxu0 %v15987_v21  ;;  %4635 = vmatprep.subr.bf16.mxu1 %v15992_v48  ;;  %v16038_v21 = vld [vmem:[#allocation8 + $0x4f0] ss:$24 sps:$4 sm:$0xff]  }
 0x362   :  { %9950 = vmatprep.subr.bf16.mxu0 %v15995_v24  ;;  %v16043_v48 = vld [vmem:[#allocation11 + $0x4e4] ss:$24 sps:$4 sm:$0xff]   ;;  %v16049_v24 = vld [vmem:[#allocation11 + $0x514] ss:$24 sps:$4 sm:$0xff]  }
 0x364   :  { %4636 = vmatpush1.bf16.msra.mxu1 %v15990_v2  ;;  %v16044_v2 = vld [vmem:[#allocation8 + $0x520] ss:$24 sps:$4 sm:$0xff]  }
 0x365   :  { %9951 = vmatpush1.bf16.msra.mxu0 %v15993_v26  ;;  %4637 = vmatprep.subr.bf16.mxu1 %v15998_v35  ;;  %v16047_v26 = vld [vmem:[#allocation11 + $0x510] ss:$24 sps:$4 sm:$0xff]  }
 0x366   :  { %9952 = vmatprep.subr.bf16.mxu0 %v16001_v36  ;;  %v16052_v35 = vld [vmem:[#allocation8 + $0x554] ss:$24 sps:$4 sm:$0xff]  }
 0x367   :  { %v16055_v36 = vld [vmem:[#allocation11 + $0x544] ss:$24 sps:$4 sm:$0xff]  }
 0x368   :  { %4638 = vmatpush1.bf16.msra.mxu1 %v15996_v25  ;;  %v16050_v25 = vld [vmem:[#allocation8 + $0x550] ss:$24 sps:$4 sm:$0xff]  }
 0x369   :  { %9953 = vmatpush1.bf16.msra.mxu0 %v15999_v28  ;;  %4639 = vmatprep.subr.bf16.mxu1 %v16004_v27  ;;  %v16053_v28 = vld [vmem:[#allocation11 + $0x540] ss:$24 sps:$4 sm:$0xff]  }
 0x36a   :  { %9954 = vmatprep.subr.bf16.mxu0 %v16007_v37  ;;  %v16058_v27 = vld [vmem:[#allocation8 + $0x584] ss:$24 sps:$4 sm:$0xff]  }
 0x36b   :  { %v16061_v37 = vld [vmem:[#allocation11 + $0x574] ss:$24 sps:$4 sm:$0xff]  }
 0x36c   :  { %4640 = vmatpush1.bf16.msra.mxu1 %v16002_v29  ;;  %v16056_v29 = vld [vmem:[#allocation8 + $0x580] ss:$24 sps:$4 sm:$0xff]  }
 0x36d   :  { %9955 = vmatpush1.bf16.msra.mxu0 %v16005_v38  ;;  %4641 = vmatprep.subr.bf16.mxu1 %v16010_v39  ;;  %v16059_v38 = vld [vmem:[#allocation11 + $0x570] ss:$24 sps:$4 sm:$0xff]  }
 0x36e   :  { %9956 = vmatprep.subr.bf16.mxu0 %v16013_v44  ;;  %v16064_v39 = vld [vmem:[#allocation8 + $0x5b4] ss:$24 sps:$4 sm:$0xff]  }
 0x36f   :  { %v16067_v44 = vld [vmem:[#allocation11 + $0x5a4] ss:$24 sps:$4 sm:$0xff]  }
 0x370   :  { %4642 = vmatpush1.bf16.msra.mxu1 %v16008_v43  ;;  %v16062_v43 = vld [vmem:[#allocation8 + $0x5b0] ss:$24 sps:$4 sm:$0xff]  }
 0x371   :  { %9957 = vmatpush1.bf16.msra.mxu0 %v16011_v45  ;;  %4643 = vmatprep.subr.bf16.mxu1 %v16016_v51  ;;  %v16065_v45 = vld [vmem:[#allocation11 + $0x5a0] ss:$24 sps:$4 sm:$0xff]  }
 0x372   :  { %9958 = vmatprep.subr.bf16.mxu0 %v16019_v42  ;;  %v16070_v51 = vld [vmem:[#allocation8 + $0x5e4] ss:$24 sps:$4 sm:$0xff]   ;;  %v16068_v42 = vld [vmem:[#allocation8 + $0x5e0] ss:$24 sps:$4 sm:$0xff]  }
 0x374   :  { %4644 = vmatpush1.bf16.msra.mxu1 %v16014_v52  ;;  %v16073_v52 = vld [vmem:[#allocation11 + $0x5d4] ss:$24 sps:$4 sm:$0xff]  }
 0x375   :  { %9959 = vmatpush1.bf16.msra.mxu0 %v16017_v0  ;;  %4645 = vmatprep.subr.bf16.mxu1 %v16022_v53  ;;  %v16071_v0 = vld [vmem:[#allocation11 + $0x5d0] ss:$24 sps:$4 sm:$0xff]  }
 0x376   :  { %9960 = vmatprep.subr.bf16.mxu0 %v16025_v58  ;;  %v16076_v53 = vld [vmem:[#allocation8 + $0x614] ss:$24 sps:$4 sm:$0xff]   ;;  %v4996_v58 = vcombine.high %v18358_v10, %v18365_v13 }
 0x378   :  { %4646 = vmatpush1.bf16.msra.mxu1 %v16020_v59  ;;  %v5140_v59 = vcombine.high %v18370_v30, %v18373_v60 }
 0x379   :  { %9961 = vmatpush1.bf16.msra.mxu0 %v16023_v61  ;;  %4647 = vmatprep.subr.bf16.mxu1 %v16028_v3  ;;  %v16079_v61 = vld [vmem:[#allocation11 + $0x604] ss:$24 sps:$4 sm:$0xff]   ;;  %v4964_v3 = vcombine.high %v18335_v50, %v18337_v63  ;;  %v16077_v63 = vld [vmem:[#allocation11 + $0x600] ss:$24 sps:$4 sm:$0xff]  }
 0x37a   :  { %9962 = vmatprep.subr.bf16.mxu0 %v16031_v4  ;;  %v4966_v4 = vcombine.high %v18339_v1, %v18345_v57  ;;  %v16080_v1 = vld [vmem:[#allocation8 + $0x640] ss:$24 sps:$4 sm:$0xff]   ;;  %v18399_v57 = vpack.c.bf16 %v5140_v59, %v4996_v58  ;;  %v16130_v59 = vld [vmem:[#allocation8 + $0x7c4] ss:$24 sps:$4 sm:$0xff]  }
 0x37b   :  { %v4980_v10 = vrot.slane %v4964_v3, %v18291_v40  ;;  %v16127_v58 = vld [vmem:[#allocation11 + $0x784] ss:$24 sps:$4 sm:$0xff]  }
 0x37c   :  { %4648 = vmatpush1.bf16.msra.mxu1 %v16026_v5  ;;  %v5108_v5 = vcombine.high %v18347_v49, %v18349_v7  ;;  %v4994_v13 = vrot.slane %v4966_v4, %v18291_v40  ;;  %v16128_v3 = vld [vmem:[#allocation8 + $0x7c0] ss:$24 sps:$4 sm:$0xff]  }
 0x37d   :  { %9963 = vmatpush1.bf16.msra.mxu0 %v16029_v56  ;;  %4649 = vmatprep.subr.bf16.mxu1 %v16034_v47  ;;  %v5110_v56 = vcombine.high %v18351_v8, %v18353_v16  ;;  %v16074_v47 = vld [vmem:[#allocation8 + $0x610] ss:$24 sps:$4 sm:$0xff]   ;;  %v16088_v16 = vld [vmem:[#allocation8 + $0x674] ss:$24 sps:$4 sm:$0xff]  }
 0x37e   :  { %9964 = vmatprep.subr.bf16.mxu0 %v16037_v11  ;;  %v5124_v30 = vrot.slane %v5108_v5, %v18291_v40  ;;  %v4998_v49 = vcombine.high %v4980_v10, %v4994_v13  ;;  %v16085_v8 = vld [vmem:[#allocation11 + $0x634] ss:$24 sps:$4 sm:$0xff]   ;;  %v4997_v60 = vcombine.low %v4980_v10, %v4994_v13  ;;  %v16137_v13 = vld [vmem:[#allocation11 + $0x7e0] ss:$24 sps:$4 sm:$0xff]  }
 0x37f   :  { %v5138_v50 = vrot.slane %v5110_v56, %v18291_v40  ;;  %v16133_v4 = vld [vmem:[#allocation11 + $0x7b4] ss:$24 sps:$4 sm:$0xff]   ;;  %v16131_v56 = vld [vmem:[#allocation11 + $0x7b0] ss:$24 sps:$4 sm:$0xff]  }
 0x380   :  { %4650 = vmatpush1.bf16.msra.mxu1 %v16032_v9  ;;  %v16082_v9 = vld [vmem:[#allocation8 + $0x644] ss:$24 sps:$4 sm:$0xff]   ;;  %v16136_v5 = vld [vmem:[#allocation8 + $0x7f4] ss:$24 sps:$4 sm:$0xff]  }
 0x381   :  { %9965 = vmatpush1.bf16.msra.mxu0 %v16035_v12  ;;  %4651 = vmatprep.subr.bf16.mxu1 %v16040_v20  ;;  %v5142_v7 = vcombine.high %v5124_v30, %v5138_v50  ;;  %v5141_v11 = vcombine.low %v5124_v30, %v5138_v50  ;;  %v16142_v10 = vld [vmem:[#allocation8 + $0x824] ss:$24 sps:$4 sm:$0xff]   ;;  %v16140_v30 = vld [vmem:[#allocation8 + $0x820] ss:$24 sps:$4 sm:$0xff]  }
 0x382   :  { %9966 = vmatprep.subr.bf16.mxu0 %v16043_v48  ;;  %v16086_v48 = vld [vmem:[#allocation8 + $0x670] ss:$24 sps:$4 sm:$0xff]  }
 0x383   :  { %v18403_v12 = vpack.c.bf16 %v5142_v7, %v4998_v49  ;;  %v18406_v20 = vpack.c.bf16 %v5141_v11, %v4997_v60  ;;  %v16145_v50 = vld [vmem:[#allocation11 + $0x814] ss:$24 sps:$4 sm:$0xff]   ;;  %v16151_v7 = vld [vmem:[#allocation11 + $0x844] ss:$24 sps:$4 sm:$0xff]  }
 0x384   :  { %4652 = vmatpush1.bf16.msra.mxu1 %v16038_v21  ;;  %v16083_v21 = vld [vmem:[#allocation11 + $0x630] ss:$24 sps:$4 sm:$0xff]   ;;  %v16157_v11 = vld [vmem:[#allocation11 + $0x874] ss:$24 sps:$4 sm:$0xff]  }
 0x385   :  { %9967 = vmatpush1.bf16.msra.mxu0 %v16041_v62  ;;  %4653 = vmatprep.subr.bf16.mxu1 %v16046_v22  ;;  %v16094_v62 = vld [vmem:[#allocation8 + $0x6a4] ss:$24 sps:$4 sm:$0xff]   ;;  %v16146_v49 = vld [vmem:[#allocation8 + $0x850] ss:$24 sps:$4 sm:$0xff]   ;;  %v16152_v60 = vld [vmem:[#allocation8 + $0x880] ss:$24 sps:$4 sm:$0xff]  }
 0x386   :  { %9968 = vmatprep.subr.bf16.mxu0 %v16049_v24  ;;  %v16089_v22 = vld [vmem:[#allocation11 + $0x660] ss:$24 sps:$4 sm:$0xff]   ;;  %v16100_v24 = vld [vmem:[#allocation8 + $0x6d4] ss:$24 sps:$4 sm:$0xff]  }
 0x388   :  { %4654 = vmatpush1.bf16.msra.mxu1 %v16044_v2  ;;  %v16097_v2 = vld [vmem:[#allocation11 + $0x694] ss:$24 sps:$4 sm:$0xff]  }
 0x389   :  { %9969 = vmatpush1.bf16.msra.mxu0 %v16047_v26  ;;  %4655 = vmatprep.subr.bf16.mxu1 %v16052_v35  ;;  %v16095_v26 = vld [vmem:[#allocation11 + $0x690] ss:$24 sps:$4 sm:$0xff]  }
 0x38a   :  { %9970 = vmatprep.subr.bf16.mxu0 %v16055_v36  ;;  %v16098_v35 = vld [vmem:[#allocation8 + $0x6d0] ss:$24 sps:$4 sm:$0xff]   ;;  %v16106_v36 = vld [vmem:[#allocation8 + $0x704] ss:$24 sps:$4 sm:$0xff]  }
 0x38c   :  { %4656 = vmatpush1.bf16.msra.mxu1 %v16050_v25  ;;  %v16103_v25 = vld [vmem:[#allocation11 + $0x6c4] ss:$24 sps:$4 sm:$0xff]  }
 0x38d   :  { %9971 = vmatpush1.bf16.msra.mxu0 %v16053_v28  ;;  %4657 = vmatprep.subr.bf16.mxu1 %v16058_v27  ;;  %v16101_v28 = vld [vmem:[#allocation11 + $0x6c0] ss:$24 sps:$4 sm:$0xff]  }
 0x38e   :  { %9972 = vmatprep.subr.bf16.mxu0 %v16061_v37  ;;  %v16104_v27 = vld [vmem:[#allocation8 + $0x700] ss:$24 sps:$4 sm:$0xff]   ;;  %v16112_v37 = vld [vmem:[#allocation8 + $0x734] ss:$24 sps:$4 sm:$0xff]  }
 0x390   :  { %4658 = vmatpush1.bf16.msra.mxu1 %v16056_v29  ;;  %v16109_v29 = vld [vmem:[#allocation11 + $0x6f4] ss:$24 sps:$4 sm:$0xff]  }
 0x391   :  { %9973 = vmatpush1.bf16.msra.mxu0 %v16059_v38  ;;  %4659 = vmatprep.subr.bf16.mxu1 %v16064_v39  ;;  %v16107_v38 = vld [vmem:[#allocation11 + $0x6f0] ss:$24 sps:$4 sm:$0xff]  }
 0x392   :  { %9974 = vmatprep.subr.bf16.mxu0 %v16067_v44  ;;  %v16110_v39 = vld [vmem:[#allocation8 + $0x730] ss:$24 sps:$4 sm:$0xff]   ;;  %v16118_v44 = vld [vmem:[#allocation8 + $0x764] ss:$24 sps:$4 sm:$0xff]  }
 0x394   :  { %4660 = vmatpush1.bf16.msra.mxu1 %v16062_v43  ;;  %v16115_v43 = vld [vmem:[#allocation11 + $0x724] ss:$24 sps:$4 sm:$0xff]  }
 0x395   :  { %9975 = vmatpush1.bf16.msra.mxu0 %v16065_v45  ;;  %4661 = vmatprep.subr.bf16.mxu1 %v16070_v51  ;;  %v16113_v45 = vld [vmem:[#allocation11 + $0x720] ss:$24 sps:$4 sm:$0xff]  }
 0x396   :  { %9976 = vmatprep.subr.bf16.mxu0 %v16073_v52  ;;  %v16116_v51 = vld [vmem:[#allocation8 + $0x760] ss:$24 sps:$4 sm:$0xff]   ;;  %v16124_v52 = vld [vmem:[#allocation8 + $0x794] ss:$24 sps:$4 sm:$0xff]  }
 0x398   :  { %4662 = vmatpush1.bf16.msra.mxu1 %v16068_v42  ;;  %v16121_v42 = vld [vmem:[#allocation11 + $0x754] ss:$24 sps:$4 sm:$0xff]  }
 0x399   :  { %9977 = vmatpush1.bf16.msra.mxu0 %v16071_v0  ;;  %4674 = vmatprep.subr.bf16.mxu1 %v16076_v53  ;;  %v16119_v0 = vld [vmem:[#allocation11 + $0x750] ss:$24 sps:$4 sm:$0xff]  }
 0x39a   :  { %9989 = vmatprep.subr.bf16.mxu0 %v16079_v61  ;;  %v16122_v53 = vld [vmem:[#allocation8 + $0x790] ss:$24 sps:$4 sm:$0xff]  }
 0x39b   :  { %4664 = vmatmul.mubr.bf16.vlgmr.msra.gmra.mrb[8].mxu1 %v18256_v32  ;;  %v16091_v32 = vld [vmem:[#allocation11 + $0x664] ss:$24 sps:$4 sm:$0xff]   ;;  %v16125_v61 = vld [vmem:[#allocation11 + $0x780] ss:$24 sps:$4 sm:$0xff]  }
 0x39c   :  { %4675 = vmatpush1.bf16.msra.mxu1 %v16074_v47  ;;  %4706 = vmatprep.mubr.bf16.mxu1 %v18313_v23  ;;  %v16092_v23 = vld [vmem:[#allocation8 + $0x6a0] ss:$24 sps:$4 sm:$0xff]   ;;  %v16134_v47 = vld [vmem:[#allocation8 + $0x7f0] ss:$24 sps:$4 sm:$0xff]  }
 0x39d   :  { %9979 = vmatmul.mubr.bf16.vlgmr.msra.gmra.mrb[12].mxu0 %v18328_v34  ;;  %4676 = vmatprep.subr.bf16.mxu1 %v16082_v9  ;;  %v16139_v9 = vld [vmem:[#allocation11 + $0x7e4] ss:$24 sps:$4 sm:$0xff]  }
 0x39e   :  { %9990 = vmatpush1.bf16.msra.mxu0 %v16077_v63  ;;  %10021 = vmatprep.mubr.bf16.mxu0 %v18399_v57  ;;  %v16148_v63 = vld [vmem:[#allocation8 + $0x854] ss:$24 sps:$4 sm:$0xff]  }
 0x39f   :  { %9991 = vmatprep.subr.bf16.mxu0 %v16085_v8  ;;  %v16154_v8 = vld [vmem:[#allocation8 + $0x884] ss:$24 sps:$4 sm:$0xff]  }
 0x3a0   :  { %4677 = vmatpush1.bf16.msra.mxu1 %v16080_v1  ;;  %v16143_v1 = vld [vmem:[#allocation11 + $0x810] ss:$24 sps:$4 sm:$0xff]  }
 0x3a1   :  { %4678 = vmatprep.subr.bf16.mxu1 %v16088_v16  ;;  %v16149_v16 = vld [vmem:[#allocation11 + $0x840] ss:$24 sps:$4 sm:$0xff]  }
 0x3a2   :  { %9992 = vmatpush1.bf16.msra.mxu0 %v16083_v21  ;;  %v16160_v21 = vld [vmem:[#allocation8 + $0x8b4] ss:$24 sps:$4 sm:$0xff]  }
 0x3a3   :  { %9993 = vmatprep.subr.bf16.mxu0 %v16091_v32  ;;  %v16158_v32 = vld [vmem:[#allocation8 + $0x8b0] ss:$24 sps:$4 sm:$0xff]  }
 0x3a4   :  { %4679 = vmatpush1.bf16.msra.mxu1 %v16086_v48  ;;  %v16155_v48 = vld [vmem:[#allocation11 + $0x870] ss:$24 sps:$4 sm:$0xff]  }
 0x3a5   :  { %4680 = vmatprep.subr.bf16.mxu1 %v16094_v62  ;;  %v16163_v62 = vld [vmem:[#allocation11 + $0x8a4] ss:$24 sps:$4 sm:$0xff]  }
 0x3a6   :  { %9994 = vmatpush1.bf16.msra.mxu0 %v16089_v22  ;;  %v16166_v22 = vld [vmem:[#allocation8 + $0x8e4] ss:$24 sps:$4 sm:$0xff]  }
 0x3a7   :  { %9995 = vmatprep.subr.bf16.mxu0 %v16097_v2  ;;  %v16164_v2 = vld [vmem:[#allocation8 + $0x8e0] ss:$24 sps:$4 sm:$0xff]  }
 0x3a8   :  { %4681 = vmatpush1.bf16.msra.mxu1 %v16092_v23  ;;  %v16161_v23 = vld [vmem:[#allocation11 + $0x8a0] ss:$24 sps:$4 sm:$0xff]  }
 0x3a9   :  { %4682 = vmatprep.subr.bf16.mxu1 %v16100_v24  ;;  %v16169_v24 = vld [vmem:[#allocation11 + $0x8d4] ss:$24 sps:$4 sm:$0xff]  }
 0x3aa   :  { %9996 = vmatpush1.bf16.msra.mxu0 %v16095_v26  ;;  %v16175_v26 = vld [vmem:[#allocation11 + $0xc] ss:$24 sps:$4 sm:$0xff]  }
 0x3ab   :  { %9997 = vmatprep.subr.bf16.mxu0 %v16103_v25  ;;  %v18411_v25 = vld [vmem:[#allocation2 + $0x30] sm:$0xff] }
 0x3ac   :  { %4683 = vmatpush1.bf16.msra.mxu1 %v16098_v35  ;;  %v18409_v35 = vld [vmem:[#allocation2 + $0x10] sm:$0xff] }
 0x3ad   :  { %4684 = vmatprep.subr.bf16.mxu1 %v16106_v36  ;;  %v18413_v36 = vld [vmem:[#allocation2 + $0x50] sm:$0xff] }
 0x3ae   :  { %9998 = vmatpush1.bf16.msra.mxu0 %v16101_v28  ;;  %v16167_v28 = vld [vmem:[#allocation11 + $0x8d0] ss:$24 sps:$4 sm:$0xff]  }
 0x3af   :  { %9999 = vmatprep.subr.bf16.mxu0 %v16109_v29  ;;  %v18415_v29 = vld [vmem:[#allocation2 + $0x70] sm:$0xff] }
 0x3b0   :  { %4685 = vmatpush1.bf16.msra.mxu1 %v16104_v27  ;;  %v16172_v27 = vld [vmem:[#allocation11 + $0x904] ss:$24 sps:$4 sm:$0xff]  }
 0x3b1   :  { %4686 = vmatprep.subr.bf16.mxu1 %v16112_v37  ;;  %v4999_v37 = vcombine.low %v18409_v35, %v18411_v25 }
 0x3b2   :  { %10000 = vmatpush1.bf16.msra.mxu0 %v16107_v38  ;;  %v16173_v38 = vld [vmem:[#allocation11 + $0x8] ss:$24 sps:$4 sm:$0xff]  }
 0x3b3   :  { %10001 = vmatprep.subr.bf16.mxu0 %v16115_v43  ;;  %v18419_v43 = vld [vmem:[#allocation2 + $0x90] sm:$0xff] }
 0x3b4   :  { %4687 = vmatpush1.bf16.msra.mxu1 %v16110_v39  ;;  %v16181_v39 = vld [vmem:[#allocation11 + $0x3c] ss:$24 sps:$4 sm:$0xff]  }
 0x3b5   :  { %4688 = vmatprep.subr.bf16.mxu1 %v16118_v44  ;;  %v5001_v44 = vcombine.low %v18413_v36, %v18415_v29 }
 0x3b6   :  { %10002 = vmatpush1.bf16.msra.mxu0 %v16113_v45  ;;  %v18423_v45 = vld [vmem:[#allocation2 + $0xb0] sm:$0xff] }
 0x3b7   :  { %10003 = vmatprep.subr.bf16.mxu0 %v16121_v42  ;;  %v18427_v42 = vld [vmem:[#allocation2 + $0xf0] sm:$0xff] }
 0x3b8   :  { %4689 = vmatpush1.bf16.msra.mxu1 %v16116_v51  ;;  %v18425_v51 = vld [vmem:[#allocation2 + $0xd0] sm:$0xff] }
 0x3b9   :  { %4690 = vmatprep.subr.bf16.mxu1 %v16124_v52  ;;  %v18430_v52 = vrot.slane %v4999_v37, %v18291_v40  ;;  %v16200_v37 = vld [vmem:[#allocation11 + $0x9f0] ss:$24 sps:$4 sm:$0xff]  }
 0x3ba   :  { %10004 = vmatpush1.bf16.msra.mxu0 %v16119_v0  ;;  %v18433_v0 = vrot.slane %v5001_v44, %v18291_v40 }
 0x3bb   :  { %10005 = vmatprep.subr.bf16.mxu0 %v16127_v58  ;;  %v5145_v58 = vcombine.low %v18425_v51, %v18427_v42 }
 0x3bc   :  { %4691 = vmatpush1.bf16.msra.mxu1 %v16122_v53  ;;  %v5143_v53 = vcombine.low %v18419_v43, %v18423_v45 }
 0x3bd   :  { %4692 = vmatprep.subr.bf16.mxu1 %v16130_v59  ;;  %v16170_v59 = vld [vmem:[#allocation11 + $0x900] ss:$24 sps:$4 sm:$0xff]  }
 0x3be   :  { %10006 = vmatpush1.bf16.msra.mxu0 %v16125_v61  ;;  %v16178_v61 = vld [vmem:[#allocation11 + $0x934] ss:$24 sps:$4 sm:$0xff]  }
 0x3bf   :  { %10007 = vmatprep.subr.bf16.mxu0 %v16133_v4  ;;  %v16187_v4 = vld [vmem:[#allocation11 + $0x6c] ss:$24 sps:$4 sm:$0xff]  }
 0x3c0   :  { %4693 = vmatpush1.bf16.msra.mxu1 %v16128_v3  ;;  %v16179_v3 = vld [vmem:[#allocation11 + $0x38] ss:$24 sps:$4 sm:$0xff]  }
 0x3c1   :  { %4694 = vmatprep.subr.bf16.mxu1 %v16136_v5  ;;  %v18441_v5 = vrot.slane %v5143_v53, %v18291_v40 }
 0x3c2   :  { %10008 = vmatpush1.bf16.msra.mxu0 %v16131_v56  ;;  %v18444_v56 = vrot.slane %v5145_v58, %v18291_v40  ;;  %v16208_v58 = vld [vmem:[#allocation11 + $0xa24] ss:$24 sps:$4 sm:$0xff]  }
 0x3c3   :  { %10009 = vmatprep.subr.bf16.mxu0 %v16139_v9  ;;  %v16176_v9 = vld [vmem:[#allocation11 + $0x930] ss:$24 sps:$4 sm:$0xff]  }
 0x3c4   :  { %4695 = vmatpush1.bf16.msra.mxu1 %v16134_v47  ;;  %v5031_v47 = vcombine.low %v18430_v52, %v18433_v0 }
 0x3c5   :  { %4696 = vmatprep.subr.bf16.mxu1 %v16142_v10  ;;  %v16184_v10 = vld [vmem:[#allocation11 + $0x964] ss:$24 sps:$4 sm:$0xff]  }
 0x3c6   :  { %10010 = vmatpush1.bf16.msra.mxu0 %v16137_v13  ;;  %v16185_v13 = vld [vmem:[#allocation11 + $0x68] ss:$24 sps:$4 sm:$0xff]  }
 0x3c7   :  { %10011 = vmatprep.subr.bf16.mxu0 %v16145_v50 }
 0x3c8   :  { %4697 = vmatpush1.bf16.msra.mxu1 %v16140_v30  ;;  %v16193_v30 = vld [vmem:[#allocation11 + $0x9c] ss:$24 sps:$4 sm:$0xff]  }
 0x3c9   :  { %4698 = vmatprep.subr.bf16.mxu1 %v16148_v63  ;;  %v16182_v63 = vld [vmem:[#allocation11 + $0x960] ss:$24 sps:$4 sm:$0xff]  }
 0x3ca   :  { %10012 = vmatpush1.bf16.msra.mxu0 %v16143_v1  ;;  %v16190_v1 = vld [vmem:[#allocation11 + $0x994] ss:$24 sps:$4 sm:$0xff]  }
 0x3cb   :  { %10013 = vmatprep.subr.bf16.mxu0 %v16151_v7  ;;  %v16199_v7 = vld [vmem:[#allocation11 + $0xcc] ss:$24 sps:$4 sm:$0xff]  }
 0x3cc   :  { %4699 = vmatpush1.bf16.msra.mxu1 %v16146_v49  ;;  %v16191_v49 = vld [vmem:[#allocation11 + $0x98] ss:$24 sps:$4 sm:$0xff]  }
 0x3cd   :  { %4700 = vmatprep.subr.bf16.mxu1 %v16154_v8  ;;  %v16188_v8 = vld [vmem:[#allocation11 + $0x990] ss:$24 sps:$4 sm:$0xff]  }
 0x3ce   :  { %10014 = vmatpush1.bf16.msra.mxu0 %v16149_v16  ;;  %v16196_v16 = vld [vmem:[#allocation11 + $0x9c4] ss:$24 sps:$4 sm:$0xff]  }
 0x3cf   :  { %10015 = vmatprep.subr.bf16.mxu0 %v16157_v11  ;;  %v18455_v11 = vld [vmem:[#allocation10] sm:$0x3f] }
 0x3d0   :  { %4701 = vmatpush1.bf16.msra.mxu1 %v16152_v60  ;;  %v16197_v60 = vld [vmem:[#allocation11 + $0xc8] ss:$24 sps:$4 sm:$0xff]  }
 0x3d1   :  { %4702 = vmatprep.subr.bf16.mxu1 %v16160_v21  ;;  %v16205_v21 = vld [vmem:[#allocation11 + $0xfc] ss:$24 sps:$4 sm:$0xff]  }
 0x3d2   :  { %10016 = vmatpush1.bf16.msra.mxu0 %v16155_v48  ;;  %v16194_v48 = vld [vmem:[#allocation11 + $0x9c0] ss:$24 sps:$4 sm:$0xff]  }
 0x3d3   :  { %10017 = vmatprep.subr.bf16.mxu0 %v16163_v62  ;;  %v2871_v62 = vrot.slane %v18455_v11, %v18186_v15 }
 0x3d4   :  { %4703 = vmatpush1.bf16.msra.mxu1 %v16158_v32  ;;  %v2863_v32 = vrot.slane %v18455_v11, %v18183_v14 }
 0x3d5   :  { %4704 = vmatprep.subr.bf16.mxu1 %v16166_v22  ;;  %v16202_v22 = vld [vmem:[#allocation11 + $0x9f4] ss:$24 sps:$4 sm:$0xff]  }
 0x3d6   :  { %10018 = vmatpush1.bf16.msra.mxu0 %v16161_v23  ;;  %v16203_v23 = vld [vmem:[#allocation11 + $0xf8] ss:$24 sps:$4 sm:$0xff]  }
 0x3d7   :  { %10019 = vmatprep.subr.bf16.mxu0 %v16169_v24  ;;  %v2875_v24 = vrot.slane %v18455_v11, %v18192_v18 }
 0x3d8   :  { %4705 = vmatpush1.bf16.msra.mxu1 %v16164_v2  ;;  %v2867_v2 = vrot.slane %v18455_v11, %v18189_v46 }
 0x3d9   :  { %10247 = vmatprep.subr.bf16.mxu1 %v16175_v26  ;;  %v16211_v26 = vld [vmem:[#allocation11 + $0x12c] ss:$24 sps:$4 sm:$0xff]  }
 0x3da   :  { %10020 = vmatpush1.bf16.msra.mxu0 %v16167_v28 }
 0x3db   :  { %4707 = vmatmul.mubr.bf16.vlgmr.msra.gmra.mrb[8].mxu1 %v18311_v19  ;;  %10032 = vmatprep.subr.bf16.mxu0 %v16172_v27  ;;  %v5175_v19 = vcombine.low %v18441_v5, %v18444_v56 }
 0x3dc   :  { %10248 = vmatpush1.bf16.msra.mxu1 %v16173_v38  ;;  %10279 = vmatprep.mubr.bf16.mxu1 %v18321_v41 }
 0x3dd   :  { %10022 = vmatmul.mubr.bf16.vlgmr.msra.gmra.mrb[12].mxu0 %v18381_v17  ;;  %10249 = vmatprep.subr.bf16.mxu1 %v16181_v39  ;;  %v18453_v50 = vpack.c.bf16 %v5175_v19, %v5031_v47  ;;  %v16209_v47 = vld [vmem:[#allocation11 + $0x128] ss:$24 sps:$4 sm:$0xff]  }
 0x3de   :  { %10033 = vmatpush1.bf16.msra.mxu0 %v16170_v59  ;;  %10064 = vmatprep.mubr.bf16.mxu0 %v18403_v12 }
 0x3df   :  { %10034 = vmatprep.subr.bf16.mxu0 %v16178_v61 }
 0x3e0   :  { %10250 = vmatpush1.bf16.msra.mxu1 %v16179_v3 }
 0x3e1   :  { %10251 = vmatprep.subr.bf16.mxu1 %v16187_v4 }
 0x3e2   :  { %10035 = vmatpush1.bf16.msra.mxu0 %v16176_v9 }
 0x3e3   :  { %10036 = vmatprep.subr.bf16.mxu0 %v16184_v10 }
 0x3e4   :  { %10252 = vmatpush1.bf16.msra.mxu1 %v16185_v13 }
 0x3e5   :  { %10253 = vmatprep.subr.bf16.mxu1 %v16193_v30  ;;  %v16217_v30 = vld [vmem:[#allocation11 + $0x15c] ss:$24 sps:$4 sm:$0xff]  }
 0x3e6   :  { %10037 = vmatpush1.bf16.msra.mxu0 %v16182_v63 }
 0x3e7   :  { %10038 = vmatprep.subr.bf16.mxu0 %v16190_v1 }
 0x3e8   :  { %10254 = vmatpush1.bf16.msra.mxu1 %v16191_v49 }
 0x3e9   :  { %10255 = vmatprep.subr.bf16.mxu1 %v16199_v7 }
 0x3ea   :  { %10039 = vmatpush1.bf16.msra.mxu0 %v16188_v8  ;;  %v16206_v8 = vld [vmem:[#allocation11 + $0xa20] ss:$24 sps:$4 sm:$0xff]  }
 0x3eb   :  { %10040 = vmatprep.subr.bf16.mxu0 %v16196_v16  ;;  %v16214_v16 = vld [vmem:[#allocation11 + $0xa54] ss:$24 sps:$4 sm:$0xff]  }
 0x3ec   :  { %10256 = vmatpush1.bf16.msra.mxu1 %v16197_v60 }
 0x3ed   :  { %10257 = vmatprep.subr.bf16.mxu1 %v16205_v21 }
 0x3ee   :  { %10041 = vmatpush1.bf16.msra.mxu0 %v16194_v48  ;;  %v4450_v28 = vpop.f32.mrb[4].mxu1  ;;  %v4579_v27 = vpop.f32.mrb[8].mxu0 }
 0x3ef   :  { %v14939_v38 = vadd.f32 %v4450_v28, %v2863_v32  ;;  %v14943_v39 = vadd.f32 %v4579_v27, %v2871_v62  ;;  %10042 = vmatprep.subr.bf16.mxu0 %v16202_v22  ;;  %v4452_v44 = vpop.f32.mrb[5].mxu1  ;;  %v4581_v53 = vpop.f32.mrb[9].mxu0  ;;  %v16223_v22 = vld [vmem:[#allocation11 + $0x18c] ss:$24 sps:$4 sm:$0xff]   ;;  %v16212_v28 = vld [vmem:[#allocation11 + $0xa50] ss:$24 sps:$4 sm:$0xff]  }
 0x3f0   :  { %v14940_v59 = vadd.f32 %v4452_v44, %v2867_v2  ;;  %v14944_v61 = vadd.f32 %v4581_v53, %v2875_v24  ;;  %10258 = vmatpush1.bf16.msra.mxu1 %v16203_v23  ;;  %v4454_v3 = vpop.f32.mrb[6].mxu1  ;;  %v4583_v4 = vpop.f32.mrb[10].mxu0  ;;  %v16220_v27 = vld [vmem:[#allocation11 + $0xa84] ss:$24 sps:$4 sm:$0xff]   ;;  %v16218_v53 = vld [vmem:[#allocation11 + $0xa80] ss:$24 sps:$4 sm:$0xff]  }
 0x3f1   :  { %v14941_v19 = vadd.f32 %v4454_v3, %v2863_v32  ;;  %v14945_v9 = vadd.f32 %v4583_v4, %v2871_v62  ;;  %v4456_v10 = vpop.f32.mrb[7].mxu1  ;;  %v4585_v13 = vpop.f32.mrb[11].mxu0  ;;  %10259 = vmatprep.subr.bf16.mxu1 %v16211_v26  ;;  %v16215_v62 = vld [vmem:[#allocation11 + $0x158] ss:$24 sps:$4 sm:$0xff]   ;;  %v16229_v44 = vld [vmem:[#allocation11 + $0x1bc] ss:$24 sps:$4 sm:$0xff]  }
 0x3f2   :  { %v13859_v63 = vpack.c.bf16 %v14940_v59, %v14939_v38  ;;  %v13861_v1 = vpack.c.bf16 %v14944_v61, %v14943_v39  ;;  %10043 = vmatpush1.bf16.msra.mxu0 %v16200_v37  ;;  %v14942_v49 = vadd.f32 %v4456_v10, %v2867_v2  ;;  %v14946_v7 = vadd.f32 %v4585_v13, %v2875_v24  ;;  %v16221_v39 = vld [vmem:[#allocation11 + $0x188] ss:$24 sps:$4 sm:$0xff]   ;;  %v16227_v59 = vld [vmem:[#allocation11 + $0x1b8] ss:$24 sps:$4 sm:$0xff]   ;;  %v16235_v61 = vld [vmem:[#allocation11 + $0x1ec] ss:$24 sps:$4 sm:$0xff]  }
 0x3f3   :  { %10044 = vmatprep.subr.bf16.mxu0 %v16208_v58  ;;  %v16226_v58 = vld [vmem:[#allocation11 + $0xab4] ss:$24 sps:$4 sm:$0xff]   ;;  %v16224_v3 = vld [vmem:[#allocation11 + $0xab0] ss:$24 sps:$4 sm:$0xff]   ;;  %v16232_v4 = vld [vmem:[#allocation11 + $0xae4] ss:$24 sps:$4 sm:$0xff]  }
 0x3f4   :  { %v18466_v60 = vrot.slane %v13859_v63, %v18094_v55  ;;  %v18469_v21 = vrot.slane %v13861_v1, %v18094_v55  ;;  %v13860_v48 = vpack.c.bf16 %v14942_v49, %v14941_v19  ;;  %v13862_v32 = vpack.c.bf16 %v14946_v7, %v14945_v9  ;;  %10260 = vmatpush1.bf16.msra.mxu1 %v16209_v47  ;;  %v16233_v47 = vld [vmem:[#allocation11 + $0x1e8] ss:$24 sps:$4 sm:$0xff]   ;;  %v16241_v19 = vld [vmem:[#allocation11 + $0x21c] ss:$24 sps:$4 sm:$0xff]   ;;  %v16239_v13 = vld [vmem:[#allocation11 + $0x218] ss:$24 sps:$4 sm:$0xff]  }
 0x3f5   :  { %10261 = vmatprep.subr.bf16.mxu1 %v16217_v30  ;;  %v16230_v9 = vld [vmem:[#allocation11 + $0xae0] ss:$24 sps:$4 sm:$0xff]   ;;  %v16238_v10 = vld [vmem:[#allocation11 + $0xb14] ss:$24 sps:$4 sm:$0xff]   ;;  %v16236_v63 = vld [vmem:[#allocation11 + $0xb10] ss:$24 sps:$4 sm:$0xff]  }
 0x3f6   :  { %v4777_v23 = vcombine.low %v18466_v60, %v18469_v21  ;;  %v4778_v2 = vcombine.high %v18466_v60, %v18469_v21  ;;  %v18476_v24 = vrot.slane %v13860_v48, %v18094_v55  ;;  %v18479_v26 = vrot.slane %v13862_v32, %v18094_v55  ;;  %10045 = vmatpush1.bf16.msra.mxu0 %v16206_v8  ;;  %v16247_v30 = vld [vmem:[#allocation11 + $0x24c] ss:$24 sps:$4 sm:$0xff]   ;;  %v16245_v49 = vld [vmem:[#allocation11 + $0x248] ss:$24 sps:$4 sm:$0xff]   ;;  %v16253_v7 = vld [vmem:[#allocation11 + $0x27c] ss:$24 sps:$4 sm:$0xff]  }
 0x3f7   :  { %10046 = vmatprep.subr.bf16.mxu0 %v16214_v16  ;;  %v16244_v1 = vld [vmem:[#allocation11 + $0xb44] ss:$24 sps:$4 sm:$0xff]   ;;  %v16242_v8 = vld [vmem:[#allocation11 + $0xb40] ss:$24 sps:$4 sm:$0xff]   ;;  %v16250_v16 = vld [vmem:[#allocation11 + $0xb74] ss:$24 sps:$4 sm:$0xff]  }
 0x3f8   :  { %v4779_v37 = vcombine.low %v18476_v24, %v18479_v26  ;;  %v4780_v38 = vcombine.high %v18476_v24, %v18479_v26  ;;  %10262 = vmatpush1.bf16.msra.mxu1 %v16215_v62  ;;  %v16251_v48 = vld [vmem:[#allocation11 + $0x278] ss:$24 sps:$4 sm:$0xff]   ;;  %v16259_v32 = vld [vmem:[#allocation11 + $0x2ac] ss:$24 sps:$4 sm:$0xff]  }
 0x3f9   :  { %10263 = vmatprep.subr.bf16.mxu1 %v16223_v22  ;;  %v16248_v62 = vld [vmem:[#allocation11 + $0xb70] ss:$24 sps:$4 sm:$0xff]   ;;  %v16256_v22 = vld [vmem:[#allocation11 + $0xba4] ss:$24 sps:$4 sm:$0xff]  }
 0x3fa   :  { %10047 = vmatpush1.bf16.msra.mxu0 %v16212_v28  ;;  %v16257_v28 = vld [vmem:[#allocation11 + $0x2a8] ss:$24 sps:$4 sm:$0xff]   ;;  %v4810_v60 = vrot.slane %v4780_v38, %v18094_v55  ;;  %v16523_v24 = vld [vmem:[#allocation11 + $0xaec] ss:$24 sps:$4 sm:$0xff]  }
 0x3fb   :  { %10048 = vmatprep.subr.bf16.mxu0 %v16220_v27  ;;  %v16265_v27 = vld [vmem:[#allocation11 + $0x2dc] ss:$24 sps:$4 sm:$0xff]   ;;  %v16512_v26 = vld [vmem:[#allocation11 + $0x13b0] ss:$24 sps:$4 sm:$0xff]  }
 0x3fc   :  { %10264 = vmatpush1.bf16.msra.mxu1 %v16221_v39  ;;  %v16254_v39 = vld [vmem:[#allocation11 + $0xba0] ss:$24 sps:$4 sm:$0xff]   ;;  %v16520_v38 = vld [vmem:[#allocation11 + $0x13e4] ss:$24 sps:$4 sm:$0xff]  }
 0x3fd   :  { %10265 = vmatprep.subr.bf16.mxu1 %v16229_v44  ;;  %v16262_v44 = vld [vmem:[#allocation11 + $0xbd4] ss:$24 sps:$4 sm:$0xff]  }
 0x3fe   :  { %10049 = vmatpush1.bf16.msra.mxu0 %v16218_v53  ;;  %v16263_v53 = vld [vmem:[#allocation11 + $0x2d8] ss:$24 sps:$4 sm:$0xff]  }
 0x3ff   :  { %10050 = vmatprep.subr.bf16.mxu0 %v16226_v58  ;;  %v16271_v58 = vld [vmem:[#allocation11 + $0x30c] ss:$24 sps:$4 sm:$0xff]  }
 0x400   :  { %10266 = vmatpush1.bf16.msra.mxu1 %v16227_v59  ;;  %v5032_v59 = vcombine.high %v18430_v52, %v18433_v0  ;;  %v16269_v52 = vld [vmem:[#allocation11 + $0x308] ss:$24 sps:$4 sm:$0xff]  }
 0x401   :  { %10267 = vmatprep.subr.bf16.mxu1 %v16235_v61  ;;  %v5176_v61 = vcombine.high %v18441_v5, %v18444_v56 }
 0x402   :  { %10051 = vmatpush1.bf16.msra.mxu0 %v16224_v3  ;;  %v16260_v3 = vld [vmem:[#allocation11 + $0xbd0] ss:$24 sps:$4 sm:$0xff]  }
 0x403   :  { %10052 = vmatprep.subr.bf16.mxu0 %v16232_v4  ;;  %v5000_v4 = vcombine.high %v18409_v35, %v18411_v25  ;;  %v16277_v25 = vld [vmem:[#allocation11 + $0x33c] ss:$24 sps:$4 sm:$0xff]  }
 0x404   :  { %10268 = vmatpush1.bf16.msra.mxu1 %v16233_v47  ;;  %v5002_v47 = vcombine.high %v18413_v36, %v18415_v29  ;;  %v16266_v36 = vld [vmem:[#allocation11 + $0xc00] ss:$24 sps:$4 sm:$0xff]   ;;  %v18501_v29 = vpack.c.bf16 %v5176_v61, %v5032_v59  ;;  %v16298_v59 = vld [vmem:[#allocation11 + $0xcf4] ss:$24 sps:$4 sm:$0xff]  }
 0x405   :  { %10269 = vmatprep.subr.bf16.mxu1 %v16241_v19  ;;  %v5144_v19 = vcombine.high %v18419_v43, %v18423_v45  ;;  %v5016_v0 = vrot.slane %v5000_v4, %v18291_v40  ;;  %v16299_v61 = vld [vmem:[#allocation11 + $0x3f8] ss:$24 sps:$4 sm:$0xff]  }
 0x406   :  { %10053 = vmatpush1.bf16.msra.mxu0 %v16230_v9  ;;  %v5146_v9 = vcombine.high %v18425_v51, %v18427_v42  ;;  %v5030_v5 = vrot.slane %v5002_v47, %v18291_v40  ;;  %v16274_v51 = vld [vmem:[#allocation11 + $0xc34] ss:$24 sps:$4 sm:$0xff]   ;;  %v16296_v4 = vld [vmem:[#allocation11 + $0xcf0] ss:$24 sps:$4 sm:$0xff]   ;;  %v16304_v47 = vld [vmem:[#allocation11 + $0xd24] ss:$24 sps:$4 sm:$0xff]  }
 0x407   :  { %10054 = vmatprep.subr.bf16.mxu0 %v16238_v10  ;;  %v16268_v10 = vld [vmem:[#allocation11 + $0xc04] ss:$24 sps:$4 sm:$0xff]   ;;  %v5160_v56 = vrot.slane %v5144_v19, %v18291_v40  ;;  %v16305_v19 = vld [vmem:[#allocation11 + $0x428] ss:$24 sps:$4 sm:$0xff]  }
 0x408   :  { %10270 = vmatpush1.bf16.msra.mxu1 %v16239_v13  ;;  %v5174_v35 = vrot.slane %v5146_v9, %v18291_v40  ;;  %v5034_v43 = vcombine.high %v5016_v0, %v5030_v5  ;;  %v5033_v42 = vcombine.low %v5016_v0, %v5030_v5  ;;  %v16313_v9 = vld [vmem:[#allocation11 + $0x45c] ss:$24 sps:$4 sm:$0xff]   ;;  %v16311_v0 = vld [vmem:[#allocation11 + $0x458] ss:$24 sps:$4 sm:$0xff]   ;;  %v16319_v5 = vld [vmem:[#allocation11 + $0x48c] ss:$24 sps:$4 sm:$0xff]  }
 0x409   :  { %10271 = vmatprep.subr.bf16.mxu1 %v16247_v30  ;;  %v16275_v30 = vld [vmem:[#allocation11 + $0x338] ss:$24 sps:$4 sm:$0xff]  }
 0x40a   :  { %10055 = vmatpush1.bf16.msra.mxu0 %v16236_v63  ;;  %v5178_v45 = vcombine.high %v5160_v56, %v5174_v35  ;;  %v5177_v13 = vcombine.low %v5160_v56, %v5174_v35  ;;  %v16308_v56 = vld [vmem:[#allocation11 + $0xd50] ss:$24 sps:$4 sm:$0xff]   ;;  %v16316_v35 = vld [vmem:[#allocation11 + $0xd84] ss:$24 sps:$4 sm:$0xff]  }
 0x40b   :  { %10056 = vmatprep.subr.bf16.mxu0 %v16244_v1  ;;  %v16283_v1 = vld [vmem:[#allocation11 + $0x36c] ss:$24 sps:$4 sm:$0xff]  }
 0x40c   :  { %10272 = vmatpush1.bf16.msra.mxu1 %v16245_v49  ;;  %v18505_v63 = vpack.c.bf16 %v5178_v45, %v5034_v43  ;;  %v18508_v49 = vpack.c.bf16 %v5177_v13, %v5033_v42  ;;  %v16314_v43 = vld [vmem:[#allocation11 + $0xd80] ss:$24 sps:$4 sm:$0xff]   ;;  %v16322_v45 = vld [vmem:[#allocation11 + $0xdb4] ss:$24 sps:$4 sm:$0xff]   ;;  %v16320_v13 = vld [vmem:[#allocation11 + $0xdb0] ss:$24 sps:$4 sm:$0xff]  }
 0x40d   :  { %10273 = vmatprep.subr.bf16.mxu1 %v16253_v7  ;;  %v16272_v7 = vld [vmem:[#allocation11 + $0xc30] ss:$24 sps:$4 sm:$0xff]   ;;  %v16331_v42 = vld [vmem:[#allocation11 + $0x4ec] ss:$24 sps:$4 sm:$0xff]  }
 0x40e   :  { %10057 = vmatpush1.bf16.msra.mxu0 %v16242_v8  ;;  %v16280_v8 = vld [vmem:[#allocation11 + $0xc64] ss:$24 sps:$4 sm:$0xff]  }
 0x40f   :  { %10058 = vmatprep.subr.bf16.mxu0 %v16250_v16  ;;  %v16281_v16 = vld [vmem:[#allocation11 + $0x368] ss:$24 sps:$4 sm:$0xff]  }
 0x410   :  { %10274 = vmatpush1.bf16.msra.mxu1 %v16251_v48  ;;  %v16289_v48 = vld [vmem:[#allocation11 + $0x39c] ss:$24 sps:$4 sm:$0xff]  }
 0x411   :  { %10275 = vmatprep.subr.bf16.mxu1 %v16259_v32  ;;  %v16278_v32 = vld [vmem:[#allocation11 + $0xc60] ss:$24 sps:$4 sm:$0xff]  }
 0x412   :  { %10059 = vmatpush1.bf16.msra.mxu0 %v16248_v62  ;;  %v16286_v62 = vld [vmem:[#allocation11 + $0xc94] ss:$24 sps:$4 sm:$0xff]  }
 0x413   :  { %10060 = vmatprep.subr.bf16.mxu0 %v16256_v22  ;;  %v16287_v22 = vld [vmem:[#allocation11 + $0x398] ss:$24 sps:$4 sm:$0xff]  }
 0x414   :  { %10276 = vmatpush1.bf16.msra.mxu1 %v16257_v28  ;;  %v16295_v28 = vld [vmem:[#allocation11 + $0x3cc] ss:$24 sps:$4 sm:$0xff]  }
 0x415   :  { %10277 = vmatprep.subr.bf16.mxu1 %v16265_v27  ;;  %v16284_v27 = vld [vmem:[#allocation11 + $0xc90] ss:$24 sps:$4 sm:$0xff]  }
 0x416   :  { %10061 = vmatpush1.bf16.msra.mxu0 %v16254_v39  ;;  %v16292_v39 = vld [vmem:[#allocation11 + $0xcc4] ss:$24 sps:$4 sm:$0xff]  }
 0x417   :  { %10062 = vmatprep.subr.bf16.mxu0 %v16262_v44  ;;  %v16293_v44 = vld [vmem:[#allocation11 + $0x3c8] ss:$24 sps:$4 sm:$0xff]  }
 0x418   :  { %10278 = vmatpush1.bf16.msra.mxu1 %v16263_v53  ;;  %v16301_v53 = vld [vmem:[#allocation11 + $0x3fc] ss:$24 sps:$4 sm:$0xff]  }
 0x419   :  { %10290 = vmatprep.subr.bf16.mxu1 %v16271_v58  ;;  %v16290_v58 = vld [vmem:[#allocation11 + $0xcc0] ss:$24 sps:$4 sm:$0xff]  }
 0x41a   :  { %10063 = vmatpush1.bf16.msra.mxu0 %v16260_v3  ;;  %v16307_v3 = vld [vmem:[#allocation11 + $0x42c] ss:$24 sps:$4 sm:$0xff]  }
 0x41b   :  { %10075 = vmatprep.subr.bf16.mxu0 %v16268_v10  ;;  %10280 = vmatmul.mubr.bf16.vlgmr.msra.gmra.mrb[12].mxu1 %v18343_v6  ;;  %v16302_v10 = vld [vmem:[#allocation11 + $0xd20] ss:$24 sps:$4 sm:$0xff]  }
 0x41c   :  { %10291 = vmatpush1.bf16.msra.mxu1 %v16269_v52  ;;  %10322 = vmatprep.mubr.bf16.mxu1 %v18326_v33  ;;  %v16310_v52 = vld [vmem:[#allocation11 + $0xd54] ss:$24 sps:$4 sm:$0xff]  }
 0x41d   :  { %10065 = vmatmul.mubr.bf16.vlgmr.msra.gmra.mrb[12].mxu0 %v18406_v20  ;;  %10292 = vmatprep.subr.bf16.mxu1 %v16277_v25  ;;  %v16317_v25 = vld [vmem:[#allocation11 + $0x488] ss:$24 sps:$4 sm:$0xff]  }
 0x41e   :  { %10076 = vmatpush1.bf16.msra.mxu0 %v16266_v36  ;;  %10107 = vmatprep.mubr.bf16.mxu0 %v18501_v29  ;;  %v16325_v36 = vld [vmem:[#allocation11 + $0x4bc] ss:$24 sps:$4 sm:$0xff]  }
 0x41f   :  { %10077 = vmatprep.subr.bf16.mxu0 %v16274_v51  ;;  %v16323_v51 = vld [vmem:[#allocation11 + $0x4b8] ss:$24 sps:$4 sm:$0xff]  }
 0x420   :  { %10293 = vmatpush1.bf16.msra.mxu1 %v16275_v30  ;;  %v16328_v30 = vld [vmem:[#allocation11 + $0xde4] ss:$24 sps:$4 sm:$0xff]  }
 0x421   :  { %10294 = vmatprep.subr.bf16.mxu1 %v16283_v1  ;;  %v16329_v1 = vld [vmem:[#allocation11 + $0x4e8] ss:$24 sps:$4 sm:$0xff]  }
 0x422   :  { %10078 = vmatpush1.bf16.msra.mxu0 %v16272_v7  ;;  %v16337_v7 = vld [vmem:[#allocation11 + $0x51c] ss:$24 sps:$4 sm:$0xff]  }
 0x423   :  { %10079 = vmatprep.subr.bf16.mxu0 %v16280_v8  ;;  %v16326_v8 = vld [vmem:[#allocation11 + $0xde0] ss:$24 sps:$4 sm:$0xff]  }
 0x424   :  { %10295 = vmatpush1.bf16.msra.mxu1 %v16281_v16  ;;  %v16334_v16 = vld [vmem:[#allocation11 + $0xe14] ss:$24 sps:$4 sm:$0xff]  }
 0x425   :  { %10296 = vmatprep.subr.bf16.mxu1 %v16289_v48  ;;  %v16335_v48 = vld [vmem:[#allocation11 + $0x518] ss:$24 sps:$4 sm:$0xff]  }
 0x426   :  { %10080 = vmatpush1.bf16.msra.mxu0 %v16278_v32  ;;  %v16343_v32 = vld [vmem:[#allocation11 + $0x54c] ss:$24 sps:$4 sm:$0xff]  }
 0x427   :  { %10081 = vmatprep.subr.bf16.mxu0 %v16286_v62  ;;  %v16332_v62 = vld [vmem:[#allocation11 + $0xe10] ss:$24 sps:$4 sm:$0xff]  }
 0x428   :  { %10297 = vmatpush1.bf16.msra.mxu1 %v16287_v22  ;;  %v16340_v22 = vld [vmem:[#allocation11 + $0xe44] ss:$24 sps:$4 sm:$0xff]  }
 0x429   :  { %10298 = vmatprep.subr.bf16.mxu1 %v16295_v28  ;;  %v16341_v28 = vld [vmem:[#allocation11 + $0x548] ss:$24 sps:$4 sm:$0xff]  }
 0x42a   :  { %10082 = vmatpush1.bf16.msra.mxu0 %v16284_v27  ;;  %v16349_v27 = vld [vmem:[#allocation11 + $0x57c] ss:$24 sps:$4 sm:$0xff]  }
 0x42b   :  { %10083 = vmatprep.subr.bf16.mxu0 %v16292_v39  ;;  %v16338_v39 = vld [vmem:[#allocation11 + $0xe40] ss:$24 sps:$4 sm:$0xff]  }
 0x42c   :  { %10299 = vmatpush1.bf16.msra.mxu1 %v16293_v44  ;;  %v16346_v44 = vld [vmem:[#allocation11 + $0xe74] ss:$24 sps:$4 sm:$0xff]  }
 0x42d   :  { %10300 = vmatprep.subr.bf16.mxu1 %v16301_v53  ;;  %v16347_v53 = vld [vmem:[#allocation11 + $0x578] ss:$24 sps:$4 sm:$0xff]  }
 0x42e   :  { %10084 = vmatpush1.bf16.msra.mxu0 %v16290_v58  ;;  %v16355_v58 = vld [vmem:[#allocation11 + $0x5ac] ss:$24 sps:$4 sm:$0xff]  }
 0x42f   :  { %10085 = vmatprep.subr.bf16.mxu0 %v16298_v59  ;;  %v16344_v59 = vld [vmem:[#allocation11 + $0xe70] ss:$24 sps:$4 sm:$0xff]  }
 0x430   :  { %10301 = vmatpush1.bf16.msra.mxu1 %v16299_v61  ;;  %v16352_v61 = vld [vmem:[#allocation11 + $0xea4] ss:$24 sps:$4 sm:$0xff]  }
 0x431   :  { %10302 = vmatprep.subr.bf16.mxu1 %v16307_v3  ;;  %v16353_v3 = vld [vmem:[#allocation11 + $0x5a8] ss:$24 sps:$4 sm:$0xff]  }
 0x432   :  { %10086 = vmatpush1.bf16.msra.mxu0 %v16296_v4  ;;  %v16361_v4 = vld [vmem:[#allocation11 + $0x5dc] ss:$24 sps:$4 sm:$0xff]  }
 0x433   :  { %10087 = vmatprep.subr.bf16.mxu0 %v16304_v47  ;;  %v16350_v47 = vld [vmem:[#allocation11 + $0xea0] ss:$24 sps:$4 sm:$0xff]  }
 0x434   :  { %10303 = vmatpush1.bf16.msra.mxu1 %v16305_v19  ;;  %v16358_v19 = vld [vmem:[#allocation11 + $0xed4] ss:$24 sps:$4 sm:$0xff]  }
 0x435   :  { %10304 = vmatprep.subr.bf16.mxu1 %v16313_v9  ;;  %v16359_v9 = vld [vmem:[#allocation11 + $0x5d8] ss:$24 sps:$4 sm:$0xff]  }
 0x436   :  { %10088 = vmatpush1.bf16.msra.mxu0 %v16302_v10  ;;  %v16367_v10 = vld [vmem:[#allocation11 + $0x60c] ss:$24 sps:$4 sm:$0xff]  }
 0x437   :  { %10089 = vmatprep.subr.bf16.mxu0 %v16310_v52  ;;  %v18511_v52 = vld [vmem:[#allocation2 + $0x18] sm:$0xff] }
 0x438   :  { %10305 = vmatpush1.bf16.msra.mxu1 %v16311_v0  ;;  %v18513_v0 = vld [vmem:[#allocation2 + $0x38] sm:$0xff] }
 0x439   :  { %10306 = vmatprep.subr.bf16.mxu1 %v16319_v5  ;;  %v18515_v5 = vld [vmem:[#allocation2 + $0x58] sm:$0xff] }
 0x43a   :  { %10090 = vmatpush1.bf16.msra.mxu0 %v16308_v56  ;;  %v16356_v56 = vld [vmem:[#allocation11 + $0xed0] ss:$24 sps:$4 sm:$0xff]  }
 0x43b   :  { %10091 = vmatprep.subr.bf16.mxu0 %v16316_v35  ;;  %v18517_v35 = vld [vmem:[#allocation2 + $0x78] sm:$0xff] }
 0x43c   :  { %10307 = vmatpush1.bf16.msra.mxu1 %v16317_v25  ;;  %v5035_v25 = vcombine.low %v18511_v52, %v18513_v0 }
 0x43d   :  { %10308 = vmatprep.subr.bf16.mxu1 %v16325_v36  ;;  %v16364_v36 = vld [vmem:[#allocation11 + $0xf04] ss:$24 sps:$4 sm:$0xff]  }
 0x43e   :  { %10092 = vmatpush1.bf16.msra.mxu0 %v16314_v43  ;;  %v16365_v43 = vld [vmem:[#allocation11 + $0x608] ss:$24 sps:$4 sm:$0xff]  }
 0x43f   :  { %10093 = vmatprep.subr.bf16.mxu0 %v16322_v45  ;;  %v18521_v45 = vld [vmem:[#allocation2 + $0x98] sm:$0xff] }
 0x440   :  { %10309 = vmatpush1.bf16.msra.mxu1 %v16323_v51  ;;  %v5037_v51 = vcombine.low %v18515_v5, %v18517_v35 }
 0x441   :  { %10310 = vmatprep.subr.bf16.mxu1 %v16331_v42  ;;  %v18525_v42 = vld [vmem:[#allocation2 + $0xb8] sm:$0xff] }
 0x442   :  { %10094 = vmatpush1.bf16.msra.mxu0 %v16320_v13  ;;  %v18527_v13 = vld [vmem:[#allocation2 + $0xd8] sm:$0xff] }
 0x443   :  { %10095 = vmatprep.subr.bf16.mxu0 %v16328_v30  ;;  %v18529_v30 = vld [vmem:[#allocation2 + $0xf8] sm:$0xff] }
 0x444   :  { %10311 = vmatpush1.bf16.msra.mxu1 %v16329_v1  ;;  %v18532_v1 = vrot.slane %v5035_v25, %v18291_v40  ;;  %v16388_v25 = vld [vmem:[#allocation11 + $0xfc4] ss:$24 sps:$4 sm:$0xff]  }
 0x445   :  { %10312 = vmatprep.subr.bf16.mxu1 %v16337_v7  ;;  %v16373_v7 = vld [vmem:[#allocation11 + $0x63c] ss:$24 sps:$4 sm:$0xff]  }
 0x446   :  { %10096 = vmatpush1.bf16.msra.mxu0 %v16326_v8  ;;  %v18535_v8 = vrot.slane %v5037_v51, %v18291_v40  ;;  %v16386_v51 = vld [vmem:[#allocation11 + $0xfc0] ss:$24 sps:$4 sm:$0xff]  }
 0x447   :  { %10097 = vmatprep.subr.bf16.mxu0 %v16334_v16  ;;  %v5179_v16 = vcombine.low %v18521_v45, %v18525_v42 }
 0x448   :  { %10313 = vmatpush1.bf16.msra.mxu1 %v16335_v48  ;;  %v5181_v48 = vcombine.low %v18527_v13, %v18529_v30 }
 0x449   :  { %10314 = vmatprep.subr.bf16.mxu1 %v16343_v32  ;;  %v16362_v32 = vld [vmem:[#allocation11 + $0xf00] ss:$24 sps:$4 sm:$0xff]  }
 0x44a   :  { %10098 = vmatpush1.bf16.msra.mxu0 %v16332_v62  ;;  %v16370_v62 = vld [vmem:[#allocation11 + $0xf34] ss:$24 sps:$4 sm:$0xff]  }
 0x44b   :  { %10099 = vmatprep.subr.bf16.mxu0 %v16340_v22  ;;  %v18543_v22 = vrot.slane %v5179_v16, %v18291_v40  ;;  %v16395_v16 = vld [vmem:[#allocation11 + $0x6f8] ss:$24 sps:$4 sm:$0xff]  }
 0x44c   :  { %10315 = vmatpush1.bf16.msra.mxu1 %v16341_v28  ;;  %v18546_v28 = vrot.slane %v5181_v48, %v18291_v40  ;;  %v16403_v48 = vld [vmem:[#allocation11 + $0x72c] ss:$24 sps:$4 sm:$0xff]  }
 0x44d   :  { %10316 = vmatprep.subr.bf16.mxu1 %v16349_v27  ;;  %v16371_v27 = vld [vmem:[#allocation11 + $0x638] ss:$24 sps:$4 sm:$0xff]  }
 0x44e   :  { %10100 = vmatpush1.bf16.msra.mxu0 %v16338_v39  ;;  %v5067_v39 = vcombine.low %v18532_v1, %v18535_v8 }
 0x44f   :  { %10101 = vmatprep.subr.bf16.mxu0 %v16346_v44  ;;  %v16379_v44 = vld [vmem:[#allocation11 + $0x66c] ss:$24 sps:$4 sm:$0xff]  }
 0x450   :  { %10317 = vmatpush1.bf16.msra.mxu1 %v16347_v53  ;;  %v5211_v53 = vcombine.low %v18543_v22, %v18546_v28 }
 0x451   :  { %10318 = vmatprep.subr.bf16.mxu1 %v16355_v58  ;;  %v16368_v58 = vld [vmem:[#allocation11 + $0xf30] ss:$24 sps:$4 sm:$0xff]  }
 0x452   :  { %10102 = vmatpush1.bf16.msra.mxu0 %v16344_v59  ;;  %v16376_v59 = vld [vmem:[#allocation11 + $0xf64] ss:$24 sps:$4 sm:$0xff]  }
 0x453   :  { %10103 = vmatprep.subr.bf16.mxu0 %v16352_v61  ;;  %v18555_v61 = vpack.c.bf16 %v5211_v53, %v5067_v39  ;;  %v16409_v39 = vld [vmem:[#allocation11 + $0x75c] ss:$24 sps:$4 sm:$0xff]  }
 0x454   :  { %10319 = vmatpush1.bf16.msra.mxu1 %v16353_v3  ;;  %v16377_v3 = vld [vmem:[#allocation11 + $0x668] ss:$24 sps:$4 sm:$0xff]   ;;  %v16406_v53 = vld [vmem:[#allocation11 + $0x1054] ss:$24 sps:$4 sm:$0xff]  }
 0x455   :  { %10320 = vmatprep.subr.bf16.mxu1 %v16361_v4  ;;  %v16385_v4 = vld [vmem:[#allocation11 + $0x69c] ss:$24 sps:$4 sm:$0xff]  }
 0x456   :  { %10104 = vmatpush1.bf16.msra.mxu0 %v16350_v47  ;;  %v16374_v47 = vld [vmem:[#allocation11 + $0xf60] ss:$24 sps:$4 sm:$0xff]  }
 0x457   :  { %10105 = vmatprep.subr.bf16.mxu0 %v16358_v19  ;;  %v16382_v19 = vld [vmem:[#allocation11 + $0xf94] ss:$24 sps:$4 sm:$0xff]  }
 0x458   :  { %10321 = vmatpush1.bf16.msra.mxu1 %v16359_v9  ;;  %v16383_v9 = vld [vmem:[#allocation11 + $0x698] ss:$24 sps:$4 sm:$0xff]  }
 0x459   :  { %10333 = vmatprep.subr.bf16.mxu1 %v16367_v10  ;;  %v16391_v10 = vld [vmem:[#allocation11 + $0x6cc] ss:$24 sps:$4 sm:$0xff]  }
 0x45a   :  { %10106 = vmatpush1.bf16.msra.mxu0 %v16356_v56  ;;  %v16380_v56 = vld [vmem:[#allocation11 + $0xf90] ss:$24 sps:$4 sm:$0xff]  }
 0x45b   :  { %10118 = vmatprep.subr.bf16.mxu0 %v16364_v36  ;;  %10323 = vmatmul.mubr.bf16.vlgmr.msra.gmra.mrb[12].mxu1 %v18328_v34  ;;  %v16389_v36 = vld [vmem:[#allocation11 + $0x6c8] ss:$24 sps:$4 sm:$0xff]  }
 0x45c   :  { %10334 = vmatpush1.bf16.msra.mxu1 %v16365_v43  ;;  %10365 = vmatprep.mubr.bf16.mxu1 %v18399_v57  ;;  %v16397_v43 = vld [vmem:[#allocation11 + $0x6fc] ss:$24 sps:$4 sm:$0xff]  }
 0x45d   :  { %10108 = vmatmul.mubr.bf16.vlgmr.msra.gmra.mrb[12].mxu0 %v18453_v50  ;;  %10335 = vmatprep.subr.bf16.mxu1 %v16373_v7  ;;  %v16394_v7 = vld [vmem:[#allocation11 + $0xff4] ss:$24 sps:$4 sm:$0xff]  }
 0x45e   :  { %10119 = vmatpush1.bf16.msra.mxu0 %v16362_v32  ;;  %10150 = vmatprep.mubr.bf16.mxu0 %v18505_v63  ;;  %v16392_v32 = vld [vmem:[#allocation11 + $0xff0] ss:$24 sps:$4 sm:$0xff]  }
 0x45f   :  { %10120 = vmatprep.subr.bf16.mxu0 %v16370_v62  ;;  %v16400_v62 = vld [vmem:[#allocation11 + $0x1024] ss:$24 sps:$4 sm:$0xff]  }
 0x460   :  { %10336 = vmatpush1.bf16.msra.mxu1 %v16371_v27  ;;  %v16401_v27 = vld [vmem:[#allocation11 + $0x728] ss:$24 sps:$4 sm:$0xff]  }
 0x461   :  { %10337 = vmatprep.subr.bf16.mxu1 %v16379_v44  ;;  %v16398_v44 = vld [vmem:[#allocation11 + $0x1020] ss:$24 sps:$4 sm:$0xff]  }
 0x462   :  { %10121 = vmatpush1.bf16.msra.mxu0 %v16368_v58  ;;  %v16407_v58 = vld [vmem:[#allocation11 + $0x758] ss:$24 sps:$4 sm:$0xff]  }
 0x463   :  { %10122 = vmatprep.subr.bf16.mxu0 %v16376_v59  ;;  %v16415_v59 = vld [vmem:[#allocation11 + $0x78c] ss:$24 sps:$4 sm:$0xff]  }
 0x464   :  { %10338 = vmatpush1.bf16.msra.mxu1 %v16377_v3  ;;  %v16404_v3 = vld [vmem:[#allocation11 + $0x1050] ss:$24 sps:$4 sm:$0xff]  }
 0x465   :  { %10339 = vmatprep.subr.bf16.mxu1 %v16385_v4  ;;  %v16412_v4 = vld [vmem:[#allocation11 + $0x1084] ss:$24 sps:$4 sm:$0xff]  }
 0x466   :  { %10123 = vmatpush1.bf16.msra.mxu0 %v16374_v47  ;;  %v16413_v47 = vld [vmem:[#allocation11 + $0x788] ss:$24 sps:$4 sm:$0xff]  }
 0x467   :  { %10124 = vmatprep.subr.bf16.mxu0 %v16382_v19  ;;  %v16421_v19 = vld [vmem:[#allocation11 + $0x7bc] ss:$24 sps:$4 sm:$0xff]  }
 0x468   :  { %10340 = vmatpush1.bf16.msra.mxu1 %v16383_v9  ;;  %v16410_v9 = vld [vmem:[#allocation11 + $0x1080] ss:$24 sps:$4 sm:$0xff]  }
 0x469   :  { %10341 = vmatprep.subr.bf16.mxu1 %v16391_v10  ;;  %v16418_v10 = vld [vmem:[#allocation11 + $0x10b4] ss:$24 sps:$4 sm:$0xff]  }
 0x46a   :  { %10125 = vmatpush1.bf16.msra.mxu0 %v16380_v56  ;;  %v16419_v56 = vld [vmem:[#allocation11 + $0x7b8] ss:$24 sps:$4 sm:$0xff]  }
 0x46b   :  { %10126 = vmatprep.subr.bf16.mxu0 %v16388_v25  ;;  %v16427_v25 = vld [vmem:[#allocation11 + $0x7ec] ss:$24 sps:$4 sm:$0xff]  }
 0x46c   :  { %10342 = vmatpush1.bf16.msra.mxu1 %v16389_v36  ;;  %v16416_v36 = vld [vmem:[#allocation11 + $0x10b0] ss:$24 sps:$4 sm:$0xff]  }
 0x46d   :  { %10343 = vmatprep.subr.bf16.mxu1 %v16397_v43  ;;  %v16424_v43 = vld [vmem:[#allocation11 + $0x10e4] ss:$24 sps:$4 sm:$0xff]  }
 0x46e   :  { %10127 = vmatpush1.bf16.msra.mxu0 %v16386_v51  ;;  %v16425_v51 = vld [vmem:[#allocation11 + $0x7e8] ss:$24 sps:$4 sm:$0xff]  }
 0x46f   :  { %10128 = vmatprep.subr.bf16.mxu0 %v16394_v7  ;;  %v16433_v7 = vld [vmem:[#allocation11 + $0x81c] ss:$24 sps:$4 sm:$0xff]  }
 0x470   :  { %10344 = vmatpush1.bf16.msra.mxu1 %v16395_v16  ;;  %v16422_v16 = vld [vmem:[#allocation11 + $0x10e0] ss:$24 sps:$4 sm:$0xff]  }
 0x471   :  { %10345 = vmatprep.subr.bf16.mxu1 %v16403_v48  ;;  %v16430_v48 = vld [vmem:[#allocation11 + $0x1114] ss:$24 sps:$4 sm:$0xff]  }
 0x472   :  { %10129 = vmatpush1.bf16.msra.mxu0 %v16392_v32  ;;  %v16431_v32 = vld [vmem:[#allocation11 + $0x818] ss:$24 sps:$4 sm:$0xff]  }
 0x473   :  { %10130 = vmatprep.subr.bf16.mxu0 %v16400_v62  ;;  %v16439_v62 = vld [vmem:[#allocation11 + $0x84c] ss:$24 sps:$4 sm:$0xff]  }
 0x474   :  { %10346 = vmatpush1.bf16.msra.mxu1 %v16401_v27  ;;  %v16428_v27 = vld [vmem:[#allocation11 + $0x1110] ss:$24 sps:$4 sm:$0xff]  }
 0x475   :  { %10347 = vmatprep.subr.bf16.mxu1 %v16409_v39  ;;  %v16436_v39 = vld [vmem:[#allocation11 + $0x1144] ss:$24 sps:$4 sm:$0xff]  }
 0x476   :  { %10131 = vmatpush1.bf16.msra.mxu0 %v16398_v44  ;;  %v16437_v44 = vld [vmem:[#allocation11 + $0x848] ss:$24 sps:$4 sm:$0xff]  }
 0x477   :  { %10132 = vmatprep.subr.bf16.mxu0 %v16406_v53  ;;  %v16445_v53 = vld [vmem:[#allocation11 + $0x87c] ss:$24 sps:$4 sm:$0xff]  }
 0x478   :  { %10348 = vmatpush1.bf16.msra.mxu1 %v16407_v58  ;;  %v16434_v58 = vld [vmem:[#allocation11 + $0x1140] ss:$24 sps:$4 sm:$0xff]  }
 0x479   :  { %10349 = vmatprep.subr.bf16.mxu1 %v16415_v59  ;;  %v16442_v59 = vld [vmem:[#allocation11 + $0x1174] ss:$24 sps:$4 sm:$0xff]  }
 0x47a   :  { %10133 = vmatpush1.bf16.msra.mxu0 %v16404_v3  ;;  %v16443_v3 = vld [vmem:[#allocation11 + $0x878] ss:$24 sps:$4 sm:$0xff]  }
 0x47b   :  { %10134 = vmatprep.subr.bf16.mxu0 %v16412_v4  ;;  %v16451_v4 = vld [vmem:[#allocation11 + $0x8ac] ss:$24 sps:$4 sm:$0xff]  }
 0x47c   :  { %10350 = vmatpush1.bf16.msra.mxu1 %v16413_v47  ;;  %v16440_v47 = vld [vmem:[#allocation11 + $0x1170] ss:$24 sps:$4 sm:$0xff]  }
 0x47d   :  { %10351 = vmatprep.subr.bf16.mxu1 %v16421_v19  ;;  %v16448_v19 = vld [vmem:[#allocation11 + $0x11a4] ss:$24 sps:$4 sm:$0xff]  }
 0x47e   :  { %10135 = vmatpush1.bf16.msra.mxu0 %v16410_v9  ;;  %v16449_v9 = vld [vmem:[#allocation11 + $0x8a8] ss:$24 sps:$4 sm:$0xff]  }
 0x47f   :  { %10136 = vmatprep.subr.bf16.mxu0 %v16418_v10  ;;  %v16457_v10 = vld [vmem:[#allocation11 + $0x8dc] ss:$24 sps:$4 sm:$0xff]  }
 0x480   :  { %10352 = vmatpush1.bf16.msra.mxu1 %v16419_v56  ;;  %v16446_v56 = vld [vmem:[#allocation11 + $0x11a0] ss:$24 sps:$4 sm:$0xff]  }
 0x481   :  { %10353 = vmatprep.subr.bf16.mxu1 %v16427_v25  ;;  %v16454_v25 = vld [vmem:[#allocation11 + $0x11d4] ss:$24 sps:$4 sm:$0xff]  }
 0x482   :  { %10137 = vmatpush1.bf16.msra.mxu0 %v16416_v36  ;;  %v16455_v36 = vld [vmem:[#allocation11 + $0x8d8] ss:$24 sps:$4 sm:$0xff]  }
 0x483   :  { %10138 = vmatprep.subr.bf16.mxu0 %v16424_v43  ;;  %v16463_v43 = vld [vmem:[#allocation11 + $0x90c] ss:$24 sps:$4 sm:$0xff]  }
 0x484   :  { %10354 = vmatpush1.bf16.msra.mxu1 %v16425_v51  ;;  %v5036_v51 = vcombine.high %v18511_v52, %v18513_v0 }
 0x485   :  { %10355 = vmatprep.subr.bf16.mxu1 %v16433_v7  ;;  %v5038_v7 = vcombine.high %v18515_v5, %v18517_v35 }
 0x486   :  { %10139 = vmatpush1.bf16.msra.mxu0 %v16422_v16  ;;  %v5180_v16 = vcombine.high %v18521_v45, %v18525_v42  ;;  %v5052_v52 = vrot.slane %v5036_v51, %v18291_v40  ;;  %v16461_v45 = vld [vmem:[#allocation11 + $0x908] ss:$24 sps:$4 sm:$0xff]   ;;  %v16469_v42 = vld [vmem:[#allocation11 + $0x93c] ss:$24 sps:$4 sm:$0xff]  }
 0x487   :  { %10140 = vmatprep.subr.bf16.mxu0 %v16430_v48  ;;  %v5182_v48 = vcombine.high %v18527_v13, %v18529_v30  ;;  %v5066_v0 = vrot.slane %v5038_v7, %v18291_v40  ;;  %v16485_v51 = vld [vmem:[#allocation11 + $0x9c8] ss:$24 sps:$4 sm:$0xff]   ;;  %v16493_v7 = vld [vmem:[#allocation11 + $0x9fc] ss:$24 sps:$4 sm:$0xff]  }
 0x488   :  { %10356 = vmatpush1.bf16.msra.mxu1 %v16431_v32  ;;  %v16452_v32 = vld [vmem:[#allocation11 + $0x11d0] ss:$24 sps:$4 sm:$0xff]   ;;  %v5196_v5 = vrot.slane %v5180_v16, %v18291_v40  ;;  %v16482_v16 = vld [vmem:[#allocation11 + $0x12c0] ss:$24 sps:$4 sm:$0xff]  }
 0x489   :  { %10357 = vmatprep.subr.bf16.mxu1 %v16439_v62  ;;  %v5068_v62 = vcombine.high %v18532_v1, %v18535_v8  ;;  %v5210_v35 = vrot.slane %v5182_v48, %v18291_v40  ;;  %v5070_v13 = vcombine.high %v5052_v52, %v5066_v0  ;;  %v16458_v1 = vld [vmem:[#allocation11 + $0x1200] ss:$24 sps:$4 sm:$0xff]   ;;  %v2879_v48 = vrot.slane %v18455_v11, %v18271_v54 }
 0x48a   :  { %10141 = vmatpush1.bf16.msra.mxu0 %v16428_v27  ;;  %v5212_v27 = vcombine.high %v18543_v22, %v18546_v28  ;;  %v5069_v22 = vcombine.low %v5052_v52, %v5066_v0  ;;  %v16467_v40 = vld [vmem:[#allocation11 + $0x938] ss:$24 sps:$4 sm:$0xff]  }
 0x48b   :  { %10142 = vmatprep.subr.bf16.mxu0 %v16436_v39  ;;  %v16460_v39 = vld [vmem:[#allocation11 + $0x1204] ss:$24 sps:$4 sm:$0xff]   ;;  %v5214_v30 = vcombine.high %v5196_v5, %v5210_v35  ;;  %v5213_v28 = vcombine.low %v5196_v5, %v5210_v35  ;;  %v16488_v0 = vld [vmem:[#allocation11 + $0x12f0] ss:$24 sps:$4 sm:$0xff]  }
 0x48c   :  { %10358 = vmatpush1.bf16.msra.mxu1 %v16437_v44  ;;  %v18573_v8 = vpack.c.bf16 %v5212_v27, %v5068_v62  ;;  %v16466_v44 = vld [vmem:[#allocation11 + $0x1234] ss:$24 sps:$4 sm:$0xff]   ;;  %v2883_v62 = vrot.slane %v18455_v11, %v18274_v31  ;;  %v16491_v27 = vld [vmem:[#allocation11 + $0x9f8] ss:$24 sps:$4 sm:$0xff]  }
 0x48d   :  { %10359 = vmatprep.subr.bf16.mxu1 %v16445_v53  ;;  %v18576_v53 = vpack.c.bf16 %v5214_v30, %v5070_v13  ;;  %v16497_v30 = vld [vmem:[#allocation11 + $0xa28] ss:$24 sps:$4 sm:$0xff]  }
 0x48e   :  { %10143 = vmatpush1.bf16.msra.mxu0 %v16434_v58  ;;  %v18579_v58 = vpack.c.bf16 %v5213_v28, %v5069_v22  ;;  %v16505_v28 = vld [vmem:[#allocation11 + $0xa5c] ss:$24 sps:$4 sm:$0xff]  }
 0x48f   :  { %10144 = vmatprep.subr.bf16.mxu0 %v16442_v59  ;;  %v16475_v59 = vld [vmem:[#allocation11 + $0x96c] ss:$24 sps:$4 sm:$0xff]  }
 0x490   :  { %10360 = vmatpush1.bf16.msra.mxu1 %v16443_v3  ;;  %v16464_v3 = vld [vmem:[#allocation11 + $0x1230] ss:$24 sps:$4 sm:$0xff]  }
 0x491   :  { %10361 = vmatprep.subr.bf16.mxu1 %v16451_v4  ;;  %v16472_v4 = vld [vmem:[#allocation11 + $0x1264] ss:$24 sps:$4 sm:$0xff]  }
 0x492   :  { %10145 = vmatpush1.bf16.msra.mxu0 %v16440_v47  ;;  %v16473_v47 = vld [vmem:[#allocation11 + $0x968] ss:$24 sps:$4 sm:$0xff]  }
 0x493   :  { %10146 = vmatprep.subr.bf16.mxu0 %v16448_v19  ;;  %v16481_v19 = vld [vmem:[#allocation11 + $0x99c] ss:$24 sps:$4 sm:$0xff]  }
 0x494   :  { %10362 = vmatpush1.bf16.msra.mxu1 %v16449_v9  ;;  %v16470_v9 = vld [vmem:[#allocation11 + $0x1260] ss:$24 sps:$4 sm:$0xff]  }
 0x495   :  { %10363 = vmatprep.subr.bf16.mxu1 %v16457_v10  ;;  %v16478_v10 = vld [vmem:[#allocation11 + $0x1294] ss:$24 sps:$4 sm:$0xff]  }
 0x496   :  { %10147 = vmatpush1.bf16.msra.mxu0 %v16446_v56  ;;  %v16479_v56 = vld [vmem:[#allocation11 + $0x998] ss:$24 sps:$4 sm:$0xff]  }
 0x497   :  { %10148 = vmatprep.subr.bf16.mxu0 %v16454_v25  ;;  %v16487_v25 = vld [vmem:[#allocation11 + $0x9cc] ss:$24 sps:$4 sm:$0xff]  }
 0x498   :  { %10364 = vmatpush1.bf16.msra.mxu1 %v16455_v36  ;;  %v16476_v36 = vld [vmem:[#allocation11 + $0x1290] ss:$24 sps:$4 sm:$0xff]  }
 0x499   :  { %10376 = vmatprep.subr.bf16.mxu1 %v16463_v43  ;;  %v16484_v43 = vld [vmem:[#allocation11 + $0x12c4] ss:$24 sps:$4 sm:$0xff]  }
 0x49a   :  { %10149 = vmatpush1.bf16.msra.mxu0 %v16452_v32  ;;  %v16490_v32 = vld [vmem:[#allocation11 + $0x12f4] ss:$24 sps:$4 sm:$0xff]  }
 0x49b   :  { %10161 = vmatprep.subr.bf16.mxu0 %v16460_v39  ;;  %10366 = vmatmul.mubr.bf16.vlgmr.msra.gmra.mrb[12].mxu1 %v18381_v17  ;;  %v16499_v39 = vld [vmem:[#allocation11 + $0xa2c] ss:$24 sps:$4 sm:$0xff]  }
 0x49c   :  { %10377 = vmatpush1.bf16.msra.mxu1 %v16461_v45  ;;  %10408 = vmatprep.mubr.bf16.mxu1 %v18403_v12  ;;  %v16496_v45 = vld [vmem:[#allocation11 + $0x1324] ss:$24 sps:$4 sm:$0xff]  }
 0x49d   :  { %10151 = vmatmul.mubr.bf16.vlgmr.msra.gmra.mrb[12].mxu0 %v18508_v49  ;;  %10378 = vmatprep.subr.bf16.mxu1 %v16469_v42 }
 0x49e   :  { %10162 = vmatpush1.bf16.msra.mxu0 %v16458_v1  ;;  %10193 = vmatprep.mubr.bf16.mxu0 %v18573_v8 }
 0x49f   :  { %10163 = vmatprep.subr.bf16.mxu0 %v16466_v44 }
 0x4a0   :  { %10379 = vmatpush1.bf16.msra.mxu1 %v16467_v40  ;;  %v16494_v40 = vld [vmem:[#allocation11 + $0x1320] ss:$24 sps:$4 sm:$0xff]  }
 0x4a1   :  { %10380 = vmatprep.subr.bf16.mxu1 %v16475_v59  ;;  %v16502_v59 = vld [vmem:[#allocation11 + $0x1354] ss:$24 sps:$4 sm:$0xff]  }
 0x4a2   :  { %10164 = vmatpush1.bf16.msra.mxu0 %v16464_v3 }
 0x4a3   :  { %10165 = vmatprep.subr.bf16.mxu0 %v16472_v4 }
 0x4a4   :  { %10381 = vmatpush1.bf16.msra.mxu1 %v16473_v47  ;;  %v16503_v47 = vld [vmem:[#allocation11 + $0xa58] ss:$24 sps:$4 sm:$0xff]  }
 0x4a5   :  { %10382 = vmatprep.subr.bf16.mxu1 %v16481_v19  ;;  %v16511_v19 = vld [vmem:[#allocation11 + $0xa8c] ss:$24 sps:$4 sm:$0xff]  }
 0x4a6   :  { %10166 = vmatpush1.bf16.msra.mxu0 %v16470_v9  ;;  %v4789_v9 = vrot.slane %v4777_v23, %v18094_v55  ;;  %v16509_v23 = vld [vmem:[#allocation11 + $0xa88] ss:$24 sps:$4 sm:$0xff]  }
 0x4a7   :  { %10167 = vmatprep.subr.bf16.mxu0 %v16478_v10 }
 0x4a8   :  { %10383 = vmatpush1.bf16.msra.mxu1 %v16479_v56 }
 0x4a9   :  { %10384 = vmatprep.subr.bf16.mxu1 %v16487_v25 }
 0x4aa   :  { %10168 = vmatpush1.bf16.msra.mxu0 %v16476_v36  ;;  %v16500_v36 = vld [vmem:[#allocation11 + $0x1350] ss:$24 sps:$4 sm:$0xff]  }
 0x4ab   :  { %10169 = vmatprep.subr.bf16.mxu0 %v16484_v43  ;;  %v4803_v43 = vrot.slane %v4778_v2, %v18094_v55 }
 0x4ac   :  { %10385 = vmatpush1.bf16.msra.mxu1 %v16485_v51  ;;  %v16508_v51 = vld [vmem:[#allocation11 + $0x1384] ss:$24 sps:$4 sm:$0xff]  }
 0x4ad   :  { %10386 = vmatprep.subr.bf16.mxu1 %v16493_v7 }
 0x4ae   :  { %10170 = vmatpush1.bf16.msra.mxu0 %v16482_v16  ;;  %v4708_v52 = vpop.f32.mrb[8].mxu1 }
 0x4af   :  { %v14947_v5 = vadd.f32 %v4708_v52, %v2879_v48  ;;  %v4710_v35 = vpop.f32.mrb[9].mxu1  ;;  %10171 = vmatprep.subr.bf16.mxu0 %v16490_v32 }
 0x4b0   :  { %v14948_v42 = vadd.f32 %v4710_v35, %v2883_v62  ;;  %v4712_v13 = vpop.f32.mrb[10].mxu1  ;;  %10387 = vmatpush1.bf16.msra.mxu1 %v16491_v27 }
 0x4b1   :  { %v14949_v1 = vadd.f32 %v4712_v13, %v2879_v48  ;;  %v4714_v22 = vpop.f32.mrb[11].mxu1  ;;  %10388 = vmatprep.subr.bf16.mxu1 %v16499_v39  ;;  %v16517_v39 = vld [vmem:[#allocation11 + $0xabc] ss:$24 sps:$4 sm:$0xff]   ;;  %v16515_v13 = vld [vmem:[#allocation11 + $0xab8] ss:$24 sps:$4 sm:$0xff]  }
 0x4b2   :  { %v13863_v44 = vpack.c.bf16 %v14948_v42, %v14947_v5  ;;  %10172 = vmatpush1.bf16.msra.mxu0 %v16488_v0  ;;  %v14950_v11 = vadd.f32 %v4714_v22, %v2883_v62  ;;  %v4796_v62 = vrot.slane %v4779_v37, %v18094_v55  ;;  %v16506_v0 = vld [vmem:[#allocation11 + $0x1380] ss:$24 sps:$4 sm:$0xff]   ;;  %v16514_v37 = vld [vmem:[#allocation11 + $0x13b4] ss:$24 sps:$4 sm:$0xff]  }
 0x4b3   :  { %10173 = vmatprep.subr.bf16.mxu0 %v16496_v45  ;;  %v16518_v22 = vld [vmem:[#allocation11 + $0x13e0] ss:$24 sps:$4 sm:$0xff]  }
 0x4b4   :  { %v4769_v3 = vrot.slane %v13863_v44, %v18094_v55  ;;  %v13864_v4 = vpack.c.bf16 %v14950_v11, %v14949_v1  ;;  %10389 = vmatpush1.bf16.msra.mxu1 %v16497_v30  ;;  %v16521_v30 = vld [vmem:[#allocation11 + $0xae8] ss:$24 sps:$4 sm:$0xff]   ;;  %v16529_v1 = vld [vmem:[#allocation11 + $0xb1c] ss:$24 sps:$4 sm:$0xff]   ;;  %v16527_v44 = vld [vmem:[#allocation11 + $0xb18] ss:$24 sps:$4 sm:$0xff]  }
 0x4b5   :  { %10390 = vmatprep.subr.bf16.mxu1 %v16505_v28  ;;  %v16526_v28 = vld [vmem:[#allocation11 + $0x1414] ss:$24 sps:$4 sm:$0xff]  }
 0x4b6   :  { %v4781_v10 = vcombine.high %v4769_v3, %v4769_v3  ;;  %v4817_v56 = vrot.slane %v4769_v3, %v18094_v55  ;;  %v4776_v25 = vrot.slane %v13864_v4, %v18094_v55  ;;  %10174 = vmatpush1.bf16.msra.mxu0 %v16494_v40  ;;  %v16535_v11 = vld [vmem:[#allocation11 + $0xb4c] ss:$24 sps:$4 sm:$0xff]   ;;  %v16524_v40 = vld [vmem:[#allocation11 + $0x1410] ss:$24 sps:$4 sm:$0xff]   ;;  %v16541_v4 = vld [vmem:[#allocation11 + $0xb7c] ss:$24 sps:$4 sm:$0xff]  }
 0x4b7   :  { %10175 = vmatprep.subr.bf16.mxu0 %v16502_v59  ;;  %v16532_v59 = vld [vmem:[#allocation11 + $0x1444] ss:$24 sps:$4 sm:$0xff]   ;;  %v16533_v3 = vld [vmem:[#allocation11 + $0xb48] ss:$24 sps:$4 sm:$0xff]  }
 0x4b8   :  { %v4831_v7 = vrot.slane %v4781_v10, %v18094_v55  ;;  %v4839_v16 = vcombine.low %v4789_v9, %v4817_v56  ;;  %v4840_v48 = vcombine.high %v4789_v9, %v4817_v56  ;;  %v4782_v32 = vcombine.high %v4776_v25, %v4776_v25  ;;  %10391 = vmatpush1.bf16.msra.mxu1 %v16503_v47  ;;  %v16530_v47 = vld [vmem:[#allocation11 + $0x1440] ss:$24 sps:$4 sm:$0xff]   ;;  %v16547_v10 = vld [vmem:[#allocation11 + $0xbac] ss:$24 sps:$4 sm:$0xff]   ;;  %v16536_v56 = vld [vmem:[#allocation11 + $0x1470] ss:$24 sps:$4 sm:$0xff]  }
 0x4b9   :  { %v4824_v27 = vrot.slane %v4776_v25, %v18094_v55  ;;  %10392 = vmatprep.subr.bf16.mxu1 %v16511_v19  ;;  %v16538_v19 = vld [vmem:[#allocation11 + $0x1474] ss:$24 sps:$4 sm:$0xff]   ;;  %v16539_v9 = vld [vmem:[#allocation11 + $0xb78] ss:$24 sps:$4 sm:$0xff]   ;;  %v16544_v25 = vld [vmem:[#allocation11 + $0x14a4] ss:$24 sps:$4 sm:$0xff]  }
 0x4ba   :  { %v4843_v21 = vcombine.low %v4803_v43, %v4831_v7  ;;  %v4844_v2 = vcombine.high %v4803_v43, %v4831_v7  ;;  %4855 = vst [vmem:[#allocation17] sm:$0x3f] %v4839_v16  ;;  %4857 = vst [vmem:[#allocation17 + $0xc] sm:$0x3f] %v4840_v48  ;;  %v4838_v52 = vrot.slane %v4782_v32, %v18094_v55  ;;  %10176 = vmatpush1.bf16.msra.mxu0 %v16500_v36  ;;  %v16545_v36 = vld [vmem:[#allocation11 + $0xba8] ss:$24 sps:$4 sm:$0xff]  }
 0x4bb   :  { %v4841_v5 = vcombine.low %v4796_v62, %v4824_v27  ;;  %v4842_v35 = vcombine.high %v4796_v62, %v4824_v27  ;;  %10177 = vmatprep.subr.bf16.mxu0 %v16508_v51  ;;  %v16553_v43 = vld [vmem:[#allocation11 + $0xbdc] ss:$24 sps:$4 sm:$0xff]   ;;  %v16542_v51 = vld [vmem:[#allocation11 + $0x14a0] ss:$24 sps:$4 sm:$0xff]   ;;  %v16559_v48 = vld [vmem:[#allocation11 + $0xc0c] ss:$24 sps:$4 sm:$0xff]  }
 0x4bc   :  { %4856 = vst [vmem:[#allocation17 + $0x6] sm:$0x3f] %v4843_v21  ;;  %4858 = vst [vmem:[#allocation17 + $0x12] sm:$0x3f] %v4844_v2  ;;  %v4845_v45 = vcombine.low %v4810_v60, %v4838_v52  ;;  %v4846_v42 = vcombine.high %v4810_v60, %v4838_v52  ;;  %10393 = vmatpush1.bf16.msra.mxu1 %v16509_v23  ;;  %v16550_v7 = vld [vmem:[#allocation11 + $0x14d4] ss:$24 sps:$4 sm:$0xff]  }
 0x4bd   :  { %4859 = vst [vmem:[#allocation17 + $0x18] sm:$0x3f] %v4841_v5  ;;  %4861 = vst [vmem:[#allocation17 + $0x24] sm:$0x3f] %v4842_v35  ;;  %10394 = vmatprep.subr.bf16.mxu1 %v16517_v39  ;;  %v16551_v16 = vld [vmem:[#allocation11 + $0xbd8] ss:$24 sps:$4 sm:$0xff]  }
 0x4be   :  { %4860 = vst [vmem:[#allocation17 + $0x1e] sm:$0x3f] %v4845_v45  ;;  %4862 = vst [vmem:[#allocation17 + $0x2a] sm:$0x3f] %v4846_v42  ;;  %10178 = vmatpush1.bf16.msra.mxu0 %v16506_v0  ;;  %v16548_v32 = vld [vmem:[#allocation11 + $0x14d0] ss:$24 sps:$4 sm:$0xff]  }
 0x4bf   :  { %10179 = vmatprep.subr.bf16.mxu0 %v16514_v37  ;;  %v16556_v23 = vld [vmem:[#allocation11 + $0x1504] ss:$24 sps:$4 sm:$0xff]   ;;  %v16557_v62 = vld [vmem:[#allocation11 + $0xc08] ss:$24 sps:$4 sm:$0xff]   ;;  %v16562_v60 = vld [vmem:[#allocation11 + $0x1534] ss:$24 sps:$4 sm:$0xff]  }
 0x4c0   :  { %10395 = vmatpush1.bf16.msra.mxu1 %v16515_v13  ;;  %v16565_v27 = vld [vmem:[#allocation11 + $0xc3c] ss:$24 sps:$4 sm:$0xff]   ;;  %v16554_v39 = vld [vmem:[#allocation11 + $0x1500] ss:$24 sps:$4 sm:$0xff]   ;;  %v16571_v2 = vld [vmem:[#allocation11 + $0xc6c] ss:$24 sps:$4 sm:$0xff]  }
 0x4c1   :  { %10396 = vmatprep.subr.bf16.mxu1 %v16523_v24  ;;  %v16563_v21 = vld [vmem:[#allocation11 + $0xc38] ss:$24 sps:$4 sm:$0xff]   ;;  %v16568_v0 = vld [vmem:[#allocation11 + $0x1564] ss:$24 sps:$4 sm:$0xff]   ;;  %v16569_v5 = vld [vmem:[#allocation11 + $0xc68] ss:$24 sps:$4 sm:$0xff]  }
 0x4c2   :  { %10180 = vmatpush1.bf16.msra.mxu0 %v16512_v26  ;;  %v16560_v52 = vld [vmem:[#allocation11 + $0x1530] ss:$24 sps:$4 sm:$0xff]   ;;  %v16577_v35 = vld [vmem:[#allocation11 + $0xc9c] ss:$24 sps:$4 sm:$0xff]   ;;  %v16566_v37 = vld [vmem:[#allocation11 + $0x1560] ss:$24 sps:$4 sm:$0xff]  }
 0x4c3   :  { %10181 = vmatprep.subr.bf16.mxu0 %v16520_v38  ;;  %v16574_v45 = vld [vmem:[#allocation11 + $0x1594] ss:$24 sps:$4 sm:$0xff]   ;;  %v16575_v42 = vld [vmem:[#allocation11 + $0xc98] ss:$24 sps:$4 sm:$0xff]   ;;  %v16580_v26 = vld [vmem:[#allocation11 + $0x15c4] ss:$24 sps:$4 sm:$0xff]  }
 0x4c4   :  { %10397 = vmatpush1.bf16.msra.mxu1 %v16521_v30  ;;  %v16583_v13 = vld [vmem:[#allocation11 + $0xccc] ss:$24 sps:$4 sm:$0xff]   ;;  %v16572_v24 = vld [vmem:[#allocation11 + $0x1590] ss:$24 sps:$4 sm:$0xff]   ;;  %v16589_v30 = vld [vmem:[#allocation11 + $0xcfc] ss:$24 sps:$4 sm:$0xff]  }
 0x4c5   :  { %10398 = vmatprep.subr.bf16.mxu1 %v16529_v1  ;;  %v16581_v38 = vld [vmem:[#allocation11 + $0xcc8] ss:$24 sps:$4 sm:$0xff]  }
 0x4c6   :  { %10182 = vmatpush1.bf16.msra.mxu0 %v16518_v22  ;;  %v16578_v1 = vld [vmem:[#allocation11 + $0x15c0] ss:$24 sps:$4 sm:$0xff]   ;;  %v16586_v22 = vld [vmem:[#allocation11 + $0x15f4] ss:$24 sps:$4 sm:$0xff]  }
 0x4c7   :  { %10183 = vmatprep.subr.bf16.mxu0 %v16526_v28  ;;  %v16587_v28 = vld [vmem:[#allocation11 + $0xcf8] ss:$24 sps:$4 sm:$0xff]  }
 0x4c8   :  { %10399 = vmatpush1.bf16.msra.mxu1 %v16527_v44  ;;  %v16595_v44 = vld [vmem:[#allocation11 + $0xd2c] ss:$24 sps:$4 sm:$0xff]  }
 0x4c9   :  { %10400 = vmatprep.subr.bf16.mxu1 %v16535_v11  ;;  %v16584_v11 = vld [vmem:[#allocation11 + $0x15f0] ss:$24 sps:$4 sm:$0xff]  }
 0x4ca   :  { %10184 = vmatpush1.bf16.msra.mxu0 %v16524_v40  ;;  %v16592_v40 = vld [vmem:[#allocation11 + $0x1624] ss:$24 sps:$4 sm:$0xff]  }
 0x4cb   :  { %10185 = vmatprep.subr.bf16.mxu0 %v16532_v59  ;;  %v16593_v59 = vld [vmem:[#allocation11 + $0xd28] ss:$24 sps:$4 sm:$0xff]  }
 0x4cc   :  { %10401 = vmatpush1.bf16.msra.mxu1 %v16533_v3  ;;  %v16601_v3 = vld [vmem:[#allocation11 + $0xd5c] ss:$24 sps:$4 sm:$0xff]  }
 0x4cd   :  { %10402 = vmatprep.subr.bf16.mxu1 %v16541_v4  ;;  %v16590_v4 = vld [vmem:[#allocation11 + $0x1620] ss:$24 sps:$4 sm:$0xff]  }
 0x4ce   :  { %10186 = vmatpush1.bf16.msra.mxu0 %v16530_v47  ;;  %v16598_v47 = vld [vmem:[#allocation11 + $0x1654] ss:$24 sps:$4 sm:$0xff]  }
 0x4cf   :  { %10187 = vmatprep.subr.bf16.mxu0 %v16538_v19  ;;  %v16599_v19 = vld [vmem:[#allocation11 + $0xd58] ss:$24 sps:$4 sm:$0xff]  }
 0x4d0   :  { %10403 = vmatpush1.bf16.msra.mxu1 %v16539_v9  ;;  %v16607_v9 = vld [vmem:[#allocation11 + $0xd8c] ss:$24 sps:$4 sm:$0xff]  }
 0x4d1   :  { %10404 = vmatprep.subr.bf16.mxu1 %v16547_v10  ;;  %v16596_v10 = vld [vmem:[#allocation11 + $0x1650] ss:$24 sps:$4 sm:$0xff]  }
 0x4d2   :  { %10188 = vmatpush1.bf16.msra.mxu0 %v16536_v56  ;;  %v16604_v56 = vld [vmem:[#allocation11 + $0x1684] ss:$24 sps:$4 sm:$0xff]  }
 0x4d3   :  { %10189 = vmatprep.subr.bf16.mxu0 %v16544_v25  ;;  %v16605_v25 = vld [vmem:[#allocation11 + $0xd88] ss:$24 sps:$4 sm:$0xff]  }
 0x4d4   :  { %10405 = vmatpush1.bf16.msra.mxu1 %v16545_v36  ;;  %v16613_v36 = vld [vmem:[#allocation11 + $0xdbc] ss:$24 sps:$4 sm:$0xff]  }
 0x4d5   :  { %10406 = vmatprep.subr.bf16.mxu1 %v16553_v43  ;;  %v16602_v43 = vld [vmem:[#allocation11 + $0x1680] ss:$24 sps:$4 sm:$0xff]  }
 0x4d6   :  { %10190 = vmatpush1.bf16.msra.mxu0 %v16542_v51  ;;  %v16610_v51 = vld [vmem:[#allocation11 + $0x16b4] ss:$24 sps:$4 sm:$0xff]  }
 0x4d7   :  { %10191 = vmatprep.subr.bf16.mxu0 %v16550_v7  ;;  %v16611_v7 = vld [vmem:[#allocation11 + $0xdb8] ss:$24 sps:$4 sm:$0xff]  }
 0x4d8   :  { %10407 = vmatpush1.bf16.msra.mxu1 %v16551_v16  ;;  %v16619_v16 = vld [vmem:[#allocation11 + $0xdec] ss:$24 sps:$4 sm:$0xff]  }
 0x4d9   :  { %10419 = vmatprep.subr.bf16.mxu1 %v16559_v48  ;;  %v16608_v48 = vld [vmem:[#allocation11 + $0x16b0] ss:$24 sps:$4 sm:$0xff]  }
 0x4da   :  { %10192 = vmatpush1.bf16.msra.mxu0 %v16548_v32  ;;  %v16616_v32 = vld [vmem:[#allocation11 + $0x16e4] ss:$24 sps:$4 sm:$0xff]  }
 0x4db   :  { %10204 = vmatprep.subr.bf16.mxu0 %v16556_v23  ;;  %10409 = vmatmul.mubr.bf16.vlgmr.msra.gmra.mrb[12].mxu1 %v18406_v20  ;;  %v16617_v23 = vld [vmem:[#allocation11 + $0xde8] ss:$24 sps:$4 sm:$0xff]  }
 0x4dc   :  { %10420 = vmatpush1.bf16.msra.mxu1 %v16557_v62  ;;  %10451 = vmatprep.mubr.bf16.mxu1 %v18501_v29  ;;  %v16625_v62 = vld [vmem:[#allocation11 + $0xe1c] ss:$24 sps:$4 sm:$0xff]  }
 0x4dd   :  { %10194 = vmatmul.mubr.bf16.vlgmr.msra.gmra.mrb[12].mxu0 %v18555_v61  ;;  %10421 = vmatprep.subr.bf16.mxu1 %v16565_v27  ;;  %v16614_v27 = vld [vmem:[#allocation11 + $0x16e0] ss:$24 sps:$4 sm:$0xff]  }
 0x4de   :  { %10205 = vmatpush1.bf16.msra.mxu0 %v16554_v39  ;;  %10236 = vmatprep.mubr.bf16.mxu0 %v18576_v53  ;;  %v16622_v39 = vld [vmem:[#allocation11 + $0x1714] ss:$24 sps:$4 sm:$0xff]  }
 0x4df   :  { %10206 = vmatprep.subr.bf16.mxu0 %v16562_v60  ;;  %v16623_v60 = vld [vmem:[#allocation11 + $0xe18] ss:$24 sps:$4 sm:$0xff]  }
 0x4e0   :  { %10422 = vmatpush1.bf16.msra.mxu1 %v16563_v21  ;;  %v16631_v21 = vld [vmem:[#allocation11 + $0xe4c] ss:$24 sps:$4 sm:$0xff]  }
 0x4e1   :  { %10423 = vmatprep.subr.bf16.mxu1 %v16571_v2  ;;  %v16620_v2 = vld [vmem:[#allocation11 + $0x1710] ss:$24 sps:$4 sm:$0xff]  }
 0x4e2   :  { %10207 = vmatpush1.bf16.msra.mxu0 %v16560_v52  ;;  %v16628_v52 = vld [vmem:[#allocation11 + $0x1744] ss:$24 sps:$4 sm:$0xff]  }
 0x4e3   :  { %10208 = vmatprep.subr.bf16.mxu0 %v16568_v0  ;;  %v16629_v0 = vld [vmem:[#allocation11 + $0xe48] ss:$24 sps:$4 sm:$0xff]  }
 0x4e4   :  { %10424 = vmatpush1.bf16.msra.mxu1 %v16569_v5  ;;  %v16637_v5 = vld [vmem:[#allocation11 + $0xe7c] ss:$24 sps:$4 sm:$0xff]  }
 0x4e5   :  { %10425 = vmatprep.subr.bf16.mxu1 %v16577_v35  ;;  %v16626_v35 = vld [vmem:[#allocation11 + $0x1740] ss:$24 sps:$4 sm:$0xff]  }
 0x4e6   :  { %10209 = vmatpush1.bf16.msra.mxu0 %v16566_v37  ;;  %v16634_v37 = vld [vmem:[#allocation11 + $0x1774] ss:$24 sps:$4 sm:$0xff]  }
 0x4e7   :  { %10210 = vmatprep.subr.bf16.mxu0 %v16574_v45  ;;  %v16635_v45 = vld [vmem:[#allocation11 + $0xe78] ss:$24 sps:$4 sm:$0xff]  }
 0x4e8   :  { %10426 = vmatpush1.bf16.msra.mxu1 %v16575_v42  ;;  %v16643_v42 = vld [vmem:[#allocation11 + $0xeac] ss:$24 sps:$4 sm:$0xff]  }
 0x4e9   :  { %10427 = vmatprep.subr.bf16.mxu1 %v16583_v13  ;;  %v16632_v13 = vld [vmem:[#allocation11 + $0x1770] ss:$24 sps:$4 sm:$0xff]  }
 0x4ea   :  { %10211 = vmatpush1.bf16.msra.mxu0 %v16572_v24  ;;  %v16640_v24 = vld [vmem:[#allocation11 + $0x17a4] ss:$24 sps:$4 sm:$0xff]  }
 0x4eb   :  { %10212 = vmatprep.subr.bf16.mxu0 %v16580_v26  ;;  %v16641_v26 = vld [vmem:[#allocation11 + $0xea8] ss:$24 sps:$4 sm:$0xff]  }
 0x4ec   :  { %10428 = vmatpush1.bf16.msra.mxu1 %v16581_v38  ;;  %v16649_v38 = vld [vmem:[#allocation11 + $0xedc] ss:$24 sps:$4 sm:$0xff]  }
 0x4ed   :  { %10429 = vmatprep.subr.bf16.mxu1 %v16589_v30  ;;  %v16638_v30 = vld [vmem:[#allocation11 + $0x17a0] ss:$24 sps:$4 sm:$0xff]  }
 0x4ee   :  { %10213 = vmatpush1.bf16.msra.mxu0 %v16578_v1  ;;  %v16646_v1 = vld [vmem:[#allocation11 + $0x17d4] ss:$24 sps:$4 sm:$0xff]  }
 0x4ef   :  { %10214 = vmatprep.subr.bf16.mxu0 %v16586_v22  ;;  %v16647_v22 = vld [vmem:[#allocation11 + $0xed8] ss:$24 sps:$4 sm:$0xff]  }
 0x4f0   :  { %10430 = vmatpush1.bf16.msra.mxu1 %v16587_v28  ;;  %v16652_v28 = vld [vmem:[#allocation11 + $0xf0c] ss:$24 sps:$4 sm:$0xff]  }
 0x4f1   :  { %10431 = vmatprep.subr.bf16.mxu1 %v16595_v44  ;;  %v16644_v44 = vld [vmem:[#allocation11 + $0x17d0] ss:$24 sps:$4 sm:$0xff]  }
 0x4f2   :  { %10215 = vmatpush1.bf16.msra.mxu0 %v16584_v11  ;;  %v16655_v11 = vld [vmem:[#allocation11 + $0x14] ss:$24 sps:$4 sm:$0xff]  }
 0x4f3   :  { %10216 = vmatprep.subr.bf16.mxu0 %v16592_v40  ;;  %v16650_v40 = vld [vmem:[#allocation11 + $0xf08] ss:$24 sps:$4 sm:$0xff]  }
 0x4f4   :  { %10432 = vmatpush1.bf16.msra.mxu1 %v16593_v59  ;;  %v16658_v59 = vld [vmem:[#allocation11 + $0xf3c] ss:$24 sps:$4 sm:$0xff]  }
 0x4f5   :  { %10433 = vmatprep.subr.bf16.mxu1 %v16601_v3  ;;  %v16653_v3 = vld [vmem:[#allocation11 + $0x10] ss:$24 sps:$4 sm:$0xff]  }
 0x4f6   :  { %10217 = vmatpush1.bf16.msra.mxu0 %v16590_v4  ;;  %v16661_v4 = vld [vmem:[#allocation11 + $0x44] ss:$24 sps:$4 sm:$0xff]  }
 0x4f7   :  { %10218 = vmatprep.subr.bf16.mxu0 %v16598_v47  ;;  %v16656_v47 = vld [vmem:[#allocation11 + $0xf38] ss:$24 sps:$4 sm:$0xff]  }
 0x4f8   :  { %10434 = vmatpush1.bf16.msra.mxu1 %v16599_v19  ;;  %v16664_v19 = vld [vmem:[#allocation11 + $0xf6c] ss:$24 sps:$4 sm:$0xff]  }
 0x4f9   :  { %10435 = vmatprep.subr.bf16.mxu1 %v16607_v9  ;;  %v16659_v9 = vld [vmem:[#allocation11 + $0x40] ss:$24 sps:$4 sm:$0xff]  }
 0x4fa   :  { %10219 = vmatpush1.bf16.msra.mxu0 %v16596_v10  ;;  %v16667_v10 = vld [vmem:[#allocation11 + $0x74] ss:$24 sps:$4 sm:$0xff]  }
 0x4fb   :  { %10220 = vmatprep.subr.bf16.mxu0 %v16604_v56  ;;  %v16662_v56 = vld [vmem:[#allocation11 + $0xf68] ss:$24 sps:$4 sm:$0xff]  }
 0x4fc   :  { %10436 = vmatpush1.bf16.msra.mxu1 %v16605_v25  ;;  %v16670_v25 = vld [vmem:[#allocation11 + $0xf9c] ss:$24 sps:$4 sm:$0xff]  }
 0x4fd   :  { %10437 = vmatprep.subr.bf16.mxu1 %v16613_v36  ;;  %v16665_v36 = vld [vmem:[#allocation11 + $0x70] ss:$24 sps:$4 sm:$0xff]  }
 0x4fe   :  { %10221 = vmatpush1.bf16.msra.mxu0 %v16602_v43  ;;  %v16673_v43 = vld [vmem:[#allocation11 + $0xa4] ss:$24 sps:$4 sm:$0xff]  }
 0x4ff   :  { %10222 = vmatprep.subr.bf16.mxu0 %v16610_v51  ;;  %v16668_v51 = vld [vmem:[#allocation11 + $0xf98] ss:$24 sps:$4 sm:$0xff]  }
 0x500   :  { %10438 = vmatpush1.bf16.msra.mxu1 %v16611_v7  ;;  %v16676_v7 = vld [vmem:[#allocation11 + $0xfcc] ss:$24 sps:$4 sm:$0xff]  }
 0x501   :  { %10439 = vmatprep.subr.bf16.mxu1 %v16619_v16  ;;  %v16671_v16 = vld [vmem:[#allocation11 + $0xa0] ss:$24 sps:$4 sm:$0xff]  }
 0x502   :  { %10223 = vmatpush1.bf16.msra.mxu0 %v16608_v48  ;;  %v16679_v48 = vld [vmem:[#allocation11 + $0xd4] ss:$24 sps:$4 sm:$0xff]  }
 0x503   :  { %10224 = vmatprep.subr.bf16.mxu0 %v16616_v32  ;;  %v16682_v32 = vld [vmem:[#allocation11 + $0xffc] ss:$24 sps:$4 sm:$0xff]  }
 0x504   :  { %10440 = vmatpush1.bf16.msra.mxu1 %v16617_v23  ;;  %v16677_v23 = vld [vmem:[#allocation11 + $0xd0] ss:$24 sps:$4 sm:$0xff]  }
 0x505   :  { %10441 = vmatprep.subr.bf16.mxu1 %v16625_v62  ;;  %v16685_v62 = vld [vmem:[#allocation11 + $0x104] ss:$24 sps:$4 sm:$0xff]  }
 0x506   :  { %10225 = vmatpush1.bf16.msra.mxu0 %v16614_v27  ;;  %v16680_v27 = vld [vmem:[#allocation11 + $0xff8] ss:$24 sps:$4 sm:$0xff]  }
 0x507   :  { %10226 = vmatprep.subr.bf16.mxu0 %v16622_v39  ;;  %v16688_v39 = vld [vmem:[#allocation11 + $0x102c] ss:$24 sps:$4 sm:$0xff]  }
 0x508   :  { %10442 = vmatpush1.bf16.msra.mxu1 %v16623_v60  ;;  %v16683_v60 = vld [vmem:[#allocation11 + $0x100] ss:$24 sps:$4 sm:$0xff]  }
 0x509   :  { %10443 = vmatprep.subr.bf16.mxu1 %v16631_v21  ;;  %v16691_v21 = vld [vmem:[#allocation11 + $0x134] ss:$24 sps:$4 sm:$0xff]  }
 0x50a   :  { %10227 = vmatpush1.bf16.msra.mxu0 %v16620_v2  ;;  %v16686_v2 = vld [vmem:[#allocation11 + $0x1028] ss:$24 sps:$4 sm:$0xff]  }
 0x50b   :  { %10228 = vmatprep.subr.bf16.mxu0 %v16628_v52  ;;  %v16694_v52 = vld [vmem:[#allocation11 + $0x105c] ss:$24 sps:$4 sm:$0xff]  }
 0x50c   :  { %10444 = vmatpush1.bf16.msra.mxu1 %v16629_v0  ;;  %v16689_v0 = vld [vmem:[#allocation11 + $0x130] ss:$24 sps:$4 sm:$0xff]  }
 0x50d   :  { %10445 = vmatprep.subr.bf16.mxu1 %v16637_v5  ;;  %v16697_v5 = vld [vmem:[#allocation11 + $0x164] ss:$24 sps:$4 sm:$0xff]  }
 0x50e   :  { %10229 = vmatpush1.bf16.msra.mxu0 %v16626_v35  ;;  %v16692_v35 = vld [vmem:[#allocation11 + $0x1058] ss:$24 sps:$4 sm:$0xff]  }
 0x50f   :  { %10230 = vmatprep.subr.bf16.mxu0 %v16634_v37  ;;  %v16700_v37 = vld [vmem:[#allocation11 + $0x108c] ss:$24 sps:$4 sm:$0xff]  }
 0x510   :  { %10446 = vmatpush1.bf16.msra.mxu1 %v16635_v45  ;;  %v16695_v45 = vld [vmem:[#allocation11 + $0x160] ss:$24 sps:$4 sm:$0xff]  }
 0x511   :  { %10447 = vmatprep.subr.bf16.mxu1 %v16643_v42  ;;  %v16703_v42 = vld [vmem:[#allocation11 + $0x194] ss:$24 sps:$4 sm:$0xff]  }
 0x512   :  { %10231 = vmatpush1.bf16.msra.mxu0 %v16632_v13  ;;  %v16698_v13 = vld [vmem:[#allocation11 + $0x1088] ss:$24 sps:$4 sm:$0xff]  }
 0x513   :  { %10232 = vmatprep.subr.bf16.mxu0 %v16640_v24  ;;  %v16706_v24 = vld [vmem:[#allocation11 + $0x10bc] ss:$24 sps:$4 sm:$0xff]  }
 0x514   :  { %10448 = vmatpush1.bf16.msra.mxu1 %v16641_v26  ;;  %v16701_v26 = vld [vmem:[#allocation11 + $0x190] ss:$24 sps:$4 sm:$0xff]  }
 0x515   :  { %10449 = vmatprep.subr.bf16.mxu1 %v16649_v38  ;;  %v16709_v38 = vld [vmem:[#allocation11 + $0x1c4] ss:$24 sps:$4 sm:$0xff]  }
 0x516   :  { %10233 = vmatpush1.bf16.msra.mxu0 %v16638_v30  ;;  %v16704_v30 = vld [vmem:[#allocation11 + $0x10b8] ss:$24 sps:$4 sm:$0xff]  }
 0x517   :  { %10234 = vmatprep.subr.bf16.mxu0 %v16646_v1  ;;  %v16712_v1 = vld [vmem:[#allocation11 + $0x10ec] ss:$24 sps:$4 sm:$0xff]  }
 0x518   :  { %10450 = vmatpush1.bf16.msra.mxu1 %v16647_v22  ;;  %v16707_v22 = vld [vmem:[#allocation11 + $0x1c0] ss:$24 sps:$4 sm:$0xff]  }
 0x519   :  { %10462 = vmatprep.subr.bf16.mxu1 %v16652_v28  ;;  %v16715_v28 = vld [vmem:[#allocation11 + $0x1f4] ss:$24 sps:$4 sm:$0xff]  }
 0x51a   :  { %10235 = vmatpush1.bf16.msra.mxu0 %v16644_v44  ;;  %v16710_v44 = vld [vmem:[#allocation11 + $0x10e8] ss:$24 sps:$4 sm:$0xff]  }
 0x51b   :  { %10591 = vmatprep.subr.bf16.mxu0 %v16655_v11  ;;  %10452 = vmatmul.mubr.bf16.vlgmr.msra.gmra.mrb[12].mxu1 %v18453_v50  ;;  %v16718_v11 = vld [vmem:[#allocation11 + $0x111c] ss:$24 sps:$4 sm:$0xff]  }
 0x51c   :  { %10463 = vmatpush1.bf16.msra.mxu1 %v16650_v40  ;;  %10494 = vmatprep.mubr.bf16.mxu1 %v18505_v63  ;;  %v16713_v40 = vld [vmem:[#allocation11 + $0x1f0] ss:$24 sps:$4 sm:$0xff]  }
 0x51d   :  { %10237 = vmatmul.mubr.bf16.vlgmr.msra.gmra.mrb[12].mxu0 %v18579_v58  ;;  %10464 = vmatprep.subr.bf16.mxu1 %v16658_v59  ;;  %v16721_v59 = vld [vmem:[#allocation11 + $0x224] ss:$24 sps:$4 sm:$0xff]  }
 0x51e   :  { %10592 = vmatpush1.bf16.msra.mxu0 %v16653_v3  ;;  %10623 = vmatprep.mubr.bf16.mxu0 %v18321_v41  ;;  %v16674_v41 = vld [vmem:[#allocation11 + $0xfc8] ss:$24 sps:$4 sm:$0xff]   ;;  %v16716_v3 = vld [vmem:[#allocation11 + $0x1118] ss:$24 sps:$4 sm:$0xff]  }
 0x51f   :  { %10593 = vmatprep.subr.bf16.mxu0 %v16661_v4  ;;  %v16724_v4 = vld [vmem:[#allocation11 + $0x114c] ss:$24 sps:$4 sm:$0xff]  }
 0x520   :  { %10465 = vmatpush1.bf16.msra.mxu1 %v16656_v47  ;;  %v16719_v47 = vld [vmem:[#allocation11 + $0x220] ss:$24 sps:$4 sm:$0xff]  }
 0x521   :  { %10466 = vmatprep.subr.bf16.mxu1 %v16664_v19  ;;  %v16727_v19 = vld [vmem:[#allocation11 + $0x254] ss:$24 sps:$4 sm:$0xff]  }
 0x522   :  { %10594 = vmatpush1.bf16.msra.mxu0 %v16659_v9  ;;  %v16722_v9 = vld [vmem:[#allocation11 + $0x1148] ss:$24 sps:$4 sm:$0xff]  }
 0x523   :  { %10595 = vmatprep.subr.bf16.mxu0 %v16667_v10  ;;  %v16730_v10 = vld [vmem:[#allocation11 + $0x117c] ss:$24 sps:$4 sm:$0xff]  }
 0x524   :  { %10467 = vmatpush1.bf16.msra.mxu1 %v16662_v56  ;;  %v16725_v56 = vld [vmem:[#allocation11 + $0x250] ss:$24 sps:$4 sm:$0xff]  }
 0x525   :  { %10468 = vmatprep.subr.bf16.mxu1 %v16670_v25  ;;  %v16733_v25 = vld [vmem:[#allocation11 + $0x284] ss:$24 sps:$4 sm:$0xff]  }
 0x526   :  { %10596 = vmatpush1.bf16.msra.mxu0 %v16665_v36  ;;  %v16728_v36 = vld [vmem:[#allocation11 + $0x1178] ss:$24 sps:$4 sm:$0xff]  }
 0x527   :  { %10597 = vmatprep.subr.bf16.mxu0 %v16673_v43  ;;  %v16736_v43 = vld [vmem:[#allocation11 + $0x11ac] ss:$24 sps:$4 sm:$0xff]  }
 0x528   :  { %10469 = vmatpush1.bf16.msra.mxu1 %v16668_v51  ;;  %v16731_v51 = vld [vmem:[#allocation11 + $0x280] ss:$24 sps:$4 sm:$0xff]  }
 0x529   :  { %10470 = vmatprep.subr.bf16.mxu1 %v16676_v7  ;;  %v16739_v7 = vld [vmem:[#allocation11 + $0x2b4] ss:$24 sps:$4 sm:$0xff]  }
 0x52a   :  { %10598 = vmatpush1.bf16.msra.mxu0 %v16671_v16  ;;  %v16734_v16 = vld [vmem:[#allocation11 + $0x11a8] ss:$24 sps:$4 sm:$0xff]  }
 0x52b   :  { %10599 = vmatprep.subr.bf16.mxu0 %v16679_v48  ;;  %v16742_v48 = vld [vmem:[#allocation11 + $0x11dc] ss:$24 sps:$4 sm:$0xff]  }
 0x52c   :  { %10471 = vmatpush1.bf16.msra.mxu1 %v16674_v41  ;;  %v16737_v41 = vld [vmem:[#allocation11 + $0x2b0] ss:$24 sps:$4 sm:$0xff]  }
 0x52d   :  { %10472 = vmatprep.subr.bf16.mxu1 %v16682_v32  ;;  %v16745_v32 = vld [vmem:[#allocation11 + $0x2e4] ss:$24 sps:$4 sm:$0xff]  }
 0x52e   :  { %10600 = vmatpush1.bf16.msra.mxu0 %v16677_v23  ;;  %v16740_v23 = vld [vmem:[#allocation11 + $0x11d8] ss:$24 sps:$4 sm:$0xff]  }
 0x52f   :  { %10601 = vmatprep.subr.bf16.mxu0 %v16685_v62  ;;  %v16748_v62 = vld [vmem:[#allocation11 + $0x120c] ss:$24 sps:$4 sm:$0xff]  }
 0x530   :  { %10473 = vmatpush1.bf16.msra.mxu1 %v16680_v27  ;;  %v16743_v27 = vld [vmem:[#allocation11 + $0x2e0] ss:$24 sps:$4 sm:$0xff]  }
 0x531   :  { %10474 = vmatprep.subr.bf16.mxu1 %v16688_v39  ;;  %v16751_v39 = vld [vmem:[#allocation11 + $0x314] ss:$24 sps:$4 sm:$0xff]  }
 0x532   :  { %10602 = vmatpush1.bf16.msra.mxu0 %v16683_v60  ;;  %v16746_v60 = vld [vmem:[#allocation11 + $0x1208] ss:$24 sps:$4 sm:$0xff]  }
 0x533   :  { %10603 = vmatprep.subr.bf16.mxu0 %v16691_v21  ;;  %v16754_v21 = vld [vmem:[#allocation11 + $0x123c] ss:$24 sps:$4 sm:$0xff]  }
 0x534   :  { %10475 = vmatpush1.bf16.msra.mxu1 %v16686_v2  ;;  %v16749_v2 = vld [vmem:[#allocation11 + $0x310] ss:$24 sps:$4 sm:$0xff]  }
 0x535   :  { %10476 = vmatprep.subr.bf16.mxu1 %v16694_v52  ;;  %v16757_v52 = vld [vmem:[#allocation11 + $0x344] ss:$24 sps:$4 sm:$0xff]  }
 0x536   :  { %10604 = vmatpush1.bf16.msra.mxu0 %v16689_v0  ;;  %v16752_v0 = vld [vmem:[#allocation11 + $0x1238] ss:$24 sps:$4 sm:$0xff]  }
 0x537   :  { %10605 = vmatprep.subr.bf16.mxu0 %v16697_v5  ;;  %v16760_v5 = vld [vmem:[#allocation11 + $0x126c] ss:$24 sps:$4 sm:$0xff]  }
 0x538   :  { %10477 = vmatpush1.bf16.msra.mxu1 %v16692_v35  ;;  %v16755_v35 = vld [vmem:[#allocation11 + $0x340] ss:$24 sps:$4 sm:$0xff]  }
 0x539   :  { %10478 = vmatprep.subr.bf16.mxu1 %v16700_v37  ;;  %v16763_v37 = vld [vmem:[#allocation11 + $0x374] ss:$24 sps:$4 sm:$0xff]  }
 0x53a   :  { %10606 = vmatpush1.bf16.msra.mxu0 %v16695_v45  ;;  %v16758_v45 = vld [vmem:[#allocation11 + $0x1268] ss:$24 sps:$4 sm:$0xff]  }
 0x53b   :  { %10607 = vmatprep.subr.bf16.mxu0 %v16703_v42  ;;  %v16766_v42 = vld [vmem:[#allocation11 + $0x129c] ss:$24 sps:$4 sm:$0xff]  }
 0x53c   :  { %10479 = vmatpush1.bf16.msra.mxu1 %v16698_v13  ;;  %v16761_v13 = vld [vmem:[#allocation11 + $0x370] ss:$24 sps:$4 sm:$0xff]  }
 0x53d   :  { %10480 = vmatprep.subr.bf16.mxu1 %v16706_v24  ;;  %v16769_v24 = vld [vmem:[#allocation11 + $0x3a4] ss:$24 sps:$4 sm:$0xff]  }
 0x53e   :  { %10608 = vmatpush1.bf16.msra.mxu0 %v16701_v26  ;;  %v16764_v26 = vld [vmem:[#allocation11 + $0x1298] ss:$24 sps:$4 sm:$0xff]  }
 0x53f   :  { %10609 = vmatprep.subr.bf16.mxu0 %v16709_v38  ;;  %v16767_v38 = vld [vmem:[#allocation11 + $0x3a0] ss:$24 sps:$4 sm:$0xff]  }
 0x540   :  { %10481 = vmatpush1.bf16.msra.mxu1 %v16704_v30  ;;  %v16775_v30 = vld [vmem:[#allocation11 + $0x3d4] ss:$24 sps:$4 sm:$0xff]  }
 0x541   :  { %10482 = vmatprep.subr.bf16.mxu1 %v16712_v1  ;;  %v16778_v1 = vld [vmem:[#allocation11 + $0x12fc] ss:$24 sps:$4 sm:$0xff]  }
 0x542   :  { %10610 = vmatpush1.bf16.msra.mxu0 %v16707_v22  ;;  %v16773_v22 = vld [vmem:[#allocation11 + $0x3d0] ss:$24 sps:$4 sm:$0xff]  }
 0x543   :  { %10611 = vmatprep.subr.bf16.mxu0 %v16715_v28  ;;  %v16781_v28 = vld [vmem:[#allocation11 + $0x404] ss:$24 sps:$4 sm:$0xff]  }
 0x544   :  { %10483 = vmatpush1.bf16.msra.mxu1 %v16710_v44  ;;  %v16776_v44 = vld [vmem:[#allocation11 + $0x12f8] ss:$24 sps:$4 sm:$0xff]  }
 0x545   :  { %10484 = vmatprep.subr.bf16.mxu1 %v16718_v11  ;;  %v16784_v11 = vld [vmem:[#allocation11 + $0x132c] ss:$24 sps:$4 sm:$0xff]  }
 0x546   :  { %10612 = vmatpush1.bf16.msra.mxu0 %v16713_v40  ;;  %v16779_v40 = vld [vmem:[#allocation11 + $0x400] ss:$24 sps:$4 sm:$0xff]  }
 0x547   :  { %10613 = vmatprep.subr.bf16.mxu0 %v16721_v59  ;;  %v16787_v59 = vld [vmem:[#allocation11 + $0x434] ss:$24 sps:$4 sm:$0xff]  }
 0x548   :  { %10485 = vmatpush1.bf16.msra.mxu1 %v16716_v3  ;;  %v16782_v3 = vld [vmem:[#allocation11 + $0x1328] ss:$24 sps:$4 sm:$0xff]  }
 0x549   :  { %10486 = vmatprep.subr.bf16.mxu1 %v16724_v4  ;;  %v16790_v4 = vld [vmem:[#allocation11 + $0x135c] ss:$24 sps:$4 sm:$0xff]  }
 0x54a   :  { %10614 = vmatpush1.bf16.msra.mxu0 %v16719_v47  ;;  %v16785_v47 = vld [vmem:[#allocation11 + $0x430] ss:$24 sps:$4 sm:$0xff]  }
 0x54b   :  { %10615 = vmatprep.subr.bf16.mxu0 %v16727_v19  ;;  %v16793_v19 = vld [vmem:[#allocation11 + $0x464] ss:$24 sps:$4 sm:$0xff]  }
 0x54c   :  { %10487 = vmatpush1.bf16.msra.mxu1 %v16722_v9  ;;  %v16788_v9 = vld [vmem:[#allocation11 + $0x1358] ss:$24 sps:$4 sm:$0xff]  }
 0x54d   :  { %10488 = vmatprep.subr.bf16.mxu1 %v16730_v10  ;;  %v16796_v10 = vld [vmem:[#allocation11 + $0x138c] ss:$24 sps:$4 sm:$0xff]  }
 0x54e   :  { %10616 = vmatpush1.bf16.msra.mxu0 %v16725_v56  ;;  %v16791_v56 = vld [vmem:[#allocation11 + $0x460] ss:$24 sps:$4 sm:$0xff]  }
 0x54f   :  { %10617 = vmatprep.subr.bf16.mxu0 %v16733_v25  ;;  %v16799_v25 = vld [vmem:[#allocation11 + $0x494] ss:$24 sps:$4 sm:$0xff]  }
 0x550   :  { %10489 = vmatpush1.bf16.msra.mxu1 %v16728_v36  ;;  %v16794_v36 = vld [vmem:[#allocation11 + $0x1388] ss:$24 sps:$4 sm:$0xff]  }
 0x551   :  { %10490 = vmatprep.subr.bf16.mxu1 %v16736_v43  ;;  %v16802_v43 = vld [vmem:[#allocation11 + $0x13bc] ss:$24 sps:$4 sm:$0xff]  }
 0x552   :  { %10618 = vmatpush1.bf16.msra.mxu0 %v16731_v51  ;;  %v16797_v51 = vld [vmem:[#allocation11 + $0x490] ss:$24 sps:$4 sm:$0xff]  }
 0x553   :  { %10619 = vmatprep.subr.bf16.mxu0 %v16739_v7  ;;  %v16805_v7 = vld [vmem:[#allocation11 + $0x4c4] ss:$24 sps:$4 sm:$0xff]  }
 0x554   :  { %10491 = vmatpush1.bf16.msra.mxu1 %v16734_v16  ;;  %v16800_v16 = vld [vmem:[#allocation11 + $0x13b8] ss:$24 sps:$4 sm:$0xff]  }
 0x555   :  { %10492 = vmatprep.subr.bf16.mxu1 %v16742_v48  ;;  %v16808_v48 = vld [vmem:[#allocation11 + $0x13ec] ss:$24 sps:$4 sm:$0xff]  }
 0x556   :  { %10620 = vmatpush1.bf16.msra.mxu0 %v16737_v41  ;;  %v16803_v41 = vld [vmem:[#allocation11 + $0x4c0] ss:$24 sps:$4 sm:$0xff]  }
 0x557   :  { %10621 = vmatprep.subr.bf16.mxu0 %v16745_v32  ;;  %v16811_v32 = vld [vmem:[#allocation11 + $0x4f4] ss:$24 sps:$4 sm:$0xff]  }
 0x558   :  { %10493 = vmatpush1.bf16.msra.mxu1 %v16740_v23  ;;  %v16806_v23 = vld [vmem:[#allocation11 + $0x13e8] ss:$24 sps:$4 sm:$0xff]  }
 0x559   :  { %10505 = vmatprep.subr.bf16.mxu1 %v16748_v62  ;;  %v16814_v62 = vld [vmem:[#allocation11 + $0x141c] ss:$24 sps:$4 sm:$0xff]  }
 0x55a   :  { %10622 = vmatpush1.bf16.msra.mxu0 %v16743_v27  ;;  %v16809_v27 = vld [vmem:[#allocation11 + $0x4f0] ss:$24 sps:$4 sm:$0xff]  }
 0x55b   :  { %10634 = vmatprep.subr.bf16.mxu0 %v16751_v39  ;;  %10495 = vmatmul.mubr.bf16.vlgmr.msra.gmra.mrb[12].mxu1 %v18508_v49  ;;  %v16817_v39 = vld [vmem:[#allocation11 + $0x524] ss:$24 sps:$4 sm:$0xff]  }
 0x55c   :  { %10506 = vmatpush1.bf16.msra.mxu1 %v16746_v60  ;;  %10537 = vmatprep.mubr.bf16.mxu1 %v18573_v8  ;;  %v16812_v60 = vld [vmem:[#allocation11 + $0x1418] ss:$24 sps:$4 sm:$0xff]  }
 0x55d   :  { %10624 = vmatmul.mubr.bf16.vlgmr.msra.gmra.mrb[16].mxu0 %v18343_v6  ;;  %10507 = vmatprep.subr.bf16.mxu1 %v16754_v21  ;;  %v16772_v6 = vld [vmem:[#allocation11 + $0x12cc] ss:$24 sps:$4 sm:$0xff]  }
 0x55e   :  { %10635 = vmatpush1.bf16.msra.mxu0 %v16749_v2  ;;  %10666 = vmatprep.mubr.bf16.mxu0 %v18326_v33  ;;  %v16770_v33 = vld [vmem:[#allocation11 + $0x12c8] ss:$24 sps:$4 sm:$0xff]   ;;  %v16820_v21 = vld [vmem:[#allocation11 + $0x144c] ss:$24 sps:$4 sm:$0xff]  }
 0x55f   :  { %10636 = vmatprep.subr.bf16.mxu0 %v16757_v52  ;;  %v16815_v2 = vld [vmem:[#allocation11 + $0x520] ss:$24 sps:$4 sm:$0xff]   ;;  %v16823_v52 = vld [vmem:[#allocation11 + $0x554] ss:$24 sps:$4 sm:$0xff]  }
 0x560   :  { %10508 = vmatpush1.bf16.msra.mxu1 %v16752_v0  ;;  %v16818_v0 = vld [vmem:[#allocation11 + $0x1448] ss:$24 sps:$4 sm:$0xff]  }
 0x561   :  { %10509 = vmatprep.subr.bf16.mxu1 %v16760_v5  ;;  %v16826_v5 = vld [vmem:[#allocation11 + $0x147c] ss:$24 sps:$4 sm:$0xff]  }
 0x562   :  { %10637 = vmatpush1.bf16.msra.mxu0 %v16755_v35  ;;  %v16821_v35 = vld [vmem:[#allocation11 + $0x550] ss:$24 sps:$4 sm:$0xff]  }
 0x563   :  { %10638 = vmatprep.subr.bf16.mxu0 %v16763_v37  ;;  %v16829_v37 = vld [vmem:[#allocation11 + $0x584] ss:$24 sps:$4 sm:$0xff]  }
 0x564   :  { %10510 = vmatpush1.bf16.msra.mxu1 %v16758_v45  ;;  %v16824_v45 = vld [vmem:[#allocation11 + $0x1478] ss:$24 sps:$4 sm:$0xff]  }
 0x565   :  { %10511 = vmatprep.subr.bf16.mxu1 %v16766_v42  ;;  %v16832_v42 = vld [vmem:[#allocation11 + $0x14ac] ss:$24 sps:$4 sm:$0xff]  }
 0x566   :  { %10639 = vmatpush1.bf16.msra.mxu0 %v16761_v13  ;;  %v16827_v13 = vld [vmem:[#allocation11 + $0x580] ss:$24 sps:$4 sm:$0xff]  }
 0x567   :  { %10640 = vmatprep.subr.bf16.mxu0 %v16769_v24  ;;  %v16835_v24 = vld [vmem:[#allocation11 + $0x5b4] ss:$24 sps:$4 sm:$0xff]  }
 0x568   :  { %10512 = vmatpush1.bf16.msra.mxu1 %v16764_v26  ;;  %v16830_v26 = vld [vmem:[#allocation11 + $0x14a8] ss:$24 sps:$4 sm:$0xff]  }
 0x569   :  { %10513 = vmatprep.subr.bf16.mxu1 %v16772_v6  ;;  %v16838_v6 = vld [vmem:[#allocation11 + $0x14dc] ss:$24 sps:$4 sm:$0xff]  }
 0x56a   :  { %10641 = vmatpush1.bf16.msra.mxu0 %v16767_v38  ;;  %v16833_v38 = vld [vmem:[#allocation11 + $0x5b0] ss:$24 sps:$4 sm:$0xff]  }
 0x56b   :  { %10642 = vmatprep.subr.bf16.mxu0 %v16775_v30  ;;  %v16841_v30 = vld [vmem:[#allocation11 + $0x5e4] ss:$24 sps:$4 sm:$0xff]  }
 0x56c   :  { %10514 = vmatpush1.bf16.msra.mxu1 %v16770_v33  ;;  %v16836_v33 = vld [vmem:[#allocation11 + $0x14d8] ss:$24 sps:$4 sm:$0xff]  }
 0x56d   :  { %10515 = vmatprep.subr.bf16.mxu1 %v16778_v1  ;;  %v16844_v1 = vld [vmem:[#allocation11 + $0x150c] ss:$24 sps:$4 sm:$0xff]  }
 0x56e   :  { %10643 = vmatpush1.bf16.msra.mxu0 %v16773_v22  ;;  %v16839_v22 = vld [vmem:[#allocation11 + $0x5e0] ss:$24 sps:$4 sm:$0xff]  }
 0x56f   :  { %10644 = vmatprep.subr.bf16.mxu0 %v16781_v28  ;;  %v16847_v28 = vld [vmem:[#allocation11 + $0x614] ss:$24 sps:$4 sm:$0xff]  }
 0x570   :  { %10516 = vmatpush1.bf16.msra.mxu1 %v16776_v44  ;;  %v16842_v44 = vld [vmem:[#allocation11 + $0x1508] ss:$24 sps:$4 sm:$0xff]  }
 0x571   :  { %10517 = vmatprep.subr.bf16.mxu1 %v16784_v11  ;;  %v16850_v11 = vld [vmem:[#allocation11 + $0x153c] ss:$24 sps:$4 sm:$0xff]  }
 0x572   :  { %10645 = vmatpush1.bf16.msra.mxu0 %v16779_v40  ;;  %v16845_v40 = vld [vmem:[#allocation11 + $0x610] ss:$24 sps:$4 sm:$0xff]  }
 0x573   :  { %10646 = vmatprep.subr.bf16.mxu0 %v16787_v59  ;;  %v16853_v59 = vld [vmem:[#allocation11 + $0x644] ss:$24 sps:$4 sm:$0xff]  }
 0x574   :  { %10518 = vmatpush1.bf16.msra.mxu1 %v16782_v3  ;;  %v16848_v3 = vld [vmem:[#allocation11 + $0x1538] ss:$24 sps:$4 sm:$0xff]  }
 0x575   :  { %10519 = vmatprep.subr.bf16.mxu1 %v16790_v4  ;;  %v16856_v4 = vld [vmem:[#allocation11 + $0x156c] ss:$24 sps:$4 sm:$0xff]  }
 0x576   :  { %10647 = vmatpush1.bf16.msra.mxu0 %v16785_v47  ;;  %v16851_v47 = vld [vmem:[#allocation11 + $0x640] ss:$24 sps:$4 sm:$0xff]  }
 0x577   :  { %10648 = vmatprep.subr.bf16.mxu0 %v16793_v19  ;;  %v16859_v19 = vld [vmem:[#allocation11 + $0x674] ss:$24 sps:$4 sm:$0xff]  }
 0x578   :  { %10520 = vmatpush1.bf16.msra.mxu1 %v16788_v9  ;;  %v16854_v9 = vld [vmem:[#allocation11 + $0x1568] ss:$24 sps:$4 sm:$0xff]  }
 0x579   :  { %10521 = vmatprep.subr.bf16.mxu1 %v16796_v10  ;;  %v16862_v10 = vld [vmem:[#allocation11 + $0x159c] ss:$24 sps:$4 sm:$0xff]  }
 0x57a   :  { %10649 = vmatpush1.bf16.msra.mxu0 %v16791_v56  ;;  %v16857_v56 = vld [vmem:[#allocation11 + $0x670] ss:$24 sps:$4 sm:$0xff]  }
 0x57b   :  { %10650 = vmatprep.subr.bf16.mxu0 %v16799_v25  ;;  %v16865_v25 = vld [vmem:[#allocation11 + $0x6a4] ss:$24 sps:$4 sm:$0xff]  }
 0x57c   :  { %10522 = vmatpush1.bf16.msra.mxu1 %v16794_v36  ;;  %v16860_v36 = vld [vmem:[#allocation11 + $0x1598] ss:$24 sps:$4 sm:$0xff]  }
 0x57d   :  { %10523 = vmatprep.subr.bf16.mxu1 %v16802_v43  ;;  %v16863_v43 = vld [vmem:[#allocation11 + $0x6a0] ss:$24 sps:$4 sm:$0xff]  }
 0x57e   :  { %10651 = vmatpush1.bf16.msra.mxu0 %v16797_v51  ;;  %v16871_v51 = vld [vmem:[#allocation11 + $0x6d4] ss:$24 sps:$4 sm:$0xff]  }
 0x57f   :  { %10652 = vmatprep.subr.bf16.mxu0 %v16805_v7  ;;  %v16874_v7 = vld [vmem:[#allocation11 + $0x15fc] ss:$24 sps:$4 sm:$0xff]  }
 0x580   :  { %10524 = vmatpush1.bf16.msra.mxu1 %v16800_v16  ;;  %v16869_v16 = vld [vmem:[#allocation11 + $0x6d0] ss:$24 sps:$4 sm:$0xff]  }
 0x581   :  { %10525 = vmatprep.subr.bf16.mxu1 %v16808_v48  ;;  %v16877_v48 = vld [vmem:[#allocation11 + $0x704] ss:$24 sps:$4 sm:$0xff]  }
 0x582   :  { %10653 = vmatpush1.bf16.msra.mxu0 %v16803_v41  ;;  %v16872_v41 = vld [vmem:[#allocation11 + $0x15f8] ss:$24 sps:$4 sm:$0xff]  }
 0x583   :  { %10654 = vmatprep.subr.bf16.mxu0 %v16811_v32  ;;  %v16880_v32 = vld [vmem:[#allocation11 + $0x162c] ss:$24 sps:$4 sm:$0xff]  }
 0x584   :  { %10526 = vmatpush1.bf16.msra.mxu1 %v16806_v23  ;;  %v16875_v23 = vld [vmem:[#allocation11 + $0x700] ss:$24 sps:$4 sm:$0xff]  }
 0x585   :  { %10527 = vmatprep.subr.bf16.mxu1 %v16814_v62  ;;  %v16883_v62 = vld [vmem:[#allocation11 + $0x734] ss:$24 sps:$4 sm:$0xff]  }
 0x586   :  { %10655 = vmatpush1.bf16.msra.mxu0 %v16809_v27  ;;  %v16878_v27 = vld [vmem:[#allocation11 + $0x1628] ss:$24 sps:$4 sm:$0xff]  }
 0x587   :  { %10656 = vmatprep.subr.bf16.mxu0 %v16817_v39  ;;  %v16886_v39 = vld [vmem:[#allocation11 + $0x165c] ss:$24 sps:$4 sm:$0xff]  }
 0x588   :  { %10528 = vmatpush1.bf16.msra.mxu1 %v16812_v60  ;;  %v16881_v60 = vld [vmem:[#allocation11 + $0x730] ss:$24 sps:$4 sm:$0xff]  }
 0x589   :  { %10529 = vmatprep.subr.bf16.mxu1 %v16820_v21  ;;  %v16889_v21 = vld [vmem:[#allocation11 + $0x764] ss:$24 sps:$4 sm:$0xff]  }
 0x58a   :  { %10657 = vmatpush1.bf16.msra.mxu0 %v16815_v2  ;;  %v16884_v2 = vld [vmem:[#allocation11 + $0x1658] ss:$24 sps:$4 sm:$0xff]  }
 0x58b   :  { %10658 = vmatprep.subr.bf16.mxu0 %v16823_v52  ;;  %v16892_v52 = vld [vmem:[#allocation11 + $0x168c] ss:$24 sps:$4 sm:$0xff]  }
 0x58c   :  { %10530 = vmatpush1.bf16.msra.mxu1 %v16818_v0  ;;  %v16887_v0 = vld [vmem:[#allocation11 + $0x760] ss:$24 sps:$4 sm:$0xff]  }
 0x58d   :  { %10531 = vmatprep.subr.bf16.mxu1 %v16826_v5  ;;  %v16895_v5 = vld [vmem:[#allocation11 + $0x794] ss:$24 sps:$4 sm:$0xff]  }
 0x58e   :  { %10659 = vmatpush1.bf16.msra.mxu0 %v16821_v35  ;;  %v16890_v35 = vld [vmem:[#allocation11 + $0x1688] ss:$24 sps:$4 sm:$0xff]  }
 0x58f   :  { %10660 = vmatprep.subr.bf16.mxu0 %v16829_v37  ;;  %v16898_v37 = vld [vmem:[#allocation11 + $0x16bc] ss:$24 sps:$4 sm:$0xff]  }
 0x590   :  { %10532 = vmatpush1.bf16.msra.mxu1 %v16824_v45  ;;  %v16893_v45 = vld [vmem:[#allocation11 + $0x790] ss:$24 sps:$4 sm:$0xff]  }
 0x591   :  { %10533 = vmatprep.subr.bf16.mxu1 %v16832_v42  ;;  %v16901_v42 = vld [vmem:[#allocation11 + $0x7c4] ss:$24 sps:$4 sm:$0xff]  }
 0x592   :  { %10661 = vmatpush1.bf16.msra.mxu0 %v16827_v13  ;;  %v16896_v13 = vld [vmem:[#allocation11 + $0x16b8] ss:$24 sps:$4 sm:$0xff]  }
 0x593   :  { %10662 = vmatprep.subr.bf16.mxu0 %v16835_v24  ;;  %v16904_v24 = vld [vmem:[#allocation11 + $0x16ec] ss:$24 sps:$4 sm:$0xff]  }
 0x594   :  { %10534 = vmatpush1.bf16.msra.mxu1 %v16830_v26  ;;  %v16899_v26 = vld [vmem:[#allocation11 + $0x7c0] ss:$24 sps:$4 sm:$0xff]  }
 0x595   :  { %10535 = vmatprep.subr.bf16.mxu1 %v16838_v6  ;;  %v16907_v6 = vld [vmem:[#allocation11 + $0x7f4] ss:$24 sps:$4 sm:$0xff]  }
 0x596   :  { %10663 = vmatpush1.bf16.msra.mxu0 %v16833_v38  ;;  %v16902_v38 = vld [vmem:[#allocation11 + $0x16e8] ss:$24 sps:$4 sm:$0xff]  }
 0x597   :  { %10664 = vmatprep.subr.bf16.mxu0 %v16841_v30  ;;  %v16910_v30 = vld [vmem:[#allocation11 + $0x171c] ss:$24 sps:$4 sm:$0xff]  }
 0x598   :  { %10536 = vmatpush1.bf16.msra.mxu1 %v16836_v33  ;;  %v16905_v33 = vld [vmem:[#allocation11 + $0x7f0] ss:$24 sps:$4 sm:$0xff]  }
 0x599   :  { %10548 = vmatprep.subr.bf16.mxu1 %v16844_v1  ;;  %v16913_v1 = vld [vmem:[#allocation11 + $0x824] ss:$24 sps:$4 sm:$0xff]  }
 0x59a   :  { %10665 = vmatpush1.bf16.msra.mxu0 %v16839_v22  ;;  %v16908_v22 = vld [vmem:[#allocation11 + $0x1718] ss:$24 sps:$4 sm:$0xff]  }
 0x59b   :  { %10677 = vmatprep.subr.bf16.mxu0 %v16847_v28  ;;  %10538 = vmatmul.mubr.bf16.vlgmr.msra.gmra.mrb[12].mxu1 %v18555_v61  ;;  %v16916_v28 = vld [vmem:[#allocation11 + $0x174c] ss:$24 sps:$4 sm:$0xff]  }
 0x59c   :  { %10549 = vmatpush1.bf16.msra.mxu1 %v16842_v44  ;;  %10580 = vmatprep.mubr.bf16.mxu1 %v18576_v53  ;;  %v16911_v44 = vld [vmem:[#allocation11 + $0x820] ss:$24 sps:$4 sm:$0xff]  }
 0x59d   :  { %10667 = vmatmul.mubr.bf16.vlgmr.msra.gmra.mrb[16].mxu0 %v18328_v34  ;;  %10550 = vmatprep.subr.bf16.mxu1 %v16850_v11  ;;  %v16868_v34 = vld [vmem:[#allocation11 + $0x15cc] ss:$24 sps:$4 sm:$0xff]  }
 0x59e   :  { %10678 = vmatpush1.bf16.msra.mxu0 %v16845_v40  ;;  %10709 = vmatprep.mubr.bf16.mxu0 %v18399_v57  ;;  %v16866_v57 = vld [vmem:[#allocation11 + $0x15c8] ss:$24 sps:$4 sm:$0xff]   ;;  %v16919_v11 = vld [vmem:[#allocation11 + $0x854] ss:$24 sps:$4 sm:$0xff]  }
 0x59f   :  { %10679 = vmatprep.subr.bf16.mxu0 %v16853_v59  ;;  %v16914_v40 = vld [vmem:[#allocation11 + $0x1748] ss:$24 sps:$4 sm:$0xff]   ;;  %v16922_v59 = vld [vmem:[#allocation11 + $0x177c] ss:$24 sps:$4 sm:$0xff]  }
 0x5a0   :  { %10551 = vmatpush1.bf16.msra.mxu1 %v16848_v3  ;;  %v16917_v3 = vld [vmem:[#allocation11 + $0x850] ss:$24 sps:$4 sm:$0xff]  }
 0x5a1   :  { %10552 = vmatprep.subr.bf16.mxu1 %v16856_v4  ;;  %v16925_v4 = vld [vmem:[#allocation11 + $0x884] ss:$24 sps:$4 sm:$0xff]  }
 0x5a2   :  { %10680 = vmatpush1.bf16.msra.mxu0 %v16851_v47  ;;  %v16920_v47 = vld [vmem:[#allocation11 + $0x1778] ss:$24 sps:$4 sm:$0xff]  }
 0x5a3   :  { %10681 = vmatprep.subr.bf16.mxu0 %v16859_v19  ;;  %v16928_v19 = vld [vmem:[#allocation11 + $0x17ac] ss:$24 sps:$4 sm:$0xff]  }
 0x5a4   :  { %10553 = vmatpush1.bf16.msra.mxu1 %v16854_v9  ;;  %v16923_v9 = vld [vmem:[#allocation11 + $0x880] ss:$24 sps:$4 sm:$0xff]  }
 0x5a5   :  { %10554 = vmatprep.subr.bf16.mxu1 %v16862_v10  ;;  %v16931_v10 = vld [vmem:[#allocation11 + $0x8b4] ss:$24 sps:$4 sm:$0xff]  }
 0x5a6   :  { %10682 = vmatpush1.bf16.msra.mxu0 %v16857_v56  ;;  %v16926_v56 = vld [vmem:[#allocation11 + $0x17a8] ss:$24 sps:$4 sm:$0xff]  }
 0x5a7   :  { %10683 = vmatprep.subr.bf16.mxu0 %v16865_v25  ;;  %v16934_v25 = vld [vmem:[#allocation11 + $0x17dc] ss:$24 sps:$4 sm:$0xff]  }
 0x5a8   :  { %10555 = vmatpush1.bf16.msra.mxu1 %v16860_v36  ;;  %v16929_v36 = vld [vmem:[#allocation11 + $0x8b0] ss:$24 sps:$4 sm:$0xff]  }
 0x5a9   :  { %10556 = vmatprep.subr.bf16.mxu1 %v16868_v34  ;;  %v16937_v34 = vld [vmem:[#allocation11 + $0x8e4] ss:$24 sps:$4 sm:$0xff]  }
 0x5aa   :  { %10684 = vmatpush1.bf16.msra.mxu0 %v16863_v43  ;;  %v16932_v43 = vld [vmem:[#allocation11 + $0x17d8] ss:$24 sps:$4 sm:$0xff]  }
 0x5ab   :  { %10685 = vmatprep.subr.bf16.mxu0 %v16871_v51  ;;  %v16943_v51 = vld [vmem:[#allocation14 + $0x4] ss:$24 sps:$4 sm:$0xff]  }
 0x5ac   :  { %10557 = vmatpush1.bf16.msra.mxu1 %v16866_v57  ;;  %v16935_v57 = vld [vmem:[#allocation11 + $0x8e0] ss:$24 sps:$4 sm:$0xff]  }
 0x5ad   :  { %10558 = vmatprep.subr.bf16.mxu1 %v16874_v7  ;;  %v16940_v7 = vld [vmem:[#allocation11 + $0x914] ss:$24 sps:$4 sm:$0xff]  }
 0x5ae   :  { %10686 = vmatpush1.bf16.msra.mxu0 %v16869_v16  ;;  %v16941_v16 = vld [vmem:[#allocation14] ss:$24 sps:$4 sm:$0xff]  }
 0x5af   :  { %10687 = vmatprep.subr.bf16.mxu0 %v16877_v48  ;;  %v16949_v48 = vld [vmem:[#allocation14 + $0x34] ss:$24 sps:$4 sm:$0xff]  }
 0x5b0   :  { %10559 = vmatpush1.bf16.msra.mxu1 %v16872_v41  ;;  %v16938_v41 = vld [vmem:[#allocation11 + $0x910] ss:$24 sps:$4 sm:$0xff]  }
 0x5b1   :  { %10560 = vmatprep.subr.bf16.mxu1 %v16880_v32  ;;  %v16946_v32 = vld [vmem:[#allocation11 + $0x944] ss:$24 sps:$4 sm:$0xff]  }
 0x5b2   :  { %10688 = vmatpush1.bf16.msra.mxu0 %v16875_v23  ;;  %v16947_v23 = vld [vmem:[#allocation14 + $0x30] ss:$24 sps:$4 sm:$0xff]  }
 0x5b3   :  { %10689 = vmatprep.subr.bf16.mxu0 %v16883_v62  ;;  %v16955_v62 = vld [vmem:[#allocation14 + $0x64] ss:$24 sps:$4 sm:$0xff]  }
 0x5b4   :  { %10561 = vmatpush1.bf16.msra.mxu1 %v16878_v27  ;;  %v16944_v27 = vld [vmem:[#allocation11 + $0x940] ss:$24 sps:$4 sm:$0xff]  }
 0x5b5   :  { %10562 = vmatprep.subr.bf16.mxu1 %v16886_v39  ;;  %v16952_v39 = vld [vmem:[#allocation11 + $0x974] ss:$24 sps:$4 sm:$0xff]  }
 0x5b6   :  { %10690 = vmatpush1.bf16.msra.mxu0 %v16881_v60  ;;  %v16953_v60 = vld [vmem:[#allocation14 + $0x60] ss:$24 sps:$4 sm:$0xff]  }
 0x5b7   :  { %10691 = vmatprep.subr.bf16.mxu0 %v16889_v21  ;;  %v16961_v21 = vld [vmem:[#allocation14 + $0x94] ss:$24 sps:$4 sm:$0xff]  }
 0x5b8   :  { %10563 = vmatpush1.bf16.msra.mxu1 %v16884_v2  ;;  %v16950_v2 = vld [vmem:[#allocation11 + $0x970] ss:$24 sps:$4 sm:$0xff]  }
 0x5b9   :  { %10564 = vmatprep.subr.bf16.mxu1 %v16892_v52  ;;  %v16958_v52 = vld [vmem:[#allocation11 + $0x9a4] ss:$24 sps:$4 sm:$0xff]  }
 0x5ba   :  { %10692 = vmatpush1.bf16.msra.mxu0 %v16887_v0  ;;  %v16959_v0 = vld [vmem:[#allocation14 + $0x90] ss:$24 sps:$4 sm:$0xff]  }
 0x5bb   :  { %10693 = vmatprep.subr.bf16.mxu0 %v16895_v5  ;;  %v16956_v5 = vld [vmem:[#allocation11 + $0x9a0] ss:$24 sps:$4 sm:$0xff]  }
 0x5bc   :  { %10565 = vmatpush1.bf16.msra.mxu1 %v16890_v35  ;;  %v16964_v35 = vld [vmem:[#allocation11 + $0x9d4] ss:$24 sps:$4 sm:$0xff]  }
 0x5bd   :  { %10566 = vmatprep.subr.bf16.mxu1 %v16898_v37  ;;  %v16973_v37 = vld [vmem:[#allocation14 + $0xf4] ss:$24 sps:$4 sm:$0xff]  }
 0x5be   :  { %10694 = vmatpush1.bf16.msra.mxu0 %v16893_v45  ;;  %v16962_v45 = vld [vmem:[#allocation11 + $0x9d0] ss:$24 sps:$4 sm:$0xff]  }
 0x5bf   :  { %10695 = vmatprep.subr.bf16.mxu0 %v16901_v42  ;;  %v18628_v42 = vld [vmem:[#allocation13] sm:$0x3f] }
 0x5c0   :  { %10567 = vmatpush1.bf16.msra.mxu1 %v16896_v13  ;;  %v16970_v13 = vld [vmem:[#allocation11 + $0xa04] ss:$24 sps:$4 sm:$0xff]  }
 0x5c1   :  { %10568 = vmatprep.subr.bf16.mxu1 %v16904_v24  ;;  %v16971_v24 = vld [vmem:[#allocation14 + $0xf0] ss:$24 sps:$4 sm:$0xff]  }
 0x5c2   :  { %10696 = vmatpush1.bf16.msra.mxu0 %v16899_v26  ;;  %v6036_v26 = vrot.slane %v18628_v42, %v18183_v14 }
 0x5c3   :  { %10697 = vmatprep.subr.bf16.mxu0 %v16907_v6  ;;  %v16979_v6 = vld [vmem:[#allocation14 + $0x124] ss:$24 sps:$4 sm:$0xff]  }
 0x5c4   :  { %10569 = vmatpush1.bf16.msra.mxu1 %v16902_v38  ;;  %v6040_v38 = vrot.slane %v18628_v42, %v18189_v46 }
 0x5c5   :  { %10570 = vmatprep.subr.bf16.mxu1 %v16910_v30  ;;  %v16968_v30 = vld [vmem:[#allocation11 + $0xa00] ss:$24 sps:$4 sm:$0xff]  }
 0x5c6   :  { %10698 = vmatpush1.bf16.msra.mxu0 %v16905_v33  ;;  %v16976_v33 = vld [vmem:[#allocation11 + $0xa34] ss:$24 sps:$4 sm:$0xff]  }
 0x5c7   :  { %10699 = vmatprep.subr.bf16.mxu0 %v16913_v1 }
 0x5c8   :  { %10571 = vmatpush1.bf16.msra.mxu1 %v16908_v22  ;;  %v16977_v22 = vld [vmem:[#allocation14 + $0x120] ss:$24 sps:$4 sm:$0xff]  }
 0x5c9   :  { %10572 = vmatprep.subr.bf16.mxu1 %v16916_v28 }
 0x5ca   :  { %10700 = vmatpush1.bf16.msra.mxu0 %v16911_v44 }
 0x5cb   :  { %10701 = vmatprep.subr.bf16.mxu0 %v16919_v11  ;;  %v16985_v11 = vld [vmem:[#allocation14 + $0x154] ss:$24 sps:$4 sm:$0xff]  }
 0x5cc   :  { %10573 = vmatpush1.bf16.msra.mxu1 %v16914_v40 }
 0x5cd   :  { %10574 = vmatprep.subr.bf16.mxu1 %v16922_v59 }
 0x5ce   :  { %10702 = vmatpush1.bf16.msra.mxu0 %v16917_v3  ;;  %v16974_v3 = vld [vmem:[#allocation11 + $0xa30] ss:$24 sps:$4 sm:$0xff]  }
 0x5cf   :  { %10703 = vmatprep.subr.bf16.mxu0 %v16925_v4 }
 0x5d0   :  { %10575 = vmatpush1.bf16.msra.mxu1 %v16920_v47 }
 0x5d1   :  { %10576 = vmatprep.subr.bf16.mxu1 %v16928_v19  ;;  %v16982_v19 = vld [vmem:[#allocation11 + $0xa64] ss:$24 sps:$4 sm:$0xff]  }
 0x5d2   :  { %10704 = vmatpush1.bf16.msra.mxu0 %v16923_v9 }
 0x5d3   :  { %10705 = vmatprep.subr.bf16.mxu0 %v16931_v10  ;;  %v16983_v10 = vld [vmem:[#allocation14 + $0x150] ss:$24 sps:$4 sm:$0xff]  }
 0x5d4   :  { %10577 = vmatpush1.bf16.msra.mxu1 %v16926_v56 }
 0x5d5   :  { %10578 = vmatprep.subr.bf16.mxu1 %v16934_v25 }
 0x5d6   :  { %10706 = vmatpush1.bf16.msra.mxu0 %v16929_v36  ;;  %v16991_v36 = vld [vmem:[#allocation14 + $0x184] ss:$24 sps:$4 sm:$0xff]  }
 0x5d7   :  { %10707 = vmatprep.subr.bf16.mxu0 %v16937_v34 }
 0x5d8   :  { %10579 = vmatpush1.bf16.msra.mxu1 %v16932_v43 }
 0x5d9   :  { %12713 = vmatprep.subr.bf16.mxu1 %v16943_v51  ;;  %v16980_v51 = vld [vmem:[#allocation11 + $0xa60] ss:$24 sps:$4 sm:$0xff]  }
 0x5da   :  { %10708 = vmatpush1.bf16.msra.mxu0 %v16935_v57 }
 0x5db   :  { %10581 = vmatmul.mubr.bf16.vlgmr.msra.gmra.mrb[12].mxu1 %v18579_v58  ;;  %10720 = vmatprep.subr.bf16.mxu0 %v16940_v7  ;;  %v16988_v7 = vld [vmem:[#allocation11 + $0xa94] ss:$24 sps:$4 sm:$0xff]  }
 0x5dc   :  { %12714 = vmatpush1.bf16.msra.mxu1 %v16941_v16 }
 0x5dd   :  { %10710 = vmatmul.mubr.bf16.vlgmr.msra.gmra.mrb[16].mxu0 %v18381_v17  ;;  %12715 = vmatprep.subr.bf16.mxu1 %v16949_v48  ;;  %v16967_v17 = vld [vmem:[#allocation14 + $0xc4] ss:$24 sps:$4 sm:$0xff]   ;;  %v16989_v48 = vld [vmem:[#allocation14 + $0x180] ss:$24 sps:$4 sm:$0xff]  }
 0x5de   :  { %10721 = vmatpush1.bf16.msra.mxu0 %v16938_v41  ;;  %10752 = vmatprep.mubr.bf16.mxu0 %v18403_v12  ;;  %v16965_v12 = vld [vmem:[#allocation14 + $0xc0] ss:$24 sps:$4 sm:$0xff]   ;;  %v16997_v41 = vld [vmem:[#allocation14 + $0x1b4] ss:$24 sps:$4 sm:$0xff]  }
 0x5df   :  { %10722 = vmatprep.subr.bf16.mxu0 %v16946_v32  ;;  %v16986_v32 = vld [vmem:[#allocation11 + $0xa90] ss:$24 sps:$4 sm:$0xff]  }
 0x5e0   :  { %12716 = vmatpush1.bf16.msra.mxu1 %v16947_v23  ;;  %v16994_v23 = vld [vmem:[#allocation11 + $0xac4] ss:$24 sps:$4 sm:$0xff]  }
 0x5e1   :  { %12717 = vmatprep.subr.bf16.mxu1 %v16955_v62  ;;  %v16995_v62 = vld [vmem:[#allocation14 + $0x1b0] ss:$24 sps:$4 sm:$0xff]  }
 0x5e2   :  { %10723 = vmatpush1.bf16.msra.mxu0 %v16944_v27  ;;  %v17003_v27 = vld [vmem:[#allocation14 + $0x1e4] ss:$24 sps:$4 sm:$0xff]  }
 0x5e3   :  { %10724 = vmatprep.subr.bf16.mxu0 %v16952_v39  ;;  %v16992_v39 = vld [vmem:[#allocation11 + $0xac0] ss:$24 sps:$4 sm:$0xff]  }
 0x5e4   :  { %12718 = vmatpush1.bf16.msra.mxu1 %v16953_v60  ;;  %v17000_v60 = vld [vmem:[#allocation11 + $0xaf4] ss:$24 sps:$4 sm:$0xff]  }
 0x5e5   :  { %12719 = vmatprep.subr.bf16.mxu1 %v16961_v21  ;;  %v17001_v21 = vld [vmem:[#allocation14 + $0x1e0] ss:$24 sps:$4 sm:$0xff]  }
 0x5e6   :  { %10725 = vmatpush1.bf16.msra.mxu0 %v16950_v2  ;;  %v17009_v2 = vld [vmem:[#allocation14 + $0x214] ss:$24 sps:$4 sm:$0xff]  }
 0x5e7   :  { %10726 = vmatprep.subr.bf16.mxu0 %v16958_v52  ;;  %v16998_v52 = vld [vmem:[#allocation11 + $0xaf0] ss:$24 sps:$4 sm:$0xff]  }
 0x5e8   :  { %12720 = vmatpush1.bf16.msra.mxu1 %v16959_v0  ;;  %v17006_v0 = vld [vmem:[#allocation11 + $0xb24] ss:$24 sps:$4 sm:$0xff]  }
 0x5e9   :  { %12721 = vmatprep.subr.bf16.mxu1 %v16967_v17  ;;  %v17007_v17 = vld [vmem:[#allocation14 + $0x210] ss:$24 sps:$4 sm:$0xff]  }
 0x5ea   :  { %10727 = vmatpush1.bf16.msra.mxu0 %v16956_v5  ;;  %v17015_v5 = vld [vmem:[#allocation14 + $0x244] ss:$24 sps:$4 sm:$0xff]  }
 0x5eb   :  { %10728 = vmatprep.subr.bf16.mxu0 %v16964_v35  ;;  %v17004_v35 = vld [vmem:[#allocation11 + $0xb20] ss:$24 sps:$4 sm:$0xff]  }
 0x5ec   :  { %12722 = vmatpush1.bf16.msra.mxu1 %v16965_v12  ;;  %v17012_v12 = vld [vmem:[#allocation11 + $0xb54] ss:$24 sps:$4 sm:$0xff]  }
 0x5ed   :  { %12723 = vmatprep.subr.bf16.mxu1 %v16973_v37  ;;  %v17013_v37 = vld [vmem:[#allocation14 + $0x240] ss:$24 sps:$4 sm:$0xff]  }
 0x5ee   :  { %10729 = vmatpush1.bf16.msra.mxu0 %v16962_v45  ;;  %v17021_v45 = vld [vmem:[#allocation14 + $0x274] ss:$24 sps:$4 sm:$0xff]  }
 0x5ef   :  { %10730 = vmatprep.subr.bf16.mxu0 %v16970_v13  ;;  %v17010_v13 = vld [vmem:[#allocation11 + $0xb50] ss:$24 sps:$4 sm:$0xff]  }
 0x5f0   :  { %v10238_v1 = vpop.f32.mrb[12].mxu0  ;;  %12724 = vmatpush1.bf16.msra.mxu1 %v16971_v24  ;;  %v17018_v24 = vld [vmem:[#allocation11 + $0xb84] ss:$24 sps:$4 sm:$0xff]  }
 0x5f1   :  { %v14951_v28 = vadd.f32 %v10238_v1, %v6036_v26  ;;  %v10240_v44 = vpop.f32.mrb[13].mxu0  ;;  %12725 = vmatprep.subr.bf16.mxu1 %v16979_v6  ;;  %v17027_v6 = vld [vmem:[#allocation14 + $0x2a4] ss:$24 sps:$4 sm:$0xff]   ;;  %v17033_v1 = vld [vmem:[#allocation14 + $0x2d4] ss:$24 sps:$4 sm:$0xff]  }
 0x5f2   :  { %v14952_v40 = vadd.f32 %v10240_v44, %v6040_v38  ;;  %v10242_v59 = vpop.f32.mrb[14].mxu0  ;;  %10731 = vmatpush1.bf16.msra.mxu0 %v16968_v30  ;;  %v17024_v30 = vld [vmem:[#allocation11 + $0xbb4] ss:$24 sps:$4 sm:$0xff]  }
 0x5f3   :  { %v14953_v4 = vadd.f32 %v10242_v59, %v6036_v26  ;;  %v10244_v47 = vpop.f32.mrb[15].mxu0  ;;  %10732 = vmatprep.subr.bf16.mxu0 %v16976_v33  ;;  %v10935_v56 = vmax.f32 %v14951_v28, 0.0  ;;  %v17019_v26 = vld [vmem:[#allocation14 + $0x270] ss:$24 sps:$4 sm:$0xff]   ;;  %v17025_v33 = vld [vmem:[#allocation14 + $0x2a0] ss:$24 sps:$4 sm:$0xff]  }
 0x5f4   :  { %v14954_v9 = vadd.f32 %v10244_v47, %v6040_v38  ;;  %12726 = vmatpush1.bf16.msra.mxu1 %v16977_v22  ;;  %v10936_v34 = vmax.f32 %v14952_v40, 0.0  ;;  %v17016_v38 = vld [vmem:[#allocation11 + $0xb80] ss:$24 sps:$4 sm:$0xff]   ;;  %v17022_v22 = vld [vmem:[#allocation11 + $0xbb0] ss:$24 sps:$4 sm:$0xff]  }
 0x5f5   :  { %v10941_v25 = vmax.f32 %v14953_v4, 0.0  ;;  %12727 = vmatprep.subr.bf16.mxu1 %v16985_v11  ;;  %v17030_v28 = vld [vmem:[#allocation11 + $0xbe4] ss:$24 sps:$4 sm:$0xff]   ;;  %v17031_v44 = vld [vmem:[#allocation14 + $0x2d0] ss:$24 sps:$4 sm:$0xff]  }
 0x5f6   :  { %v10942_v43 = vmax.f32 %v14954_v9, 0.0  ;;  %10733 = vmatpush1.bf16.msra.mxu0 %v16974_v3  ;;  %v17108_v11 = vld [vmem:[#allocation14 + $0x304] ss:$24 sps:$4 sm:$0xff]   ;;  %v17106_v3 = vld [vmem:[#allocation14 + $0x300] ss:$24 sps:$4 sm:$0xff]  }
 0x5f7   :  { %v18634_v57 = vpack.c.bf16 %v10941_v25, %v10935_v56  ;;  %10734 = vmatprep.subr.bf16.mxu0 %v16982_v19  ;;  %v17028_v40 = vld [vmem:[#allocation11 + $0xbe0] ss:$24 sps:$4 sm:$0xff]   ;;  %v17036_v59 = vld [vmem:[#allocation11 + $0xc14] ss:$24 sps:$4 sm:$0xff]   ;;  %v17034_v47 = vld [vmem:[#allocation11 + $0xc10] ss:$24 sps:$4 sm:$0xff]  }
 0x5f8   :  { %v18636_v16 = vpack.c.bf16 %v10942_v43, %v10936_v34  ;;  %12728 = vmatpush1.bf16.msra.mxu1 %v16983_v10  ;;  %v17114_v4 = vld [vmem:[#allocation14 + $0x334] ss:$24 sps:$4 sm:$0xff]   ;;  %v17112_v9 = vld [vmem:[#allocation14 + $0x330] ss:$24 sps:$4 sm:$0xff]   ;;  %v17120_v10 = vld [vmem:[#allocation14 + $0x364] ss:$24 sps:$4 sm:$0xff]  }
 0x5f9   :  { %12729 = vmatprep.subr.bf16.mxu1 %v16991_v36  ;;  %v17039_v19 = vld [vmem:[#allocation11 + $0xc44] ss:$24 sps:$4 sm:$0xff]   ;;  %v17037_v56 = vld [vmem:[#allocation11 + $0xc40] ss:$24 sps:$4 sm:$0xff]   ;;  %v17042_v25 = vld [vmem:[#allocation11 + $0xc74] ss:$24 sps:$4 sm:$0xff]  }
 0x5fa   :  { %10735 = vmatpush1.bf16.msra.mxu0 %v16980_v51  ;;  %12745 = vmatprep.mubr.bf16.mxu1 %v18636_v16  ;;  %v17118_v36 = vld [vmem:[#allocation14 + $0x360] ss:$24 sps:$4 sm:$0xff]   ;;  %v17126_v34 = vld [vmem:[#allocation14 + $0x394] ss:$24 sps:$4 sm:$0xff]  }
 0x5fb   :  { %10736 = vmatprep.subr.bf16.mxu0 %v16988_v7  ;;  %v17040_v43 = vld [vmem:[#allocation11 + $0xc70] ss:$24 sps:$4 sm:$0xff]   ;;  %v17045_v51 = vld [vmem:[#allocation11 + $0xca4] ss:$24 sps:$4 sm:$0xff]  }
 0x5fc   :  { %12730 = vmatpush1.bf16.msra.mxu1 %v16989_v48  ;;  %v17124_v7 = vld [vmem:[#allocation14 + $0x390] ss:$24 sps:$4 sm:$0xff]  }
 0x5fd   :  { %12731 = vmatprep.subr.bf16.mxu1 %v16997_v41  ;;  %v17043_v48 = vld [vmem:[#allocation11 + $0xca0] ss:$24 sps:$4 sm:$0xff]   ;;  %v17048_v41 = vld [vmem:[#allocation11 + $0xcd4] ss:$24 sps:$4 sm:$0xff]  }
 0x5fe   :  { %10737 = vmatpush1.bf16.msra.mxu0 %v16986_v32  ;;  %v17138_v32 = vld [vmem:[#allocation14 + $0x3f4] ss:$24 sps:$4 sm:$0xff]  }
 0x5ff   :  { %10738 = vmatprep.subr.bf16.mxu0 %v16994_v23  ;;  %v17046_v23 = vld [vmem:[#allocation11 + $0xcd0] ss:$24 sps:$4 sm:$0xff]  }
 0x600   :  { %12732 = vmatpush1.bf16.msra.mxu1 %v16995_v62  ;;  %v17051_v62 = vld [vmem:[#allocation11 + $0xd04] ss:$24 sps:$4 sm:$0xff]  }
 0x601   :  { %12733 = vmatprep.subr.bf16.mxu1 %v17003_v27  ;;  %v17136_v27 = vld [vmem:[#allocation14 + $0x3f0] ss:$24 sps:$4 sm:$0xff]  }
 0x602   :  { %10739 = vmatpush1.bf16.msra.mxu0 %v16992_v39  ;;  %v17144_v39 = vld [vmem:[#allocation14 + $0x424] ss:$24 sps:$4 sm:$0xff]  }
 0x603   :  { %10740 = vmatprep.subr.bf16.mxu0 %v17000_v60  ;;  %v17049_v60 = vld [vmem:[#allocation11 + $0xd00] ss:$24 sps:$4 sm:$0xff]  }
 0x604   :  { %12734 = vmatpush1.bf16.msra.mxu1 %v17001_v21  ;;  %v17054_v21 = vld [vmem:[#allocation11 + $0xd34] ss:$24 sps:$4 sm:$0xff]  }
 0x605   :  { %12735 = vmatprep.subr.bf16.mxu1 %v17009_v2  ;;  %v17142_v2 = vld [vmem:[#allocation14 + $0x420] ss:$24 sps:$4 sm:$0xff]  }
 0x606   :  { %10741 = vmatpush1.bf16.msra.mxu0 %v16998_v52  ;;  %v17150_v52 = vld [vmem:[#allocation14 + $0x454] ss:$24 sps:$4 sm:$0xff]  }
 0x607   :  { %10742 = vmatprep.subr.bf16.mxu0 %v17006_v0  ;;  %v17052_v0 = vld [vmem:[#allocation11 + $0xd30] ss:$24 sps:$4 sm:$0xff]  }
 0x608   :  { %12736 = vmatpush1.bf16.msra.mxu1 %v17007_v17  ;;  %v17057_v17 = vld [vmem:[#allocation11 + $0xd64] ss:$24 sps:$4 sm:$0xff]  }
 0x609   :  { %12737 = vmatprep.subr.bf16.mxu1 %v17015_v5  ;;  %v17148_v5 = vld [vmem:[#allocation14 + $0x450] ss:$24 sps:$4 sm:$0xff]  }
 0x60a   :  { %10743 = vmatpush1.bf16.msra.mxu0 %v17004_v35  ;;  %v17156_v35 = vld [vmem:[#allocation14 + $0x484] ss:$24 sps:$4 sm:$0xff]  }
 0x60b   :  { %10744 = vmatprep.subr.bf16.mxu0 %v17012_v12  ;;  %v17055_v12 = vld [vmem:[#allocation11 + $0xd60] ss:$24 sps:$4 sm:$0xff]  }
 0x60c   :  { %12738 = vmatpush1.bf16.msra.mxu1 %v17013_v37  ;;  %v17060_v37 = vld [vmem:[#allocation11 + $0xd94] ss:$24 sps:$4 sm:$0xff]  }
 0x60d   :  { %12739 = vmatprep.subr.bf16.mxu1 %v17021_v45  ;;  %v17154_v45 = vld [vmem:[#allocation14 + $0x480] ss:$24 sps:$4 sm:$0xff]  }
 0x60e   :  { %10745 = vmatpush1.bf16.msra.mxu0 %v17010_v13  ;;  %v17162_v13 = vld [vmem:[#allocation14 + $0x4b4] ss:$24 sps:$4 sm:$0xff]  }
 0x60f   :  { %10746 = vmatprep.subr.bf16.mxu0 %v17018_v24  ;;  %v17058_v24 = vld [vmem:[#allocation11 + $0xd90] ss:$24 sps:$4 sm:$0xff]  }
 0x610   :  { %12740 = vmatpush1.bf16.msra.mxu1 %v17019_v26  ;;  %v17063_v26 = vld [vmem:[#allocation11 + $0xdc4] ss:$24 sps:$4 sm:$0xff]  }
 0x611   :  { %12741 = vmatprep.subr.bf16.mxu1 %v17027_v6  ;;  %v17160_v6 = vld [vmem:[#allocation14 + $0x4b0] ss:$24 sps:$4 sm:$0xff]  }
 0x612   :  { %10747 = vmatpush1.bf16.msra.mxu0 %v17016_v38  ;;  %v17168_v38 = vld [vmem:[#allocation14 + $0x4e4] ss:$24 sps:$4 sm:$0xff]  }
 0x613   :  { %10748 = vmatprep.subr.bf16.mxu0 %v17024_v30  ;;  %v17061_v30 = vld [vmem:[#allocation11 + $0xdc0] ss:$24 sps:$4 sm:$0xff]  }
 0x614   :  { %12742 = vmatpush1.bf16.msra.mxu1 %v17025_v33  ;;  %v17066_v33 = vld [vmem:[#allocation11 + $0xdf4] ss:$24 sps:$4 sm:$0xff]  }
 0x615   :  { %12743 = vmatprep.subr.bf16.mxu1 %v17033_v1  ;;  %v17166_v1 = vld [vmem:[#allocation14 + $0x4e0] ss:$24 sps:$4 sm:$0xff]  }
 0x616   :  { %10749 = vmatpush1.bf16.msra.mxu0 %v17022_v22  ;;  %v17174_v22 = vld [vmem:[#allocation14 + $0x514] ss:$24 sps:$4 sm:$0xff]  }
 0x617   :  { %10750 = vmatprep.subr.bf16.mxu0 %v17030_v28  ;;  %v17064_v28 = vld [vmem:[#allocation11 + $0xdf0] ss:$24 sps:$4 sm:$0xff]  }
 0x618   :  { %12744 = vmatpush1.bf16.msra.mxu1 %v17031_v44  ;;  %v17069_v44 = vld [vmem:[#allocation11 + $0xe24] ss:$24 sps:$4 sm:$0xff]  }
 0x619   :  { %12756 = vmatprep.subr.bf16.mxu1 %v17108_v11  ;;  %v17172_v11 = vld [vmem:[#allocation14 + $0x510] ss:$24 sps:$4 sm:$0xff]  }
 0x61a   :  { %10751 = vmatpush1.bf16.msra.mxu0 %v17028_v40  ;;  %v17180_v40 = vld [vmem:[#allocation14 + $0x544] ss:$24 sps:$4 sm:$0xff]  }
 0x61b   :  { %10763 = vmatprep.subr.bf16.mxu0 %v17036_v59  ;;  %12746 = vmatmul.mubr.bf16.vlgmr.msra.gmra.mrb[16].mxu1 %v18634_v57  ;;  %v17067_v59 = vld [vmem:[#allocation11 + $0xe20] ss:$24 sps:$4 sm:$0xff]  }
 0x61c   :  { %12757 = vmatpush1.bf16.msra.mxu1 %v17106_v3  ;;  %v17072_v3 = vld [vmem:[#allocation11 + $0xe54] ss:$24 sps:$4 sm:$0xff]  }
 0x61d   :  { %10753 = vmatmul.mubr.bf16.vlgmr.msra.gmra.mrb[16].mxu0 %v18406_v20  ;;  %12758 = vmatprep.subr.bf16.mxu1 %v17114_v4  ;;  %v17132_v20 = vld [vmem:[#allocation14 + $0x3c4] ss:$24 sps:$4 sm:$0xff]   ;;  %v17178_v4 = vld [vmem:[#allocation14 + $0x540] ss:$24 sps:$4 sm:$0xff]  }
 0x61e   :  { %10764 = vmatpush1.bf16.msra.mxu0 %v17034_v47  ;;  %10795 = vmatprep.mubr.bf16.mxu0 %v18501_v29  ;;  %v17130_v29 = vld [vmem:[#allocation14 + $0x3c0] ss:$24 sps:$4 sm:$0xff]   ;;  %v17186_v47 = vld [vmem:[#allocation14 + $0x574] ss:$24 sps:$4 sm:$0xff]  }
 0x61f   :  { %10765 = vmatprep.subr.bf16.mxu0 %v17039_v19  ;;  %v17070_v19 = vld [vmem:[#allocation11 + $0xe50] ss:$24 sps:$4 sm:$0xff]  }
 0x620   :  { %12759 = vmatpush1.bf16.msra.mxu1 %v17112_v9  ;;  %v17075_v9 = vld [vmem:[#allocation11 + $0xe84] ss:$24 sps:$4 sm:$0xff]  }
 0x621   :  { %12760 = vmatprep.subr.bf16.mxu1 %v17120_v10  ;;  %v17184_v10 = vld [vmem:[#allocation14 + $0x570] ss:$24 sps:$4 sm:$0xff]  }
 0x622   :  { %10766 = vmatpush1.bf16.msra.mxu0 %v17037_v56  ;;  %v17192_v56 = vld [vmem:[#allocation14 + $0x5a4] ss:$24 sps:$4 sm:$0xff]  }
 0x623   :  { %10767 = vmatprep.subr.bf16.mxu0 %v17042_v25  ;;  %v17073_v25 = vld [vmem:[#allocation11 + $0xe80] ss:$24 sps:$4 sm:$0xff]  }
 0x624   :  { %12761 = vmatpush1.bf16.msra.mxu1 %v17118_v36  ;;  %v17078_v36 = vld [vmem:[#allocation11 + $0xeb4] ss:$24 sps:$4 sm:$0xff]  }
 0x625   :  { %12762 = vmatprep.subr.bf16.mxu1 %v17126_v34  ;;  %v17190_v34 = vld [vmem:[#allocation14 + $0x5a0] ss:$24 sps:$4 sm:$0xff]  }
 0x626   :  { %10768 = vmatpush1.bf16.msra.mxu0 %v17040_v43  ;;  %v17198_v43 = vld [vmem:[#allocation14 + $0x5d4] ss:$24 sps:$4 sm:$0xff]  }
 0x627   :  { %10769 = vmatprep.subr.bf16.mxu0 %v17045_v51  ;;  %v17076_v51 = vld [vmem:[#allocation11 + $0xeb0] ss:$24 sps:$4 sm:$0xff]  }
 0x628   :  { %12763 = vmatpush1.bf16.msra.mxu1 %v17124_v7  ;;  %v17081_v7 = vld [vmem:[#allocation11 + $0xee4] ss:$24 sps:$4 sm:$0xff]  }
 0x629   :  { %12764 = vmatprep.subr.bf16.mxu1 %v17132_v20  ;;  %v17196_v20 = vld [vmem:[#allocation14 + $0x5d0] ss:$24 sps:$4 sm:$0xff]  }
 0x62a   :  { %10770 = vmatpush1.bf16.msra.mxu0 %v17043_v48  ;;  %v17079_v48 = vld [vmem:[#allocation11 + $0xee0] ss:$24 sps:$4 sm:$0xff]  }
 0x62b   :  { %10771 = vmatprep.subr.bf16.mxu0 %v17048_v41  ;;  %v17084_v41 = vld [vmem:[#allocation11 + $0xf14] ss:$24 sps:$4 sm:$0xff]  }
 0x62c   :  { %12765 = vmatpush1.bf16.msra.mxu1 %v17130_v29  ;;  %v17082_v29 = vld [vmem:[#allocation11 + $0xf10] ss:$24 sps:$4 sm:$0xff]  }
 0x62d   :  { %12766 = vmatprep.subr.bf16.mxu1 %v17138_v32  ;;  %v17087_v32 = vld [vmem:[#allocation11 + $0xf44] ss:$24 sps:$4 sm:$0xff]  }
 0x62e   :  { %10772 = vmatpush1.bf16.msra.mxu0 %v17046_v23  ;;  %v17085_v23 = vld [vmem:[#allocation11 + $0xf40] ss:$24 sps:$4 sm:$0xff]  }
 0x62f   :  { %10773 = vmatprep.subr.bf16.mxu0 %v17051_v62  ;;  %v17090_v62 = vld [vmem:[#allocation11 + $0xf74] ss:$24 sps:$4 sm:$0xff]  }
 0x630   :  { %12767 = vmatpush1.bf16.msra.mxu1 %v17136_v27  ;;  %v17088_v27 = vld [vmem:[#allocation11 + $0xf70] ss:$24 sps:$4 sm:$0xff]  }
 0x631   :  { %12768 = vmatprep.subr.bf16.mxu1 %v17144_v39  ;;  %v17093_v39 = vld [vmem:[#allocation11 + $0xfa4] ss:$24 sps:$4 sm:$0xff]  }
 0x632   :  { %10774 = vmatpush1.bf16.msra.mxu0 %v17049_v60  ;;  %v17091_v60 = vld [vmem:[#allocation11 + $0xfa0] ss:$24 sps:$4 sm:$0xff]  }
 0x633   :  { %10775 = vmatprep.subr.bf16.mxu0 %v17054_v21  ;;  %v17096_v21 = vld [vmem:[#allocation11 + $0xfd4] ss:$24 sps:$4 sm:$0xff]  }
 0x634   :  { %12769 = vmatpush1.bf16.msra.mxu1 %v17142_v2  ;;  %v17094_v2 = vld [vmem:[#allocation11 + $0xfd0] ss:$24 sps:$4 sm:$0xff]  }
 0x635   :  { %12770 = vmatprep.subr.bf16.mxu1 %v17150_v52  ;;  %v17099_v52 = vld [vmem:[#allocation11 + $0x1004] ss:$24 sps:$4 sm:$0xff]  }
 0x636   :  { %10776 = vmatpush1.bf16.msra.mxu0 %v17052_v0  ;;  %v17102_v0 = vld [vmem:[#allocation11 + $0x1034] ss:$24 sps:$4 sm:$0xff]  }
 0x637   :  { %10777 = vmatprep.subr.bf16.mxu0 %v17057_v17  ;;  %v17105_v17 = vld [vmem:[#allocation11 + $0x1064] ss:$24 sps:$4 sm:$0xff]  }
 0x638   :  { %12771 = vmatpush1.bf16.msra.mxu1 %v17148_v5  ;;  %v17103_v5 = vld [vmem:[#allocation11 + $0x1060] ss:$24 sps:$4 sm:$0xff]  }
 0x639   :  { %12772 = vmatprep.subr.bf16.mxu1 %v17156_v35  ;;  %v17111_v35 = vld [vmem:[#allocation11 + $0x1094] ss:$24 sps:$4 sm:$0xff]  }
 0x63a   :  { %10778 = vmatpush1.bf16.msra.mxu0 %v17055_v12  ;;  %v17109_v12 = vld [vmem:[#allocation11 + $0x1090] ss:$24 sps:$4 sm:$0xff]  }
 0x63b   :  { %10779 = vmatprep.subr.bf16.mxu0 %v17060_v37  ;;  %v17117_v37 = vld [vmem:[#allocation11 + $0x10c4] ss:$24 sps:$4 sm:$0xff]  }
 0x63c   :  { %12773 = vmatpush1.bf16.msra.mxu1 %v17154_v45  ;;  %v17115_v45 = vld [vmem:[#allocation11 + $0x10c0] ss:$24 sps:$4 sm:$0xff]  }
 0x63d   :  { %12774 = vmatprep.subr.bf16.mxu1 %v17162_v13  ;;  %v17123_v13 = vld [vmem:[#allocation11 + $0x10f4] ss:$24 sps:$4 sm:$0xff]  }
 0x63e   :  { %10780 = vmatpush1.bf16.msra.mxu0 %v17058_v24  ;;  %v17121_v24 = vld [vmem:[#allocation11 + $0x10f0] ss:$24 sps:$4 sm:$0xff]  }
 0x63f   :  { %10781 = vmatprep.subr.bf16.mxu0 %v17063_v26  ;;  %v17129_v26 = vld [vmem:[#allocation11 + $0x1124] ss:$24 sps:$4 sm:$0xff]  }
 0x640   :  { %12775 = vmatpush1.bf16.msra.mxu1 %v17160_v6  ;;  %v17127_v6 = vld [vmem:[#allocation11 + $0x1120] ss:$24 sps:$4 sm:$0xff]  }
 0x641   :  { %12776 = vmatprep.subr.bf16.mxu1 %v17168_v38  ;;  %v17135_v38 = vld [vmem:[#allocation11 + $0x1154] ss:$24 sps:$4 sm:$0xff]  }
 0x642   :  { %10782 = vmatpush1.bf16.msra.mxu0 %v17061_v30  ;;  %v17133_v30 = vld [vmem:[#allocation11 + $0x1150] ss:$24 sps:$4 sm:$0xff]  }
 0x643   :  { %10783 = vmatprep.subr.bf16.mxu0 %v17066_v33  ;;  %v17141_v33 = vld [vmem:[#allocation11 + $0x1184] ss:$24 sps:$4 sm:$0xff]  }
 0x644   :  { %12777 = vmatpush1.bf16.msra.mxu1 %v17166_v1  ;;  %v17139_v1 = vld [vmem:[#allocation11 + $0x1180] ss:$24 sps:$4 sm:$0xff]  }
 0x645   :  { %12778 = vmatprep.subr.bf16.mxu1 %v17174_v22  ;;  %v17147_v22 = vld [vmem:[#allocation11 + $0x11b4] ss:$24 sps:$4 sm:$0xff]  }
 0x646   :  { %10784 = vmatpush1.bf16.msra.mxu0 %v17064_v28  ;;  %v17145_v28 = vld [vmem:[#allocation11 + $0x11b0] ss:$24 sps:$4 sm:$0xff]  }
 0x647   :  { %10785 = vmatprep.subr.bf16.mxu0 %v17069_v44  ;;  %v17153_v44 = vld [vmem:[#allocation11 + $0x11e4] ss:$24 sps:$4 sm:$0xff]  }
 0x648   :  { %12779 = vmatpush1.bf16.msra.mxu1 %v17172_v11  ;;  %v17151_v11 = vld [vmem:[#allocation11 + $0x11e0] ss:$24 sps:$4 sm:$0xff]  }
 0x649   :  { %12780 = vmatprep.subr.bf16.mxu1 %v17180_v40  ;;  %v17159_v40 = vld [vmem:[#allocation11 + $0x1214] ss:$24 sps:$4 sm:$0xff]  }
 0x64a   :  { %10786 = vmatpush1.bf16.msra.mxu0 %v17067_v59  ;;  %v17157_v59 = vld [vmem:[#allocation11 + $0x1210] ss:$24 sps:$4 sm:$0xff]  }
 0x64b   :  { %10787 = vmatprep.subr.bf16.mxu0 %v17072_v3  ;;  %v17165_v3 = vld [vmem:[#allocation11 + $0x1244] ss:$24 sps:$4 sm:$0xff]  }
 0x64c   :  { %12781 = vmatpush1.bf16.msra.mxu1 %v17178_v4  ;;  %v17276_v4 = vld [vmem:[#allocation14 + $0x604] ss:$24 sps:$4 sm:$0xff]  }
 0x64d   :  { %12782 = vmatprep.subr.bf16.mxu1 %v17186_v47  ;;  %v17163_v47 = vld [vmem:[#allocation11 + $0x1240] ss:$24 sps:$4 sm:$0xff]  }
 0x64e   :  { %10788 = vmatpush1.bf16.msra.mxu0 %v17070_v19  ;;  %v17171_v19 = vld [vmem:[#allocation11 + $0x1274] ss:$24 sps:$4 sm:$0xff]  }
 0x64f   :  { %10789 = vmatprep.subr.bf16.mxu0 %v17075_v9  ;;  %v17169_v9 = vld [vmem:[#allocation11 + $0x1270] ss:$24 sps:$4 sm:$0xff]  }
 0x650   :  { %12783 = vmatpush1.bf16.msra.mxu1 %v17184_v10  ;;  %v17177_v10 = vld [vmem:[#allocation11 + $0x12a4] ss:$24 sps:$4 sm:$0xff]  }
 0x651   :  { %12784 = vmatprep.subr.bf16.mxu1 %v17192_v56  ;;  %v17175_v56 = vld [vmem:[#allocation11 + $0x12a0] ss:$24 sps:$4 sm:$0xff]  }
 0x652   :  { %10790 = vmatpush1.bf16.msra.mxu0 %v17073_v25  ;;  %v17183_v25 = vld [vmem:[#allocation11 + $0x12d4] ss:$24 sps:$4 sm:$0xff]  }
 0x653   :  { %10791 = vmatprep.subr.bf16.mxu0 %v17078_v36  ;;  %v17181_v36 = vld [vmem:[#allocation11 + $0x12d0] ss:$24 sps:$4 sm:$0xff]  }
 0x654   :  { %12785 = vmatpush1.bf16.msra.mxu1 %v17190_v34  ;;  %v17189_v34 = vld [vmem:[#allocation11 + $0x1304] ss:$24 sps:$4 sm:$0xff]  }
 0x655   :  { %12786 = vmatprep.subr.bf16.mxu1 %v17198_v43 }
 0x656   :  { %10792 = vmatpush1.bf16.msra.mxu0 %v17076_v51  ;;  %v17187_v51 = vld [vmem:[#allocation11 + $0x1300] ss:$24 sps:$4 sm:$0xff]  }
 0x657   :  { %10793 = vmatprep.subr.bf16.mxu0 %v17081_v7 }
 0x658   :  { %12787 = vmatpush1.bf16.msra.mxu1 %v17196_v20 }
 0x659   :  { %12799 = vmatprep.subr.bf16.mxu1 %v17276_v4  ;;  %v17294_v4 = vld [vmem:[#allocation14 + $0x724] ss:$24 sps:$4 sm:$0xff]  }
 0x65a   :  { %10794 = vmatpush1.bf16.msra.mxu0 %v17079_v48  ;;  %v17195_v48 = vld [vmem:[#allocation11 + $0x1334] ss:$24 sps:$4 sm:$0xff]  }
 0x65b   :  { %10806 = vmatprep.subr.bf16.mxu0 %v17084_v41 }
 0x65d   :  { %10796 = vmatmul.mubr.bf16.vlgmr.msra.gmra.mrb[16].mxu0 %v18453_v50  ;;  %v17097_v50 = vld [vmem:[#allocation11 + $0x1000] ss:$24 sps:$4 sm:$0xff]  }
 0x65e   :  { %10807 = vmatpush1.bf16.msra.mxu0 %v17082_v29  ;;  %10838 = vmatprep.mubr.bf16.mxu0 %v18505_v63  ;;  %v17100_v63 = vld [vmem:[#allocation11 + $0x1030] ss:$24 sps:$4 sm:$0xff]  }
 0x65f   :  { %10808 = vmatprep.subr.bf16.mxu0 %v17087_v32 }
 0x662   :  { %10809 = vmatpush1.bf16.msra.mxu0 %v17085_v23 }
 0x663   :  { %10810 = vmatprep.subr.bf16.mxu0 %v17090_v62 }
 0x666   :  { %10811 = vmatpush1.bf16.msra.mxu0 %v17088_v27  ;;  %v17193_v27 = vld [vmem:[#allocation11 + $0x1330] ss:$24 sps:$4 sm:$0xff]  }
 0x667   :  { %10812 = vmatprep.subr.bf16.mxu0 %v17093_v39 }
 0x66a   :  { %10813 = vmatpush1.bf16.msra.mxu0 %v17091_v60 }
 0x66b   :  { %10814 = vmatprep.subr.bf16.mxu0 %v17096_v21  ;;  %v17201_v21 = vld [vmem:[#allocation11 + $0x1364] ss:$24 sps:$4 sm:$0xff]  }
 0x66e   :  { %10815 = vmatpush1.bf16.msra.mxu0 %v17094_v2 }
 0x66f   :  { %10816 = vmatprep.subr.bf16.mxu0 %v17099_v52 }
 0x672   :  { %10817 = vmatpush1.bf16.msra.mxu0 %v17097_v50 }
 0x673   :  { %10818 = vmatprep.subr.bf16.mxu0 %v17102_v0  ;;  %v17199_v0 = vld [vmem:[#allocation11 + $0x1360] ss:$24 sps:$4 sm:$0xff]  }
 0x676   :  { %10819 = vmatpush1.bf16.msra.mxu0 %v17100_v63  ;;  %v17274_v63 = vld [vmem:[#allocation14 + $0x600] ss:$24 sps:$4 sm:$0xff]  }
 0x677   :  { %10820 = vmatprep.subr.bf16.mxu0 %v17105_v17  ;;  %v17204_v17 = vld [vmem:[#allocation11 + $0x1394] ss:$24 sps:$4 sm:$0xff]  }
 0x67a   :  { %10821 = vmatpush1.bf16.msra.mxu0 %v17103_v5  ;;  %v17279_v5 = vld [vmem:[#allocation14 + $0x634] ss:$24 sps:$4 sm:$0xff]  }
 0x67b   :  { %10822 = vmatprep.subr.bf16.mxu0 %v17111_v35  ;;  %v17202_v35 = vld [vmem:[#allocation11 + $0x1390] ss:$24 sps:$4 sm:$0xff]  }
 0x67e   :  { %10823 = vmatpush1.bf16.msra.mxu0 %v17109_v12  ;;  %v17277_v12 = vld [vmem:[#allocation14 + $0x630] ss:$24 sps:$4 sm:$0xff]  }
 0x67f   :  { %10824 = vmatprep.subr.bf16.mxu0 %v17117_v37  ;;  %v17207_v37 = vld [vmem:[#allocation11 + $0x13c4] ss:$24 sps:$4 sm:$0xff]  }
 0x682   :  { %10825 = vmatpush1.bf16.msra.mxu0 %v17115_v45  ;;  %v17282_v45 = vld [vmem:[#allocation14 + $0x664] ss:$24 sps:$4 sm:$0xff]  }
 0x683   :  { %10826 = vmatprep.subr.bf16.mxu0 %v17123_v13  ;;  %v17205_v13 = vld [vmem:[#allocation11 + $0x13c0] ss:$24 sps:$4 sm:$0xff]  }
 0x686   :  { %10827 = vmatpush1.bf16.msra.mxu0 %v17121_v24  ;;  %v17280_v24 = vld [vmem:[#allocation14 + $0x660] ss:$24 sps:$4 sm:$0xff]  }
 0x687   :  { %10828 = vmatprep.subr.bf16.mxu0 %v17129_v26  ;;  %v17210_v26 = vld [vmem:[#allocation11 + $0x13f4] ss:$24 sps:$4 sm:$0xff]  }
 0x68a   :  { %10829 = vmatpush1.bf16.msra.mxu0 %v17127_v6  ;;  %v17285_v6 = vld [vmem:[#allocation14 + $0x694] ss:$24 sps:$4 sm:$0xff]  }
 0x68b   :  { %10830 = vmatprep.subr.bf16.mxu0 %v17135_v38  ;;  %v17208_v38 = vld [vmem:[#allocation11 + $0x13f0] ss:$24 sps:$4 sm:$0xff]  }
 0x68e   :  { %10831 = vmatpush1.bf16.msra.mxu0 %v17133_v30  ;;  %v17283_v30 = vld [vmem:[#allocation14 + $0x690] ss:$24 sps:$4 sm:$0xff]  }
 0x68f   :  { %10832 = vmatprep.subr.bf16.mxu0 %v17141_v33  ;;  %v17213_v33 = vld [vmem:[#allocation11 + $0x1424] ss:$24 sps:$4 sm:$0xff]  }
 0x692   :  { %10833 = vmatpush1.bf16.msra.mxu0 %v17139_v1  ;;  %v17288_v1 = vld [vmem:[#allocation14 + $0x6c4] ss:$24 sps:$4 sm:$0xff]  }
 0x693   :  { %10834 = vmatprep.subr.bf16.mxu0 %v17147_v22  ;;  %v17211_v22 = vld [vmem:[#allocation11 + $0x1420] ss:$24 sps:$4 sm:$0xff]  }
 0x696   :  { %10835 = vmatpush1.bf16.msra.mxu0 %v17145_v28  ;;  %v17286_v28 = vld [vmem:[#allocation14 + $0x6c0] ss:$24 sps:$4 sm:$0xff]  }
 0x697   :  { %10836 = vmatprep.subr.bf16.mxu0 %v17153_v44  ;;  %v17216_v44 = vld [vmem:[#allocation11 + $0x1454] ss:$24 sps:$4 sm:$0xff]  }
 0x69a   :  { %10837 = vmatpush1.bf16.msra.mxu0 %v17151_v11  ;;  %v17291_v11 = vld [vmem:[#allocation14 + $0x6f4] ss:$24 sps:$4 sm:$0xff]  }
 0x69b   :  { %10849 = vmatprep.subr.bf16.mxu0 %v17159_v40  ;;  %v17214_v40 = vld [vmem:[#allocation11 + $0x1450] ss:$24 sps:$4 sm:$0xff]  }
 0x69d   :  { %10839 = vmatmul.mubr.bf16.vlgmr.msra.gmra.mrb[16].mxu0 %v18508_v49  ;;  %v6044_v49 = vrot.slane %v18628_v42, %v18186_v15 }
 0x69e   :  { %10850 = vmatpush1.bf16.msra.mxu0 %v17157_v59  ;;  %10881 = vmatprep.mubr.bf16.mxu0 %v18573_v8  ;;  %v6048_v8 = vrot.slane %v18628_v42, %v18192_v18  ;;  %v17289_v59 = vld [vmem:[#allocation14 + $0x6f0] ss:$24 sps:$4 sm:$0xff]  }
 0x69f   :  { %10851 = vmatprep.subr.bf16.mxu0 %v17165_v3  ;;  %v17219_v3 = vld [vmem:[#allocation11 + $0x1484] ss:$24 sps:$4 sm:$0xff]  }
 0x6a2   :  { %10852 = vmatpush1.bf16.msra.mxu0 %v17163_v47  ;;  %v17217_v47 = vld [vmem:[#allocation11 + $0x1480] ss:$24 sps:$4 sm:$0xff]  }
 0x6a3   :  { %10853 = vmatprep.subr.bf16.mxu0 %v17171_v19  ;;  %v17292_v19 = vld [vmem:[#allocation14 + $0x720] ss:$24 sps:$4 sm:$0xff]  }
 0x6a6   :  { %10854 = vmatpush1.bf16.msra.mxu0 %v17169_v9  ;;  %v17222_v9 = vld [vmem:[#allocation11 + $0x14b4] ss:$24 sps:$4 sm:$0xff]  }
 0x6a7   :  { %10855 = vmatprep.subr.bf16.mxu0 %v17177_v10  ;;  %v17297_v10 = vld [vmem:[#allocation14 + $0x754] ss:$24 sps:$4 sm:$0xff]  }
 0x6aa   :  { %10856 = vmatpush1.bf16.msra.mxu0 %v17175_v56  ;;  %v17220_v56 = vld [vmem:[#allocation11 + $0x14b0] ss:$24 sps:$4 sm:$0xff]  }
 0x6ab   :  { %10857 = vmatprep.subr.bf16.mxu0 %v17183_v25  ;;  %v17295_v25 = vld [vmem:[#allocation14 + $0x750] ss:$24 sps:$4 sm:$0xff]  }
 0x6ae   :  { %10858 = vmatpush1.bf16.msra.mxu0 %v17181_v36  ;;  %v10582_v43 = vpop.f32.mrb[12].mxu1  ;;  %v17225_v36 = vld [vmem:[#allocation11 + $0x14e4] ss:$24 sps:$4 sm:$0xff]  }
 0x6af   :  { %v14955_v7 = vadd.f32 %v10582_v43, %v6044_v49  ;;  %v10584_v20 = vpop.f32.mrb[13].mxu1  ;;  %10859 = vmatprep.subr.bf16.mxu0 %v17189_v34  ;;  %v17223_v34 = vld [vmem:[#allocation11 + $0x14e0] ss:$24 sps:$4 sm:$0xff]   ;;  %v17228_v43 = vld [vmem:[#allocation11 + $0x1514] ss:$24 sps:$4 sm:$0xff]  }
 0x6b0   :  { %v14956_v41 = vadd.f32 %v10584_v20, %v6048_v8  ;;  %v10586_v29 = vpop.f32.mrb[14].mxu1  ;;  %v17231_v20 = vld [vmem:[#allocation11 + $0x1544] ss:$24 sps:$4 sm:$0xff]  }
 0x6b1   :  { %v14957_v32 = vadd.f32 %v10586_v29, %v6044_v49  ;;  %v10588_v23 = vpop.f32.mrb[15].mxu1  ;;  %v10937_v39 = vmax.f32 %v14955_v7, 0.0  ;;  %v17300_v49 = vld [vmem:[#allocation14 + $0x784] ss:$24 sps:$4 sm:$0xff]  }
 0x6b2   :  { %10860 = vmatpush1.bf16.msra.mxu0 %v17187_v51  ;;  %v14958_v62 = vadd.f32 %v10588_v23, %v6048_v8  ;;  %v10938_v2 = vmax.f32 %v14956_v41, 0.0  ;;  %v17298_v8 = vld [vmem:[#allocation14 + $0x780] ss:$24 sps:$4 sm:$0xff]   ;;  %v17303_v51 = vld [vmem:[#allocation14 + $0x7b4] ss:$24 sps:$4 sm:$0xff]  }
 0x6b3   :  { %v10943_v60 = vmax.f32 %v14957_v32, 0.0  ;;  %10861 = vmatprep.subr.bf16.mxu0 %v17195_v48  ;;  %v17226_v7 = vld [vmem:[#allocation11 + $0x1510] ss:$24 sps:$4 sm:$0xff]   ;;  %v17229_v29 = vld [vmem:[#allocation11 + $0x1540] ss:$24 sps:$4 sm:$0xff]  }
 0x6b4   :  { %v10944_v42 = vmax.f32 %v14958_v62, 0.0  ;;  %v17301_v48 = vld [vmem:[#allocation14 + $0x7b0] ss:$24 sps:$4 sm:$0xff]   ;;  %v17306_v41 = vld [vmem:[#allocation14 + $0x7e4] ss:$24 sps:$4 sm:$0xff]  }
 0x6b5   :  { %v18650_v52 = vpack.c.bf16 %v10943_v60, %v10937_v39  ;;  %v17234_v32 = vld [vmem:[#allocation11 + $0x1574] ss:$24 sps:$4 sm:$0xff]   ;;  %v17304_v23 = vld [vmem:[#allocation14 + $0x7e0] ss:$24 sps:$4 sm:$0xff]  }
 0x6b6   :  { %v18652_v50 = vpack.c.bf16 %v10944_v42, %v10938_v2  ;;  %10862 = vmatpush1.bf16.msra.mxu0 %v17193_v27  ;;  %v17309_v62 = vld [vmem:[#allocation14 + $0x814] ss:$24 sps:$4 sm:$0xff]   ;;  %v17307_v60 = vld [vmem:[#allocation14 + $0x810] ss:$24 sps:$4 sm:$0xff]  }
 0x6b7   :  { %10863 = vmatprep.subr.bf16.mxu0 %v17201_v21  ;;  %v17232_v27 = vld [vmem:[#allocation11 + $0x1570] ss:$24 sps:$4 sm:$0xff]   ;;  %v17237_v39 = vld [vmem:[#allocation11 + $0x15a4] ss:$24 sps:$4 sm:$0xff]   ;;  %v17240_v2 = vld [vmem:[#allocation11 + $0x15d4] ss:$24 sps:$4 sm:$0xff]  }
 0x6b8   :  { %12788 = vmatprep.mubr.bf16.mxu1 %v18652_v50  ;;  %v17312_v21 = vld [vmem:[#allocation14 + $0x844] ss:$24 sps:$4 sm:$0xff]   ;;  %v17315_v42 = vld [vmem:[#allocation14 + $0x874] ss:$24 sps:$4 sm:$0xff]  }
 0x6b9   :  { %12789 = vmatmul.mubr.bf16.vlgmr.msra.gmra.mrb[16].mxu1 %v18650_v52 }
 0x6ba   :  { %10864 = vmatpush1.bf16.msra.mxu0 %v17199_v0  ;;  %12800 = vmatpush1.bf16.msra.mxu1 %v17274_v63  ;;  %v17238_v0 = vld [vmem:[#allocation11 + $0x15d0] ss:$24 sps:$4 sm:$0xff]   ;;  %v17243_v63 = vld [vmem:[#allocation11 + $0x1604] ss:$24 sps:$4 sm:$0xff]  }
 0x6bb   :  { %10865 = vmatprep.subr.bf16.mxu0 %v17204_v17  ;;  %12801 = vmatprep.subr.bf16.mxu1 %v17279_v5  ;;  %v17313_v17 = vld [vmem:[#allocation14 + $0x870] ss:$24 sps:$4 sm:$0xff]  }
 0x6bc   :  { %v17241_v5 = vld [vmem:[#allocation11 + $0x1600] ss:$24 sps:$4 sm:$0xff]  }
 0x6be   :  { %10866 = vmatpush1.bf16.msra.mxu0 %v17202_v35  ;;  %12802 = vmatpush1.bf16.msra.mxu1 %v17277_v12  ;;  %v17246_v35 = vld [vmem:[#allocation11 + $0x1634] ss:$24 sps:$4 sm:$0xff]   ;;  %v17244_v12 = vld [vmem:[#allocation11 + $0x1630] ss:$24 sps:$4 sm:$0xff]  }
 0x6bf   :  { %10867 = vmatprep.subr.bf16.mxu0 %v17207_v37  ;;  %12803 = vmatprep.subr.bf16.mxu1 %v17282_v45  ;;  %v17249_v37 = vld [vmem:[#allocation11 + $0x1664] ss:$24 sps:$4 sm:$0xff]   ;;  %v17247_v45 = vld [vmem:[#allocation11 + $0x1660] ss:$24 sps:$4 sm:$0xff]  }
 0x6c2   :  { %10868 = vmatpush1.bf16.msra.mxu0 %v17205_v13  ;;  %12804 = vmatpush1.bf16.msra.mxu1 %v17280_v24  ;;  %v17252_v13 = vld [vmem:[#allocation11 + $0x1694] ss:$24 sps:$4 sm:$0xff]   ;;  %v17250_v24 = vld [vmem:[#allocation11 + $0x1690] ss:$24 sps:$4 sm:$0xff]  }
 0x6c3   :  { %10869 = vmatprep.subr.bf16.mxu0 %v17210_v26  ;;  %12805 = vmatprep.subr.bf16.mxu1 %v17285_v6  ;;  %v17255_v26 = vld [vmem:[#allocation11 + $0x16c4] ss:$24 sps:$4 sm:$0xff]   ;;  %v17253_v6 = vld [vmem:[#allocation11 + $0x16c0] ss:$24 sps:$4 sm:$0xff]  }
 0x6c6   :  { %10870 = vmatpush1.bf16.msra.mxu0 %v17208_v38  ;;  %12806 = vmatpush1.bf16.msra.mxu1 %v17283_v30  ;;  %v17258_v38 = vld [vmem:[#allocation11 + $0x16f4] ss:$24 sps:$4 sm:$0xff]   ;;  %v17256_v30 = vld [vmem:[#allocation11 + $0x16f0] ss:$24 sps:$4 sm:$0xff]  }
 0x6c7   :  { %10871 = vmatprep.subr.bf16.mxu0 %v17213_v33  ;;  %12807 = vmatprep.subr.bf16.mxu1 %v17288_v1  ;;  %v17261_v33 = vld [vmem:[#allocation11 + $0x1724] ss:$24 sps:$4 sm:$0xff]   ;;  %v17259_v1 = vld [vmem:[#allocation11 + $0x1720] ss:$24 sps:$4 sm:$0xff]  }
 0x6ca   :  { %10872 = vmatpush1.bf16.msra.mxu0 %v17211_v22  ;;  %12808 = vmatpush1.bf16.msra.mxu1 %v17286_v28  ;;  %v17264_v22 = vld [vmem:[#allocation11 + $0x1754] ss:$24 sps:$4 sm:$0xff]   ;;  %v17262_v28 = vld [vmem:[#allocation11 + $0x1750] ss:$24 sps:$4 sm:$0xff]  }
 0x6cb   :  { %10873 = vmatprep.subr.bf16.mxu0 %v17216_v44  ;;  %12809 = vmatprep.subr.bf16.mxu1 %v17291_v11  ;;  %v17267_v44 = vld [vmem:[#allocation11 + $0x1784] ss:$24 sps:$4 sm:$0xff]   ;;  %v17265_v11 = vld [vmem:[#allocation11 + $0x1780] ss:$24 sps:$4 sm:$0xff]  }
 0x6ce   :  { %10874 = vmatpush1.bf16.msra.mxu0 %v17214_v40  ;;  %12810 = vmatpush1.bf16.msra.mxu1 %v17289_v59  ;;  %v17270_v40 = vld [vmem:[#allocation11 + $0x17b4] ss:$24 sps:$4 sm:$0xff]   ;;  %v17268_v59 = vld [vmem:[#allocation11 + $0x17b0] ss:$24 sps:$4 sm:$0xff]  }
 0x6cf   :  { %10875 = vmatprep.subr.bf16.mxu0 %v17219_v3  ;;  %12811 = vmatprep.subr.bf16.mxu1 %v17294_v4  ;;  %v17273_v3 = vld [vmem:[#allocation11 + $0x17e4] ss:$24 sps:$4 sm:$0xff]   ;;  %v17271_v4 = vld [vmem:[#allocation11 + $0x17e0] ss:$24 sps:$4 sm:$0xff]  }
 0x6d2   :  { %10876 = vmatpush1.bf16.msra.mxu0 %v17217_v47  ;;  %12812 = vmatpush1.bf16.msra.mxu1 %v17292_v19  ;;  %v17318_v47 = vld [vmem:[#allocation14 + $0x8a4] ss:$24 sps:$4 sm:$0xff]   ;;  %v17316_v19 = vld [vmem:[#allocation14 + $0x8a0] ss:$24 sps:$4 sm:$0xff]  }
 0x6d3   :  { %10877 = vmatprep.subr.bf16.mxu0 %v17222_v9  ;;  %12813 = vmatprep.subr.bf16.mxu1 %v17297_v10  ;;  %v17321_v9 = vld [vmem:[#allocation14 + $0x8d4] ss:$24 sps:$4 sm:$0xff]   ;;  %v17319_v10 = vld [vmem:[#allocation14 + $0x8d0] ss:$24 sps:$4 sm:$0xff]  }
 0x6d6   :  { %10878 = vmatpush1.bf16.msra.mxu0 %v17220_v56  ;;  %12814 = vmatpush1.bf16.msra.mxu1 %v17295_v25  ;;  %v17324_v56 = vld [vmem:[#allocation14 + $0xc] ss:$24 sps:$4 sm:$0xff]   ;;  %v17635_v25 = vld [vmem:[#allocation13] sm:$0x3f] }
 0x6d7   :  { %10879 = vmatprep.subr.bf16.mxu0 %v17225_v36  ;;  %12815 = vmatprep.subr.bf16.mxu1 %v17300_v49  ;;  %v6052_v36 = vrot.slane %v17635_v25, %v18271_v54  ;;  %v6056_v49 = vrot.slane %v17635_v25, %v18274_v31  ;;  %v17376_v25 = vld [vmem:[#allocation14 + $0x368] ss:$24 sps:$4 sm:$0xff]  }
 0x6da   :  { %10880 = vmatpush1.bf16.msra.mxu0 %v17223_v34  ;;  %12816 = vmatpush1.bf16.msra.mxu1 %v17298_v8 }
 0x6db   :  { %10892 = vmatprep.subr.bf16.mxu0 %v17228_v43  ;;  %12817 = vmatprep.subr.bf16.mxu1 %v17303_v51 }
 0x6dd   :  { %10882 = vmatmul.mubr.bf16.vlgmr.msra.gmra.mrb[16].mxu0 %v18555_v61  ;;  %v17235_v61 = vld [vmem:[#allocation11 + $0x15a0] ss:$24 sps:$4 sm:$0xff]  }
 0x6de   :  { %10893 = vmatpush1.bf16.msra.mxu0 %v17226_v7  ;;  %10924 = vmatprep.mubr.bf16.mxu0 %v18576_v53  ;;  %v17310_v53 = vld [vmem:[#allocation14 + $0x840] ss:$24 sps:$4 sm:$0xff]  }
 0x6df   :  { %10894 = vmatprep.subr.bf16.mxu0 %v17231_v20  ;;  %12818 = vmatpush1.bf16.msra.mxu1 %v17301_v48 }
 0x6e0   :  { %12819 = vmatprep.subr.bf16.mxu1 %v17306_v41 }
 0x6e2   :  { %10895 = vmatpush1.bf16.msra.mxu0 %v17229_v29 }
 0x6e3   :  { %10896 = vmatprep.subr.bf16.mxu0 %v17234_v32  ;;  %12820 = vmatpush1.bf16.msra.mxu1 %v17304_v23 }
 0x6e4   :  { %12821 = vmatprep.subr.bf16.mxu1 %v17309_v62 }
 0x6e6   :  { %10897 = vmatpush1.bf16.msra.mxu0 %v17232_v27 }
 0x6e7   :  { %10898 = vmatprep.subr.bf16.mxu0 %v17237_v39  ;;  %12822 = vmatpush1.bf16.msra.mxu1 %v17307_v60  ;;  %v17322_v39 = vld [vmem:[#allocation14 + $0x8] ss:$24 sps:$4 sm:$0xff]   ;;  %v17327_v60 = vld [vmem:[#allocation14 + $0x3c] ss:$24 sps:$4 sm:$0xff]  }
 0x6e8   :  { %12823 = vmatprep.subr.bf16.mxu1 %v17312_v21  ;;  %v17325_v21 = vld [vmem:[#allocation14 + $0x38] ss:$24 sps:$4 sm:$0xff]  }
 0x6ea   :  { %10899 = vmatpush1.bf16.msra.mxu0 %v17235_v61  ;;  %v17330_v61 = vld [vmem:[#allocation14 + $0x6c] ss:$24 sps:$4 sm:$0xff]  }
 0x6eb   :  { %10900 = vmatprep.subr.bf16.mxu0 %v17240_v2  ;;  %12824 = vmatpush1.bf16.msra.mxu1 %v17310_v53  ;;  %v17328_v2 = vld [vmem:[#allocation14 + $0x68] ss:$24 sps:$4 sm:$0xff]   ;;  %v17333_v53 = vld [vmem:[#allocation14 + $0x9c] ss:$24 sps:$4 sm:$0xff]  }
 0x6ec   :  { %12825 = vmatprep.subr.bf16.mxu1 %v17315_v42  ;;  %v17331_v42 = vld [vmem:[#allocation14 + $0x98] ss:$24 sps:$4 sm:$0xff]  }
 0x6ee   :  { %10901 = vmatpush1.bf16.msra.mxu0 %v17238_v0  ;;  %v17336_v0 = vld [vmem:[#allocation14 + $0xcc] ss:$24 sps:$4 sm:$0xff]  }
 0x6ef   :  { %10902 = vmatprep.subr.bf16.mxu0 %v17243_v63  ;;  %12826 = vmatpush1.bf16.msra.mxu1 %v17313_v17  ;;  %v17334_v63 = vld [vmem:[#allocation14 + $0xc8] ss:$24 sps:$4 sm:$0xff]   ;;  %v17339_v17 = vld [vmem:[#allocation14 + $0xfc] ss:$24 sps:$4 sm:$0xff]  }
 0x6f0   :  { %12827 = vmatprep.subr.bf16.mxu1 %v17318_v47  ;;  %v17372_v47 = vld [vmem:[#allocation14 + $0x30c] ss:$24 sps:$4 sm:$0xff]  }
 0x6f2   :  { %10903 = vmatpush1.bf16.msra.mxu0 %v17241_v5  ;;  %v17337_v5 = vld [vmem:[#allocation14 + $0xf8] ss:$24 sps:$4 sm:$0xff]  }
 0x6f3   :  { %10904 = vmatprep.subr.bf16.mxu0 %v17246_v35  ;;  %12828 = vmatpush1.bf16.msra.mxu1 %v17316_v19  ;;  %v17342_v35 = vld [vmem:[#allocation14 + $0x12c] ss:$24 sps:$4 sm:$0xff]   ;;  %v17370_v19 = vld [vmem:[#allocation14 + $0x308] ss:$24 sps:$4 sm:$0xff]  }
 0x6f4   :  { %12829 = vmatprep.subr.bf16.mxu1 %v17321_v9  ;;  %v17375_v9 = vld [vmem:[#allocation14 + $0x33c] ss:$24 sps:$4 sm:$0xff]  }
 0x6f6   :  { %10905 = vmatpush1.bf16.msra.mxu0 %v17244_v12  ;;  %v17340_v12 = vld [vmem:[#allocation14 + $0x128] ss:$24 sps:$4 sm:$0xff]  }
 0x6f7   :  { %10906 = vmatprep.subr.bf16.mxu0 %v17249_v37  ;;  %12830 = vmatpush1.bf16.msra.mxu1 %v17319_v10  ;;  %v17345_v37 = vld [vmem:[#allocation14 + $0x15c] ss:$24 sps:$4 sm:$0xff]   ;;  %v17373_v10 = vld [vmem:[#allocation14 + $0x338] ss:$24 sps:$4 sm:$0xff]  }
 0x6f8   :  { %12842 = vmatprep.subr.bf16.mxu1 %v17324_v56  ;;  %v17378_v56 = vld [vmem:[#allocation14 + $0x36c] ss:$24 sps:$4 sm:$0xff]  }
 0x6fa   :  { %10907 = vmatpush1.bf16.msra.mxu0 %v17247_v45  ;;  %v17343_v45 = vld [vmem:[#allocation14 + $0x158] ss:$24 sps:$4 sm:$0xff]  }
 0x6fb   :  { %10908 = vmatprep.subr.bf16.mxu0 %v17252_v13  ;;  %v17348_v13 = vld [vmem:[#allocation14 + $0x18c] ss:$24 sps:$4 sm:$0xff]  }
 0x6fe   :  { %10909 = vmatpush1.bf16.msra.mxu0 %v17250_v24  ;;  %v17346_v24 = vld [vmem:[#allocation14 + $0x188] ss:$24 sps:$4 sm:$0xff]  }
 0x6ff   :  { %10910 = vmatprep.subr.bf16.mxu0 %v17255_v26  ;;  %v17351_v26 = vld [vmem:[#allocation14 + $0x1bc] ss:$24 sps:$4 sm:$0xff]  }
 0x702   :  { %10911 = vmatpush1.bf16.msra.mxu0 %v17253_v6  ;;  %v17349_v6 = vld [vmem:[#allocation14 + $0x1b8] ss:$24 sps:$4 sm:$0xff]  }
 0x703   :  { %10912 = vmatprep.subr.bf16.mxu0 %v17258_v38  ;;  %v17354_v38 = vld [vmem:[#allocation14 + $0x1ec] ss:$24 sps:$4 sm:$0xff]  }
 0x706   :  { %10913 = vmatpush1.bf16.msra.mxu0 %v17256_v30  ;;  %v17352_v30 = vld [vmem:[#allocation14 + $0x1e8] ss:$24 sps:$4 sm:$0xff]  }
 0x707   :  { %10914 = vmatprep.subr.bf16.mxu0 %v17261_v33  ;;  %v17357_v33 = vld [vmem:[#allocation14 + $0x21c] ss:$24 sps:$4 sm:$0xff]  }
 0x70a   :  { %10915 = vmatpush1.bf16.msra.mxu0 %v17259_v1  ;;  %v17355_v1 = vld [vmem:[#allocation14 + $0x218] ss:$24 sps:$4 sm:$0xff]  }
 0x70b   :  { %10916 = vmatprep.subr.bf16.mxu0 %v17264_v22  ;;  %v17360_v22 = vld [vmem:[#allocation14 + $0x24c] ss:$24 sps:$4 sm:$0xff]  }
 0x70e   :  { %10917 = vmatpush1.bf16.msra.mxu0 %v17262_v28  ;;  %v17358_v28 = vld [vmem:[#allocation14 + $0x248] ss:$24 sps:$4 sm:$0xff]  }
 0x70f   :  { %10918 = vmatprep.subr.bf16.mxu0 %v17267_v44  ;;  %v17363_v44 = vld [vmem:[#allocation14 + $0x27c] ss:$24 sps:$4 sm:$0xff]  }
 0x712   :  { %10919 = vmatpush1.bf16.msra.mxu0 %v17265_v11  ;;  %v17361_v11 = vld [vmem:[#allocation14 + $0x278] ss:$24 sps:$4 sm:$0xff]  }
 0x713   :  { %10920 = vmatprep.subr.bf16.mxu0 %v17270_v40  ;;  %v17366_v40 = vld [vmem:[#allocation14 + $0x2ac] ss:$24 sps:$4 sm:$0xff]  }
 0x716   :  { %10921 = vmatpush1.bf16.msra.mxu0 %v17268_v59  ;;  %v17364_v59 = vld [vmem:[#allocation14 + $0x2a8] ss:$24 sps:$4 sm:$0xff]  }
 0x717   :  { %10922 = vmatprep.subr.bf16.mxu0 %v17273_v3  ;;  %v17369_v3 = vld [vmem:[#allocation14 + $0x2dc] ss:$24 sps:$4 sm:$0xff]  }
 0x71a   :  { %10923 = vmatpush1.bf16.msra.mxu0 %v17271_v4  ;;  %v17367_v4 = vld [vmem:[#allocation14 + $0x2d8] ss:$24 sps:$4 sm:$0xff]  }
 0x71d   :  { %10925 = vmatmul.mubr.bf16.vlgmr.msra.gmra.mrb[16].mxu0 %v18579_v58 }
 0x7f0   :  { %v10926_v34 = vpop.f32.mrb[16].mxu0 }
 0x7f1   :  { %v14959_v8 = vadd.f32 %v10926_v34, %v6052_v36  ;;  %v10928_v43 = vpop.f32.mrb[17].mxu0  ;;  %v17384_v34 = vld [vmem:[#allocation14 + $0x3cc] ss:$24 sps:$4 sm:$0xff]  }
 0x7f2   :  { %v14960_v51 = vadd.f32 %v10928_v43, %v6056_v49  ;;  %v10930_v58 = vpop.f32.mrb[18].mxu0  ;;  %v17387_v43 = vld [vmem:[#allocation14 + $0x3fc] ss:$24 sps:$4 sm:$0xff]  }
 0x7f3   :  { %v14961_v7 = vadd.f32 %v10930_v58, %v6052_v36  ;;  %v10932_v20 = vpop.f32.mrb[19].mxu0  ;;  %v10939_v41 = vmax.f32 %v14959_v8, 0.0  ;;  %v17381_v36 = vld [vmem:[#allocation14 + $0x39c] ss:$24 sps:$4 sm:$0xff]   ;;  %v17382_v8 = vld [vmem:[#allocation14 + $0x3c8] ss:$24 sps:$4 sm:$0xff]  }
 0x7f4   :  { %v14962_v48 = vadd.f32 %v10932_v20, %v6056_v49  ;;  %v10940_v32 = vmax.f32 %v14960_v51, 0.0  ;;  %v17379_v49 = vld [vmem:[#allocation14 + $0x398] ss:$24 sps:$4 sm:$0xff]   ;;  %v17390_v58 = vld [vmem:[#allocation14 + $0x42c] ss:$24 sps:$4 sm:$0xff]  }
 0x7f5   :  { %v10945_v29 = vmax.f32 %v14961_v7, 0.0  ;;  %v17385_v51 = vld [vmem:[#allocation14 + $0x3f8] ss:$24 sps:$4 sm:$0xff]   ;;  %v17388_v7 = vld [vmem:[#allocation14 + $0x428] ss:$24 sps:$4 sm:$0xff]  }
 0x7f6   :  { %v10946_v23 = vmax.f32 %v14962_v48, 0.0  ;;  %v17393_v20 = vld [vmem:[#allocation14 + $0x45c] ss:$24 sps:$4 sm:$0xff]   ;;  %v17391_v48 = vld [vmem:[#allocation14 + $0x458] ss:$24 sps:$4 sm:$0xff]  }
 0x7f7   :  { %v18661_v62 = vpack.c.bf16 %v10945_v29, %v10939_v41  ;;  %v17396_v41 = vld [vmem:[#allocation14 + $0x48c] ss:$24 sps:$4 sm:$0xff]   ;;  %v17394_v29 = vld [vmem:[#allocation14 + $0x488] ss:$24 sps:$4 sm:$0xff]  }
 0x7f8   :  { %v18663_v27 = vpack.c.bf16 %v10946_v23, %v10940_v32  ;;  %v17399_v32 = vld [vmem:[#allocation14 + $0x4bc] ss:$24 sps:$4 sm:$0xff]   ;;  %v17397_v23 = vld [vmem:[#allocation14 + $0x4b8] ss:$24 sps:$4 sm:$0xff]  }
 0x7fa   :  { %12831 = vmatprep.mubr.bf16.mxu1 %v18663_v27 }
 0x7fb   :  { %12832 = vmatmul.mubr.bf16.vlgmr.msra.gmra.mrb[16].mxu1 %v18661_v62 }
 0x7fc   :  { %12843 = vmatpush1.bf16.msra.mxu1 %v17322_v39  ;;  %12874 = vmatprep.mubr.bf16.mxu1 %v18636_v16  ;;  %v17402_v39 = vld [vmem:[#allocation14 + $0x4ec] ss:$24 sps:$4 sm:$0xff]  }
 0x7fd   :  { %12844 = vmatprep.subr.bf16.mxu1 %v17327_v60  ;;  %v17400_v60 = vld [vmem:[#allocation14 + $0x4e8] ss:$24 sps:$4 sm:$0xff]  }
 0x800   :  { %12845 = vmatpush1.bf16.msra.mxu1 %v17325_v21  ;;  %v17405_v21 = vld [vmem:[#allocation14 + $0x51c] ss:$24 sps:$4 sm:$0xff]  }
 0x801   :  { %12846 = vmatprep.subr.bf16.mxu1 %v17330_v61  ;;  %v17403_v61 = vld [vmem:[#allocation14 + $0x518] ss:$24 sps:$4 sm:$0xff]  }
 0x804   :  { %12847 = vmatpush1.bf16.msra.mxu1 %v17328_v2  ;;  %v17408_v2 = vld [vmem:[#allocation14 + $0x54c] ss:$24 sps:$4 sm:$0xff]  }
 0x805   :  { %12848 = vmatprep.subr.bf16.mxu1 %v17333_v53  ;;  %v17406_v53 = vld [vmem:[#allocation14 + $0x548] ss:$24 sps:$4 sm:$0xff]  }
 0x808   :  { %12849 = vmatpush1.bf16.msra.mxu1 %v17331_v42  ;;  %v17411_v42 = vld [vmem:[#allocation14 + $0x57c] ss:$24 sps:$4 sm:$0xff]  }
 0x809   :  { %12850 = vmatprep.subr.bf16.mxu1 %v17336_v0  ;;  %v17409_v0 = vld [vmem:[#allocation14 + $0x578] ss:$24 sps:$4 sm:$0xff]  }
 0x80c   :  { %12851 = vmatpush1.bf16.msra.mxu1 %v17334_v63  ;;  %v17414_v63 = vld [vmem:[#allocation14 + $0x5ac] ss:$24 sps:$4 sm:$0xff]  }
 0x80d   :  { %12852 = vmatprep.subr.bf16.mxu1 %v17339_v17  ;;  %v17412_v17 = vld [vmem:[#allocation14 + $0x5a8] ss:$24 sps:$4 sm:$0xff]  }
 0x810   :  { %12853 = vmatpush1.bf16.msra.mxu1 %v17337_v5  ;;  %v17417_v5 = vld [vmem:[#allocation14 + $0x5dc] ss:$24 sps:$4 sm:$0xff]  }
 0x811   :  { %12854 = vmatprep.subr.bf16.mxu1 %v17342_v35  ;;  %v17415_v35 = vld [vmem:[#allocation14 + $0x5d8] ss:$24 sps:$4 sm:$0xff]  }
 0x814   :  { %12855 = vmatpush1.bf16.msra.mxu1 %v17340_v12  ;;  %v17420_v12 = vld [vmem:[#allocation14 + $0x60c] ss:$24 sps:$4 sm:$0xff]  }
 0x815   :  { %12856 = vmatprep.subr.bf16.mxu1 %v17345_v37  ;;  %v17418_v37 = vld [vmem:[#allocation14 + $0x608] ss:$24 sps:$4 sm:$0xff]  }
 0x818   :  { %12857 = vmatpush1.bf16.msra.mxu1 %v17343_v45  ;;  %v17423_v45 = vld [vmem:[#allocation14 + $0x63c] ss:$24 sps:$4 sm:$0xff]  }
 0x819   :  { %12858 = vmatprep.subr.bf16.mxu1 %v17348_v13  ;;  %v17421_v13 = vld [vmem:[#allocation14 + $0x638] ss:$24 sps:$4 sm:$0xff]  }
 0x81c   :  { %12859 = vmatpush1.bf16.msra.mxu1 %v17346_v24  ;;  %v17426_v24 = vld [vmem:[#allocation14 + $0x66c] ss:$24 sps:$4 sm:$0xff]  }
 0x81d   :  { %12860 = vmatprep.subr.bf16.mxu1 %v17351_v26  ;;  %v17424_v26 = vld [vmem:[#allocation14 + $0x668] ss:$24 sps:$4 sm:$0xff]  }
 0x820   :  { %12861 = vmatpush1.bf16.msra.mxu1 %v17349_v6  ;;  %v17429_v6 = vld [vmem:[#allocation14 + $0x69c] ss:$24 sps:$4 sm:$0xff]  }
 0x821   :  { %12862 = vmatprep.subr.bf16.mxu1 %v17354_v38  ;;  %v17427_v38 = vld [vmem:[#allocation14 + $0x698] ss:$24 sps:$4 sm:$0xff]  }
 0x824   :  { %12863 = vmatpush1.bf16.msra.mxu1 %v17352_v30  ;;  %v17432_v30 = vld [vmem:[#allocation14 + $0x6cc] ss:$24 sps:$4 sm:$0xff]  }
 0x825   :  { %12864 = vmatprep.subr.bf16.mxu1 %v17357_v33  ;;  %v17430_v33 = vld [vmem:[#allocation14 + $0x6c8] ss:$24 sps:$4 sm:$0xff]  }
 0x828   :  { %12865 = vmatpush1.bf16.msra.mxu1 %v17355_v1  ;;  %v17435_v1 = vld [vmem:[#allocation14 + $0x6fc] ss:$24 sps:$4 sm:$0xff]  }
 0x829   :  { %12866 = vmatprep.subr.bf16.mxu1 %v17360_v22  ;;  %v17433_v22 = vld [vmem:[#allocation14 + $0x6f8] ss:$24 sps:$4 sm:$0xff]  }
 0x82c   :  { %12867 = vmatpush1.bf16.msra.mxu1 %v17358_v28  ;;  %v17438_v28 = vld [vmem:[#allocation14 + $0x72c] ss:$24 sps:$4 sm:$0xff]  }
 0x82d   :  { %12868 = vmatprep.subr.bf16.mxu1 %v17363_v44  ;;  %v17436_v44 = vld [vmem:[#allocation14 + $0x728] ss:$24 sps:$4 sm:$0xff]  }
 0x830   :  { %12869 = vmatpush1.bf16.msra.mxu1 %v17361_v11  ;;  %v17441_v11 = vld [vmem:[#allocation14 + $0x75c] ss:$24 sps:$4 sm:$0xff]  }
 0x831   :  { %12870 = vmatprep.subr.bf16.mxu1 %v17366_v40  ;;  %v17439_v40 = vld [vmem:[#allocation14 + $0x758] ss:$24 sps:$4 sm:$0xff]  }
 0x834   :  { %12871 = vmatpush1.bf16.msra.mxu1 %v17364_v59  ;;  %v17444_v59 = vld [vmem:[#allocation14 + $0x78c] ss:$24 sps:$4 sm:$0xff]  }
 0x835   :  { %12872 = vmatprep.subr.bf16.mxu1 %v17369_v3  ;;  %v17442_v3 = vld [vmem:[#allocation14 + $0x788] ss:$24 sps:$4 sm:$0xff]  }
 0x838   :  { %12873 = vmatpush1.bf16.msra.mxu1 %v17367_v4  ;;  %v17447_v4 = vld [vmem:[#allocation14 + $0x7bc] ss:$24 sps:$4 sm:$0xff]  }
 0x839   :  { %12885 = vmatprep.subr.bf16.mxu1 %v17372_v47  ;;  %v17445_v47 = vld [vmem:[#allocation14 + $0x7b8] ss:$24 sps:$4 sm:$0xff]  }
 0x83b   :  { %12875 = vmatmul.mubr.bf16.vlgmr.msra.gmra.mrb[20].mxu1 %v18634_v57 }
 0x83c   :  { %12886 = vmatpush1.bf16.msra.mxu1 %v17370_v19  ;;  %12917 = vmatprep.mubr.bf16.mxu1 %v18652_v50  ;;  %v17450_v19 = vld [vmem:[#allocation14 + $0x7ec] ss:$24 sps:$4 sm:$0xff]  }
 0x83d   :  { %12887 = vmatprep.subr.bf16.mxu1 %v17375_v9  ;;  %v17448_v9 = vld [vmem:[#allocation14 + $0x7e8] ss:$24 sps:$4 sm:$0xff]  }
 0x840   :  { %12888 = vmatpush1.bf16.msra.mxu1 %v17373_v10  ;;  %v17453_v10 = vld [vmem:[#allocation14 + $0x81c] ss:$24 sps:$4 sm:$0xff]  }
 0x841   :  { %12889 = vmatprep.subr.bf16.mxu1 %v17378_v56  ;;  %v17451_v56 = vld [vmem:[#allocation14 + $0x818] ss:$24 sps:$4 sm:$0xff]  }
 0x844   :  { %12890 = vmatpush1.bf16.msra.mxu1 %v17376_v25  ;;  %v17456_v25 = vld [vmem:[#allocation14 + $0x84c] ss:$24 sps:$4 sm:$0xff]  }
 0x845   :  { %12891 = vmatprep.subr.bf16.mxu1 %v17381_v36  ;;  %v17454_v36 = vld [vmem:[#allocation14 + $0x848] ss:$24 sps:$4 sm:$0xff]  }
 0x848   :  { %12892 = vmatpush1.bf16.msra.mxu1 %v17379_v49  ;;  %v17459_v49 = vld [vmem:[#allocation14 + $0x87c] ss:$24 sps:$4 sm:$0xff]  }
 0x849   :  { %12893 = vmatprep.subr.bf16.mxu1 %v17384_v34  ;;  %v17457_v34 = vld [vmem:[#allocation14 + $0x878] ss:$24 sps:$4 sm:$0xff]  }
 0x84c   :  { %12894 = vmatpush1.bf16.msra.mxu1 %v17382_v8  ;;  %v17462_v8 = vld [vmem:[#allocation14 + $0x8ac] ss:$24 sps:$4 sm:$0xff]  }
 0x84d   :  { %12895 = vmatprep.subr.bf16.mxu1 %v17387_v43  ;;  %v17460_v43 = vld [vmem:[#allocation14 + $0x8a8] ss:$24 sps:$4 sm:$0xff]  }
 0x850   :  { %12896 = vmatpush1.bf16.msra.mxu1 %v17385_v51  ;;  %v17465_v51 = vld [vmem:[#allocation14 + $0x8dc] ss:$24 sps:$4 sm:$0xff]  }
 0x851   :  { %12897 = vmatprep.subr.bf16.mxu1 %v17390_v58  ;;  %v17463_v58 = vld [vmem:[#allocation14 + $0x8d8] ss:$24 sps:$4 sm:$0xff]  }
 0x854   :  { %12898 = vmatpush1.bf16.msra.mxu1 %v17388_v7  ;;  %v17468_v7 = vld [vmem:[#allocation14 + $0x14] ss:$24 sps:$4 sm:$0xff]  }
 0x855   :  { %12899 = vmatprep.subr.bf16.mxu1 %v17393_v20  ;;  %v17466_v20 = vld [vmem:[#allocation14 + $0x10] ss:$24 sps:$4 sm:$0xff]  }
 0x858   :  { %12900 = vmatpush1.bf16.msra.mxu1 %v17391_v48  ;;  %v17471_v48 = vld [vmem:[#allocation14 + $0x44] ss:$24 sps:$4 sm:$0xff]  }
 0x859   :  { %12901 = vmatprep.subr.bf16.mxu1 %v17396_v41  ;;  %v17469_v41 = vld [vmem:[#allocation14 + $0x40] ss:$24 sps:$4 sm:$0xff]  }
 0x85c   :  { %12902 = vmatpush1.bf16.msra.mxu1 %v17394_v29  ;;  %v17474_v29 = vld [vmem:[#allocation14 + $0x74] ss:$24 sps:$4 sm:$0xff]  }
 0x85d   :  { %12903 = vmatprep.subr.bf16.mxu1 %v17399_v32  ;;  %v17472_v32 = vld [vmem:[#allocation14 + $0x70] ss:$24 sps:$4 sm:$0xff]  }
 0x860   :  { %12904 = vmatpush1.bf16.msra.mxu1 %v17397_v23  ;;  %v17477_v23 = vld [vmem:[#allocation14 + $0xa4] ss:$24 sps:$4 sm:$0xff]  }
 0x861   :  { %12905 = vmatprep.subr.bf16.mxu1 %v17402_v39  ;;  %v17475_v39 = vld [vmem:[#allocation14 + $0xa0] ss:$24 sps:$4 sm:$0xff]  }
 0x864   :  { %12906 = vmatpush1.bf16.msra.mxu1 %v17400_v60  ;;  %v17480_v60 = vld [vmem:[#allocation14 + $0xd4] ss:$24 sps:$4 sm:$0xff]  }
 0x865   :  { %12907 = vmatprep.subr.bf16.mxu1 %v17405_v21  ;;  %v17478_v21 = vld [vmem:[#allocation14 + $0xd0] ss:$24 sps:$4 sm:$0xff]  }
 0x868   :  { %12908 = vmatpush1.bf16.msra.mxu1 %v17403_v61  ;;  %v18674_v61 = vld [vmem:[#allocation16] sm:$0x3f] }
 0x869   :  { %12909 = vmatprep.subr.bf16.mxu1 %v17408_v2  ;;  %v17483_v2 = vld [vmem:[#allocation14 + $0x104] ss:$24 sps:$4 sm:$0xff]  }
 0x86c   :  { %12910 = vmatpush1.bf16.msra.mxu1 %v17406_v53  ;;  %v17481_v53 = vld [vmem:[#allocation14 + $0x100] ss:$24 sps:$4 sm:$0xff]  }
 0x86d   :  { %12911 = vmatprep.subr.bf16.mxu1 %v17411_v42  ;;  %v11250_v42 = vrot.slane %v18674_v61, %v18189_v46 }
 0x870   :  { %12912 = vmatpush1.bf16.msra.mxu1 %v17409_v0  ;;  %v17486_v0 = vld [vmem:[#allocation14 + $0x134] ss:$24 sps:$4 sm:$0xff]  }
 0x871   :  { %12913 = vmatprep.subr.bf16.mxu1 %v17414_v63 }
 0x874   :  { %12914 = vmatpush1.bf16.msra.mxu1 %v17412_v17 }
 0x875   :  { %12915 = vmatprep.subr.bf16.mxu1 %v17417_v5 }
 0x878   :  { %12916 = vmatpush1.bf16.msra.mxu1 %v17415_v35 }
 0x879   :  { %12928 = vmatprep.subr.bf16.mxu1 %v17420_v12 }
 0x87b   :  { %12918 = vmatmul.mubr.bf16.vlgmr.msra.gmra.mrb[20].mxu1 %v18650_v52 }
 0x87c   :  { %12929 = vmatpush1.bf16.msra.mxu1 %v17418_v37  ;;  %12960 = vmatprep.mubr.bf16.mxu1 %v18663_v27  ;;  %v17484_v37 = vld [vmem:[#allocation14 + $0x130] ss:$24 sps:$4 sm:$0xff]  }
 0x87d   :  { %12930 = vmatprep.subr.bf16.mxu1 %v17423_v45 }
 0x880   :  { %12931 = vmatpush1.bf16.msra.mxu1 %v17421_v13 }
 0x881   :  { %12932 = vmatprep.subr.bf16.mxu1 %v17426_v24 }
 0x884   :  { %12933 = vmatpush1.bf16.msra.mxu1 %v17424_v26 }
 0x885   :  { %12934 = vmatprep.subr.bf16.mxu1 %v17429_v6  ;;  %v17487_v6 = vld [vmem:[#allocation14 + $0x160] ss:$24 sps:$4 sm:$0xff]  }
 0x888   :  { %12935 = vmatpush1.bf16.msra.mxu1 %v17427_v38  ;;  %v17492_v38 = vld [vmem:[#allocation14 + $0x194] ss:$24 sps:$4 sm:$0xff]  }
 0x889   :  { %12936 = vmatprep.subr.bf16.mxu1 %v17432_v30  ;;  %v17490_v30 = vld [vmem:[#allocation14 + $0x190] ss:$24 sps:$4 sm:$0xff]  }
 0x88c   :  { %12937 = vmatpush1.bf16.msra.mxu1 %v17430_v33  ;;  %v17495_v33 = vld [vmem:[#allocation14 + $0x1c4] ss:$24 sps:$4 sm:$0xff]  }
 0x88d   :  { %12938 = vmatprep.subr.bf16.mxu1 %v17435_v1  ;;  %v17493_v1 = vld [vmem:[#allocation14 + $0x1c0] ss:$24 sps:$4 sm:$0xff]  }
 0x890   :  { %12939 = vmatpush1.bf16.msra.mxu1 %v17433_v22  ;;  %v17498_v22 = vld [vmem:[#allocation14 + $0x1f4] ss:$24 sps:$4 sm:$0xff]  }
 0x891   :  { %12940 = vmatprep.subr.bf16.mxu1 %v17438_v28  ;;  %v17496_v28 = vld [vmem:[#allocation14 + $0x1f0] ss:$24 sps:$4 sm:$0xff]  }
 0x894   :  { %12941 = vmatpush1.bf16.msra.mxu1 %v17436_v44  ;;  %v17501_v44 = vld [vmem:[#allocation14 + $0x224] ss:$24 sps:$4 sm:$0xff]  }
 0x895   :  { %12942 = vmatprep.subr.bf16.mxu1 %v17441_v11  ;;  %v17499_v11 = vld [vmem:[#allocation14 + $0x220] ss:$24 sps:$4 sm:$0xff]  }
 0x898   :  { %12943 = vmatpush1.bf16.msra.mxu1 %v17439_v40  ;;  %v17504_v40 = vld [vmem:[#allocation14 + $0x254] ss:$24 sps:$4 sm:$0xff]  }
 0x899   :  { %12944 = vmatprep.subr.bf16.mxu1 %v17444_v59  ;;  %v17502_v59 = vld [vmem:[#allocation14 + $0x250] ss:$24 sps:$4 sm:$0xff]  }
 0x89c   :  { %12945 = vmatpush1.bf16.msra.mxu1 %v17442_v3  ;;  %v17507_v3 = vld [vmem:[#allocation14 + $0x284] ss:$24 sps:$4 sm:$0xff]  }
 0x89d   :  { %12946 = vmatprep.subr.bf16.mxu1 %v17447_v4  ;;  %v17505_v4 = vld [vmem:[#allocation14 + $0x280] ss:$24 sps:$4 sm:$0xff]  }
 0x8a0   :  { %12947 = vmatpush1.bf16.msra.mxu1 %v17445_v47  ;;  %v17510_v47 = vld [vmem:[#allocation14 + $0x2b4] ss:$24 sps:$4 sm:$0xff]  }
 0x8a1   :  { %12948 = vmatprep.subr.bf16.mxu1 %v17450_v19  ;;  %v17508_v19 = vld [vmem:[#allocation14 + $0x2b0] ss:$24 sps:$4 sm:$0xff]  }
 0x8a4   :  { %12949 = vmatpush1.bf16.msra.mxu1 %v17448_v9  ;;  %v17513_v9 = vld [vmem:[#allocation14 + $0x2e4] ss:$24 sps:$4 sm:$0xff]  }
 0x8a5   :  { %12950 = vmatprep.subr.bf16.mxu1 %v17453_v10  ;;  %v17511_v10 = vld [vmem:[#allocation14 + $0x2e0] ss:$24 sps:$4 sm:$0xff]  }
 0x8a8   :  { %12951 = vmatpush1.bf16.msra.mxu1 %v17451_v56  ;;  %v17516_v56 = vld [vmem:[#allocation14 + $0x314] ss:$24 sps:$4 sm:$0xff]  }
 0x8a9   :  { %12952 = vmatprep.subr.bf16.mxu1 %v17456_v25  ;;  %v17514_v25 = vld [vmem:[#allocation14 + $0x310] ss:$24 sps:$4 sm:$0xff]  }
 0x8ac   :  { %12953 = vmatpush1.bf16.msra.mxu1 %v17454_v36  ;;  %v17519_v36 = vld [vmem:[#allocation14 + $0x344] ss:$24 sps:$4 sm:$0xff]  }
 0x8ad   :  { %12954 = vmatprep.subr.bf16.mxu1 %v17459_v49  ;;  %v17517_v49 = vld [vmem:[#allocation14 + $0x340] ss:$24 sps:$4 sm:$0xff]  }
 0x8b0   :  { %12955 = vmatpush1.bf16.msra.mxu1 %v17457_v34  ;;  %v17522_v34 = vld [vmem:[#allocation14 + $0x374] ss:$24 sps:$4 sm:$0xff]  }
 0x8b1   :  { %12956 = vmatprep.subr.bf16.mxu1 %v17462_v8  ;;  %v17520_v8 = vld [vmem:[#allocation14 + $0x370] ss:$24 sps:$4 sm:$0xff]  }
 0x8b4   :  { %12957 = vmatpush1.bf16.msra.mxu1 %v17460_v43  ;;  %v17525_v43 = vld [vmem:[#allocation14 + $0x3a4] ss:$24 sps:$4 sm:$0xff]  }
 0x8b5   :  { %12958 = vmatprep.subr.bf16.mxu1 %v17465_v51  ;;  %v17523_v51 = vld [vmem:[#allocation14 + $0x3a0] ss:$24 sps:$4 sm:$0xff]  }
 0x8b8   :  { %12959 = vmatpush1.bf16.msra.mxu1 %v17463_v58  ;;  %v17528_v58 = vld [vmem:[#allocation14 + $0x3d4] ss:$24 sps:$4 sm:$0xff]  }
 0x8b9   :  { %12971 = vmatprep.subr.bf16.mxu1 %v17468_v7  ;;  %v17526_v7 = vld [vmem:[#allocation14 + $0x3d0] ss:$24 sps:$4 sm:$0xff]  }
 0x8bb   :  { %12961 = vmatmul.mubr.bf16.vlgmr.msra.gmra.mrb[20].mxu1 %v18661_v62 }
 0x8bc   :  { %12972 = vmatpush1.bf16.msra.mxu1 %v17466_v20  ;;  %13003 = vmatprep.mubr.bf16.mxu1 %v18636_v16  ;;  %v11246_v16 = vrot.slane %v18674_v61, %v18183_v14  ;;  %v17489_v14 = vld [vmem:[#allocation14 + $0x164] ss:$24 sps:$4 sm:$0xff]  }
 0x8bd   :  { %12973 = vmatprep.subr.bf16.mxu1 %v17471_v48  ;;  %v17531_v20 = vld [vmem:[#allocation14 + $0x404] ss:$24 sps:$4 sm:$0xff]   ;;  %v17534_v48 = vld [vmem:[#allocation14 + $0x434] ss:$24 sps:$4 sm:$0xff]  }
 0x8c0   :  { %12974 = vmatpush1.bf16.msra.mxu1 %v17469_v41  ;;  %v17537_v41 = vld [vmem:[#allocation14 + $0x464] ss:$24 sps:$4 sm:$0xff]  }
 0x8c1   :  { %12975 = vmatprep.subr.bf16.mxu1 %v17474_v29  ;;  %v17535_v29 = vld [vmem:[#allocation14 + $0x460] ss:$24 sps:$4 sm:$0xff]  }
 0x8c4   :  { %12976 = vmatpush1.bf16.msra.mxu1 %v17472_v32  ;;  %v17540_v32 = vld [vmem:[#allocation14 + $0x494] ss:$24 sps:$4 sm:$0xff]  }
 0x8c5   :  { %12977 = vmatprep.subr.bf16.mxu1 %v17477_v23  ;;  %v17538_v23 = vld [vmem:[#allocation14 + $0x490] ss:$24 sps:$4 sm:$0xff]  }
 0x8c8   :  { %12978 = vmatpush1.bf16.msra.mxu1 %v17475_v39  ;;  %v17543_v39 = vld [vmem:[#allocation14 + $0x4c4] ss:$24 sps:$4 sm:$0xff]  }
 0x8c9   :  { %12979 = vmatprep.subr.bf16.mxu1 %v17480_v60  ;;  %v17541_v60 = vld [vmem:[#allocation14 + $0x4c0] ss:$24 sps:$4 sm:$0xff]  }
 0x8cc   :  { %12980 = vmatpush1.bf16.msra.mxu1 %v17478_v21  ;;  %v17546_v21 = vld [vmem:[#allocation14 + $0x4f4] ss:$24 sps:$4 sm:$0xff]  }
 0x8cd   :  { %12981 = vmatprep.subr.bf16.mxu1 %v17483_v2  ;;  %v17544_v2 = vld [vmem:[#allocation14 + $0x4f0] ss:$24 sps:$4 sm:$0xff]  }
 0x8ce   :  { %v12833_v63 = vpop.f32.mrb[16].mxu1 }
 0x8cf   :  { %v18680_v17 = vadd.f32 %v12833_v63, %v11246_v16  ;;  %v12835_v5 = vpop.f32.mrb[17].mxu1  ;;  %v17555_v63 = vld [vmem:[#allocation14 + $0x584] ss:$24 sps:$4 sm:$0xff]  }
 0x8d0   :  { %v18682_v35 = vadd.f32 %v12835_v5, %v11250_v42  ;;  %12982 = vmatpush1.bf16.msra.mxu1 %v17481_v53  ;;  %v12837_v12 = vpop.f32.mrb[18].mxu1  ;;  %v17547_v53 = vld [vmem:[#allocation14 + $0x520] ss:$24 sps:$4 sm:$0xff]  }
 0x8d1   :  { %v18684_v45 = vadd.f32 %v12837_v12, %v11246_v16  ;;  %v12839_v13 = vpop.f32.mrb[19].mxu1  ;;  %12983 = vmatprep.subr.bf16.mxu1 %v17486_v0  ;;  %v17549_v16 = vld [vmem:[#allocation14 + $0x524] ss:$24 sps:$4 sm:$0xff]   ;;  %v17550_v0 = vld [vmem:[#allocation14 + $0x550] ss:$24 sps:$4 sm:$0xff]  }
 0x8d2   :  { %v14921_v24 = vpack.c.bf16 %v18682_v35, %v18680_v17  ;;  %v18688_v46 = vadd.f32 %v12839_v13, %v11250_v42  ;;  %v17552_v42 = vld [vmem:[#allocation14 + $0x554] ss:$24 sps:$4 sm:$0xff]   ;;  %v17553_v5 = vld [vmem:[#allocation14 + $0x580] ss:$24 sps:$4 sm:$0xff]   ;;  %v17561_v13 = vld [vmem:[#allocation14 + $0x5e4] ss:$24 sps:$4 sm:$0xff]   ;;  %v11266_v17 = vrot.slane %v18674_v61, %v18274_v31 }
 0x8d3   :  { %v17558_v12 = vld [vmem:[#allocation14 + $0x5b4] ss:$24 sps:$4 sm:$0xff]  }
 0x8d4   :  { %v14922_v26 = vpack.c.bf16 %v18688_v46, %v18684_v45  ;;  %12984 = vmatpush1.bf16.msra.mxu1 %v17484_v37  ;;  %v17556_v37 = vld [vmem:[#allocation14 + $0x5b0] ss:$24 sps:$4 sm:$0xff]  }
 0x8d5   :  { %12985 = vmatprep.subr.bf16.mxu1 %v17489_v14  ;;  %v17559_v14 = vld [vmem:[#allocation14 + $0x5e0] ss:$24 sps:$4 sm:$0xff]  }
 0x8d8   :  { %12986 = vmatpush1.bf16.msra.mxu1 %v17487_v6  ;;  %v17564_v6 = vld [vmem:[#allocation14 + $0x614] ss:$24 sps:$4 sm:$0xff]  }
 0x8d9   :  { %12987 = vmatprep.subr.bf16.mxu1 %v17492_v38  ;;  %v17562_v38 = vld [vmem:[#allocation14 + $0x610] ss:$24 sps:$4 sm:$0xff]  }
 0x8dc   :  { %12988 = vmatpush1.bf16.msra.mxu1 %v17490_v30  ;;  %v17567_v30 = vld [vmem:[#allocation14 + $0x644] ss:$24 sps:$4 sm:$0xff]  }
 0x8dd   :  { %12989 = vmatprep.subr.bf16.mxu1 %v17495_v33  ;;  %v17565_v33 = vld [vmem:[#allocation14 + $0x640] ss:$24 sps:$4 sm:$0xff]  }
 0x8e0   :  { %12990 = vmatpush1.bf16.msra.mxu1 %v17493_v1  ;;  %v17570_v1 = vld [vmem:[#allocation14 + $0x674] ss:$24 sps:$4 sm:$0xff]  }
 0x8e1   :  { %12991 = vmatprep.subr.bf16.mxu1 %v17498_v22  ;;  %v17568_v22 = vld [vmem:[#allocation14 + $0x670] ss:$24 sps:$4 sm:$0xff]  }
 0x8e4   :  { %12992 = vmatpush1.bf16.msra.mxu1 %v17496_v28  ;;  %v17573_v28 = vld [vmem:[#allocation14 + $0x6a4] ss:$24 sps:$4 sm:$0xff]  }
 0x8e5   :  { %12993 = vmatprep.subr.bf16.mxu1 %v17501_v44  ;;  %v17571_v44 = vld [vmem:[#allocation14 + $0x6a0] ss:$24 sps:$4 sm:$0xff]  }
 0x8e8   :  { %12994 = vmatpush1.bf16.msra.mxu1 %v17499_v11  ;;  %v17576_v11 = vld [vmem:[#allocation14 + $0x6d4] ss:$24 sps:$4 sm:$0xff]  }
 0x8e9   :  { %12995 = vmatprep.subr.bf16.mxu1 %v17504_v40  ;;  %v17574_v40 = vld [vmem:[#allocation14 + $0x6d0] ss:$24 sps:$4 sm:$0xff]  }
 0x8ec   :  { %12996 = vmatpush1.bf16.msra.mxu1 %v17502_v59  ;;  %v17579_v59 = vld [vmem:[#allocation14 + $0x704] ss:$24 sps:$4 sm:$0xff]  }
 0x8ed   :  { %12997 = vmatprep.subr.bf16.mxu1 %v17507_v3  ;;  %v17582_v3 = vld [vmem:[#allocation14 + $0x734] ss:$24 sps:$4 sm:$0xff]  }
 0x8f0   :  { %12998 = vmatpush1.bf16.msra.mxu1 %v17505_v4  ;;  %v17585_v4 = vld [vmem:[#allocation14 + $0x764] ss:$24 sps:$4 sm:$0xff]  }
 0x8f1   :  { %12999 = vmatprep.subr.bf16.mxu1 %v17510_v47  ;;  %v17583_v47 = vld [vmem:[#allocation14 + $0x760] ss:$24 sps:$4 sm:$0xff]  }
 0x8f4   :  { %13000 = vmatpush1.bf16.msra.mxu1 %v17508_v19  ;;  %v17588_v19 = vld [vmem:[#allocation14 + $0x794] ss:$24 sps:$4 sm:$0xff]  }
 0x8f5   :  { %13001 = vmatprep.subr.bf16.mxu1 %v17513_v9  ;;  %v17586_v9 = vld [vmem:[#allocation14 + $0x790] ss:$24 sps:$4 sm:$0xff]  }
 0x8f8   :  { %13002 = vmatpush1.bf16.msra.mxu1 %v17511_v10  ;;  %v17591_v10 = vld [vmem:[#allocation14 + $0x7c4] ss:$24 sps:$4 sm:$0xff]  }
 0x8f9   :  { %13014 = vmatprep.subr.bf16.mxu1 %v17516_v56  ;;  %v17589_v56 = vld [vmem:[#allocation14 + $0x7c0] ss:$24 sps:$4 sm:$0xff]  }
 0x8fb   :  { %13004 = vmatmul.mubr.bf16.vlgmr.msra.gmra.mrb[24].mxu1 %v18634_v57  ;;  %v17529_v57 = vld [vmem:[#allocation14 + $0x400] ss:$24 sps:$4 sm:$0xff]  }
 0x8fc   :  { %13015 = vmatpush1.bf16.msra.mxu1 %v17514_v25  ;;  %13046 = vmatprep.mubr.bf16.mxu1 %v18652_v50  ;;  %v17532_v50 = vld [vmem:[#allocation14 + $0x430] ss:$24 sps:$4 sm:$0xff]   ;;  %v17594_v25 = vld [vmem:[#allocation14 + $0x7f4] ss:$24 sps:$4 sm:$0xff]  }
 0x8fd   :  { %13016 = vmatprep.subr.bf16.mxu1 %v17519_v36  ;;  %v17592_v36 = vld [vmem:[#allocation14 + $0x7f0] ss:$24 sps:$4 sm:$0xff]  }
 0x900   :  { %13017 = vmatpush1.bf16.msra.mxu1 %v17517_v49  ;;  %v17597_v49 = vld [vmem:[#allocation14 + $0x824] ss:$24 sps:$4 sm:$0xff]  }
 0x901   :  { %13018 = vmatprep.subr.bf16.mxu1 %v17522_v34  ;;  %v17595_v34 = vld [vmem:[#allocation14 + $0x820] ss:$24 sps:$4 sm:$0xff]  }
 0x904   :  { %13019 = vmatpush1.bf16.msra.mxu1 %v17520_v8  ;;  %v17600_v8 = vld [vmem:[#allocation14 + $0x854] ss:$24 sps:$4 sm:$0xff]  }
 0x905   :  { %13020 = vmatprep.subr.bf16.mxu1 %v17525_v43  ;;  %v17598_v43 = vld [vmem:[#allocation14 + $0x850] ss:$24 sps:$4 sm:$0xff]  }
 0x908   :  { %13021 = vmatpush1.bf16.msra.mxu1 %v17523_v51  ;;  %v17603_v51 = vld [vmem:[#allocation14 + $0x884] ss:$24 sps:$4 sm:$0xff]  }
 0x909   :  { %13022 = vmatprep.subr.bf16.mxu1 %v17528_v58  ;;  %v17601_v58 = vld [vmem:[#allocation14 + $0x880] ss:$24 sps:$4 sm:$0xff]  }
 0x90c   :  { %13023 = vmatpush1.bf16.msra.mxu1 %v17526_v7  ;;  %v17606_v7 = vld [vmem:[#allocation14 + $0x8b4] ss:$24 sps:$4 sm:$0xff]  }
 0x90d   :  { %13024 = vmatprep.subr.bf16.mxu1 %v17531_v20  ;;  %v17604_v20 = vld [vmem:[#allocation14 + $0x8b0] ss:$24 sps:$4 sm:$0xff]  }
 0x910   :  { %13025 = vmatpush1.bf16.msra.mxu1 %v17529_v57  ;;  %v17609_v57 = vld [vmem:[#allocation14 + $0x8e4] ss:$24 sps:$4 sm:$0xff]  }
 0x911   :  { %13026 = vmatprep.subr.bf16.mxu1 %v17534_v48  ;;  %v17607_v48 = vld [vmem:[#allocation14 + $0x8e0] ss:$24 sps:$4 sm:$0xff]  }
 0x914   :  { %13027 = vmatpush1.bf16.msra.mxu1 %v17532_v50  ;;  %v11254_v50 = vrot.slane %v18674_v61, %v18186_v15 }
 0x915   :  { %13028 = vmatprep.subr.bf16.mxu1 %v17537_v41  ;;  %v11258_v41 = vrot.slane %v18674_v61, %v18192_v18  ;;  %v13131_v18 = vrot.slane %v14922_v26, %v18094_v55 }
 0x918   :  { %13029 = vmatpush1.bf16.msra.mxu1 %v17535_v29 }
 0x919   :  { %13030 = vmatprep.subr.bf16.mxu1 %v17540_v32 }
 0x91c   :  { %13031 = vmatpush1.bf16.msra.mxu1 %v17538_v23 }
 0x91d   :  { %13032 = vmatprep.subr.bf16.mxu1 %v17543_v39 }
 0x920   :  { %13033 = vmatpush1.bf16.msra.mxu1 %v17541_v60 }
 0x921   :  { %13034 = vmatprep.subr.bf16.mxu1 %v17546_v21 }
 0x924   :  { %13035 = vmatpush1.bf16.msra.mxu1 %v17544_v2 }
 0x925   :  { %13036 = vmatprep.subr.bf16.mxu1 %v17549_v16 }
 0x928   :  { %13037 = vmatpush1.bf16.msra.mxu1 %v17547_v53 }
 0x929   :  { %13038 = vmatprep.subr.bf16.mxu1 %v17552_v42 }
 0x92c   :  { %13039 = vmatpush1.bf16.msra.mxu1 %v17550_v0 }
 0x92d   :  { %13040 = vmatprep.subr.bf16.mxu1 %v17555_v63 }
 0x930   :  { %13041 = vmatpush1.bf16.msra.mxu1 %v17553_v5 }
 0x931   :  { %13042 = vmatprep.subr.bf16.mxu1 %v17558_v12 }
 0x934   :  { %13043 = vmatpush1.bf16.msra.mxu1 %v17556_v37 }
 0x935   :  { %13044 = vmatprep.subr.bf16.mxu1 %v17561_v13  ;;  %v11262_v13 = vrot.slane %v18674_v61, %v18271_v54 }
 0x938   :  { %13045 = vmatpush1.bf16.msra.mxu1 %v17559_v14 }
 0x939   :  { %13057 = vmatprep.subr.bf16.mxu1 %v17564_v6 }
 0x93b   :  { %13047 = vmatmul.mubr.bf16.vlgmr.msra.gmra.mrb[24].mxu1 %v18650_v52  ;;  %v17577_v52 = vld [vmem:[#allocation14 + $0x700] ss:$24 sps:$4 sm:$0xff]  }
 0x93c   :  { %13058 = vmatpush1.bf16.msra.mxu1 %v17562_v38  ;;  %13089 = vmatprep.mubr.bf16.mxu1 %v18663_v27  ;;  %v17580_v27 = vld [vmem:[#allocation14 + $0x730] ss:$24 sps:$4 sm:$0xff]  }
 0x93d   :  { %13059 = vmatprep.subr.bf16.mxu1 %v17567_v30 }
 0x940   :  { %13060 = vmatpush1.bf16.msra.mxu1 %v17565_v33 }
 0x941   :  { %13061 = vmatprep.subr.bf16.mxu1 %v17570_v1 }
 0x944   :  { %13062 = vmatpush1.bf16.msra.mxu1 %v17568_v22 }
 0x945   :  { %13063 = vmatprep.subr.bf16.mxu1 %v17573_v28 }
 0x948   :  { %13064 = vmatpush1.bf16.msra.mxu1 %v17571_v44 }
 0x949   :  { %13065 = vmatprep.subr.bf16.mxu1 %v17576_v11 }
 0x94c   :  { %13066 = vmatpush1.bf16.msra.mxu1 %v17574_v40 }
 0x94d   :  { %13067 = vmatprep.subr.bf16.mxu1 %v17579_v59 }
 0x950   :  { %13068 = vmatpush1.bf16.msra.mxu1 %v17577_v52 }
 0x951   :  { %13069 = vmatprep.subr.bf16.mxu1 %v17582_v3 }
 0x954   :  { %13070 = vmatpush1.bf16.msra.mxu1 %v17580_v27 }
 0x955   :  { %13071 = vmatprep.subr.bf16.mxu1 %v17585_v4 }
 0x958   :  { %13072 = vmatpush1.bf16.msra.mxu1 %v17583_v47 }
 0x959   :  { %13073 = vmatprep.subr.bf16.mxu1 %v17588_v19 }
 0x95c   :  { %13074 = vmatpush1.bf16.msra.mxu1 %v17586_v9 }
 0x95d   :  { %13075 = vmatprep.subr.bf16.mxu1 %v17591_v10 }
 0x960   :  { %13076 = vmatpush1.bf16.msra.mxu1 %v17589_v56 }
 0x961   :  { %13077 = vmatprep.subr.bf16.mxu1 %v17594_v25 }
 0x964   :  { %13078 = vmatpush1.bf16.msra.mxu1 %v17592_v36 }
 0x965   :  { %13079 = vmatprep.subr.bf16.mxu1 %v17597_v49 }
 0x968   :  { %13080 = vmatpush1.bf16.msra.mxu1 %v17595_v34 }
 0x969   :  { %13081 = vmatprep.subr.bf16.mxu1 %v17600_v8 }
 0x96c   :  { %13082 = vmatpush1.bf16.msra.mxu1 %v17598_v43 }
 0x96d   :  { %13083 = vmatprep.subr.bf16.mxu1 %v17603_v51 }
 0x970   :  { %13084 = vmatpush1.bf16.msra.mxu1 %v17601_v58 }
 0x971   :  { %13085 = vmatprep.subr.bf16.mxu1 %v17606_v7 }
 0x974   :  { %13086 = vmatpush1.bf16.msra.mxu1 %v17604_v20 }
 0x975   :  { %13087 = vmatprep.subr.bf16.mxu1 %v17609_v57 }
 0x978   :  { %13088 = vmatpush1.bf16.msra.mxu1 %v17607_v48 }
 0x97b   :  { %13090 = vmatmul.mubr.bf16.vlgmr.msra.gmra.mrb[24].mxu1 %v18661_v62  ;;  %v13124_v62 = vrot.slane %v14921_v24, %v18094_v55 }
 0x98e   :  { %v12962_v29 = vpop.f32.mrb[20].mxu1 }
 0x98f   :  { %v14967_v32 = vadd.f32 %v12962_v29, %v11254_v50  ;;  %v12964_v23 = vpop.f32.mrb[21].mxu1 }
 0x990   :  { %v14968_v39 = vadd.f32 %v12964_v23, %v11258_v41  ;;  %v12966_v60 = vpop.f32.mrb[22].mxu1 }
 0x991   :  { %v14969_v21 = vadd.f32 %v12966_v60, %v11254_v50  ;;  %v12968_v2 = vpop.f32.mrb[23].mxu1 }
 0x992   :  { %v14923_v16 = vpack.c.bf16 %v14968_v39, %v14967_v32  ;;  %v14970_v53 = vadd.f32 %v12968_v2, %v11258_v41 }
 0x994   :  { %v13138_v42 = vrot.slane %v14923_v16, %v18094_v55  ;;  %v14924_v15 = vpack.c.bf16 %v14970_v53, %v14969_v21 }
 0x996   :  { %v13160_v0 = vcombine.low %v13124_v62, %v13138_v42  ;;  %v13161_v63 = vcombine.high %v13124_v62, %v13138_v42  ;;  %v13145_v5 = vrot.slane %v14924_v15, %v18094_v55 }
 0x998   :  { %v13162_v12 = vcombine.low %v13131_v18, %v13145_v5  ;;  %v13163_v37 = vcombine.high %v13131_v18, %v13145_v5  ;;  %v13172_v22 = vrot.slane %v13160_v0, %v18094_v55  ;;  %v13186_v31 = vrot.slane %v13161_v63, %v18094_v55 }
 0x99a   :  { %v13179_v52 = vrot.slane %v13162_v12, %v18094_v55  ;;  %v13193_v27 = vrot.slane %v13163_v37, %v18094_v55 }
 0xa4e   :  { %v13091_v35 = vpop.f32.mrb[24].mxu1 }
 0xa4f   :  { %v14971_v24 = vadd.f32 %v13091_v35, %v11262_v13  ;;  %v13093_v14 = vpop.f32.mrb[25].mxu1 }
 0xa50   :  { %v14972_v6 = vadd.f32 %v13093_v14, %v11266_v17  ;;  %v13095_v38 = vpop.f32.mrb[26].mxu1 }
 0xa51   :  { %v14973_v30 = vadd.f32 %v13095_v38, %v11262_v13  ;;  %v13097_v45 = vpop.f32.mrb[27].mxu1 }
 0xa52   :  { %v14925_v46 = vpack.c.bf16 %v14972_v6, %v14971_v24  ;;  %v14974_v26 = vadd.f32 %v13097_v45, %v11266_v17 }
 0xa54   :  { %v13152_v33 = vrot.slane %v14925_v46, %v18094_v55  ;;  %v14926_v1 = vpack.c.bf16 %v14974_v26, %v14973_v30 }
 0xa56   :  { %v13164_v28 = vcombine.high %v13152_v33, %v13152_v33  ;;  %v13200_v54 = vrot.slane %v13152_v33, %v18094_v55  ;;  %v13159_v44 = vrot.slane %v14926_v1, %v18094_v55 }
 0xa58   :  { %v13214_v61 = vrot.slane %v13164_v28, %v18094_v55  ;;  %v13222_v11 = vcombine.low %v13172_v22, %v13200_v54  ;;  %v13223_v40 = vcombine.high %v13172_v22, %v13200_v54  ;;  %v13165_v59 = vcombine.high %v13159_v44, %v13159_v44 }
 0xa59   :  { %v13207_v3 = vrot.slane %v13159_v44, %v18094_v55 }
 0xa5a   :  { %v13226_v4 = vcombine.low %v13186_v31, %v13214_v61  ;;  %v13227_v47 = vcombine.high %v13186_v31, %v13214_v61  ;;  %13238 = vst [vmem:[#allocation18] sm:$0x3f] %v13222_v11  ;;  %13240 = vst [vmem:[#allocation18 + $0xc] sm:$0x3f] %v13223_v40  ;;  %v13221_v19 = vrot.slane %v13165_v59, %v18094_v55 }
 0xa5b   :  { %v13224_v9 = vcombine.low %v13179_v52, %v13207_v3  ;;  %v13225_v10 = vcombine.high %v13179_v52, %v13207_v3 }
 0xa5c   :  { %13239 = vst [vmem:[#allocation18 + $0x6] sm:$0x3f] %v13226_v4  ;;  %13241 = vst [vmem:[#allocation18 + $0x12] sm:$0x3f] %v13227_v47  ;;  %v13228_v56 = vcombine.low %v13193_v27, %v13221_v19  ;;  %v13229_v25 = vcombine.high %v13193_v27, %v13221_v19 }
 0xa5d   :  { %13242 = vst [vmem:[#allocation18 + $0x18] sm:$0x3f] %v13224_v9  ;;  %13244 = vst [vmem:[#allocation18 + $0x24] sm:$0x3f] %v13225_v10 }
 0xa5e   :  { %13243 = vst [vmem:[#allocation18 + $0x1e] sm:$0x3f] %v13228_v56  ;;  %13245 = vst [vmem:[#allocation18 + $0x2a] sm:$0x3f] %v13229_v25 }
 0xa5f   :  { %13250 = vsyncadd [#allocation4], 672  ;;  %s17907_s0 = smov [#allocation17]  }
 0xa60   :  { %s13251_s25 = sshll.u32 %s17907_s0, 4  ;;  %s13252_s25 = int_to_ptr.vmem [resolvable:$true] %s13251_s25 }
 0xa61   :  { %s17834_s1 = scalar_lea.vmem %s13252_s25, 96  ;;  %s17838_s22 = scalar_lea.vmem %s13252_s25, 768 }
 0xa62   :  { %p17835_p2 = scmp.ne.s32.totalorder %s13252_s25, %s17834_s1  ;;  %p17839_p3 = scmp.lt.s32.totalorder %s13252_s25, %s13252_s25 }
 0xa63   :  { %p17840_p4 = scmp.lt.s32.totalorder %s17838_s22, %s17834_s1 }
 0xa65   :  { %p17841_p5 = por %p17840_p4, %p17839_p3 }
 0xa67   :  { %p17842_p6 = pnand %p17841_p5, %p17835_p2 }
 0xa69   :  { %17845 = shalt.err (!%p17842_p6)
}
 0xa6a   :  { %s17846_s4 = scalar_lea.hbm %s18759_s10, 96 }
 0xa6b   :  { %p17847_p7 = scmp.ne.s32.totalorder %s18759_s10, %s17846_s4  ;;  %p17850_p8 = scmp.lt.u32.totalorder %s17846_s4, %s18759_s10 }
 0xa6d   :  { %p17852_p9 = pnand %p17850_p8, %p17847_p7 }
 0xa6f   :  { %17855 = shalt.err (!%p17852_p9)
}
 0xa70   :  { %s17908_s7 = smov 96   ;;  %s17909_s8 = smov 6  }
 0xa71   :  { %13257 = dma.vmem_to_hbm [thread:$0]  %s13252_s25, 96, %s18759_s10, [#allocation4], %s17908_s7, %s17908_s7, %s17909_s8  }
 0xa72   :  { %13262 = vsyncadd [#allocation19], 672  ;;  %s17910_s3 = smov [#allocation18]  }
 0xa73   :  { %s13263_s28 = sshll.u32 %s17910_s3, 4  ;;  %s13264_s28 = int_to_ptr.vmem [resolvable:$true] %s13263_s28 }
 0xa74   :  { %s17856_s20 = scalar_lea.vmem %s13264_s28, 96  ;;  %s17860_s2 = scalar_lea.vmem %s13264_s28, 768 }
 0xa75   :  { %p17857_p10 = scmp.ne.s32.totalorder %s13264_s28, %s17856_s20  ;;  %p17861_p11 = scmp.lt.s32.totalorder %s13264_s28, %s13264_s28 }
 0xa76   :  { %p17862_p12 = scmp.lt.s32.totalorder %s17860_s2, %s17856_s20 }
 0xa78   :  { %p17863_p13 = por %p17862_p12, %p17861_p11 }
 0xa7a   :  { %p17864_p0 = pnand %p17863_p13, %p17857_p10 }
 0xa7c   :  { %17867 = shalt.err (!%p17864_p0)
}
 0xa7d   :  { %s17868_s26 = scalar_lea.hbm %s18760_s11, 96 }
 0xa7e   :  { %p17869_p1 = scmp.ne.s32.totalorder %s18760_s11, %s17868_s26  ;;  %p17872_p2 = scmp.lt.u32.totalorder %s17868_s26, %s18760_s11 }
 0xa80   :  { %p17874_p3 = pnand %p17872_p2, %p17869_p1 }
 0xa82   :  { %17877 = shalt.err (!%p17874_p3)
}
 0xa83   :  { %13269 = dma.vmem_to_hbm [thread:$0]  %s13264_s28, 96, %s18760_s11, [#allocation19], %s17908_s7, %s17908_s7, %s17909_s8  }
 0xa84   :  { %17888 = dma.done.wait [#allocation4], 768  }
 0xa85   :  { %17889 = vsyncadd [#allocation4], 4294966528 }
 0xa86   :  { %17890 = dma.done.wait [#allocation19], 768  }
 0xa87   :  { %17891 = vsyncadd [#allocation19], 4294966528 }
 0xa88   :  { %13276 = vsyncpa [#allocation3], 1 }
 0xa89   :  { %13277 = vsyncpa [#allocation6], 1 }
 0xa8a   :  { %13278 = vsyncpa [#allocation9], 1 }
 0xa8b   :  { %13279 = vsyncpa [#allocation12], 1 }
 0xa8c   :  { %13280 = vsyncpa [#allocation15], 1 }
 0xa8d   :  { %13281 = vsyncpa [#allocation4], 1 }
 0xa8e   :  { %13282 = vsyncpa [#allocation19], 1 }

</bundles_post_ra>
